<compile_context>
chip_gen: v7x
topology: tpu7x:2x2x1
jax: 0.10.0
libtpu: 0.0.40
codegen_flags: <defaults>
</compile_context>

<pallas_src>
import jax
import jax.numpy as jnp
from jax import lax
from jax.experimental import pallas as pl
from jax.experimental.pallas import tpu as pltpu

K1_W    = 25     # layer1 Conv2d(1, 40, (1, 25))
K2_H    = 10     # layer2 Conv2d(40, 40, (10, 1), bias=False)
POOL_W  = 75     # layer4 AvgPool2d((1, 75), stride 1)
K3_W    = 50     # layer5 Conv2d(40, 2, (1, 50), dilation=(1, 15))
DIL     = 15
C_MID   = 40
C_OUT   = 2
KEFF    = K1_W * K2_H      # 250: fused layer1+2 contraction depth
K5      = K3_W * C_MID     # 2000: K-stacked layer5 contraction depth
BN_EPS  = 1e-5
LOG_EPS = 1e-6


def _round_up(x, m):
    return (x + m - 1) // m * m


def _cnn_kernel(x_ref, weff_ref, bbn_ref, w3f_ref, b3_ref, out_ref,
                cols_ref, lp_ref, lpc_ref):
    B = x_ref.shape[0]
    H = x_ref.shape[2]
    T = x_ref.shape[3]
    T1 = T - K1_W + 1                 # width after fused conv
    H2 = H - K2_H + 1                 # height after fused conv
    TP = T1 - POOL_W + 1              # width after avg-pool
    TO = TP - DIL * (K3_W - 1)        # width after layer5
    T1p = cols_ref.shape[1] // B      # 128-aligned per-sample lane stride
    Lc = B * T1p                      # total slab lanes

    weff = weff_ref[...]              # (40, 250) bf16  layer1*layer2, BN scale folded
    bbn  = bbn_ref[...]               # (40, 1)   f32   fused conv bias + BN shift
    w3f  = w3f_ref[...]               # (2, 2000) f32
    b3   = b3_ref[...]                # (2, 1)    f32

    # Zero the layer-5 slab once so its padding columns stay finite (they only feed
    # output lanes the wrapper discards; under megacore the 2nd core may skip this,
    # which is harmless for correctness).
    @pl.when(pl.program_id(0) == 0)
    def _():
        lpc_ref[...] = jnp.zeros_like(lpc_ref)

    # Zero the im2col per-sample lane padding so no stale VMEM reaches the matmul
    # (keeps every downstream value finite). Cheap: (250, T1p-T1) bf16 per sample.
    if T1p > T1:
        for b in range(B):
            cols_ref[:, b * T1p + T1:(b + 1) * T1p] = jnp.zeros(
                (KEFF, T1p - T1), dtype=cols_ref.dtype)

    # TODO(synk): if H2 > 1 ever matters, lift h2 to a "parallel" grid axis.
    for h2 in range(H2):
        # ---- layers 1+2 (+BN): im2col slab via XLU rolls + one bf16 MXU matmul ----
        # cols[k*10+kh, b*T1p+t] = x[b, h2+kh, t+k]
        for b in range(B):
            xb = x_ref[b, 0, h2:h2 + K2_H, :]                         # (10, T) f32
            base = b * T1p
            for k in range(K1_W):
                sh = xb if k == 0 else pltpu.roll(xb, shift=T - k, axis=1)
                cols_ref[k * K2_H:(k + 1) * K2_H, base:base + T1] = \
                    sh[:, :T1].astype(cols_ref.dtype)
        z = jnp.dot(weff, cols_ref[...],
                    preferred_element_type=jnp.float32) + bbn          # (40, Lc) f32

        # ---- layer3: BN folded into weff/bbn; square() --------------------------
        sq = z * z

        # ---- layer4: AvgPool2d((1,75)) = 3*5*5 factorized shift-add tree --------
        # rolls land in lanes that are never consumed by valid outputs
        # (t + 74 <= T1 - 1 < T1p for every valid pooled lane t).
        a3 = sq
        for s in (1, 2):
            a3 = a3 + pltpu.roll(sq, shift=Lc - s, axis=1)             # 3-window
        a15 = a3
        for s in (3, 6, 9, 12):
            a15 = a15 + pltpu.roll(a3, shift=Lc - s, axis=1)           # 15-window
        pool = a15
        for s in (15, 30, 45, 60):
            pool = pool + pltpu.roll(a15, shift=Lc - s, axis=1)        # 75-window
        # safe_log(avg) = log(clamp(avg, min=1e-6))
        lp_ref[...] = jnp.log(jnp.maximum(pool * (1.0 / POOL_W), LOG_EPS))

        # ---- layer5: Dropout (identity) + dilated conv, K-stacked, dense packing -
        # lpc[k*40+ci, b*TO+t] = lp[ci, b*T1p + 15*k + t]   (lane-dense columns)
        for b in range(B):
            base = b * T1p
            for k in range(K3_W):
                lpc_ref[k * C_MID:(k + 1) * C_MID, b * TO:(b + 1) * TO] = \
                    lp_ref[:, base + DIL * k:base + DIL * k + TO]
        logits = jnp.dot(w3f, lpc_ref[...],
                         preferred_element_type=jnp.float32) + b3      # (2, W5)

        # ---- log_softmax over the 2 output channels; lane-dense store ------------
        m = jnp.max(logits, axis=0, keepdims=True)
        lse = m + jnp.log(jnp.sum(jnp.exp(logits - m), axis=0, keepdims=True))
        out_ref[0, h2] = logits - lse                                   # (2, W5)


def cnn_forward(x, params, block_n=None):
    (w1, b1, w2, gamma, beta, rmean, rvar, w3, b3) = params
    N, C, H, T = x.shape
    T1 = T - K1_W + 1
    H2 = H - K2_H + 1
    TP = T1 - POOL_W + 1
    TO = TP - DIL * (K3_W - 1)
    assert C == 1 and H >= K2_H and TO >= 1, "input too small for this network"

    # ---- parameter fusion (plain-JAX glue, kept in f32; only the matmul is bf16) --
    w1k = w1[:, 0, 0, :]                                     # (40, 25)    [ci, k]
    w2k = w2[:, :, :, 0]                                     # (40, 40, 10)[co, ci, kh]
    weff = jnp.einsum('oih,ik->okh', w2k, w1k).reshape(C_MID, KEFF)   # col = k*10+kh
    beff = jnp.einsum('oih,i->o', w2k, b1)                   # (40,)
    scale = gamma / jnp.sqrt(rvar + BN_EPS)
    weff_bn = (weff * scale[:, None]).astype(jnp.bfloat16)   # bf16 MXU operand
    bias_bn = (scale * (beff - rmean) + beta)[:, None].astype(jnp.float32)  # (40, 1)
    w3f = jnp.transpose(w3[:, :, 0, :], (0, 2, 1)).reshape(C_OUT, K5)  # col = k*40+ci
    b3k = b3[:, None]                                        # (2, 1)

    # ---- batching: B samples per grid step; keep grid >= 2 (and even) when possible
    if block_n is None:
        block_n = 1 if N < 4 else min(8, N // 2)
    grid_n = pl.cdiv(N, block_n)
    if grid_n > 2 and grid_n % 2 == 1:
        grid_n += 1                    # balanced megacore sharding on 2-TC chips
    N_pad = grid_n * block_n
    xp = x if N_pad == N else jnp.pad(x, ((0, N_pad - N), (0, 0), (0, 0), (0, 0)))

    T1p = _round_up(T1, 128)               # 128-aligned per-sample im2col lane stride
    W5 = _round_up(block_n * TO, 128)      # lane-dense layer-5 / output slab width

    grid_spec = pltpu.PrefetchScalarGridSpec(
        num_scalar_prefetch=0,
        grid=(grid_n,),
        in_specs=[
            pl.BlockSpec((block_n, 1, H, T), lambda n: (n, 0, 0, 0)),
            pl.BlockSpec((C_MID, KEFF), lambda n: (0, 0)),
            pl.BlockSpec((C_MID, 1), lambda n: (0, 0)),
            pl.BlockSpec((C_OUT, K5), lambda n: (0, 0)),
            pl.BlockSpec((C_OUT, 1), lambda n: (0, 0)),
        ],
        out_specs=pl.BlockSpec((1, H2, C_OUT, W5), lambda n: (n, 0, 0, 0)),
        scratch_shapes=[
            pltpu.VMEM((KEFF, block_n * T1p), jnp.bfloat16),   # fused-conv im2col slab
            pltpu.VMEM((C_MID, block_n * T1p), jnp.float32),   # safe_log(pooled)
            pltpu.VMEM((K5, W5), jnp.float32),                 # layer-5 K-stacked slab
        ],
    )

    # Scoped-VMEM budget: explicit scratch + pooling temps + double-buffered I/O,
    # clamped to [32 MiB, 48 MiB] (stays under v7x's 64 MiB physical VMEM).
    slab_f32 = C_MID * block_n * T1p * 4
    vmem_est = (KEFF * block_n * T1p * 2 + slab_f32 + K5 * W5 * 4
                + 8 * slab_f32 + 4 * block_n * H * T * 4 + (4 << 20))
    vmem_limit = int(min(48 << 20, max(32 << 20, vmem_est)))

    y = pl.pallas_call(
        _cnn_kernel,
        out_shape=jax.ShapeDtypeStruct((grid_n, H2, C_OUT, W5), jnp.float32),
        grid_spec=grid_spec,
        compiler_params=pltpu.CompilerParams(
            dimension_semantics=("parallel",),
            vmem_limit_bytes=vmem_limit),
    )(xp, weff_bn, bias_bn, w3f, b3k)

    # ---- unpack the lane-dense slab back to NCHW (N, 2, H2, TO) -------------------
    y = y[:, :, :, :block_n * TO]
    y = y.reshape(grid_n, H2, C_OUT, block_n, TO)
    y = jnp.transpose(y, (0, 3, 2, 1, 4)).reshape(N_pad, C_OUT, H2, TO)[:N]
    out2 = jnp.squeeze(y)                     # mimics np.squeeze
    out = jnp.mean(out2, axis=2)              # torch.mean(out, dim=2)
    return out, out2


def cnn_reference(x, params):
    """Pure-JAX reference of the PyTorch forward (inference mode), f32 throughout."""
    (w1, b1, w2, gamma, beta, rmean, rvar, w3, b3) = params
    dn = ('NCHW', 'OIHW', 'NCHW')
    hp = lax.Precision.HIGHEST
    y = lax.conv_general_dilated(x, w1, (1, 1), 'VALID',
                                 dimension_numbers=dn, precision=hp)
    y = y + b1[None, :, None, None]
    y = lax.conv_general_dilated(y, w2, (1, 1), 'VALID',
                                 dimension_numbers=dn, precision=hp)
    scale = gamma / jnp.sqrt(rvar + BN_EPS)
    y = (y - rmean[None, :, None, None]) * scale[None, :, None, None] \
        + beta[None, :, None, None]
    y = y * y
    y = lax.reduce_window(y, 0.0, lax.add, (1, 1, 1, POOL_W), (1, 1, 1, 1),
                          'VALID') / POOL_W
    y = jnp.log(jnp.maximum(y, LOG_EPS))
    y = lax.conv_general_dilated(y, w3, (1, 1), 'VALID', rhs_dilation=(1, DIL),
                                 dimension_numbers=dn, precision=hp)
    y = y + b3[None, :, None, None]
    y = jax.nn.log_softmax(y, axis=1)
    out2 = jnp.squeeze(y)
    out = jnp.mean(out2, axis=2)
    return out, out2


if __name__ == "__main__":
    key = jax.random.PRNGKey(0)
    ks = jax.random.split(key, 10)

    # Smallest shapes consistent with the module: layer2's (10,1) kernel spans all
    # H=10 electrodes; T must be >= 834 for a non-empty output (TO >= 1).
    N, H, T = 2, 10, 840

    w1 = 0.2 * jax.random.normal(ks[0], (C_MID, 1, 1, K1_W), jnp.float32)
    b1 = 0.1 * jax.random.normal(ks[1], (C_MID,), jnp.float32)
    w2 = 0.05 * jax.random.normal(ks[2], (C_MID, C_MID, K2_H, 1), jnp.float32)
    gamma = 1.0 + 0.1 * jax.random.normal(ks[3], (C_MID,), jnp.float32)
    beta = 0.1 * jax.random.normal(ks[4], (C_MID,), jnp.float32)
    rmean = 0.1 * jax.random.normal(ks[5], (C_MID,), jnp.float32)
    rvar = 1.0 + 0.1 * jnp.abs(jax.random.normal(ks[6], (C_MID,), jnp.float32))
    w3 = 0.02 * jax.random.normal(ks[7], (C_OUT, C_MID, 1, K3_W), jnp.float32)
    b3 = 0.1 * jax.random.normal(ks[8], (C_OUT,), jnp.float32)
    x = jax.random.normal(ks[9], (N, 1, H, T), jnp.float32)

    params = (w1, b1, w2, gamma, beta, rmean, rvar, w3, b3)

    out_k, out2_k = jax.jit(cnn_forward)(x, params)
    jax.block_until_ready((out_k, out2_k))

    out_r, out2_r = cnn_reference(x, params)
    assert out_k.shape == out_r.shape and out2_k.shape == out2_r.shape
    err = max(float(jnp.max(jnp.abs(out_k - out_r))),
              float(jnp.max(jnp.abs(out2_k - out2_r))))
    # Tolerance covers bf16 MXU inputs for the fused 250-deep contraction vs the f32
    # reference (~1% relative in intermediates); structural bugs produce O(0.3+) errors.
    if err > 8e-2:
        raise AssertionError(f"kernel/reference mismatch, max abs err = {err}")

    print("KERNEL_OK")
</pallas_src>

<mosaic_0001>
module attributes {stable_mosaic.version = 11 : i64} {
  func.func @_cnn_kernel(%arg0: i32, %arg1: memref<1x1x10x840xf32, #tpu.memory_space<vmem>>, %arg2: memref<40x250xbf16, #tpu.memory_space<vmem>>, %arg3: memref<40x1xf32, #tpu.memory_space<vmem>>, %arg4: memref<2x2000xf32, #tpu.memory_space<vmem>>, %arg5: memref<2x1xf32, #tpu.memory_space<vmem>>, %arg6: memref<1x1x2x128xf32, #tpu.memory_space<vmem>>, %arg7: memref<250x896xbf16, #tpu.memory_space<vmem>>, %arg8: memref<40x896xf32, #tpu.memory_space<vmem>>, %arg9: memref<2000x128xf32, #tpu.memory_space<vmem>>) attributes {dimension_semantics = [#tpu.dimension_semantics<parallel>], iteration_bounds = array<i64: 2>, scalar_prefetch = 0 : i64, scratch_operands = 3 : i64, tpu.core_type = #tpu.core_type<tc>, window_params = [{transform_indices = @transform_0, window_bounds = array<i64: 1, 1, 10, 840>}, {pipeline_mode = #tpu.pipeline_mode<synchronous>, transform_indices = @transform_1, window_bounds = array<i64: 40, 250>}, {pipeline_mode = #tpu.pipeline_mode<synchronous>, transform_indices = @transform_2, window_bounds = array<i64: 40, 1>}, {pipeline_mode = #tpu.pipeline_mode<synchronous>, transform_indices = @transform_3, window_bounds = array<i64: 2, 2000>}, {pipeline_mode = #tpu.pipeline_mode<synchronous>, transform_indices = @transform_4, window_bounds = array<i64: 2, 1>}, {transform_indices = @transform_5, window_bounds = array<i64: 1, 1, 2, 128>}]} {
    %c0 = arith.constant 0 : index
    %c0_0 = arith.constant 0 : index
    %0 = vector.load %arg2[%c0, %c0_0] : memref<40x250xbf16, #tpu.memory_space<vmem>>, vector<40x250xbf16>
    %c0_1 = arith.constant 0 : index
    %c0_2 = arith.constant 0 : index
    %1 = vector.load %arg3[%c0_1, %c0_2] : memref<40x1xf32, #tpu.memory_space<vmem>>, vector<40x1xf32>
    %c0_3 = arith.constant 0 : index
    %c0_4 = arith.constant 0 : index
    %2 = vector.load %arg4[%c0_3, %c0_4] : memref<2x2000xf32, #tpu.memory_space<vmem>>, vector<2x2000xf32>
    %c0_5 = arith.constant 0 : index
    %c0_6 = arith.constant 0 : index
    %3 = vector.load %arg5[%c0_5, %c0_6] : memref<2x1xf32, #tpu.memory_space<vmem>>, vector<2x1xf32>
    %c0_i32 = arith.constant 0 : i32
    %4 = arith.cmpi eq, %arg0, %c0_i32 : i32
    %5 = arith.extui %4 : i1 to i32
    %c0_i32_7 = arith.constant 0 : i32
    %6 = arith.cmpi ne, %5, %c0_i32_7 : i32
    scf.if %6 {
      %cst_176 = arith.constant 0.000000e+00 : f32
      %259 = vector.broadcast %cst_176 : f32 to vector<2000x128xf32>
      %c0_177 = arith.constant 0 : index
      %c0_178 = arith.constant 0 : index
      %260 = vector.load %arg9[%c0_177, %c0_178] : memref<2000x128xf32, #tpu.memory_space<vmem>>, vector<2000x128xf32>
      tpu.vector_store %arg9[%c0_177, %c0_178], %259 {strides = array<i32>} : memref<2000x128xf32, #tpu.memory_space<vmem>>, vector<2000x128xf32>,
    } else {
    }
    %cst = arith.constant 0.000000e+00 : bf16
    %7 = vector.broadcast %cst : bf16 to vector<250x80xbf16>
    %c0_8 = arith.constant 0 : index
    %c816 = arith.constant 816 : index
    %8 = vector.load %arg7[%c0_8, %c816] : memref<250x896xbf16, #tpu.memory_space<vmem>>, vector<250x80xbf16>
    tpu.vector_store %arg7[%c0_8, %c816], %7 {strides = array<i32>} : memref<250x896xbf16, #tpu.memory_space<vmem>>, vector<250x80xbf16>,
    %c0_9 = arith.constant 0 : index
    %c0_10 = arith.constant 0 : index
    %c0_11 = arith.constant 0 : index
    %c0_12 = arith.constant 0 : index
    %9 = vector.load %arg1[%c0_9, %c0_10, %c0_11, %c0_12] : memref<1x1x10x840xf32, #tpu.memory_space<vmem>>, vector<1x1x10x840xf32>
    %10 = vector.shape_cast %9 : vector<1x1x10x840xf32> to vector<10x840xf32>
    %11 = vector.extract_strided_slice %10 {offsets = [0, 0], sizes = [10, 816], strides = [1, 1]} : vector<10x840xf32> to vector<10x816xf32>
    %12 = arith.truncf %11 : vector<10x816xf32> to vector<10x816xbf16>
    %c0_13 = arith.constant 0 : index
    %c0_14 = arith.constant 0 : index
    %13 = vector.load %arg7[%c0_13, %c0_14] : memref<250x896xbf16, #tpu.memory_space<vmem>>, vector<10x816xbf16>
    tpu.vector_store %arg7[%c0_13, %c0_14], %12 {strides = array<i32>} : memref<250x896xbf16, #tpu.memory_space<vmem>>, vector<10x816xbf16>,
    %c839_i32 = arith.constant 839 : i32
    %14 = tpu.dynamic_rotate %10 by %c839_i32 dim 1 : vector<10x840xf32>, i32 -> vector<10x840xf32>
    %15 = vector.extract_strided_slice %14 {offsets = [0, 0], sizes = [10, 816], strides = [1, 1]} : vector<10x840xf32> to vector<10x816xf32>
    %16 = arith.truncf %15 : vector<10x816xf32> to vector<10x816xbf16>
    %c10 = arith.constant 10 : index
    %c0_15 = arith.constant 0 : index
    %17 = vector.load %arg7[%c10, %c0_15] : memref<250x896xbf16, #tpu.memory_space<vmem>>, vector<10x816xbf16>
    tpu.vector_store %arg7[%c10, %c0_15], %16 {strides = array<i32>} : memref<250x896xbf16, #tpu.memory_space<vmem>>, vector<10x816xbf16>,
    %c838_i32 = arith.constant 838 : i32
    %18 = tpu.dynamic_rotate %10 by %c838_i32 dim 1 : vector<10x840xf32>, i32 -> vector<10x840xf32>
    %19 = vector.extract_strided_slice %18 {offsets = [0, 0], sizes = [10, 816], strides = [1, 1]} : vector<10x840xf32> to vector<10x816xf32>
    %20 = arith.truncf %19 : vector<10x816xf32> to vector<10x816xbf16>
    %c20 = arith.constant 20 : index
    %c0_16 = arith.constant 0 : index
    %21 = vector.load %arg7[%c20, %c0_16] : memref<250x896xbf16, #tpu.memory_space<vmem>>, vector<10x816xbf16>
    tpu.vector_store %arg7[%c20, %c0_16], %20 {strides = array<i32>} : memref<250x896xbf16, #tpu.memory_space<vmem>>, vector<10x816xbf16>,
    %c837_i32 = arith.constant 837 : i32
    %22 = tpu.dynamic_rotate %10 by %c837_i32 dim 1 : vector<10x840xf32>, i32 -> vector<10x840xf32>
    %23 = vector.extract_strided_slice %22 {offsets = [0, 0], sizes = [10, 816], strides = [1, 1]} : vector<10x840xf32> to vector<10x816xf32>
    %24 = arith.truncf %23 : vector<10x816xf32> to vector<10x816xbf16>
    %c30 = arith.constant 30 : index
    %c0_17 = arith.constant 0 : index
    %25 = vector.load %arg7[%c30, %c0_17] : memref<250x896xbf16, #tpu.memory_space<vmem>>, vector<10x816xbf16>
    tpu.vector_store %arg7[%c30, %c0_17], %24 {strides = array<i32>} : memref<250x896xbf16, #tpu.memory_space<vmem>>, vector<10x816xbf16>,
    %c836_i32 = arith.constant 836 : i32
    %26 = tpu.dynamic_rotate %10 by %c836_i32 dim 1 : vector<10x840xf32>, i32 -> vector<10x840xf32>
    %27 = vector.extract_strided_slice %26 {offsets = [0, 0], sizes = [10, 816], strides = [1, 1]} : vector<10x840xf32> to vector<10x816xf32>
    %28 = arith.truncf %27 : vector<10x816xf32> to vector<10x816xbf16>
    %c40 = arith.constant 40 : index
    %c0_18 = arith.constant 0 : index
    %29 = vector.load %arg7[%c40, %c0_18] : memref<250x896xbf16, #tpu.memory_space<vmem>>, vector<10x816xbf16>
    tpu.vector_store %arg7[%c40, %c0_18], %28 {strides = array<i32>} : memref<250x896xbf16, #tpu.memory_space<vmem>>, vector<10x816xbf16>,
    %c835_i32 = arith.constant 835 : i32
    %30 = tpu.dynamic_rotate %10 by %c835_i32 dim 1 : vector<10x840xf32>, i32 -> vector<10x840xf32>
    %31 = vector.extract_strided_slice %30 {offsets = [0, 0], sizes = [10, 816], strides = [1, 1]} : vector<10x840xf32> to vector<10x816xf32>
    %32 = arith.truncf %31 : vector<10x816xf32> to vector<10x816xbf16>
    %c50 = arith.constant 50 : index
    %c0_19 = arith.constant 0 : index
    %33 = vector.load %arg7[%c50, %c0_19] : memref<250x896xbf16, #tpu.memory_space<vmem>>, vector<10x816xbf16>
    tpu.vector_store %arg7[%c50, %c0_19], %32 {strides = array<i32>} : memref<250x896xbf16, #tpu.memory_space<vmem>>, vector<10x816xbf16>,
    %c834_i32 = arith.constant 834 : i32
    %34 = tpu.dynamic_rotate %10 by %c834_i32 dim 1 : vector<10x840xf32>, i32 -> vector<10x840xf32>
    %35 = vector.extract_strided_slice %34 {offsets = [0, 0], sizes = [10, 816], strides = [1, 1]} : vector<10x840xf32> to vector<10x816xf32>
    %36 = arith.truncf %35 : vector<10x816xf32> to vector<10x816xbf16>
    %c60 = arith.constant 60 : index
    %c0_20 = arith.constant 0 : index
    %37 = vector.load %arg7[%c60, %c0_20] : memref<250x896xbf16, #tpu.memory_space<vmem>>, vector<10x816xbf16>
    tpu.vector_store %arg7[%c60, %c0_20], %36 {strides = array<i32>} : memref<250x896xbf16, #tpu.memory_space<vmem>>, vector<10x816xbf16>,
    %c833_i32 = arith.constant 833 : i32
    %38 = tpu.dynamic_rotate %10 by %c833_i32 dim 1 : vector<10x840xf32>, i32 -> vector<10x840xf32>
    %39 = vector.extract_strided_slice %38 {offsets = [0, 0], sizes = [10, 816], strides = [1, 1]} : vector<10x840xf32> to vector<10x816xf32>
    %40 = arith.truncf %39 : vector<10x816xf32> to vector<10x816xbf16>
    %c70 = arith.constant 70 : index
    %c0_21 = arith.constant 0 : index
    %41 = vector.load %arg7[%c70, %c0_21] : memref<250x896xbf16, #tpu.memory_space<vmem>>, vector<10x816xbf16>
    tpu.vector_store %arg7[%c70, %c0_21], %40 {strides = array<i32>} : memref<250x896xbf16, #tpu.memory_space<vmem>>, vector<10x816xbf16>,
    %c832_i32 = arith.constant 832 : i32
    %42 = tpu.dynamic_rotate %10 by %c832_i32 dim 1 : vector<10x840xf32>, i32 -> vector<10x840xf32>
    %43 = vector.extract_strided_slice %42 {offsets = [0, 0], sizes = [10, 816], strides = [1, 1]} : vector<10x840xf32> to vector<10x816xf32>
    %44 = arith.truncf %43 : vector<10x816xf32> to vector<10x816xbf16>
    %c80 = arith.constant 80 : index
    %c0_22 = arith.constant 0 : index
    %45 = vector.load %arg7[%c80, %c0_22] : memref<250x896xbf16, #tpu.memory_space<vmem>>, vector<10x816xbf16>
    tpu.vector_store %arg7[%c80, %c0_22], %44 {strides = array<i32>} : memref<250x896xbf16, #tpu.memory_space<vmem>>, vector<10x816xbf16>,
    %c831_i32 = arith.constant 831 : i32
    %46 = tpu.dynamic_rotate %10 by %c831_i32 dim 1 : vector<10x840xf32>, i32 -> vector<10x840xf32>
    %47 = vector.extract_strided_slice %46 {offsets = [0, 0], sizes = [10, 816], strides = [1, 1]} : vector<10x840xf32> to vector<10x816xf32>
    %48 = arith.truncf %47 : vector<10x816xf32> to vector<10x816xbf16>
    %c90 = arith.constant 90 : index
    %c0_23 = arith.constant 0 : index
    %49 = vector.load %arg7[%c90, %c0_23] : memref<250x896xbf16, #tpu.memory_space<vmem>>, vector<10x816xbf16>
    tpu.vector_store %arg7[%c90, %c0_23], %48 {strides = array<i32>} : memref<250x896xbf16, #tpu.memory_space<vmem>>, vector<10x816xbf16>,
    %c830_i32 = arith.constant 830 : i32
    %50 = tpu.dynamic_rotate %10 by %c830_i32 dim 1 : vector<10x840xf32>, i32 -> vector<10x840xf32>
    %51 = vector.extract_strided_slice %50 {offsets = [0, 0], sizes = [10, 816], strides = [1, 1]} : vector<10x840xf32> to vector<10x816xf32>
    %52 = arith.truncf %51 : vector<10x816xf32> to vector<10x816xbf16>
    %c100 = arith.constant 100 : index
    %c0_24 = arith.constant 0 : index
    %53 = vector.load %arg7[%c100, %c0_24] : memref<250x896xbf16, #tpu.memory_space<vmem>>, vector<10x816xbf16>
    tpu.vector_store %arg7[%c100, %c0_24], %52 {strides = array<i32>} : memref<250x896xbf16, #tpu.memory_space<vmem>>, vector<10x816xbf16>,
    %c829_i32 = arith.constant 829 : i32
    %54 = tpu.dynamic_rotate %10 by %c829_i32 dim 1 : vector<10x840xf32>, i32 -> vector<10x840xf32>
    %55 = vector.extract_strided_slice %54 {offsets = [0, 0], sizes = [10, 816], strides = [1, 1]} : vector<10x840xf32> to vector<10x816xf32>
    %56 = arith.truncf %55 : vector<10x816xf32> to vector<10x816xbf16>
    %c110 = arith.constant 110 : index
    %c0_25 = arith.constant 0 : index
    %57 = vector.load %arg7[%c110, %c0_25] : memref<250x896xbf16, #tpu.memory_space<vmem>>, vector<10x816xbf16>
    tpu.vector_store %arg7[%c110, %c0_25], %56 {strides = array<i32>} : memref<250x896xbf16, #tpu.memory_space<vmem>>, vector<10x816xbf16>,
    %c828_i32 = arith.constant 828 : i32
    %58 = tpu.dynamic_rotate %10 by %c828_i32 dim 1 : vector<10x840xf32>, i32 -> vector<10x840xf32>
    %59 = vector.extract_strided_slice %58 {offsets = [0, 0], sizes = [10, 816], strides = [1, 1]} : vector<10x840xf32> to vector<10x816xf32>
    %60 = arith.truncf %59 : vector<10x816xf32> to vector<10x816xbf16>
    %c120 = arith.constant 120 : index
    %c0_26 = arith.constant 0 : index
    %61 = vector.load %arg7[%c120, %c0_26] : memref<250x896xbf16, #tpu.memory_space<vmem>>, vector<10x816xbf16>
    tpu.vector_store %arg7[%c120, %c0_26], %60 {strides = array<i32>} : memref<250x896xbf16, #tpu.memory_space<vmem>>, vector<10x816xbf16>,
    %c827_i32 = arith.constant 827 : i32
    %62 = tpu.dynamic_rotate %10 by %c827_i32 dim 1 : vector<10x840xf32>, i32 -> vector<10x840xf32>
    %63 = vector.extract_strided_slice %62 {offsets = [0, 0], sizes = [10, 816], strides = [1, 1]} : vector<10x840xf32> to vector<10x816xf32>
    %64 = arith.truncf %63 : vector<10x816xf32> to vector<10x816xbf16>
    %c130 = arith.constant 130 : index
    %c0_27 = arith.constant 0 : index
    %65 = vector.load %arg7[%c130, %c0_27] : memref<250x896xbf16, #tpu.memory_space<vmem>>, vector<10x816xbf16>
    tpu.vector_store %arg7[%c130, %c0_27], %64 {strides = array<i32>} : memref<250x896xbf16, #tpu.memory_space<vmem>>, vector<10x816xbf16>,
    %c826_i32 = arith.constant 826 : i32
    %66 = tpu.dynamic_rotate %10 by %c826_i32 dim 1 : vector<10x840xf32>, i32 -> vector<10x840xf32>
    %67 = vector.extract_strided_slice %66 {offsets = [0, 0], sizes = [10, 816], strides = [1, 1]} : vector<10x840xf32> to vector<10x816xf32>
    %68 = arith.truncf %67 : vector<10x816xf32> to vector<10x816xbf16>
    %c140 = arith.constant 140 : index
    %c0_28 = arith.constant 0 : index
    %69 = vector.load %arg7[%c140, %c0_28] : memref<250x896xbf16, #tpu.memory_space<vmem>>, vector<10x816xbf16>
    tpu.vector_store %arg7[%c140, %c0_28], %68 {strides = array<i32>} : memref<250x896xbf16, #tpu.memory_space<vmem>>, vector<10x816xbf16>,
    %c825_i32 = arith.constant 825 : i32
    %70 = tpu.dynamic_rotate %10 by %c825_i32 dim 1 : vector<10x840xf32>, i32 -> vector<10x840xf32>
    %71 = vector.extract_strided_slice %70 {offsets = [0, 0], sizes = [10, 816], strides = [1, 1]} : vector<10x840xf32> to vector<10x816xf32>
    %72 = arith.truncf %71 : vector<10x816xf32> to vector<10x816xbf16>
    %c150 = arith.constant 150 : index
    %c0_29 = arith.constant 0 : index
    %73 = vector.load %arg7[%c150, %c0_29] : memref<250x896xbf16, #tpu.memory_space<vmem>>, vector<10x816xbf16>
    tpu.vector_store %arg7[%c150, %c0_29], %72 {strides = array<i32>} : memref<250x896xbf16, #tpu.memory_space<vmem>>, vector<10x816xbf16>,
    %c824_i32 = arith.constant 824 : i32
    %74 = tpu.dynamic_rotate %10 by %c824_i32 dim 1 : vector<10x840xf32>, i32 -> vector<10x840xf32>
    %75 = vector.extract_strided_slice %74 {offsets = [0, 0], sizes = [10, 816], strides = [1, 1]} : vector<10x840xf32> to vector<10x816xf32>
    %76 = arith.truncf %75 : vector<10x816xf32> to vector<10x816xbf16>
    %c160 = arith.constant 160 : index
    %c0_30 = arith.constant 0 : index
    %77 = vector.load %arg7[%c160, %c0_30] : memref<250x896xbf16, #tpu.memory_space<vmem>>, vector<10x816xbf16>
    tpu.vector_store %arg7[%c160, %c0_30], %76 {strides = array<i32>} : memref<250x896xbf16, #tpu.memory_space<vmem>>, vector<10x816xbf16>,
    %c823_i32 = arith.constant 823 : i32
    %78 = tpu.dynamic_rotate %10 by %c823_i32 dim 1 : vector<10x840xf32>, i32 -> vector<10x840xf32>
    %79 = vector.extract_strided_slice %78 {offsets = [0, 0], sizes = [10, 816], strides = [1, 1]} : vector<10x840xf32> to vector<10x816xf32>
    %80 = arith.truncf %79 : vector<10x816xf32> to vector<10x816xbf16>
    %c170 = arith.constant 170 : index
    %c0_31 = arith.constant 0 : index
    %81 = vector.load %arg7[%c170, %c0_31] : memref<250x896xbf16, #tpu.memory_space<vmem>>, vector<10x816xbf16>
    tpu.vector_store %arg7[%c170, %c0_31], %80 {strides = array<i32>} : memref<250x896xbf16, #tpu.memory_space<vmem>>, vector<10x816xbf16>,
    %c822_i32 = arith.constant 822 : i32
    %82 = tpu.dynamic_rotate %10 by %c822_i32 dim 1 : vector<10x840xf32>, i32 -> vector<10x840xf32>
    %83 = vector.extract_strided_slice %82 {offsets = [0, 0], sizes = [10, 816], strides = [1, 1]} : vector<10x840xf32> to vector<10x816xf32>
    %84 = arith.truncf %83 : vector<10x816xf32> to vector<10x816xbf16>
    %c180 = arith.constant 180 : index
    %c0_32 = arith.constant 0 : index
    %85 = vector.load %arg7[%c180, %c0_32] : memref<250x896xbf16, #tpu.memory_space<vmem>>, vector<10x816xbf16>
    tpu.vector_store %arg7[%c180, %c0_32], %84 {strides = array<i32>} : memref<250x896xbf16, #tpu.memory_space<vmem>>, vector<10x816xbf16>,
    %c821_i32 = arith.constant 821 : i32
    %86 = tpu.dynamic_rotate %10 by %c821_i32 dim 1 : vector<10x840xf32>, i32 -> vector<10x840xf32>
    %87 = vector.extract_strided_slice %86 {offsets = [0, 0], sizes = [10, 816], strides = [1, 1]} : vector<10x840xf32> to vector<10x816xf32>
    %88 = arith.truncf %87 : vector<10x816xf32> to vector<10x816xbf16>
    %c190 = arith.constant 190 : index
    %c0_33 = arith.constant 0 : index
    %89 = vector.load %arg7[%c190, %c0_33] : memref<250x896xbf16, #tpu.memory_space<vmem>>, vector<10x816xbf16>
    tpu.vector_store %arg7[%c190, %c0_33], %88 {strides = array<i32>} : memref<250x896xbf16, #tpu.memory_space<vmem>>, vector<10x816xbf16>,
    %c820_i32 = arith.constant 820 : i32
    %90 = tpu.dynamic_rotate %10 by %c820_i32 dim 1 : vector<10x840xf32>, i32 -> vector<10x840xf32>
    %91 = vector.extract_strided_slice %90 {offsets = [0, 0], sizes = [10, 816], strides = [1, 1]} : vector<10x840xf32> to vector<10x816xf32>
    %92 = arith.truncf %91 : vector<10x816xf32> to vector<10x816xbf16>
    %c200 = arith.constant 200 : index
    %c0_34 = arith.constant 0 : index
    %93 = vector.load %arg7[%c200, %c0_34] : memref<250x896xbf16, #tpu.memory_space<vmem>>, vector<10x816xbf16>
    tpu.vector_store %arg7[%c200, %c0_34], %92 {strides = array<i32>} : memref<250x896xbf16, #tpu.memory_space<vmem>>, vector<10x816xbf16>,
    %c819_i32 = arith.constant 819 : i32
    %94 = tpu.dynamic_rotate %10 by %c819_i32 dim 1 : vector<10x840xf32>, i32 -> vector<10x840xf32>
    %95 = vector.extract_strided_slice %94 {offsets = [0, 0], sizes = [10, 816], strides = [1, 1]} : vector<10x840xf32> to vector<10x816xf32>
    %96 = arith.truncf %95 : vector<10x816xf32> to vector<10x816xbf16>
    %c210 = arith.constant 210 : index
    %c0_35 = arith.constant 0 : index
    %97 = vector.load %arg7[%c210, %c0_35] : memref<250x896xbf16, #tpu.memory_space<vmem>>, vector<10x816xbf16>
    tpu.vector_store %arg7[%c210, %c0_35], %96 {strides = array<i32>} : memref<250x896xbf16, #tpu.memory_space<vmem>>, vector<10x816xbf16>,
    %c818_i32 = arith.constant 818 : i32
    %98 = tpu.dynamic_rotate %10 by %c818_i32 dim 1 : vector<10x840xf32>, i32 -> vector<10x840xf32>
    %99 = vector.extract_strided_slice %98 {offsets = [0, 0], sizes = [10, 816], strides = [1, 1]} : vector<10x840xf32> to vector<10x816xf32>
    %100 = arith.truncf %99 : vector<10x816xf32> to vector<10x816xbf16>
    %c220 = arith.constant 220 : index
    %c0_36 = arith.constant 0 : index
    %101 = vector.load %arg7[%c220, %c0_36] : memref<250x896xbf16, #tpu.memory_space<vmem>>, vector<10x816xbf16>
    tpu.vector_store %arg7[%c220, %c0_36], %100 {strides = array<i32>} : memref<250x896xbf16, #tpu.memory_space<vmem>>, vector<10x816xbf16>,
    %c817_i32 = arith.constant 817 : i32
    %102 = tpu.dynamic_rotate %10 by %c817_i32 dim 1 : vector<10x840xf32>, i32 -> vector<10x840xf32>
    %103 = vector.extract_strided_slice %102 {offsets = [0, 0], sizes = [10, 816], strides = [1, 1]} : vector<10x840xf32> to vector<10x816xf32>
    %104 = arith.truncf %103 : vector<10x816xf32> to vector<10x816xbf16>
    %c230 = arith.constant 230 : index
    %c0_37 = arith.constant 0 : index
    %105 = vector.load %arg7[%c230, %c0_37] : memref<250x896xbf16, #tpu.memory_space<vmem>>, vector<10x816xbf16>
    tpu.vector_store %arg7[%c230, %c0_37], %104 {strides = array<i32>} : memref<250x896xbf16, #tpu.memory_space<vmem>>, vector<10x816xbf16>,
    %c816_i32 = arith.constant 816 : i32
    %106 = tpu.dynamic_rotate %10 by %c816_i32 dim 1 : vector<10x840xf32>, i32 -> vector<10x840xf32>
    %107 = vector.extract_strided_slice %106 {offsets = [0, 0], sizes = [10, 816], strides = [1, 1]} : vector<10x840xf32> to vector<10x816xf32>
    %108 = arith.truncf %107 : vector<10x816xf32> to vector<10x816xbf16>
    %c240 = arith.constant 240 : index
    %c0_38 = arith.constant 0 : index
    %109 = vector.load %arg7[%c240, %c0_38] : memref<250x896xbf16, #tpu.memory_space<vmem>>, vector<10x816xbf16>
    tpu.vector_store %arg7[%c240, %c0_38], %108 {strides = array<i32>} : memref<250x896xbf16, #tpu.memory_space<vmem>>, vector<10x816xbf16>,
    %c0_39 = arith.constant 0 : index
    %c0_40 = arith.constant 0 : index
    %110 = vector.load %arg7[%c0_39, %c0_40] : memref<250x896xbf16, #tpu.memory_space<vmem>>, vector<250x896xbf16>
    %cst_41 = arith.constant dense<0.000000e+00> : vector<40x896xf32>
    %111 = tpu.matmul %0, %110, %cst_41 {dimension_numbers = #tpu.dot_dimension_numbers<[1], [0], [0], [1], [0, 0, 1, 1], [], []>} : vector<40x250xbf16>, vector<250x896xbf16>, vector<40x896xf32> -> vector<40x896xf32>
    %112 = vector.broadcast %1 : vector<40x1xf32> to vector<40x896xf32>
    %113 = arith.addf %111, %112 : vector<40x896xf32>
    %114 = arith.mulf %113, %113 : vector<40x896xf32>
    %c895_i32 = arith.constant 895 : i32
    %115 = tpu.dynamic_rotate %114 by %c895_i32 dim 1 : vector<40x896xf32>, i32 -> vector<40x896xf32>
    %116 = arith.addf %114, %115 : vector<40x896xf32>
    %c894_i32 = arith.constant 894 : i32
    %117 = tpu.dynamic_rotate %114 by %c894_i32 dim 1 : vector<40x896xf32>, i32 -> vector<40x896xf32>
    %118 = arith.addf %116, %117 : vector<40x896xf32>
    %c893_i32 = arith.constant 893 : i32
    %119 = tpu.dynamic_rotate %118 by %c893_i32 dim 1 : vector<40x896xf32>, i32 -> vector<40x896xf32>
    %120 = arith.addf %118, %119 : vector<40x896xf32>
    %c890_i32 = arith.constant 890 : i32
    %121 = tpu.dynamic_rotate %118 by %c890_i32 dim 1 : vector<40x896xf32>, i32 -> vector<40x896xf32>
    %122 = arith.addf %120, %121 : vector<40x896xf32>
    %c887_i32 = arith.constant 887 : i32
    %123 = tpu.dynamic_rotate %118 by %c887_i32 dim 1 : vector<40x896xf32>, i32 -> vector<40x896xf32>
    %124 = arith.addf %122, %123 : vector<40x896xf32>
    %c884_i32 = arith.constant 884 : i32
    %125 = tpu.dynamic_rotate %118 by %c884_i32 dim 1 : vector<40x896xf32>, i32 -> vector<40x896xf32>
    %126 = arith.addf %124, %125 : vector<40x896xf32>
    %c881_i32 = arith.constant 881 : i32
    %127 = tpu.dynamic_rotate %126 by %c881_i32 dim 1 : vector<40x896xf32>, i32 -> vector<40x896xf32>
    %128 = arith.addf %126, %127 : vector<40x896xf32>
    %c866_i32 = arith.constant 866 : i32
    %129 = tpu.dynamic_rotate %126 by %c866_i32 dim 1 : vector<40x896xf32>, i32 -> vector<40x896xf32>
    %130 = arith.addf %128, %129 : vector<40x896xf32>
    %c851_i32 = arith.constant 851 : i32
    %131 = tpu.dynamic_rotate %126 by %c851_i32 dim 1 : vector<40x896xf32>, i32 -> vector<40x896xf32>
    %132 = arith.addf %130, %131 : vector<40x896xf32>
    %c836_i32_42 = arith.constant 836 : i32
    %133 = tpu.dynamic_rotate %126 by %c836_i32_42 dim 1 : vector<40x896xf32>, i32 -> vector<40x896xf32>
    %134 = arith.addf %132, %133 : vector<40x896xf32>
    %cst_43 = arith.constant 0.0133333337 : f32
    %135 = vector.broadcast %cst_43 : f32 to vector<40x896xf32>
    %136 = arith.mulf %134, %135 : vector<40x896xf32>
    %cst_44 = arith.constant 9.99999997E-7 : f32
    %137 = vector.broadcast %cst_44 : f32 to vector<40x896xf32>
    %138 = arith.maximumf %136, %137 : vector<40x896xf32>
    %139 = math.log %138 : vector<40x896xf32>
    %c0_45 = arith.constant 0 : index
    %c0_46 = arith.constant 0 : index
    %140 = vector.load %arg8[%c0_45, %c0_46] : memref<40x896xf32, #tpu.memory_space<vmem>>, vector<40x896xf32>
    tpu.vector_store %arg8[%c0_45, %c0_46], %139 {strides = array<i32>} : memref<40x896xf32, #tpu.memory_space<vmem>>, vector<40x896xf32>,
    %c0_47 = arith.constant 0 : index
    %c0_48 = arith.constant 0 : index
    %141 = vector.load %arg8[%c0_47, %c0_48] : memref<40x896xf32, #tpu.memory_space<vmem>>, vector<40x7xf32>
    %c0_49 = arith.constant 0 : index
    %c0_50 = arith.constant 0 : index
    %142 = vector.load %arg9[%c0_49, %c0_50] : memref<2000x128xf32, #tpu.memory_space<vmem>>, vector<40x7xf32>
    tpu.vector_store %arg9[%c0_49, %c0_50], %141 {strides = array<i32>} : memref<2000x128xf32, #tpu.memory_space<vmem>>, vector<40x7xf32>,
    %c0_51 = arith.constant 0 : index
    %c15 = arith.constant 15 : index
    %143 = vector.load %arg8[%c0_51, %c15] : memref<40x896xf32, #tpu.memory_space<vmem>>, vector<40x7xf32>
    %c40_52 = arith.constant 40 : index
    %c0_53 = arith.constant 0 : index
    %144 = vector.load %arg9[%c40_52, %c0_53] : memref<2000x128xf32, #tpu.memory_space<vmem>>, vector<40x7xf32>
    tpu.vector_store %arg9[%c40_52, %c0_53], %143 {strides = array<i32>} : memref<2000x128xf32, #tpu.memory_space<vmem>>, vector<40x7xf32>,
    %c0_54 = arith.constant 0 : index
    %c30_55 = arith.constant 30 : index
    %145 = vector.load %arg8[%c0_54, %c30_55] : memref<40x896xf32, #tpu.memory_space<vmem>>, vector<40x7xf32>
    %c80_56 = arith.constant 80 : index
    %c0_57 = arith.constant 0 : index
    %146 = vector.load %arg9[%c80_56, %c0_57] : memref<2000x128xf32, #tpu.memory_space<vmem>>, vector<40x7xf32>
    tpu.vector_store %arg9[%c80_56, %c0_57], %145 {strides = array<i32>} : memref<2000x128xf32, #tpu.memory_space<vmem>>, vector<40x7xf32>,
    %c0_58 = arith.constant 0 : index
    %c45 = arith.constant 45 : index
    %147 = vector.load %arg8[%c0_58, %c45] : memref<40x896xf32, #tpu.memory_space<vmem>>, vector<40x7xf32>
    %c120_59 = arith.constant 120 : index
    %c0_60 = arith.constant 0 : index
    %148 = vector.load %arg9[%c120_59, %c0_60] : memref<2000x128xf32, #tpu.memory_space<vmem>>, vector<40x7xf32>
    tpu.vector_store %arg9[%c120_59, %c0_60], %147 {strides = array<i32>} : memref<2000x128xf32, #tpu.memory_space<vmem>>, vector<40x7xf32>,
    %c0_61 = arith.constant 0 : index
    %c60_62 = arith.constant 60 : index
    %149 = vector.load %arg8[%c0_61, %c60_62] : memref<40x896xf32, #tpu.memory_space<vmem>>, vector<40x7xf32>
    %c160_63 = arith.constant 160 : index
    %c0_64 = arith.constant 0 : index
    %150 = vector.load %arg9[%c160_63, %c0_64] : memref<2000x128xf32, #tpu.memory_space<vmem>>, vector<40x7xf32>
    tpu.vector_store %arg9[%c160_63, %c0_64], %149 {strides = array<i32>} : memref<2000x128xf32, #tpu.memory_space<vmem>>, vector<40x7xf32>,
    %c0_65 = arith.constant 0 : index
    %c75 = arith.constant 75 : index
    %151 = vector.load %arg8[%c0_65, %c75] : memref<40x896xf32, #tpu.memory_space<vmem>>, vector<40x7xf32>
    %c200_66 = arith.constant 200 : index
    %c0_67 = arith.constant 0 : index
    %152 = vector.load %arg9[%c200_66, %c0_67] : memref<2000x128xf32, #tpu.memory_space<vmem>>, vector<40x7xf32>
    tpu.vector_store %arg9[%c200_66, %c0_67], %151 {strides = array<i32>} : memref<2000x128xf32, #tpu.memory_space<vmem>>, vector<40x7xf32>,
    %c0_68 = arith.constant 0 : index
    %c90_69 = arith.constant 90 : index
    %153 = vector.load %arg8[%c0_68, %c90_69] : memref<40x896xf32, #tpu.memory_space<vmem>>, vector<40x7xf32>
    %c240_70 = arith.constant 240 : index
    %c0_71 = arith.constant 0 : index
    %154 = vector.load %arg9[%c240_70, %c0_71] : memref<2000x128xf32, #tpu.memory_space<vmem>>, vector<40x7xf32>
    tpu.vector_store %arg9[%c240_70, %c0_71], %153 {strides = array<i32>} : memref<2000x128xf32, #tpu.memory_space<vmem>>, vector<40x7xf32>,
    %c0_72 = arith.constant 0 : index
    %c105 = arith.constant 105 : index
    %155 = vector.load %arg8[%c0_72, %c105] : memref<40x896xf32, #tpu.memory_space<vmem>>, vector<40x7xf32>
    %c280 = arith.constant 280 : index
    %c0_73 = arith.constant 0 : index
    %156 = vector.load %arg9[%c280, %c0_73] : memref<2000x128xf32, #tpu.memory_space<vmem>>, vector<40x7xf32>
    tpu.vector_store %arg9[%c280, %c0_73], %155 {strides = array<i32>} : memref<2000x128xf32, #tpu.memory_space<vmem>>, vector<40x7xf32>,
    %c0_74 = arith.constant 0 : index
    %c120_75 = arith.constant 120 : index
    %157 = vector.load %arg8[%c0_74, %c120_75] : memref<40x896xf32, #tpu.memory_space<vmem>>, vector<40x7xf32>
    %c320 = arith.constant 320 : index
    %c0_76 = arith.constant 0 : index
    %158 = vector.load %arg9[%c320, %c0_76] : memref<2000x128xf32, #tpu.memory_space<vmem>>, vector<40x7xf32>
    tpu.vector_store %arg9[%c320, %c0_76], %157 {strides = array<i32>} : memref<2000x128xf32, #tpu.memory_space<vmem>>, vector<40x7xf32>,
    %c0_77 = arith.constant 0 : index
    %c135 = arith.constant 135 : index
    %159 = vector.load %arg8[%c0_77, %c135] : memref<40x896xf32, #tpu.memory_space<vmem>>, vector<40x7xf32>
    %c360 = arith.constant 360 : index
    %c0_78 = arith.constant 0 : index
    %160 = vector.load %arg9[%c360, %c0_78] : memref<2000x128xf32, #tpu.memory_space<vmem>>, vector<40x7xf32>
    tpu.vector_store %arg9[%c360, %c0_78], %159 {strides = array<i32>} : memref<2000x128xf32, #tpu.memory_space<vmem>>, vector<40x7xf32>,
    %c0_79 = arith.constant 0 : index
    %c150_80 = arith.constant 150 : index
    %161 = vector.load %arg8[%c0_79, %c150_80] : memref<40x896xf32, #tpu.memory_space<vmem>>, vector<40x7xf32>
    %c400 = arith.constant 400 : index
    %c0_81 = arith.constant 0 : index
    %162 = vector.load %arg9[%c400, %c0_81] : memref<2000x128xf32, #tpu.memory_space<vmem>>, vector<40x7xf32>
    tpu.vector_store %arg9[%c400, %c0_81], %161 {strides = array<i32>} : memref<2000x128xf32, #tpu.memory_space<vmem>>, vector<40x7xf32>,
    %c0_82 = arith.constant 0 : index
    %c165 = arith.constant 165 : index
    %163 = vector.load %arg8[%c0_82, %c165] : memref<40x896xf32, #tpu.memory_space<vmem>>, vector<40x7xf32>
    %c440 = arith.constant 440 : index
    %c0_83 = arith.constant 0 : index
    %164 = vector.load %arg9[%c440, %c0_83] : memref<2000x128xf32, #tpu.memory_space<vmem>>, vector<40x7xf32>
    tpu.vector_store %arg9[%c440, %c0_83], %163 {strides = array<i32>} : memref<2000x128xf32, #tpu.memory_space<vmem>>, vector<40x7xf32>,
    %c0_84 = arith.constant 0 : index
    %c180_85 = arith.constant 180 : index
    %165 = vector.load %arg8[%c0_84, %c180_85] : memref<40x896xf32, #tpu.memory_space<vmem>>, vector<40x7xf32>
    %c480 = arith.constant 480 : index
    %c0_86 = arith.constant 0 : index
    %166 = vector.load %arg9[%c480, %c0_86] : memref<2000x128xf32, #tpu.memory_space<vmem>>, vector<40x7xf32>
    tpu.vector_store %arg9[%c480, %c0_86], %165 {strides = array<i32>} : memref<2000x128xf32, #tpu.memory_space<vmem>>, vector<40x7xf32>,
    %c0_87 = arith.constant 0 : index
    %c195 = arith.constant 195 : index
    %167 = vector.load %arg8[%c0_87, %c195] : memref<40x896xf32, #tpu.memory_space<vmem>>, vector<40x7xf32>
    %c520 = arith.constant 520 : index
    %c0_88 = arith.constant 0 : index
    %168 = vector.load %arg9[%c520, %c0_88] : memref<2000x128xf32, #tpu.memory_space<vmem>>, vector<40x7xf32>
    tpu.vector_store %arg9[%c520, %c0_88], %167 {strides = array<i32>} : memref<2000x128xf32, #tpu.memory_space<vmem>>, vector<40x7xf32>,
    %c0_89 = arith.constant 0 : index
    %c210_90 = arith.constant 210 : index
    %169 = vector.load %arg8[%c0_89, %c210_90] : memref<40x896xf32, #tpu.memory_space<vmem>>, vector<40x7xf32>
    %c560 = arith.constant 560 : index
    %c0_91 = arith.constant 0 : index
    %170 = vector.load %arg9[%c560, %c0_91] : memref<2000x128xf32, #tpu.memory_space<vmem>>, vector<40x7xf32>
    tpu.vector_store %arg9[%c560, %c0_91], %169 {strides = array<i32>} : memref<2000x128xf32, #tpu.memory_space<vmem>>, vector<40x7xf32>,
    %c0_92 = arith.constant 0 : index
    %c225 = arith.constant 225 : index
    %171 = vector.load %arg8[%c0_92, %c225] : memref<40x896xf32, #tpu.memory_space<vmem>>, vector<40x7xf32>
    %c600 = arith.constant 600 : index
    %c0_93 = arith.constant 0 : index
    %172 = vector.load %arg9[%c600, %c0_93] : memref<2000x128xf32, #tpu.memory_space<vmem>>, vector<40x7xf32>
    tpu.vector_store %arg9[%c600, %c0_93], %171 {strides = array<i32>} : memref<2000x128xf32, #tpu.memory_space<vmem>>, vector<40x7xf32>,
    %c0_94 = arith.constant 0 : index
    %c240_95 = arith.constant 240 : index
    %173 = vector.load %arg8[%c0_94, %c240_95] : memref<40x896xf32, #tpu.memory_space<vmem>>, vector<40x7xf32>
    %c640 = arith.constant 640 : index
    %c0_96 = arith.constant 0 : index
    %174 = vector.load %arg9[%c640, %c0_96] : memref<2000x128xf32, #tpu.memory_space<vmem>>, vector<40x7xf32>
    tpu.vector_store %arg9[%c640, %c0_96], %173 {strides = array<i32>} : memref<2000x128xf32, #tpu.memory_space<vmem>>, vector<40x7xf32>,
    %c0_97 = arith.constant 0 : index
    %c255 = arith.constant 255 : index
    %175 = vector.load %arg8[%c0_97, %c255] : memref<40x896xf32, #tpu.memory_space<vmem>>, vector<40x7xf32>
    %c680 = arith.constant 680 : index
    %c0_98 = arith.constant 0 : index
    %176 = vector.load %arg9[%c680, %c0_98] : memref<2000x128xf32, #tpu.memory_space<vmem>>, vector<40x7xf32>
    tpu.vector_store %arg9[%c680, %c0_98], %175 {strides = array<i32>} : memref<2000x128xf32, #tpu.memory_space<vmem>>, vector<40x7xf32>,
    %c0_99 = arith.constant 0 : index
    %c270 = arith.constant 270 : index
    %177 = vector.load %arg8[%c0_99, %c270] : memref<40x896xf32, #tpu.memory_space<vmem>>, vector<40x7xf32>
    %c720 = arith.constant 720 : index
    %c0_100 = arith.constant 0 : index
    %178 = vector.load %arg9[%c720, %c0_100] : memref<2000x128xf32, #tpu.memory_space<vmem>>, vector<40x7xf32>
    tpu.vector_store %arg9[%c720, %c0_100], %177 {strides = array<i32>} : memref<2000x128xf32, #tpu.memory_space<vmem>>, vector<40x7xf32>,
    %c0_101 = arith.constant 0 : index
    %c285 = arith.constant 285 : index
    %179 = vector.load %arg8[%c0_101, %c285] : memref<40x896xf32, #tpu.memory_space<vmem>>, vector<40x7xf32>
    %c760 = arith.constant 760 : index
    %c0_102 = arith.constant 0 : index
    %180 = vector.load %arg9[%c760, %c0_102] : memref<2000x128xf32, #tpu.memory_space<vmem>>, vector<40x7xf32>
    tpu.vector_store %arg9[%c760, %c0_102], %179 {strides = array<i32>} : memref<2000x128xf32, #tpu.memory_space<vmem>>, vector<40x7xf32>,
    %c0_103 = arith.constant 0 : index
    %c300 = arith.constant 300 : index
    %181 = vector.load %arg8[%c0_103, %c300] : memref<40x896xf32, #tpu.memory_space<vmem>>, vector<40x7xf32>
    %c800 = arith.constant 800 : index
    %c0_104 = arith.constant 0 : index
    %182 = vector.load %arg9[%c800, %c0_104] : memref<2000x128xf32, #tpu.memory_space<vmem>>, vector<40x7xf32>
    tpu.vector_store %arg9[%c800, %c0_104], %181 {strides = array<i32>} : memref<2000x128xf32, #tpu.memory_space<vmem>>, vector<40x7xf32>,
    %c0_105 = arith.constant 0 : index
    %c315 = arith.constant 315 : index
    %183 = vector.load %arg8[%c0_105, %c315] : memref<40x896xf32, #tpu.memory_space<vmem>>, vector<40x7xf32>
    %c840 = arith.constant 840 : index
    %c0_106 = arith.constant 0 : index
    %184 = vector.load %arg9[%c840, %c0_106] : memref<2000x128xf32, #tpu.memory_space<vmem>>, vector<40x7xf32>
    tpu.vector_store %arg9[%c840, %c0_106], %183 {strides = array<i32>} : memref<2000x128xf32, #tpu.memory_space<vmem>>, vector<40x7xf32>,
    %c0_107 = arith.constant 0 : index
    %c330 = arith.constant 330 : index
    %185 = vector.load %arg8[%c0_107, %c330] : memref<40x896xf32, #tpu.memory_space<vmem>>, vector<40x7xf32>
    %c880 = arith.constant 880 : index
    %c0_108 = arith.constant 0 : index
    %186 = vector.load %arg9[%c880, %c0_108] : memref<2000x128xf32, #tpu.memory_space<vmem>>, vector<40x7xf32>
    tpu.vector_store %arg9[%c880, %c0_108], %185 {strides = array<i32>} : memref<2000x128xf32, #tpu.memory_space<vmem>>, vector<40x7xf32>,
    %c0_109 = arith.constant 0 : index
    %c345 = arith.constant 345 : index
    %187 = vector.load %arg8[%c0_109, %c345] : memref<40x896xf32, #tpu.memory_space<vmem>>, vector<40x7xf32>
    %c920 = arith.constant 920 : index
    %c0_110 = arith.constant 0 : index
    %188 = vector.load %arg9[%c920, %c0_110] : memref<2000x128xf32, #tpu.memory_space<vmem>>, vector<40x7xf32>
    tpu.vector_store %arg9[%c920, %c0_110], %187 {strides = array<i32>} : memref<2000x128xf32, #tpu.memory_space<vmem>>, vector<40x7xf32>,
    %c0_111 = arith.constant 0 : index
    %c360_112 = arith.constant 360 : index
    %189 = vector.load %arg8[%c0_111, %c360_112] : memref<40x896xf32, #tpu.memory_space<vmem>>, vector<40x7xf32>
    %c960 = arith.constant 960 : index
    %c0_113 = arith.constant 0 : index
    %190 = vector.load %arg9[%c960, %c0_113] : memref<2000x128xf32, #tpu.memory_space<vmem>>, vector<40x7xf32>
    tpu.vector_store %arg9[%c960, %c0_113], %189 {strides = array<i32>} : memref<2000x128xf32, #tpu.memory_space<vmem>>, vector<40x7xf32>,
    %c0_114 = arith.constant 0 : index
    %c375 = arith.constant 375 : index
    %191 = vector.load %arg8[%c0_114, %c375] : memref<40x896xf32, #tpu.memory_space<vmem>>, vector<40x7xf32>
    %c1000 = arith.constant 1000 : index
    %c0_115 = arith.constant 0 : index
    %192 = vector.load %arg9[%c1000, %c0_115] : memref<2000x128xf32, #tpu.memory_space<vmem>>, vector<40x7xf32>
    tpu.vector_store %arg9[%c1000, %c0_115], %191 {strides = array<i32>} : memref<2000x128xf32, #tpu.memory_space<vmem>>, vector<40x7xf32>,
    %c0_116 = arith.constant 0 : index
    %c390 = arith.constant 390 : index
    %193 = vector.load %arg8[%c0_116, %c390] : memref<40x896xf32, #tpu.memory_space<vmem>>, vector<40x7xf32>
    %c1040 = arith.constant 1040 : index
    %c0_117 = arith.constant 0 : index
    %194 = vector.load %arg9[%c1040, %c0_117] : memref<2000x128xf32, #tpu.memory_space<vmem>>, vector<40x7xf32>
    tpu.vector_store %arg9[%c1040, %c0_117], %193 {strides = array<i32>} : memref<2000x128xf32, #tpu.memory_space<vmem>>, vector<40x7xf32>,
    %c0_118 = arith.constant 0 : index
    %c405 = arith.constant 405 : index
    %195 = vector.load %arg8[%c0_118, %c405] : memref<40x896xf32, #tpu.memory_space<vmem>>, vector<40x7xf32>
    %c1080 = arith.constant 1080 : index
    %c0_119 = arith.constant 0 : index
    %196 = vector.load %arg9[%c1080, %c0_119] : memref<2000x128xf32, #tpu.memory_space<vmem>>, vector<40x7xf32>
    tpu.vector_store %arg9[%c1080, %c0_119], %195 {strides = array<i32>} : memref<2000x128xf32, #tpu.memory_space<vmem>>, vector<40x7xf32>,
    %c0_120 = arith.constant 0 : index
    %c420 = arith.constant 420 : index
    %197 = vector.load %arg8[%c0_120, %c420] : memref<40x896xf32, #tpu.memory_space<vmem>>, vector<40x7xf32>
    %c1120 = arith.constant 1120 : index
    %c0_121 = arith.constant 0 : index
    %198 = vector.load %arg9[%c1120, %c0_121] : memref<2000x128xf32, #tpu.memory_space<vmem>>, vector<40x7xf32>
    tpu.vector_store %arg9[%c1120, %c0_121], %197 {strides = array<i32>} : memref<2000x128xf32, #tpu.memory_space<vmem>>, vector<40x7xf32>,
    %c0_122 = arith.constant 0 : index
    %c435 = arith.constant 435 : index
    %199 = vector.load %arg8[%c0_122, %c435] : memref<40x896xf32, #tpu.memory_space<vmem>>, vector<40x7xf32>
    %c1160 = arith.constant 1160 : index
    %c0_123 = arith.constant 0 : index
    %200 = vector.load %arg9[%c1160, %c0_123] : memref<2000x128xf32, #tpu.memory_space<vmem>>, vector<40x7xf32>
    tpu.vector_store %arg9[%c1160, %c0_123], %199 {strides = array<i32>} : memref<2000x128xf32, #tpu.memory_space<vmem>>, vector<40x7xf32>,
    %c0_124 = arith.constant 0 : index
    %c450 = arith.constant 450 : index
    %201 = vector.load %arg8[%c0_124, %c450] : memref<40x896xf32, #tpu.memory_space<vmem>>, vector<40x7xf32>
    %c1200 = arith.constant 1200 : index
    %c0_125 = arith.constant 0 : index
    %202 = vector.load %arg9[%c1200, %c0_125] : memref<2000x128xf32, #tpu.memory_space<vmem>>, vector<40x7xf32>
    tpu.vector_store %arg9[%c1200, %c0_125], %201 {strides = array<i32>} : memref<2000x128xf32, #tpu.memory_space<vmem>>, vector<40x7xf32>,
    %c0_126 = arith.constant 0 : index
    %c465 = arith.constant 465 : index
    %203 = vector.load %arg8[%c0_126, %c465] : memref<40x896xf32, #tpu.memory_space<vmem>>, vector<40x7xf32>
    %c1240 = arith.constant 1240 : index
    %c0_127 = arith.constant 0 : index
    %204 = vector.load %arg9[%c1240, %c0_127] : memref<2000x128xf32, #tpu.memory_space<vmem>>, vector<40x7xf32>
    tpu.vector_store %arg9[%c1240, %c0_127], %203 {strides = array<i32>} : memref<2000x128xf32, #tpu.memory_space<vmem>>, vector<40x7xf32>,
    %c0_128 = arith.constant 0 : index
    %c480_129 = arith.constant 480 : index
    %205 = vector.load %arg8[%c0_128, %c480_129] : memref<40x896xf32, #tpu.memory_space<vmem>>, vector<40x7xf32>
    %c1280 = arith.constant 1280 : index
    %c0_130 = arith.constant 0 : index
    %206 = vector.load %arg9[%c1280, %c0_130] : memref<2000x128xf32, #tpu.memory_space<vmem>>, vector<40x7xf32>
    tpu.vector_store %arg9[%c1280, %c0_130], %205 {strides = array<i32>} : memref<2000x128xf32, #tpu.memory_space<vmem>>, vector<40x7xf32>,
    %c0_131 = arith.constant 0 : index
    %c495 = arith.constant 495 : index
    %207 = vector.load %arg8[%c0_131, %c495] : memref<40x896xf32, #tpu.memory_space<vmem>>, vector<40x7xf32>
    %c1320 = arith.constant 1320 : index
    %c0_132 = arith.constant 0 : index
    %208 = vector.load %arg9[%c1320, %c0_132] : memref<2000x128xf32, #tpu.memory_space<vmem>>, vector<40x7xf32>
    tpu.vector_store %arg9[%c1320, %c0_132], %207 {strides = array<i32>} : memref<2000x128xf32, #tpu.memory_space<vmem>>, vector<40x7xf32>,
    %c0_133 = arith.constant 0 : index
    %c510 = arith.constant 510 : index
    %209 = vector.load %arg8[%c0_133, %c510] : memref<40x896xf32, #tpu.memory_space<vmem>>, vector<40x7xf32>
    %c1360 = arith.constant 1360 : index
    %c0_134 = arith.constant 0 : index
    %210 = vector.load %arg9[%c1360, %c0_134] : memref<2000x128xf32, #tpu.memory_space<vmem>>, vector<40x7xf32>
    tpu.vector_store %arg9[%c1360, %c0_134], %209 {strides = array<i32>} : memref<2000x128xf32, #tpu.memory_space<vmem>>, vector<40x7xf32>,
    %c0_135 = arith.constant 0 : index
    %c525 = arith.constant 525 : index
    %211 = vector.load %arg8[%c0_135, %c525] : memref<40x896xf32, #tpu.memory_space<vmem>>, vector<40x7xf32>
    %c1400 = arith.constant 1400 : index
    %c0_136 = arith.constant 0 : index
    %212 = vector.load %arg9[%c1400, %c0_136] : memref<2000x128xf32, #tpu.memory_space<vmem>>, vector<40x7xf32>
    tpu.vector_store %arg9[%c1400, %c0_136], %211 {strides = array<i32>} : memref<2000x128xf32, #tpu.memory_space<vmem>>, vector<40x7xf32>,
    %c0_137 = arith.constant 0 : index
    %c540 = arith.constant 540 : index
    %213 = vector.load %arg8[%c0_137, %c540] : memref<40x896xf32, #tpu.memory_space<vmem>>, vector<40x7xf32>
    %c1440 = arith.constant 1440 : index
    %c0_138 = arith.constant 0 : index
    %214 = vector.load %arg9[%c1440, %c0_138] : memref<2000x128xf32, #tpu.memory_space<vmem>>, vector<40x7xf32>
    tpu.vector_store %arg9[%c1440, %c0_138], %213 {strides = array<i32>} : memref<2000x128xf32, #tpu.memory_space<vmem>>, vector<40x7xf32>,
    %c0_139 = arith.constant 0 : index
    %c555 = arith.constant 555 : index
    %215 = vector.load %arg8[%c0_139, %c555] : memref<40x896xf32, #tpu.memory_space<vmem>>, vector<40x7xf32>
    %c1480 = arith.constant 1480 : index
    %c0_140 = arith.constant 0 : index
    %216 = vector.load %arg9[%c1480, %c0_140] : memref<2000x128xf32, #tpu.memory_space<vmem>>, vector<40x7xf32>
    tpu.vector_store %arg9[%c1480, %c0_140], %215 {strides = array<i32>} : memref<2000x128xf32, #tpu.memory_space<vmem>>, vector<40x7xf32>,
    %c0_141 = arith.constant 0 : index
    %c570 = arith.constant 570 : index
    %217 = vector.load %arg8[%c0_141, %c570] : memref<40x896xf32, #tpu.memory_space<vmem>>, vector<40x7xf32>
    %c1520 = arith.constant 1520 : index
    %c0_142 = arith.constant 0 : index
    %218 = vector.load %arg9[%c1520, %c0_142] : memref<2000x128xf32, #tpu.memory_space<vmem>>, vector<40x7xf32>
    tpu.vector_store %arg9[%c1520, %c0_142], %217 {strides = array<i32>} : memref<2000x128xf32, #tpu.memory_space<vmem>>, vector<40x7xf32>,
    %c0_143 = arith.constant 0 : index
    %c585 = arith.constant 585 : index
    %219 = vector.load %arg8[%c0_143, %c585] : memref<40x896xf32, #tpu.memory_space<vmem>>, vector<40x7xf32>
    %c1560 = arith.constant 1560 : index
    %c0_144 = arith.constant 0 : index
    %220 = vector.load %arg9[%c1560, %c0_144] : memref<2000x128xf32, #tpu.memory_space<vmem>>, vector<40x7xf32>
    tpu.vector_store %arg9[%c1560, %c0_144], %219 {strides = array<i32>} : memref<2000x128xf32, #tpu.memory_space<vmem>>, vector<40x7xf32>,
    %c0_145 = arith.constant 0 : index
    %c600_146 = arith.constant 600 : index
    %221 = vector.load %arg8[%c0_145, %c600_146] : memref<40x896xf32, #tpu.memory_space<vmem>>, vector<40x7xf32>
    %c1600 = arith.constant 1600 : index
    %c0_147 = arith.constant 0 : index
    %222 = vector.load %arg9[%c1600, %c0_147] : memref<2000x128xf32, #tpu.memory_space<vmem>>, vector<40x7xf32>
    tpu.vector_store %arg9[%c1600, %c0_147], %221 {strides = array<i32>} : memref<2000x128xf32, #tpu.memory_space<vmem>>, vector<40x7xf32>,
    %c0_148 = arith.constant 0 : index
    %c615 = arith.constant 615 : index
    %223 = vector.load %arg8[%c0_148, %c615] : memref<40x896xf32, #tpu.memory_space<vmem>>, vector<40x7xf32>
    %c1640 = arith.constant 1640 : index
    %c0_149 = arith.constant 0 : index
    %224 = vector.load %arg9[%c1640, %c0_149] : memref<2000x128xf32, #tpu.memory_space<vmem>>, vector<40x7xf32>
    tpu.vector_store %arg9[%c1640, %c0_149], %223 {strides = array<i32>} : memref<2000x128xf32, #tpu.memory_space<vmem>>, vector<40x7xf32>,
    %c0_150 = arith.constant 0 : index
    %c630 = arith.constant 630 : index
    %225 = vector.load %arg8[%c0_150, %c630] : memref<40x896xf32, #tpu.memory_space<vmem>>, vector<40x7xf32>
    %c1680 = arith.constant 1680 : index
    %c0_151 = arith.constant 0 : index
    %226 = vector.load %arg9[%c1680, %c0_151] : memref<2000x128xf32, #tpu.memory_space<vmem>>, vector<40x7xf32>
    tpu.vector_store %arg9[%c1680, %c0_151], %225 {strides = array<i32>} : memref<2000x128xf32, #tpu.memory_space<vmem>>, vector<40x7xf32>,
    %c0_152 = arith.constant 0 : index
    %c645 = arith.constant 645 : index
    %227 = vector.load %arg8[%c0_152, %c645] : memref<40x896xf32, #tpu.memory_space<vmem>>, vector<40x7xf32>
    %c1720 = arith.constant 1720 : index
    %c0_153 = arith.constant 0 : index
    %228 = vector.load %arg9[%c1720, %c0_153] : memref<2000x128xf32, #tpu.memory_space<vmem>>, vector<40x7xf32>
    tpu.vector_store %arg9[%c1720, %c0_153], %227 {strides = array<i32>} : memref<2000x128xf32, #tpu.memory_space<vmem>>, vector<40x7xf32>,
    %c0_154 = arith.constant 0 : index
    %c660 = arith.constant 660 : index
    %229 = vector.load %arg8[%c0_154, %c660] : memref<40x896xf32, #tpu.memory_space<vmem>>, vector<40x7xf32>
    %c1760 = arith.constant 1760 : index
    %c0_155 = arith.constant 0 : index
    %230 = vector.load %arg9[%c1760, %c0_155] : memref<2000x128xf32, #tpu.memory_space<vmem>>, vector<40x7xf32>
    tpu.vector_store %arg9[%c1760, %c0_155], %229 {strides = array<i32>} : memref<2000x128xf32, #tpu.memory_space<vmem>>, vector<40x7xf32>,
    %c0_156 = arith.constant 0 : index
    %c675 = arith.constant 675 : index
    %231 = vector.load %arg8[%c0_156, %c675] : memref<40x896xf32, #tpu.memory_space<vmem>>, vector<40x7xf32>
    %c1800 = arith.constant 1800 : index
    %c0_157 = arith.constant 0 : index
    %232 = vector.load %arg9[%c1800, %c0_157] : memref<2000x128xf32, #tpu.memory_space<vmem>>, vector<40x7xf32>
    tpu.vector_store %arg9[%c1800, %c0_157], %231 {strides = array<i32>} : memref<2000x128xf32, #tpu.memory_space<vmem>>, vector<40x7xf32>,
    %c0_158 = arith.constant 0 : index
    %c690 = arith.constant 690 : index
    %233 = vector.load %arg8[%c0_158, %c690] : memref<40x896xf32, #tpu.memory_space<vmem>>, vector<40x7xf32>
    %c1840 = arith.constant 1840 : index
    %c0_159 = arith.constant 0 : index
    %234 = vector.load %arg9[%c1840, %c0_159] : memref<2000x128xf32, #tpu.memory_space<vmem>>, vector<40x7xf32>
    tpu.vector_store %arg9[%c1840, %c0_159], %233 {strides = array<i32>} : memref<2000x128xf32, #tpu.memory_space<vmem>>, vector<40x7xf32>,
    %c0_160 = arith.constant 0 : index
    %c705 = arith.constant 705 : index
    %235 = vector.load %arg8[%c0_160, %c705] : memref<40x896xf32, #tpu.memory_space<vmem>>, vector<40x7xf32>
    %c1880 = arith.constant 1880 : index
    %c0_161 = arith.constant 0 : index
    %236 = vector.load %arg9[%c1880, %c0_161] : memref<2000x128xf32, #tpu.memory_space<vmem>>, vector<40x7xf32>
    tpu.vector_store %arg9[%c1880, %c0_161], %235 {strides = array<i32>} : memref<2000x128xf32, #tpu.memory_space<vmem>>, vector<40x7xf32>,
    %c0_162 = arith.constant 0 : index
    %c720_163 = arith.constant 720 : index
    %237 = vector.load %arg8[%c0_162, %c720_163] : memref<40x896xf32, #tpu.memory_space<vmem>>, vector<40x7xf32>
    %c1920 = arith.constant 1920 : index
    %c0_164 = arith.constant 0 : index
    %238 = vector.load %arg9[%c1920, %c0_164] : memref<2000x128xf32, #tpu.memory_space<vmem>>, vector<40x7xf32>
    tpu.vector_store %arg9[%c1920, %c0_164], %237 {strides = array<i32>} : memref<2000x128xf32, #tpu.memory_space<vmem>>, vector<40x7xf32>,
    %c0_165 = arith.constant 0 : index
    %c735 = arith.constant 735 : index
    %239 = vector.load %arg8[%c0_165, %c735] : memref<40x896xf32, #tpu.memory_space<vmem>>, vector<40x7xf32>
    %c1960 = arith.constant 1960 : index
    %c0_166 = arith.constant 0 : index
    %240 = vector.load %arg9[%c1960, %c0_166] : memref<2000x128xf32, #tpu.memory_space<vmem>>, vector<40x7xf32>
    tpu.vector_store %arg9[%c1960, %c0_166], %239 {strides = array<i32>} : memref<2000x128xf32, #tpu.memory_space<vmem>>, vector<40x7xf32>,
    %c0_167 = arith.constant 0 : index
    %c0_168 = arith.constant 0 : index
    %241 = vector.load %arg9[%c0_167, %c0_168] : memref<2000x128xf32, #tpu.memory_space<vmem>>, vector<2000x128xf32>
    %cst_169 = arith.constant dense<0.000000e+00> : vector<2x128xf32>
    %242 = tpu.matmul %2, %241, %cst_169 {dimension_numbers = #tpu.dot_dimension_numbers<[1], [0], [0], [1], [0, 0, 1, 1], [], []>} : vector<2x2000xf32>, vector<2000x128xf32>, vector<2x128xf32> -> vector<2x128xf32>
    %243 = vector.broadcast %3 : vector<2x1xf32> to vector<2x128xf32>
    %244 = arith.addf %242, %243 : vector<2x128xf32>
    %cst_170 = arith.constant dense<0xFF800000> : vector<128xf32>
    %245 = vector.multi_reduction <maximumf>, %244, %cst_170 [0] : vector<2x128xf32> to vector<128xf32>
    %246 = vector.shape_cast %245 : vector<128xf32> to vector<1x128xf32>
    %247 = vector.broadcast %246 : vector<1x128xf32> to vector<2x128xf32>
    %248 = arith.subf %244, %247 : vector<2x128xf32>
    %249 = math.exp %248 : vector<2x128xf32>
    %cst_171 = arith.constant dense<0.000000e+00> : vector<128xf32>
    %250 = vector.multi_reduction <add>, %249, %cst_171 [0] : vector<2x128xf32> to vector<128xf32>
    %251 = vector.shape_cast %250 : vector<128xf32> to vector<1x128xf32>
    %252 = math.log %251 : vector<1x128xf32>
    %253 = arith.addf %246, %252 : vector<1x128xf32>
    %254 = vector.broadcast %253 : vector<1x128xf32> to vector<2x128xf32>
    %255 = arith.subf %244, %254 : vector<2x128xf32>
    %c0_172 = arith.constant 0 : index
    %c0_173 = arith.constant 0 : index
    %c0_174 = arith.constant 0 : index
    %c0_175 = arith.constant 0 : index
    %256 = vector.load %arg6[%c0_172, %c0_173, %c0_174, %c0_175] : memref<1x1x2x128xf32, #tpu.memory_space<vmem>>, vector<1x1x2x128xf32>
    %257 = vector.shape_cast %256 : vector<1x1x2x128xf32> to vector<2x128xf32>
    %258 = vector.shape_cast %255 : vector<2x128xf32> to vector<1x1x2x128xf32>
    tpu.vector_store %arg6[%c0_172, %c0_173, %c0_174, %c0_175], %258 {strides = array<i32>} : memref<1x1x2x128xf32, #tpu.memory_space<vmem>>, vector<1x1x2x128xf32>,
    return
  }
  func.func @transform_0(%arg0: i32) -> (i32, i32, i32, i32) {
    %c0_i32 = arith.constant 0 : i32
    %c0_i32_0 = arith.constant 0 : i32
    %c0_i32_1 = arith.constant 0 : i32
    %c0_i32_2 = arith.constant 0 : i32
    return %arg0, %c0_i32, %c0_i32_0, %c0_i32_1 : i32, i32, i32, i32
  }
  func.func @transform_1(%arg0: i32) -> (i32, i32) {
    %c0_i32 = arith.constant 0 : i32
    %c0_i32_0 = arith.constant 0 : i32
    %c0_i32_1 = arith.constant 0 : i32
    return %c0_i32, %c0_i32_0 : i32, i32
  }
  func.func @transform_2(%arg0: i32) -> (i32, i32) {
    %c0_i32 = arith.constant 0 : i32
    %c0_i32_0 = arith.constant 0 : i32
    %c0_i32_1 = arith.constant 0 : i32
    return %c0_i32, %c0_i32_0 : i32, i32
  }
  func.func @transform_3(%arg0: i32) -> (i32, i32) {
    %c0_i32 = arith.constant 0 : i32
    %c0_i32_0 = arith.constant 0 : i32
    %c0_i32_1 = arith.constant 0 : i32
    return %c0_i32, %c0_i32_0 : i32, i32
  }
  func.func @transform_4(%arg0: i32) -> (i32, i32) {
    %c0_i32 = arith.constant 0 : i32
    %c0_i32_0 = arith.constant 0 : i32
    %c0_i32_1 = arith.constant 0 : i32
    return %c0_i32, %c0_i32_0 : i32, i32
  }
  func.func @transform_5(%arg0: i32) -> (i32, i32, i32, i32) {
    %c0_i32 = arith.constant 0 : i32
    %c0_i32_0 = arith.constant 0 : i32
    %c0_i32_1 = arith.constant 0 : i32
    %c0_i32_2 = arith.constant 0 : i32
    return %arg0, %c0_i32, %c0_i32_0, %c0_i32_1 : i32, i32, i32, i32
  }
}

</mosaic_0001>

<bundles_post_ra>
// kernel: cnn_forward.1
= control target key start
LH: loop header
LB: loop body
LE: loop exit
PB: predicated region body
PF: predicated region fallthrough
CT: control target
= control target key end

     0   :  { %s8153_s18 = smov 0   ;;  %s13662_s0 = inlined_call_operand.vmem [shape: f32[2,1,10,840], index: 0, kind: input, shape index: {}]   ;;  %s13663_s1 = inlined_call_operand.vmem [shape: bf16[40,250], index: 1, kind: input, shape index: {}]   ;;  %s13664_s2 = inlined_call_operand.vmem [shape: f32[40,1], index: 2, kind: input, shape index: {}]   ;;  %s13665_s3 = inlined_call_operand.vmem [shape: f32[2,2000], index: 3, kind: input, shape index: {}]   ;;  %s13666_s4 = inlined_call_operand.vmem [shape: f32[2,1], index: 4, kind: input, shape index: {}]   ;;  %s13667_s5 = inlined_call_operand.vmem [shape: f32[2,1,2,128], index: 5, kind: output, shape index: {}]  }
   0x1 LB: > { %s7096_s19 = sadd.s32 4294967295, %s8052_s18   ;;  %p7100_p0 = scmp.ge.s32.totalorder %s8052_s18, 1  ;;  %s8052_s18 = sphi %s8153_s18, %s15_s18  }
   0x2   : > { %p187_p1 = scmp.lt.s32.totalorder %s8052_s18, 3 }
   0x4   : > { %p188_p2 = pnand %p7100_p0, %p187_p1 }
   0x6   : > { %191 = sbr.rel (%p188_p2) target bundleno = 2740 (0xab4), region = 40 }
   0xd   : > { %p214_p3 = scmp.lt.s32.totalorder %s7096_s19, 1  ;;  %v8164_v0 = vld [vmem:[%s13663_s1] sm:$0xff]  ;;  %v8169_v1 = vld [vmem:[%s13663_s1 + $0x8] sm:$0xff]  ;;  %v8174_v2 = vld [vmem:[%s13663_s1 + $0x10] sm:$0xff]  ;;  %p7103_p4 = scmp.ne.s32.totalorder %s7096_s19, 0 }
   0xe   : > { %13854 = vst [vmem:[#allocation5_spill] sm:$0xff] %v8164_v0  ;;  %13855 = vst [vmem:[#allocation6_spill] sm:$0xff] %v8169_v1  ;;  %v8179_v3 = vld [vmem:[%s13663_s1 + $0x18] sm:$0xff]  ;;  %v8184_v4 = vld [vmem:[%s13663_s1 + $0x20] sm:$0xff]  ;;  %v8054_v15 = vmov (!%p7103_p4), 0.0  }
   0xf   : > { %13856 = vst [vmem:[#allocation7_spill] sm:$0xff] %v8174_v2  ;;  %13857 = vst [vmem:[#allocation8_spill] sm:$0xff] %v8179_v3  ;;  %v8189_v5 = vld [vmem:[%s13664_s2] sm:$0xff]  ;;  %s215_s7 = scalar_select %p214_p3, %s7096_s19, 1  ;;  %v8194_v6 = vld [vmem:[%s13664_s2 + $0x8] sm:$0xff] }
  0x10   : > { %13858 = vst [vmem:[#allocation9_spill] sm:$0xff] %v8184_v4  ;;  %13859 = vst [vmem:[#allocation10_spill] sm:$0xff] %v8194_v6  ;;  %v8199_v7 = vld [vmem:[%s13664_s2 + $0x10] sm:$0xff]  ;;  %v8204_v8 = vld [vmem:[%s13664_s2 + $0x18] sm:$0xff]  ;;  %242 = sbr.rel (%p7103_p4) target bundleno = 146 (0x92), region = 44 }
  0x11   : > { %13860 = vst [vmem:[#allocation11_spill] sm:$0xff] %v8204_v8  ;;  %v8209_v9 = vld [vmem:[%s13664_s2 + $0x20] sm:$0xff]  ;;  %v8219_v11 = vld [vmem:[%s13665_s3 + $0x8] sm:$0xff]  ;;  %s7803_s22 = smul.u32 112, %s215_s7  ;;  %s7102_s23 = sshll.u32 %s215_s7, 1  ;;  %v8224_v12 = vld [vmem:[%s13665_s3 + $0x10] sm:$0xff] }
  0x12   : > { %13861 = vst [vmem:[#allocation12_spill] sm:$0xff] %v8209_v9  ;;  %v8214_v10 = vld [vmem:[%s13665_s3] sm:$0xff]  ;;  %13863 = vst [vmem:[#allocation14_spill] sm:$0xff] %v8219_v11  ;;  %v8229_v13 = vld [vmem:[%s13665_s3 + $0x18] sm:$0xff]  ;;  %s8239_s8 = scalar_lea.vmem %s13667_s5, %s7102_s23 }
  0x13   : > { %13862 = vst [vmem:[#allocation13_spill] sm:$0xff] %v8214_v10  ;;  %13864 = vst [vmem:[#allocation15_spill] sm:$0xff] %v8224_v12  ;;  %v8234_v14 = vld [vmem:[%s13666_s4] sm:$0x3]  ;;  %s8244_s10 = scalar_lea.vmem %s13662_s0, %s7803_s22 }
  0x14   : > { %13865 = vst [vmem:[#allocation16_spill] sm:$0xff] %v8229_v13  ;;  %13866 = vst [vmem:[#allocation17_spill] sm:$0xff] %v8234_v14 }
  0x15   : > { %243 = vst [vmem:[#allocation4] sm:$0xff] (!%p7103_p4), %v8054_v15  ;;  %244 = vst [vmem:[#allocation4 + $0x8] sm:$0xff] (!%p7103_p4), %v8054_v15 }
  0x16   : > { %245 = vst [vmem:[#allocation4 + $0x10] sm:$0xff] (!%p7103_p4), %v8054_v15  ;;  %246 = vst [vmem:[#allocation4 + $0x18] sm:$0xff] (!%p7103_p4), %v8054_v15 }
  0x17   : > { %247 = vst [vmem:[#allocation4 + $0x20] sm:$0xff] %v8054_v15  ;;  %248 = vst [vmem:[#allocation4 + $0x28] sm:$0xff] %v8054_v15 }
  0x18   : > { %249 = vst [vmem:[#allocation4 + $0x30] sm:$0xff] %v8054_v15  ;;  %250 = vst [vmem:[#allocation4 + $0x38] sm:$0xff] %v8054_v15 }
  0x19   : > { %251 = vst [vmem:[#allocation4 + $0x40] sm:$0xff] %v8054_v15  ;;  %252 = vst [vmem:[#allocation4 + $0x48] sm:$0xff] %v8054_v15 }
  0x1a   : > { %253 = vst [vmem:[#allocation4 + $0x50] sm:$0xff] %v8054_v15  ;;  %254 = vst [vmem:[#allocation4 + $0x58] sm:$0xff] %v8054_v15 }
  0x1b   : > { %255 = vst [vmem:[#allocation4 + $0x60] sm:$0xff] %v8054_v15  ;;  %256 = vst [vmem:[#allocation4 + $0x68] sm:$0xff] %v8054_v15 }
  0x1c   : > { %257 = vst [vmem:[#allocation4 + $0x70] sm:$0xff] %v8054_v15  ;;  %258 = vst [vmem:[#allocation4 + $0x78] sm:$0xff] %v8054_v15 }
  0x1d   : > { %259 = vst [vmem:[#allocation4 + $0x80] sm:$0xff] %v8054_v15  ;;  %260 = vst [vmem:[#allocation4 + $0x88] sm:$0xff] %v8054_v15 }
  0x1e   : > { %261 = vst [vmem:[#allocation4 + $0x90] sm:$0xff] %v8054_v15  ;;  %262 = vst [vmem:[#allocation4 + $0x98] sm:$0xff] %v8054_v15 }
  0x1f   : > { %263 = vst [vmem:[#allocation4 + $0xa0] sm:$0xff] %v8054_v15  ;;  %264 = vst [vmem:[#allocation4 + $0xa8] sm:$0xff] %v8054_v15 }
  0x20   : > { %265 = vst [vmem:[#allocation4 + $0xb0] sm:$0xff] %v8054_v15  ;;  %266 = vst [vmem:[#allocation4 + $0xb8] sm:$0xff] %v8054_v15 }
  0x21   : > { %267 = vst [vmem:[#allocation4 + $0xc0] sm:$0xff] %v8054_v15  ;;  %268 = vst [vmem:[#allocation4 + $0xc8] sm:$0xff] %v8054_v15 }
  0x22   : > { %269 = vst [vmem:[#allocation4 + $0xd0] sm:$0xff] %v8054_v15  ;;  %270 = vst [vmem:[#allocation4 + $0xd8] sm:$0xff] %v8054_v15 }
  0x23   : > { %271 = vst [vmem:[#allocation4 + $0xe0] sm:$0xff] %v8054_v15  ;;  %272 = vst [vmem:[#allocation4 + $0xe8] sm:$0xff] %v8054_v15 }
  0x24   : > { %273 = vst [vmem:[#allocation4 + $0xf0] sm:$0xff] %v8054_v15  ;;  %274 = vst [vmem:[#allocation4 + $0xf8] sm:$0xff] %v8054_v15 }
  0x25   : > { %275 = vst [vmem:[#allocation4 + $0x100] sm:$0xff] %v8054_v15  ;;  %276 = vst [vmem:[#allocation4 + $0x108] sm:$0xff] %v8054_v15 }
  0x26   : > { %277 = vst [vmem:[#allocation4 + $0x110] sm:$0xff] %v8054_v15  ;;  %278 = vst [vmem:[#allocation4 + $0x118] sm:$0xff] %v8054_v15 }
  0x27   : > { %279 = vst [vmem:[#allocation4 + $0x120] sm:$0xff] %v8054_v15  ;;  %280 = vst [vmem:[#allocation4 + $0x128] sm:$0xff] %v8054_v15 }
  0x28   : > { %281 = vst [vmem:[#allocation4 + $0x130] sm:$0xff] %v8054_v15  ;;  %282 = vst [vmem:[#allocation4 + $0x138] sm:$0xff] %v8054_v15 }
  0x29   : > { %283 = vst [vmem:[#allocation4 + $0x140] sm:$0xff] %v8054_v15  ;;  %284 = vst [vmem:[#allocation4 + $0x148] sm:$0xff] %v8054_v15 }
  0x2a   : > { %285 = vst [vmem:[#allocation4 + $0x150] sm:$0xff] %v8054_v15  ;;  %286 = vst [vmem:[#allocation4 + $0x158] sm:$0xff] %v8054_v15 }
  0x2b   : > { %287 = vst [vmem:[#allocation4 + $0x160] sm:$0xff] %v8054_v15  ;;  %288 = vst [vmem:[#allocation4 + $0x168] sm:$0xff] %v8054_v15 }
  0x2c   : > { %289 = vst [vmem:[#allocation4 + $0x170] sm:$0xff] %v8054_v15  ;;  %290 = vst [vmem:[#allocation4 + $0x178] sm:$0xff] %v8054_v15 }
  0x2d   : > { %291 = vst [vmem:[#allocation4 + $0x180] sm:$0xff] %v8054_v15  ;;  %292 = vst [vmem:[#allocation4 + $0x188] sm:$0xff] %v8054_v15 }
  0x2e   : > { %293 = vst [vmem:[#allocation4 + $0x190] sm:$0xff] %v8054_v15  ;;  %294 = vst [vmem:[#allocation4 + $0x198] sm:$0xff] %v8054_v15 }
  0x2f   : > { %295 = vst [vmem:[#allocation4 + $0x1a0] sm:$0xff] %v8054_v15  ;;  %296 = vst [vmem:[#allocation4 + $0x1a8] sm:$0xff] %v8054_v15 }
  0x30   : > { %297 = vst [vmem:[#allocation4 + $0x1b0] sm:$0xff] %v8054_v15  ;;  %298 = vst [vmem:[#allocation4 + $0x1b8] sm:$0xff] %v8054_v15 }
  0x31   : > { %299 = vst [vmem:[#allocation4 + $0x1c0] sm:$0xff] %v8054_v15  ;;  %300 = vst [vmem:[#allocation4 + $0x1c8] sm:$0xff] %v8054_v15 }
  0x32   : > { %301 = vst [vmem:[#allocation4 + $0x1d0] sm:$0xff] %v8054_v15  ;;  %302 = vst [vmem:[#allocation4 + $0x1d8] sm:$0xff] %v8054_v15 }
  0x33   : > { %303 = vst [vmem:[#allocation4 + $0x1e0] sm:$0xff] %v8054_v15  ;;  %304 = vst [vmem:[#allocation4 + $0x1e8] sm:$0xff] %v8054_v15 }
  0x34   : > { %305 = vst [vmem:[#allocation4 + $0x1f0] sm:$0xff] %v8054_v15  ;;  %306 = vst [vmem:[#allocation4 + $0x1f8] sm:$0xff] %v8054_v15 }
  0x35   : > { %307 = vst [vmem:[#allocation4 + $0x200] sm:$0xff] %v8054_v15  ;;  %308 = vst [vmem:[#allocation4 + $0x208] sm:$0xff] %v8054_v15 }
  0x36   : > { %309 = vst [vmem:[#allocation4 + $0x210] sm:$0xff] %v8054_v15  ;;  %310 = vst [vmem:[#allocation4 + $0x218] sm:$0xff] %v8054_v15 }
  0x37   : > { %311 = vst [vmem:[#allocation4 + $0x220] sm:$0xff] %v8054_v15  ;;  %312 = vst [vmem:[#allocation4 + $0x228] sm:$0xff] %v8054_v15 }
  0x38   : > { %313 = vst [vmem:[#allocation4 + $0x230] sm:$0xff] %v8054_v15  ;;  %314 = vst [vmem:[#allocation4 + $0x238] sm:$0xff] %v8054_v15 }
  0x39   : > { %315 = vst [vmem:[#allocation4 + $0x240] sm:$0xff] %v8054_v15  ;;  %316 = vst [vmem:[#allocation4 + $0x248] sm:$0xff] %v8054_v15 }
  0x3a   : > { %317 = vst [vmem:[#allocation4 + $0x250] sm:$0xff] %v8054_v15  ;;  %318 = vst [vmem:[#allocation4 + $0x258] sm:$0xff] %v8054_v15 }
  0x3b   : > { %319 = vst [vmem:[#allocation4 + $0x260] sm:$0xff] %v8054_v15  ;;  %320 = vst [vmem:[#allocation4 + $0x268] sm:$0xff] %v8054_v15 }
  0x3c   : > { %321 = vst [vmem:[#allocation4 + $0x270] sm:$0xff] %v8054_v15  ;;  %322 = vst [vmem:[#allocation4 + $0x278] sm:$0xff] %v8054_v15 }
  0x3d   : > { %323 = vst [vmem:[#allocation4 + $0x280] sm:$0xff] %v8054_v15  ;;  %324 = vst [vmem:[#allocation4 + $0x288] sm:$0xff] %v8054_v15 }
  0x3e   : > { %325 = vst [vmem:[#allocation4 + $0x290] sm:$0xff] %v8054_v15  ;;  %326 = vst [vmem:[#allocation4 + $0x298] sm:$0xff] %v8054_v15 }
  0x3f   : > { %327 = vst [vmem:[#allocation4 + $0x2a0] sm:$0xff] %v8054_v15  ;;  %328 = vst [vmem:[#allocation4 + $0x2a8] sm:$0xff] %v8054_v15 }
  0x40   : > { %329 = vst [vmem:[#allocation4 + $0x2b0] sm:$0xff] %v8054_v15  ;;  %330 = vst [vmem:[#allocation4 + $0x2b8] sm:$0xff] %v8054_v15 }
  0x41   : > { %331 = vst [vmem:[#allocation4 + $0x2c0] sm:$0xff] %v8054_v15  ;;  %332 = vst [vmem:[#allocation4 + $0x2c8] sm:$0xff] %v8054_v15 }
  0x42   : > { %333 = vst [vmem:[#allocation4 + $0x2d0] sm:$0xff] %v8054_v15  ;;  %334 = vst [vmem:[#allocation4 + $0x2d8] sm:$0xff] %v8054_v15 }
  0x43   : > { %335 = vst [vmem:[#allocation4 + $0x2e0] sm:$0xff] %v8054_v15  ;;  %336 = vst [vmem:[#allocation4 + $0x2e8] sm:$0xff] %v8054_v15 }
  0x44   : > { %337 = vst [vmem:[#allocation4 + $0x2f0] sm:$0xff] %v8054_v15  ;;  %338 = vst [vmem:[#allocation4 + $0x2f8] sm:$0xff] %v8054_v15 }
  0x45   : > { %339 = vst [vmem:[#allocation4 + $0x300] sm:$0xff] %v8054_v15  ;;  %340 = vst [vmem:[#allocation4 + $0x308] sm:$0xff] %v8054_v15 }
  0x46   : > { %341 = vst [vmem:[#allocation4 + $0x310] sm:$0xff] %v8054_v15  ;;  %342 = vst [vmem:[#allocation4 + $0x318] sm:$0xff] %v8054_v15 }
  0x47   : > { %343 = vst [vmem:[#allocation4 + $0x320] sm:$0xff] %v8054_v15  ;;  %344 = vst [vmem:[#allocation4 + $0x328] sm:$0xff] %v8054_v15 }
  0x48   : > { %345 = vst [vmem:[#allocation4 + $0x330] sm:$0xff] %v8054_v15  ;;  %346 = vst [vmem:[#allocation4 + $0x338] sm:$0xff] %v8054_v15 }
  0x49   : > { %347 = vst [vmem:[#allocation4 + $0x340] sm:$0xff] %v8054_v15  ;;  %348 = vst [vmem:[#allocation4 + $0x348] sm:$0xff] %v8054_v15 }
  0x4a   : > { %349 = vst [vmem:[#allocation4 + $0x350] sm:$0xff] %v8054_v15  ;;  %350 = vst [vmem:[#allocation4 + $0x358] sm:$0xff] %v8054_v15 }
  0x4b   : > { %351 = vst [vmem:[#allocation4 + $0x360] sm:$0xff] %v8054_v15  ;;  %352 = vst [vmem:[#allocation4 + $0x368] sm:$0xff] %v8054_v15 }
  0x4c   : > { %353 = vst [vmem:[#allocation4 + $0x370] sm:$0xff] %v8054_v15  ;;  %354 = vst [vmem:[#allocation4 + $0x378] sm:$0xff] %v8054_v15 }
  0x4d   : > { %355 = vst [vmem:[#allocation4 + $0x380] sm:$0xff] %v8054_v15  ;;  %356 = vst [vmem:[#allocation4 + $0x388] sm:$0xff] %v8054_v15 }
  0x4e   : > { %357 = vst [vmem:[#allocation4 + $0x390] sm:$0xff] %v8054_v15  ;;  %358 = vst [vmem:[#allocation4 + $0x398] sm:$0xff] %v8054_v15 }
  0x4f   : > { %359 = vst [vmem:[#allocation4 + $0x3a0] sm:$0xff] %v8054_v15  ;;  %360 = vst [vmem:[#allocation4 + $0x3a8] sm:$0xff] %v8054_v15 }
  0x50   : > { %361 = vst [vmem:[#allocation4 + $0x3b0] sm:$0xff] %v8054_v15  ;;  %362 = vst [vmem:[#allocation4 + $0x3b8] sm:$0xff] %v8054_v15 }
  0x51   : > { %363 = vst [vmem:[#allocation4 + $0x3c0] sm:$0xff] %v8054_v15  ;;  %364 = vst [vmem:[#allocation4 + $0x3c8] sm:$0xff] %v8054_v15 }
  0x52   : > { %365 = vst [vmem:[#allocation4 + $0x3d0] sm:$0xff] %v8054_v15  ;;  %366 = vst [vmem:[#allocation4 + $0x3d8] sm:$0xff] %v8054_v15 }
  0x53   : > { %367 = vst [vmem:[#allocation4 + $0x3e0] sm:$0xff] %v8054_v15  ;;  %368 = vst [vmem:[#allocation4 + $0x3e8] sm:$0xff] %v8054_v15 }
  0x54   : > { %369 = vst [vmem:[#allocation4 + $0x3f0] sm:$0xff] %v8054_v15  ;;  %370 = vst [vmem:[#allocation4 + $0x3f8] sm:$0xff] %v8054_v15 }
  0x55   : > { %371 = vst [vmem:[#allocation4 + $0x400] sm:$0xff] %v8054_v15  ;;  %372 = vst [vmem:[#allocation4 + $0x408] sm:$0xff] %v8054_v15 }
  0x56   : > { %373 = vst [vmem:[#allocation4 + $0x410] sm:$0xff] %v8054_v15  ;;  %374 = vst [vmem:[#allocation4 + $0x418] sm:$0xff] %v8054_v15 }
  0x57   : > { %375 = vst [vmem:[#allocation4 + $0x420] sm:$0xff] %v8054_v15  ;;  %376 = vst [vmem:[#allocation4 + $0x428] sm:$0xff] %v8054_v15 }
  0x58   : > { %377 = vst [vmem:[#allocation4 + $0x430] sm:$0xff] %v8054_v15  ;;  %378 = vst [vmem:[#allocation4 + $0x438] sm:$0xff] %v8054_v15 }
  0x59   : > { %379 = vst [vmem:[#allocation4 + $0x440] sm:$0xff] %v8054_v15  ;;  %380 = vst [vmem:[#allocation4 + $0x448] sm:$0xff] %v8054_v15 }
  0x5a   : > { %381 = vst [vmem:[#allocation4 + $0x450] sm:$0xff] %v8054_v15  ;;  %382 = vst [vmem:[#allocation4 + $0x458] sm:$0xff] %v8054_v15 }
  0x5b   : > { %383 = vst [vmem:[#allocation4 + $0x460] sm:$0xff] %v8054_v15  ;;  %384 = vst [vmem:[#allocation4 + $0x468] sm:$0xff] %v8054_v15 }
  0x5c   : > { %385 = vst [vmem:[#allocation4 + $0x470] sm:$0xff] %v8054_v15  ;;  %386 = vst [vmem:[#allocation4 + $0x478] sm:$0xff] %v8054_v15 }
  0x5d   : > { %387 = vst [vmem:[#allocation4 + $0x480] sm:$0xff] %v8054_v15  ;;  %388 = vst [vmem:[#allocation4 + $0x488] sm:$0xff] %v8054_v15 }
  0x5e   : > { %389 = vst [vmem:[#allocation4 + $0x490] sm:$0xff] %v8054_v15  ;;  %390 = vst [vmem:[#allocation4 + $0x498] sm:$0xff] %v8054_v15 }
  0x5f   : > { %391 = vst [vmem:[#allocation4 + $0x4a0] sm:$0xff] %v8054_v15  ;;  %392 = vst [vmem:[#allocation4 + $0x4a8] sm:$0xff] %v8054_v15 }
  0x60   : > { %393 = vst [vmem:[#allocation4 + $0x4b0] sm:$0xff] %v8054_v15  ;;  %394 = vst [vmem:[#allocation4 + $0x4b8] sm:$0xff] %v8054_v15 }
  0x61   : > { %395 = vst [vmem:[#allocation4 + $0x4c0] sm:$0xff] %v8054_v15  ;;  %396 = vst [vmem:[#allocation4 + $0x4c8] sm:$0xff] %v8054_v15 }
  0x62   : > { %397 = vst [vmem:[#allocation4 + $0x4d0] sm:$0xff] %v8054_v15  ;;  %398 = vst [vmem:[#allocation4 + $0x4d8] sm:$0xff] %v8054_v15 }
  0x63   : > { %399 = vst [vmem:[#allocation4 + $0x4e0] sm:$0xff] %v8054_v15  ;;  %400 = vst [vmem:[#allocation4 + $0x4e8] sm:$0xff] %v8054_v15 }
  0x64   : > { %401 = vst [vmem:[#allocation4 + $0x4f0] sm:$0xff] %v8054_v15  ;;  %402 = vst [vmem:[#allocation4 + $0x4f8] sm:$0xff] %v8054_v15 }
  0x65   : > { %403 = vst [vmem:[#allocation4 + $0x500] sm:$0xff] %v8054_v15  ;;  %404 = vst [vmem:[#allocation4 + $0x508] sm:$0xff] %v8054_v15 }
  0x66   : > { %405 = vst [vmem:[#allocation4 + $0x510] sm:$0xff] %v8054_v15  ;;  %406 = vst [vmem:[#allocation4 + $0x518] sm:$0xff] %v8054_v15 }
  0x67   : > { %407 = vst [vmem:[#allocation4 + $0x520] sm:$0xff] %v8054_v15  ;;  %408 = vst [vmem:[#allocation4 + $0x528] sm:$0xff] %v8054_v15 }
  0x68   : > { %409 = vst [vmem:[#allocation4 + $0x530] sm:$0xff] %v8054_v15  ;;  %410 = vst [vmem:[#allocation4 + $0x538] sm:$0xff] %v8054_v15 }
  0x69   : > { %411 = vst [vmem:[#allocation4 + $0x540] sm:$0xff] %v8054_v15  ;;  %412 = vst [vmem:[#allocation4 + $0x548] sm:$0xff] %v8054_v15 }
  0x6a   : > { %413 = vst [vmem:[#allocation4 + $0x550] sm:$0xff] %v8054_v15  ;;  %414 = vst [vmem:[#allocation4 + $0x558] sm:$0xff] %v8054_v15 }
  0x6b   : > { %415 = vst [vmem:[#allocation4 + $0x560] sm:$0xff] %v8054_v15  ;;  %416 = vst [vmem:[#allocation4 + $0x568] sm:$0xff] %v8054_v15 }
  0x6c   : > { %417 = vst [vmem:[#allocation4 + $0x570] sm:$0xff] %v8054_v15  ;;  %418 = vst [vmem:[#allocation4 + $0x578] sm:$0xff] %v8054_v15 }
  0x6d   : > { %419 = vst [vmem:[#allocation4 + $0x580] sm:$0xff] %v8054_v15  ;;  %420 = vst [vmem:[#allocation4 + $0x588] sm:$0xff] %v8054_v15 }
  0x6e   : > { %421 = vst [vmem:[#allocation4 + $0x590] sm:$0xff] %v8054_v15  ;;  %422 = vst [vmem:[#allocation4 + $0x598] sm:$0xff] %v8054_v15 }
  0x6f   : > { %423 = vst [vmem:[#allocation4 + $0x5a0] sm:$0xff] %v8054_v15  ;;  %424 = vst [vmem:[#allocation4 + $0x5a8] sm:$0xff] %v8054_v15 }
  0x70   : > { %425 = vst [vmem:[#allocation4 + $0x5b0] sm:$0xff] %v8054_v15  ;;  %426 = vst [vmem:[#allocation4 + $0x5b8] sm:$0xff] %v8054_v15 }
  0x71   : > { %427 = vst [vmem:[#allocation4 + $0x5c0] sm:$0xff] %v8054_v15  ;;  %428 = vst [vmem:[#allocation4 + $0x5c8] sm:$0xff] %v8054_v15 }
  0x72   : > { %429 = vst [vmem:[#allocation4 + $0x5d0] sm:$0xff] %v8054_v15  ;;  %430 = vst [vmem:[#allocation4 + $0x5d8] sm:$0xff] %v8054_v15 }
  0x73   : > { %431 = vst [vmem:[#allocation4 + $0x5e0] sm:$0xff] %v8054_v15  ;;  %432 = vst [vmem:[#allocation4 + $0x5e8] sm:$0xff] %v8054_v15 }
  0x74   : > { %433 = vst [vmem:[#allocation4 + $0x5f0] sm:$0xff] %v8054_v15  ;;  %434 = vst [vmem:[#allocation4 + $0x5f8] sm:$0xff] %v8054_v15 }
  0x75   : > { %435 = vst [vmem:[#allocation4 + $0x600] sm:$0xff] %v8054_v15  ;;  %436 = vst [vmem:[#allocation4 + $0x608] sm:$0xff] %v8054_v15 }
  0x76   : > { %437 = vst [vmem:[#allocation4 + $0x610] sm:$0xff] %v8054_v15  ;;  %438 = vst [vmem:[#allocation4 + $0x618] sm:$0xff] %v8054_v15 }
  0x77   : > { %439 = vst [vmem:[#allocation4 + $0x620] sm:$0xff] %v8054_v15  ;;  %440 = vst [vmem:[#allocation4 + $0x628] sm:$0xff] %v8054_v15 }
  0x78   : > { %441 = vst [vmem:[#allocation4 + $0x630] sm:$0xff] %v8054_v15  ;;  %442 = vst [vmem:[#allocation4 + $0x638] sm:$0xff] %v8054_v15 }
  0x79   : > { %443 = vst [vmem:[#allocation4 + $0x640] sm:$0xff] %v8054_v15  ;;  %444 = vst [vmem:[#allocation4 + $0x648] sm:$0xff] %v8054_v15 }
  0x7a   : > { %445 = vst [vmem:[#allocation4 + $0x650] sm:$0xff] %v8054_v15  ;;  %446 = vst [vmem:[#allocation4 + $0x658] sm:$0xff] %v8054_v15 }
  0x7b   : > { %447 = vst [vmem:[#allocation4 + $0x660] sm:$0xff] %v8054_v15  ;;  %448 = vst [vmem:[#allocation4 + $0x668] sm:$0xff] %v8054_v15 }
  0x7c   : > { %449 = vst [vmem:[#allocation4 + $0x670] sm:$0xff] %v8054_v15  ;;  %450 = vst [vmem:[#allocation4 + $0x678] sm:$0xff] %v8054_v15 }
  0x7d   : > { %451 = vst [vmem:[#allocation4 + $0x680] sm:$0xff] %v8054_v15  ;;  %452 = vst [vmem:[#allocation4 + $0x688] sm:$0xff] %v8054_v15 }
  0x7e   : > { %453 = vst [vmem:[#allocation4 + $0x690] sm:$0xff] %v8054_v15  ;;  %454 = vst [vmem:[#allocation4 + $0x698] sm:$0xff] %v8054_v15 }
  0x7f   : > { %455 = vst [vmem:[#allocation4 + $0x6a0] sm:$0xff] %v8054_v15  ;;  %456 = vst [vmem:[#allocation4 + $0x6a8] sm:$0xff] %v8054_v15 }
  0x80   : > { %457 = vst [vmem:[#allocation4 + $0x6b0] sm:$0xff] %v8054_v15  ;;  %458 = vst [vmem:[#allocation4 + $0x6b8] sm:$0xff] %v8054_v15 }
  0x81   : > { %459 = vst [vmem:[#allocation4 + $0x6c0] sm:$0xff] %v8054_v15  ;;  %460 = vst [vmem:[#allocation4 + $0x6c8] sm:$0xff] %v8054_v15 }
  0x82   : > { %461 = vst [vmem:[#allocation4 + $0x6d0] sm:$0xff] %v8054_v15  ;;  %462 = vst [vmem:[#allocation4 + $0x6d8] sm:$0xff] %v8054_v15 }
  0x83   : > { %463 = vst [vmem:[#allocation4 + $0x6e0] sm:$0xff] %v8054_v15  ;;  %464 = vst [vmem:[#allocation4 + $0x6e8] sm:$0xff] %v8054_v15 }
  0x84   : > { %465 = vst [vmem:[#allocation4 + $0x6f0] sm:$0xff] %v8054_v15  ;;  %466 = vst [vmem:[#allocation4 + $0x6f8] sm:$0xff] %v8054_v15 }
  0x85   : > { %467 = vst [vmem:[#allocation4 + $0x700] sm:$0xff] %v8054_v15  ;;  %468 = vst [vmem:[#allocation4 + $0x708] sm:$0xff] %v8054_v15 }
  0x86   : > { %469 = vst [vmem:[#allocation4 + $0x710] sm:$0xff] %v8054_v15  ;;  %470 = vst [vmem:[#allocation4 + $0x718] sm:$0xff] %v8054_v15 }
  0x87   : > { %471 = vst [vmem:[#allocation4 + $0x720] sm:$0xff] %v8054_v15  ;;  %472 = vst [vmem:[#allocation4 + $0x728] sm:$0xff] %v8054_v15 }
  0x88   : > { %473 = vst [vmem:[#allocation4 + $0x730] sm:$0xff] %v8054_v15  ;;  %474 = vst [vmem:[#allocation4 + $0x738] sm:$0xff] %v8054_v15 }
  0x89   : > { %475 = vst [vmem:[#allocation4 + $0x740] sm:$0xff] %v8054_v15  ;;  %476 = vst [vmem:[#allocation4 + $0x748] sm:$0xff] %v8054_v15 }
  0x8a   : > { %477 = vst [vmem:[#allocation4 + $0x750] sm:$0xff] %v8054_v15  ;;  %478 = vst [vmem:[#allocation4 + $0x758] sm:$0xff] %v8054_v15 }
  0x8b   : > { %479 = vst [vmem:[#allocation4 + $0x760] sm:$0xff] %v8054_v15  ;;  %480 = vst [vmem:[#allocation4 + $0x768] sm:$0xff] %v8054_v15 }
  0x8c   : > { %481 = vst [vmem:[#allocation4 + $0x770] sm:$0xff] %v8054_v15  ;;  %482 = vst [vmem:[#allocation4 + $0x778] sm:$0xff] %v8054_v15 }
  0x8d   : > { %483 = vst [vmem:[#allocation4 + $0x780] sm:$0xff] %v8054_v15  ;;  %484 = vst [vmem:[#allocation4 + $0x788] sm:$0xff] %v8054_v15 }
  0x8e   : > { %485 = vst [vmem:[#allocation4 + $0x790] sm:$0xff] %v8054_v15  ;;  %486 = vst [vmem:[#allocation4 + $0x798] sm:$0xff] %v8054_v15 }
  0x8f   : > { %487 = vst [vmem:[#allocation4 + $0x7a0] sm:$0xff] %v8054_v15  ;;  %488 = vst [vmem:[#allocation4 + $0x7a8] sm:$0xff] %v8054_v15 }
  0x90   : > { %489 = vst [vmem:[#allocation4 + $0x7b0] sm:$0xff] %v8054_v15  ;;  %490 = vst [vmem:[#allocation4 + $0x7b8] sm:$0xff] %v8054_v15 }
  0x91   : > { %491 = vst [vmem:[#allocation4 + $0x7c0] sm:$0xff] %v8054_v15  ;;  %492 = vst [vmem:[#allocation4 + $0x7c8] sm:$0xff] %v8054_v15 }
  0x92 PF: > { %v527_v16 = vld [vmem:[%s8244_s10] sm:$0xff]  ;;  %v528_v17 = vld [vmem:[%s8244_s10 + $0x8] sm:$0xff]  ;;  %v534_v18 = vld [vmem:[%s8244_s10 + $0x38] sm:$0x3]  ;;  %s8055_s19 = smov 72   ;;  %vm608_vm0 = vcmask 1040384  }
  0x93   : > { %v535_v19 = vld [vmem:[%s8244_s10 + $0x40] sm:$0x3]  ;;  %v7881_v20 = vpack.i.bf16 %v534_v18, %v527_v16  ;;  %v8500_v21 = vpack.c.bf16 %v528_v17, %v527_v16  ;;  %v529_v22 = vld [vmem:[%s8244_s10 + $0x10] sm:$0xff]  ;;  %v530_v23 = vld [vmem:[%s8244_s10 + $0x18] sm:$0xff]  ;;  %vm609_vm1 = vcmask 1044484   ;;  %s8056_s11 = smov 127  }
  0x94   : > { %v8504_v24 = vpack.c.bf16 %v535_v19, %v534_v18  ;;  %v8506_v25 = vpack.c.bf16 %v530_v23, %v529_v22  ;;  %v531_v26 = vld [vmem:[%s8244_s10 + $0x20] sm:$0xff]  ;;  %v532_v27 = vld [vmem:[%s8244_s10 + $0x28] sm:$0xff]  ;;  %v538_v30 = vld [vmem:[%s8244_s10 + $0x58] sm:$0x3]  ;;  %vm683_vm3 = vcmask 1041408   ;;  %vm684_vm4 = vcmask 1045508  }
  0x95   : > { %7882 = vrot.lane.b32.xlu0 %v7881_v20, %s8055_s19  ;;  %585 = vst [vmem:[#allocation2] sm:$0xff] %v8500_v21  ;;  %v8511_v28 = vpack.c.bf16 %v532_v27, %v531_v26  ;;  %v8514_v29 = vrot.slane %v8500_v21, 7  ;;  %v539_v31 = vld [vmem:[%s8244_s10 + $0x60] sm:$0x3]  ;;  %v536_v35 = vld [vmem:[%s8244_s10 + $0x48] sm:$0x3]  ;;  %vm8538_vm2 = vmor %vm608_vm0, %vm609_vm1 }
  0x96   : > { %590 = vst [vmem:[#allocation2 + $0x1c] sm:$0x11] %v8504_v24  ;;  %v8520_v32 = vrot.slane %v8506_v25, 7  ;;  %586 = vst [vmem:[#allocation2 + $0x8] sm:$0xff] %v8506_v25  ;;  %v8523_v33 = vpack.c.bf16 %v539_v31, %v538_v30  ;;  %v537_v36 = vld [vmem:[%s8244_s10 + $0x50] sm:$0x3] }
  0x97   : > { %587 = vst [vmem:[#allocation2 + $0x10] sm:$0xff] %v8511_v28  ;;  %v8529_v34 = vrot.slane %v8511_v28, 7  ;;  %v615_v37 = vrot.slane %v8514_v29, 4  ;;  %v616_v38 = vrot.slane %v8504_v24, 7  ;;  %v8542_v40 = vpack.c.bf16 %v537_v36, %v536_v35  ;;  %v8559_v47 = vld [vmem:[%s8244_s10 + $0x30] sm:$0xff]  ;;  %vm8649_vm7 = vmor %vm683_vm3, %vm684_vm4  ;;  %s8058_s12 = smov 126  }
  0x98   : > { %629 = vrot.lane.b32.xlu1 %v8520_v32, %s8056_s11  ;;  %592 = vst [vmem:[#allocation2 + $0x2c] sm:$0x11] %v8523_v33  ;;  %v618_v41 = vrot.slane %v8520_v32, 4  ;;  %v622_v42 = vrot.slane %v8523_v33, 7  ;;  %v8556_v46 = vrot.slane %v8506_v25, 6  ;;  %v7253_v48 = vpack.c.bf16 %v8559_v47, %v8559_v47  ;;  %s8059_s13 = smov 125  }
  0x99   : > { %627 = vrot.lane.b32.xlu0 %v8514_v29, %s8056_s11  ;;  %v8550_v43 = vsel %vm8538_vm2, %v615_v37, %v616_v38  ;;  %v621_v44 = vrot.slane %v8529_v34, 4  ;;  %v619_v45 = vrot.slane %v8542_v40, 7  ;;  %591 = vst [vmem:[#allocation2 + $0x24] sm:$0x11] %v8542_v40  ;;  %vm493_vm5 = vcmask 1043840   ;;  %s8060_s14 = smov 124  }
  0x9a   : > { %v693_v51 = vrot.slane %v8556_v46, 4  ;;  %v694_v52 = vrot.slane %v8542_v40, 6  ;;  %vm588_vm6 = vcmask 388096   ;;  %v13668_v53 = vmov 0   ;;  %s8061_s15 = smov 123   ;;  %s8062_s16 = smov 122  }
  0x9b   : > { %v8565_v49 = vsel %vm8538_vm2, %v618_v41, %v619_v45  ;;  %v8573_v50 = vsel %vm8538_vm2, %v621_v44, %v622_v42  ;;  %494 = vst.msk [vmem:[#allocation2 + $0x18] sm:$0xf] %vm493_vm5, %v13668_v53  ;;  %495 = vst.msk [vmem:[#allocation2 + $0x34] sm:$0xf] %vm493_vm5, %v13668_v53  ;;  %7886 = vset.pattern.permute.xlu1 %v13668_v53  ;;  %7887 = vset.pattern.permute.xlu0 %v13668_v53  ;;  %v8645_v54 = vrot.slane %v8500_v21, 6  ;;  %vm757_vm8 = vcmask 1042432  }
  0x9c   : > { %631 = vrot.lane.b32.xlu1 %v8529_v34, %s8056_s11  ;;  %496 = vst.msk [vmem:[#allocation2 + $0x50] sm:$0xf] %vm493_vm5, %v13668_v53  ;;  %497 = vst.msk [vmem:[#allocation2 + $0x6c] sm:$0xf] %vm493_vm5, %v13668_v53  ;;  %v8657_v56 = vsel %vm8649_vm7, %v693_v51, %v694_v52  ;;  %v8660_v57 = vrot.slane %v8506_v25, 5  ;;  %v8665_v58 = vrot.slane %v8511_v28, 6 }
  0x9d   : > { %637 = vrot.lane.b32.xlu0 %v8565_v49, %s8056_s11  ;;  %498 = vst.msk [vmem:[#allocation2 + $0x88] sm:$0xf] %vm493_vm5, %v13668_v53  ;;  %499 = vst.msk [vmem:[#allocation2 + $0xa4] sm:$0xf] %vm493_vm5, %v13668_v53  ;;  %v690_v59 = vrot.slane %v8645_v54, 4  ;;  %v691_v60 = vrot.slane %v8504_v24, 6 }
  0x9e   : > { %500 = vst.msk [vmem:[#allocation2 + $0xc0] sm:$0xf] %vm493_vm5, %v13668_v53  ;;  %501 = vst.msk [vmem:[#allocation2 + $0xdc] sm:$0xf] %vm493_vm5, %v13668_v53  ;;  %vm758_vm9 = vcmask 1046532   ;;  %v767_v61 = vrot.slane %v8660_v57, 4 }
  0x9f   : > { %502 = vst.msk [vmem:[#allocation2 + $0xf8] sm:$0xf] %vm493_vm5, %v13668_v53  ;;  %503 = vst.msk [vmem:[#allocation2 + $0x114] sm:$0xf] %vm493_vm5, %v13668_v53  ;;  %v768_v62 = vrot.slane %v8542_v40, 5  ;;  %v8683_v15 = vsel %vm8649_vm7, %v690_v59, %v691_v60  ;;  %v696_v16 = vrot.slane %v8665_v58, 4 }
  0xa0   : > { %635 = vrot.lane.b32.xlu1 %v8550_v43, %s8056_s11  ;;  %504 = vst.msk [vmem:[#allocation2 + $0x130] sm:$0xf] %vm493_vm5, %v13668_v53  ;;  %505 = vst.msk [vmem:[#allocation2 + $0x14c] sm:$0xf] %vm493_vm5, %v13668_v53  ;;  %v697_v17 = vrot.slane %v8523_v33, 6  ;;  %v8702_v20 = vrot.slane %v8500_v21, 5 }
  0xa1   : > { %506 = vst.msk [vmem:[#allocation2 + $0x168] sm:$0xf] %vm493_vm5, %v13668_v53  ;;  %507 = vst.msk [vmem:[#allocation2 + $0x184] sm:$0xf] %vm493_vm5, %v13668_v53  ;;  %704 = vrot.lane.b32.xlu0 %v8556_v46, %s8058_s12  ;;  %v8709_v22 = vrot.slane %v8511_v28, 5  ;;  %v765_v26 = vrot.slane %v8504_v24, 5 }
  0xa2   : > { %508 = vst.msk [vmem:[#allocation2 + $0x1a0] sm:$0xf] %vm493_vm5, %v13668_v53  ;;  %509 = vst.msk [vmem:[#allocation2 + $0x1bc] sm:$0xf] %vm493_vm5, %v13668_v53  ;;  %v8697_v19 = vsel %vm8649_vm7, %v696_v16, %v697_v17  ;;  %v764_v23 = vrot.slane %v8702_v20, 4  ;;  %v771_v31 = vrot.slane %v8523_v33, 5 }
  0xa3   : > { %510 = vst.msk [vmem:[#allocation2 + $0x1d8] sm:$0xf] %vm493_vm5, %v13668_v53  ;;  %511 = vst.msk [vmem:[#allocation2 + $0x1f4] sm:$0xf] %vm493_vm5, %v13668_v53  ;;  %v770_v30 = vrot.slane %v8709_v22, 4  ;;  %s8063_s17 = smov 121  }
  0xa4   : > { %512 = vst.msk [vmem:[#allocation2 + $0x210] sm:$0xf] %vm493_vm5, %v13668_v53  ;;  %513 = vst.msk [vmem:[#allocation2 + $0x22c] sm:$0xf] %vm493_vm5, %v13668_v53  ;;  %639 = vrot.lane.b32.xlu1 %v8573_v50, %s8056_s11  ;;  %s8064_s20 = smov 120   ;;  %vm593_vm11 = vcmask 385024  }
  0xa5   : > { %514 = vst.msk [vmem:[#allocation2 + $0x248] sm:$0xf] %vm493_vm5, %v13668_v53  ;;  %515 = vst.msk [vmem:[#allocation2 + $0x264] sm:$0xf] %vm493_vm5, %v13668_v53  ;;  %712 = vrot.lane.b32.xlu0 %v8657_v56, %s8058_s12  ;;  %v540_v36 = vld [vmem:[%s8244_s10 + $0x68] sm:$0x3] }
  0xa6   : > { %516 = vst.msk [vmem:[#allocation2 + $0x280] sm:$0xf] %vm493_vm5, %v13668_v53  ;;  %517 = vst.msk [vmem:[#allocation2 + $0x29c] sm:$0xf] %vm493_vm5, %v13668_v53  ;;  %v7257_v37 = vpack.c.bf16 %v540_v36, %v540_v36  ;;  %vm595_vm12 = vcmask 1048128   ;;  %vm651_vm13 = vcmask 1043456  }
  0xa7   : > { %518 = vst.msk [vmem:[#allocation2 + $0x2b8] sm:$0xf] %vm493_vm5, %v13668_v53  ;;  %519 = vst.msk [vmem:[#allocation2 + $0x2d4] sm:$0xf] %vm493_vm5, %v13668_v53  ;;  %vm653_vm14 = vcmask 1039360   ;;  %s8065_s21 = smov 119  }
  0xa8   : > { %520 = vst.msk [vmem:[#allocation2 + $0x2f0] sm:$0xf] %vm493_vm5, %v13668_v53  ;;  %521 = vst.msk [vmem:[#allocation2 + $0x30c] sm:$0xf] %vm493_vm5, %v13668_v53  ;;  %702 = vrot.lane.b32.xlu1 %v8645_v54, %s8058_s12  ;;  %vm727_vm15 = vcmask 1031168   ;;  %s8066_s22 = smov 118  }
  0xa9   : > { %522 = vst.msk [vmem:[#allocation2 + $0x328] sm:$0xf] %vm493_vm5, %v13668_v53  ;;  %523 = vst.msk [vmem:[#allocation2 + $0x344] sm:$0xf] %vm493_vm5, %v13668_v53  ;;  %778 = vrot.lane.b32.xlu0 %v8660_v57, %s8059_s13  ;;  %vm801_vm0 = vcmask 1022976   ;;  %s8067_s23 = smov 117  }
  0xaa   : > { %524 = vst.msk [vmem:[#allocation2 + $0x360] sm:$0xf] %vm493_vm5, %v13668_v53  ;;  %vm8675_vm10 = vmor %vm757_vm8, %vm758_vm9  ;;  %vm855_vm1 = vcmask 1014784   ;;  %s8068_s24 = smov 116   ;;  %s8069_s25 = smov 115   ;;  %vm961_vm4 = vcmask 998400  }
  0xab   : > { %589 = vst.msk [vmem:[#allocation2 + $0x18] sm:$0xf] %vm588_vm6, %v7253_v48  ;;  %v8689_v18 = vsel %vm8675_vm10, %v767_v61, %v768_v62  ;;  %v8721_v27 = vsel %vm8675_vm10, %v764_v23, %v765_v26  ;;  %v8731_v35 = vsel %vm8675_vm10, %v770_v30, %v771_v31  ;;  %s8070_s26 = smov 114   ;;  %vm1014_vm5 = vcmask 990208   ;;  %s8071_s27 = smov 113  }
  0xac   : > { %706 = vrot.lane.b32.xlu1 %v8665_v58, %s8058_s12  ;;  %594 = vst.msk [vmem:[#allocation2 + $0x34] sm:$0x1] %vm593_vm11, %v7257_v37  ;;  %s8072_s28 = smov 112   ;;  %vm676_vm8 = vcmask 388097   ;;  %vm750_vm9 = vcmask 388098   ;;  %s8073_s29 = smov 111  }
  0xad   : > { %786 = vrot.lane.b32.xlu0 %v8689_v18, %s8059_s13  ;;  %s8074_s30 = smov 110   ;;  %s8075_s6 = smov 109  }
  0xae   : > { %s8076_s7 = smov 108   ;;  %s8077_s9 = smov 107  }
  0xaf   : > { %s8078_s10 = smov 106   ;;  %s8079_s19 = smov 105  }
  0xb0   : > { %710 = vrot.lane.b32.xlu1 %v8683_v15, %s8058_s12 }
  0xb1   : > { %832 = vrot.lane.b32.xlu0 %v8506_v25, %s8060_s14 }
  0xb4   : > { %714 = vrot.lane.b32.xlu1 %v8697_v19, %s8058_s12 }
  0xb5   : > { %840 = vrot.lane.b32.xlu0 %v8542_v40, %s8060_s14 }
  0xb8   : > { %776 = vrot.lane.b32.xlu1 %v8702_v20, %s8059_s13 }
  0xb9   : > { %885 = vrot.lane.b32.xlu0 %v8520_v32, %s8061_s15 }
  0xbc   : > { %780 = vrot.lane.b32.xlu1 %v8709_v22, %s8059_s13 }
  0xbd   : > { %893 = vrot.lane.b32.xlu0 %v8565_v49, %s8061_s15 }
  0xc0   : > { %784 = vrot.lane.b32.xlu1 %v8721_v27, %s8059_s13 }
  0xc1   : > { %938 = vrot.lane.b32.xlu0 %v8556_v46, %s8062_s16 }
  0xc4   : > { %788 = vrot.lane.b32.xlu1 %v8731_v35, %s8059_s13 }
  0xc5   : > { %946 = vrot.lane.b32.xlu0 %v8657_v56, %s8062_s16 }
  0xc8   : > { %830 = vrot.lane.b32.xlu1 %v8500_v21, %s8060_s14 }
  0xc9   : > { %991 = vrot.lane.b32.xlu0 %v8660_v57, %s8063_s17 }
  0xcc   : > { %834 = vrot.lane.b32.xlu1 %v8511_v28, %s8060_s14 }
  0xcd   : > { %999 = vrot.lane.b32.xlu0 %v8689_v18, %s8063_s17 }
  0xd0   : > { %838 = vrot.lane.b32.xlu1 %v8504_v24, %s8060_s14 }
  0xd1   : > { %1044 = vrot.lane.b32.xlu0 %v8506_v25, %s8064_s20 }
  0xd4   : > { %842 = vrot.lane.b32.xlu1 %v8523_v33, %s8060_s14 }
  0xd5   : > { %1052 = vrot.lane.b32.xlu0 %v8542_v40, %s8064_s20 }
  0xd8   : > { %883 = vrot.lane.b32.xlu1 %v8514_v29, %s8061_s15 }
  0xdc   : > { %887 = vrot.lane.b32.xlu1 %v8529_v34, %s8061_s15 }
  0xe0   : > { %891 = vrot.lane.b32.xlu1 %v8550_v43, %s8061_s15 }
  0xe4   : > { %895 = vrot.lane.b32.xlu1 %v8573_v50, %s8061_s15 }
  0xe8   : > { %936 = vrot.lane.b32.xlu1 %v8645_v54, %s8062_s16 }
  0xec   : > { %940 = vrot.lane.b32.xlu1 %v8665_v58, %s8062_s16 }
  0xf0   : > { %944 = vrot.lane.b32.xlu1 %v8683_v15, %s8062_s16 }
  0xf4   : > { %948 = vrot.lane.b32.xlu1 %v8697_v19, %s8062_s16 }
  0xf8   : > { %989 = vrot.lane.b32.xlu1 %v8702_v20, %s8063_s17 }
  0xfc   : > { %993 = vrot.lane.b32.xlu1 %v8709_v22, %s8063_s17 }
 0x100   : > { %997 = vrot.lane.b32.xlu1 %v8721_v27, %s8063_s17 }
 0x104   : > { %1001 = vrot.lane.b32.xlu1 %v8731_v35, %s8063_s17 }
 0x107   : > { %v7883_v38 = vpop.permute.xlu0 %7882 }
 0x108   : > { %v7885_v41 = vunpack.i.h.bf16 %v7883_v38  ;;  %v7884_v42 = vunpack.i.l.bf16 %v7883_v38  ;;  %1042 = vrot.lane.b32.xlu1 %v8500_v21, %s8064_s20 }
 0x10a   : > { %v600_v44 = vsel %vm595_vm12, %v7884_v42, %v8559_v47  ;;  %v630_v45 = vpop.permute.xlu1 %629  ;;  %v601_v59 = vsel %vm595_vm12, %v7885_v41, %v540_v36  ;;  %vm681_vm12 = vcmask 386048  }
 0x10b   : > { %v8784_v48 = vpack.c.bf16 %v600_v44, %v600_v44  ;;  %v644_v51 = vrot.slane %v630_v45, 4  ;;  %v628_v52 = vpop.permute.xlu0 %627  ;;  %v8793_v47 = vpack.c.bf16 %v601_v59, %v601_v59 }
 0x10c   : > { %1046 = vrot.lane.b32.xlu1 %v8511_v28, %s8064_s20  ;;  %v643_v60 = vrot.slane %v628_v52, 4 }
 0x10d   : > { %836 = vrot.lane.b32.xlu0 %v8784_v48, %s8060_s14 }
 0x10e   : > { %v8790_v61 = vpop.permute.xlu1 %631  ;;  %v652_v62 = vsel %vm651_vm13, %v643_v60, %v644_v51 }
 0x10f   : > { %v13672_v16 = vrot.slane %v8790_v61, 4  ;;  %v654_v17 = vsel %vm653_vm14, %v628_v52, %v652_v62  ;;  %v638_v31 = vpop.permute.xlu0 %637 }
 0x110   : > { %1050 = vrot.lane.b32.xlu1 %v8504_v24, %s8064_s20  ;;  %673 = vst [vmem:[#allocation2 + $0x1c] sm:$0xee] %v654_v17  ;;  %v648_v37 = vrot.slane %v638_v31, 4  ;;  %v8827_v17 = vrot.slane %v8784_v48, 6 }
 0x111   : > { %v655_v23 = vsel %vm651_vm13, %v644_v51, %v13672_v16  ;;  %844 = vrot.lane.b32.xlu0 %v8793_v47, %s8060_s14  ;;  %s8080_s14 = smov 104  }
 0x112   : > { %v656_v26 = vsel %vm653_vm14, %v630_v45, %v655_v23  ;;  %v636_v30 = vpop.permute.xlu1 %635  ;;  %v8815_v45 = vrot.slane %v8784_v48, 7 }
 0x113   : > { %674 = vst [vmem:[#allocation2 + $0x24] sm:$0xee] %v656_v26  ;;  %v647_v36 = vrot.slane %v636_v30, 4  ;;  %v705_v26 = vpop.permute.xlu0 %704 }
 0x114   : > { %1054 = vrot.lane.b32.xlu1 %v8523_v33, %s8064_s20 }
 0x115   : > { %1048 = vrot.lane.b32.xlu0 %v8784_v48, %s8064_s20  ;;  %v659_v38 = vsel %vm651_vm13, %v647_v36, %v648_v37 }
 0x116   : > { %v8810_v41 = vpop.permute.xlu1 %639  ;;  %v660_v42 = vsel %vm653_vm14, %v636_v30, %v659_v38  ;;  %v719_v38 = vrot.slane %v705_v26, 4 }
 0x117   : > { %v13669_v44 = vrot.slane %v8810_v41, 4  ;;  %678 = vst [vmem:[#allocation2 + $0x38] sm:$0x33] %v660_v42  ;;  %v1947_v51 = vld [vmem:[#allocation2 + $0x1c] sm:$0xff] }
 0x118   : > { %1095 = vrot.lane.b32.xlu1 %v8514_v29, %s8065_s21  ;;  %v7121_v52 = vcombine.high %v8500_v21, %v1947_v51  ;;  %v7120_v59 = vcombine.low %v8500_v21, %v1947_v51 }
 0x119   : > { %633 = vrot.lane.b32.xlu0 %v8815_v45, %s8056_s11  ;;  %v661_v60 = vsel %vm651_vm13, %v648_v37, %v13669_v44 }
 0x11a   : > { %v703_v62 = vpop.permute.xlu1 %702  ;;  %v662_v23 = vsel %vm653_vm14, %v638_v31, %v661_v60  ;;  %v1948_v30 = vld [vmem:[#allocation2 + $0x24] sm:$0xff]  ;;  %2721 = vmatprep.subr.bf16.mxu0 %v7121_v52 }
 0x11b   : > { %v718_v36 = vrot.slane %v703_v62, 4  ;;  %679 = vst [vmem:[#allocation2 + $0x40] sm:$0x33] %v662_v23  ;;  %v7123_v42 = vcombine.high %v8506_v25, %v1948_v30  ;;  %2722 = vmatpush1.bf16.msra.mxu0 %v7120_v59  ;;  %v7122_v51 = vcombine.low %v8506_v25, %v1948_v30  ;;  %v8842_v59 = vrot.slane %v8784_v48, 5 }
 0x11c   : > { %1099 = vrot.lane.b32.xlu1 %v8529_v34, %s8065_s21 }
 0x11d   : > { %708 = vrot.lane.b32.xlu0 %v8827_v17, %s8058_s12  ;;  %v726_v31 = vsel %vm651_vm13, %v718_v36, %v719_v38  ;;  %2782 = vmatprep.subr.bf16.mxu1 %v7123_v42  ;;  %v713_v36 = vpop.permute.xlu0 %712  ;;  %v773_v13 = vrot.slane %v8842_v59, 4 }
 0x11e   : > { %v8837_v37 = vpop.permute.xlu1 %706  ;;  %v728_v52 = vsel %vm727_vm15, %v703_v62, %v726_v31  ;;  %2783 = vmatpush1.bf16.msra.mxu1 %v7122_v51  ;;  %v723_v51 = vrot.slane %v713_v36, 4 }
 0x11f   : > { %v13670_v60 = vrot.slane %v8837_v37, 4  ;;  %747 = vst [vmem:[#allocation2 + $0x38] sm:$0xcc] %v728_v52 }
 0x120   : > { %1103 = vrot.lane.b32.xlu1 %v8550_v43, %s8065_s21 }
 0x121   : > { %782 = vrot.lane.b32.xlu0 %v8842_v59, %s8059_s13  ;;  %v729_v23 = vsel %vm651_vm13, %v719_v38, %v13670_v60 }
 0x122   : > { %v711_v30 = vpop.permute.xlu1 %710  ;;  %v730_v62 = vsel %vm727_vm15, %v705_v26, %v729_v23  ;;  %v779_v26 = vpop.permute.xlu0 %778 }
 0x123   : > { %v722_v42 = vrot.slane %v711_v30, 4  ;;  %748 = vst [vmem:[#allocation2 + $0x40] sm:$0xcc] %v730_v62 }
 0x124   : > { %1107 = vrot.lane.b32.xlu1 %v8573_v50, %s8065_s21 }
 0x125   : > { %889 = vrot.lane.b32.xlu0 %v8815_v45, %s8061_s15  ;;  %v733_v31 = vsel %vm651_vm13, %v722_v42, %v723_v51 }
 0x126   : > { %v8857_v52 = vpop.permute.xlu1 %714  ;;  %v734_v53 = vsel %vm727_vm15, %v711_v30, %v733_v31  ;;  %v793_v30 = vrot.slane %v779_v26, 4  ;;  %v787_v39 = vpop.permute.xlu0 %786 }
 0x127   : > { %v13671_v38 = vrot.slane %v8857_v52, 4  ;;  %752 = vst [vmem:[#allocation2 + $0x54] sm:$0x77] %v734_v53  ;;  %v624_v53 = vrot.slane %v8815_v45, 4 }
 0x128   : > { %1148 = vrot.lane.b32.xlu1 %v8645_v54, %s8066_s22 }
 0x129   : > { %942 = vrot.lane.b32.xlu0 %v8827_v17, %s8062_s16  ;;  %v735_v23 = vsel %vm651_vm13, %v723_v51, %v13671_v38  ;;  %v625_v51 = vrot.slane %v8793_v47, 7  ;;  %v699_v38 = vrot.slane %v8827_v17, 4 }
 0x12a   : > { %v777_v62 = vpop.permute.xlu1 %776  ;;  %v736_v42 = vsel %vm727_vm15, %v713_v36, %v735_v23  ;;  %v833_v14 = vpop.permute.xlu0 %832 }
 0x12b   : > { %v792_v44 = vrot.slane %v777_v62, 4  ;;  %753 = vst [vmem:[#allocation2 + $0x5c] sm:$0x77] %v736_v42  ;;  %v8882_v42 = vsel %vm8538_vm2, %v624_v53, %v625_v51  ;;  %v797_v51 = vrot.slane %v787_v39, 4  ;;  %vm908_vm2 = vcmask 1006592  }
 0x12c   : > { %1152 = vrot.lane.b32.xlu1 %v8665_v58, %s8066_s22 }
 0x12d   : > { %995 = vrot.lane.b32.xlu0 %v8842_v59, %s8063_s17  ;;  %v800_v31 = vsel %vm651_vm13, %v792_v44, %v793_v30 }
 0x12e   : > { %v8875_v60 = vpop.permute.xlu1 %780  ;;  %v802_v36 = vsel %vm801_vm0, %v777_v62, %v800_v31  ;;  %v700_v31 = vrot.slane %v8793_v47, 6  ;;  %v841_v11 = vpop.permute.xlu0 %840 }
 0x12f   : > { %v13674_v23 = vrot.slane %v8875_v60, 4  ;;  %821 = vst [vmem:[#allocation2 + $0x54] sm:$0x88] %v802_v36 }
 0x130   : > { %1156 = vrot.lane.b32.xlu1 %v8683_v15, %s8066_s22  ;;  %v8896_v16 = vsel %vm8649_vm7, %v699_v38, %v700_v31  ;;  %vm1067_vm7 = vcmask 982016  }
 0x131   : > { %641 = vrot.lane.b32.xlu0 %v8882_v42, %s8056_s11  ;;  %v803_v44 = vsel %vm651_vm13, %v793_v30, %v13674_v23 }
 0x132   : > { %v785_v62 = vpop.permute.xlu1 %784  ;;  %v804_v36 = vsel %vm801_vm0, %v779_v26, %v803_v44  ;;  %v774_v26 = vrot.slane %v8793_v47, 5 }
 0x133   : > { %v796_v53 = vrot.slane %v785_v62, 4  ;;  %822 = vst [vmem:[#allocation2 + $0x5c] sm:$0x88] %v804_v36 }
 0x134   : > { %1160 = vrot.lane.b32.xlu1 %v8697_v19, %s8066_s22  ;;  %v8911_v31 = vsel %vm8675_vm10, %v773_v13, %v774_v26  ;;  %vm824_vm10 = vcmask 388099  }
 0x135   : > { %716 = vrot.lane.b32.xlu0 %v8896_v16, %s8058_s12  ;;  %v807_v30 = vsel %vm651_vm13, %v796_v53, %v797_v51 }
 0x136   : > { %v8904_v23 = vpop.permute.xlu1 %788  ;;  %v808_v44 = vsel %vm801_vm0, %v785_v62, %v807_v30  ;;  %v7891_v36 = vld [vmem:[#allocation2 + $0x3c] ss:$28 sps:$4 sm:$0xff]  }
 0x137   : > { %v7893_v55 = vld [vmem:[#allocation2 + $0x38] ss:$28 sps:$4 sm:$0xff]   ;;  %v13676_v38 = vrot.slane %v8904_v23, 4  ;;  %2723 = vmatprep.subr.bf16.mxu0 %v7891_v36  ;;  %v847_v36 = vrot.slane %v833_v14, 4 }
 0x138   : > { %1201 = vrot.lane.b32.xlu1 %v8702_v20, %s8067_s23  ;;  %2724 = vmatpush1.bf16.msra.mxu0 %v7893_v55 }
 0x139   : > { %790 = vrot.lane.b32.xlu0 %v8911_v31, %s8059_s13  ;;  %v809_v62 = vsel %vm651_vm13, %v797_v51, %v13676_v38 }
 0x13a   : > { %v831_v53 = vpop.permute.xlu1 %830  ;;  %v810_v30 = vsel %vm801_vm0, %v787_v39, %v809_v62  ;;  %v7888_v63 = vld [vmem:[#allocation2 + $0x44] ss:$28 sps:$4 sm:$0xff]  }
 0x13b   : > { %v7890_v13 = vld [vmem:[#allocation2 + $0x40] ss:$28 sps:$4 sm:$0xff]   ;;  %v846_v26 = vrot.slane %v831_v53, 4  ;;  %2784 = vmatprep.subr.bf16.mxu1 %v7888_v63 }
 0x13c   : > { %1205 = vrot.lane.b32.xlu1 %v8709_v22, %s8067_s23  ;;  %2785 = vmatpush1.bf16.msra.mxu1 %v7890_v13 }
 0x13d   : > { %897 = vrot.lane.b32.xlu0 %v8882_v42, %s8061_s15  ;;  %v854_v12 = vsel %vm651_vm13, %v846_v26, %v847_v36 }
 0x13e   : > { %v8926_v51 = vpop.permute.xlu1 %834  ;;  %v856_v39 = vsel %vm855_vm1, %v831_v53, %v854_v12  ;;  %v851_v53 = vrot.slane %v841_v11, 4 }
 0x13f   : > { %v13683_v55 = vrot.slane %v8926_v51, 4  ;;  %v7135_v62 = vcombine.high %v808_v44, %v856_v39  ;;  %v7134_v38 = vcombine.low %v808_v44, %v856_v39 }
 0x140   : > { %1209 = vrot.lane.b32.xlu1 %v8721_v27, %s8067_s23 }
 0x141   : > { %950 = vrot.lane.b32.xlu0 %v8896_v16, %s8062_s16  ;;  %v857_v63 = vsel %vm651_vm13, %v847_v36, %v13683_v55  ;;  %2725 = vmatprep.subr.bf16.mxu0 %v7135_v62 }
 0x142   : > { %v839_v13 = vpop.permute.xlu1 %838  ;;  %v858_v26 = vsel %vm855_vm1, %v833_v14, %v857_v63  ;;  %2726 = vmatpush1.bf16.msra.mxu0 %v7134_v38  ;;  %v886_v63 = vpop.permute.xlu0 %885 }
 0x143   : > { %v850_v12 = vrot.slane %v839_v13, 4  ;;  %v7137_v10 = vcombine.high %v810_v30, %v858_v26  ;;  %v7136_v44 = vcombine.low %v810_v30, %v858_v26  ;;  %v900_v26 = vrot.slane %v886_v63, 4 }
 0x144   : > { %1213 = vrot.lane.b32.xlu1 %v8731_v35, %s8067_s23 }
 0x145   : > { %1003 = vrot.lane.b32.xlu0 %v8911_v31, %s8063_s17  ;;  %v861_v39 = vsel %vm651_vm13, %v850_v12, %v851_v53  ;;  %2786 = vmatprep.subr.bf16.mxu1 %v7137_v10 }
 0x146   : > { %v8943_v36 = vpop.permute.xlu1 %842  ;;  %v862_v62 = vsel %vm855_vm1, %v839_v13, %v861_v39  ;;  %2787 = vmatpush1.bf16.msra.mxu1 %v7136_v44 }
 0x147   : > { %v13682_v14 = vrot.slane %v8943_v36, 4  ;;  %879 = vst [vmem:[#allocation2 + $0xa8] sm:$0x11] %v862_v62 }
 0x148   : > { %1254 = vrot.lane.b32.xlu1 %v8500_v21, %s8068_s24 }
 0x149   : > { %1056 = vrot.lane.b32.xlu0 %v8793_v47, %s8064_s20  ;;  %v863_v38 = vsel %vm651_vm13, %v851_v53, %v13682_v14  ;;  %s8084_s20 = smov 53  }
 0x14a   : > { %v884_v10 = vpop.permute.xlu1 %883  ;;  %v864_v30 = vsel %vm855_vm1, %v841_v11, %v863_v38  ;;  %v894_v11 = vpop.permute.xlu0 %893 }
 0x14b   : > { %v899_v13 = vrot.slane %v884_v10, 4  ;;  %880 = vst [vmem:[#allocation2 + $0xb0] sm:$0x11] %v864_v30  ;;  %v904_v39 = vrot.slane %v894_v11, 4 }
 0x14c   : > { %1258 = vrot.lane.b32.xlu1 %v8511_v28, %s8068_s24 }
 0x14d   : > { %1097 = vrot.lane.b32.xlu0 %v8520_v32, %s8065_s21  ;;  %v907_v21 = vsel %vm651_vm13, %v899_v13, %v900_v26 }
 0x14e   : > { %v8960_v12 = vpop.permute.xlu1 %887  ;;  %v909_v53 = vsel %vm908_vm2, %v884_v10, %v907_v21 }
 0x14f   : > { %v13680_v44 = vrot.slane %v8960_v12, 4  ;;  %928 = vst [vmem:[#allocation2 + $0xa8] sm:$0xee] %v909_v53  ;;  %v939_v53 = vpop.permute.xlu0 %938 }
 0x150   : > { %1262 = vrot.lane.b32.xlu1 %v8504_v24, %s8068_s24 }
 0x151   : > { %1101 = vrot.lane.b32.xlu0 %v8815_v45, %s8065_s21  ;;  %v910_v28 = vsel %vm651_vm13, %v900_v26, %v13680_v44 }
 0x152   : > { %v892_v62 = vpop.permute.xlu1 %891  ;;  %v911_v38 = vsel %vm908_vm2, %v886_v63, %v910_v28  ;;  %v953_v28 = vrot.slane %v939_v53, 4 }
 0x153   : > { %v903_v30 = vrot.slane %v892_v62, 4  ;;  %929 = vst [vmem:[#allocation2 + $0xb0] sm:$0xee] %v911_v38 }
 0x154   : > { %1266 = vrot.lane.b32.xlu1 %v8523_v33, %s8068_s24 }
 0x155   : > { %1105 = vrot.lane.b32.xlu0 %v8565_v49, %s8065_s21  ;;  %v914_v10 = vsel %vm651_vm13, %v903_v30, %v904_v39 }
 0x156   : > { %v8977_v13 = vpop.permute.xlu1 %895  ;;  %v915_v21 = vsel %vm908_vm2, %v892_v62, %v914_v10 }
 0x157   : > { %v13679_v26 = vrot.slane %v8977_v13, 4  ;;  %932 = vst [vmem:[#allocation2 + $0xc4] sm:$0x33] %v915_v21 }
 0x158   : > { %1307 = vrot.lane.b32.xlu1 %v8514_v29, %s8069_s25 }
 0x159   : > { %v916_v63 = vsel %vm651_vm13, %v904_v39, %v13679_v26  ;;  %1109 = vrot.lane.b32.xlu0 %v8882_v42, %s8065_s21 }
 0x15a   : > { %v917_v38 = vsel %vm908_vm2, %v894_v11, %v916_v63  ;;  %v937_v30 = vpop.permute.xlu1 %936  ;;  %v947_v11 = vpop.permute.xlu0 %946 }
 0x15b   : > { %933 = vst [vmem:[#allocation2 + $0xcc] sm:$0x33] %v917_v38  ;;  %v952_v62 = vrot.slane %v937_v30, 4 }
 0x15c   : > { %1311 = vrot.lane.b32.xlu1 %v8529_v34, %s8069_s25 }
 0x15d   : > { %v960_v10 = vsel %vm651_vm13, %v952_v62, %v953_v28  ;;  %1150 = vrot.lane.b32.xlu0 %v8556_v46, %s8066_s22 }
 0x15e   : > { %v962_v39 = vsel %vm961_vm4, %v937_v30, %v960_v10  ;;  %v8995_v21 = vpop.permute.xlu1 %940  ;;  %v957_v10 = vrot.slane %v947_v11, 4  ;;  %v992_v55 = vpop.permute.xlu0 %991 }
 0x15f   : > { %981 = vst [vmem:[#allocation2 + $0xc4] sm:$0xcc] %v962_v39  ;;  %v13681_v26 = vrot.slane %v8995_v21, 4 }
 0x160   : > { %1315 = vrot.lane.b32.xlu1 %v8550_v43, %s8069_s25 }
 0x161   : > { %v963_v63 = vsel %vm651_vm13, %v953_v28, %v13681_v26  ;;  %1154 = vrot.lane.b32.xlu0 %v8827_v17, %s8066_s22 }
 0x162   : > { %v964_v38 = vsel %vm961_vm4, %v939_v53, %v963_v63  ;;  %v945_v62 = vpop.permute.xlu1 %944 }
 0x163   : > { %982 = vst [vmem:[#allocation2 + $0xcc] sm:$0xcc] %v964_v38  ;;  %v956_v30 = vrot.slane %v945_v62, 4  ;;  %v1006_v38 = vrot.slane %v992_v55, 4 }
 0x164   : > { %1319 = vrot.lane.b32.xlu1 %v8573_v50, %s8069_s25 }
 0x165   : > { %1158 = vrot.lane.b32.xlu0 %v8657_v56, %s8066_s22  ;;  %v967_v39 = vsel %vm651_vm13, %v956_v30, %v957_v10 }
 0x166   : > { %v9011_v44 = vpop.permute.xlu1 %948  ;;  %v968_v28 = vsel %vm961_vm4, %v945_v62, %v967_v39  ;;  %v7894_v26 = vld [vmem:[#allocation2 + $0xac] ss:$28 sps:$4 sm:$0xff]  }
 0x167   : > { %v7896_v14 = vld [vmem:[#allocation2 + $0xa8] ss:$28 sps:$4 sm:$0xff]   ;;  %v13685_v53 = vrot.slane %v9011_v44, 4  ;;  %985 = vst [vmem:[#allocation2 + $0xe0] sm:$0x77] %v968_v28  ;;  %2727 = vmatprep.subr.bf16.mxu0 %v7894_v26 }
 0x168   : > { %1360 = vrot.lane.b32.xlu1 %v8645_v54, %s8070_s26  ;;  %2728 = vmatpush1.bf16.msra.mxu0 %v7896_v14  ;;  %v1000_v14 = vpop.permute.xlu0 %999 }
 0x169   : > { %v969_v63 = vsel %vm651_vm13, %v957_v10, %v13685_v53  ;;  %1162 = vrot.lane.b32.xlu0 %v8896_v16, %s8066_s22  ;;  %s8087_s22 = smov 23  }
 0x16a   : > { %v970_v62 = vsel %vm961_vm4, %v947_v11, %v969_v63  ;;  %v990_v30 = vpop.permute.xlu1 %989  ;;  %v7897_v39 = vld [vmem:[#allocation2 + $0xb4] ss:$28 sps:$4 sm:$0xff]  }
 0x16b   : > { %v7899_v4 = vld [vmem:[#allocation2 + $0xb0] ss:$28 sps:$4 sm:$0xff]   ;;  %986 = vst [vmem:[#allocation2 + $0xe8] sm:$0x77] %v970_v62  ;;  %v1005_v26 = vrot.slane %v990_v30, 4  ;;  %2788 = vmatprep.subr.bf16.mxu1 %v7897_v39  ;;  %v1010_v39 = vrot.slane %v1000_v14, 4 }
 0x16c   : > { %1364 = vrot.lane.b32.xlu1 %v8665_v58, %s8070_s26  ;;  %2789 = vmatpush1.bf16.msra.mxu1 %v7899_v4 }
 0x16d   : > { %v1013_v28 = vsel %vm651_vm13, %v1005_v26, %v1006_v38  ;;  %1203 = vrot.lane.b32.xlu0 %v8660_v57, %s8067_s23 }
 0x16e   : > { %v1015_v10 = vsel %vm1014_vm5, %v990_v30, %v1013_v28  ;;  %v9029_v11 = vpop.permute.xlu1 %993  ;;  %v1045_v28 = vpop.permute.xlu0 %1044 }
 0x16f   : > { %1034 = vst [vmem:[#allocation2 + $0xe0] sm:$0x88] %v1015_v10  ;;  %v13686_v63 = vrot.slane %v9029_v11, 4 }
 0x170   : > { %1368 = vrot.lane.b32.xlu1 %v8683_v15, %s8070_s26 }
 0x171   : > { %v1016_v62 = vsel %vm651_vm13, %v1006_v38, %v13686_v63  ;;  %1207 = vrot.lane.b32.xlu0 %v8842_v59, %s8067_s23 }
 0x172   : > { %v1017_v4 = vsel %vm1014_vm5, %v992_v55, %v1016_v62  ;;  %v998_v26 = vpop.permute.xlu1 %997 }
 0x173   : > { %1035 = vst [vmem:[#allocation2 + $0xe8] sm:$0x88] %v1017_v4  ;;  %v1009_v30 = vrot.slane %v998_v26, 4 }
 0x174   : > { %1372 = vrot.lane.b32.xlu1 %v8697_v19, %s8070_s26 }
 0x175   : > { %v1020_v10 = vsel %vm651_vm13, %v1009_v30, %v1010_v39  ;;  %1211 = vrot.lane.b32.xlu0 %v8689_v18, %s8067_s23  ;;  %v1053_v30 = vpop.permute.xlu0 %1052 }
 0x176   : > { %v1021_v38 = vsel %vm1014_vm5, %v998_v26, %v1020_v10  ;;  %v9046_v53 = vpop.permute.xlu1 %1001  ;;  %v1975_v63 = vld [vmem:[#allocation2 + $0xe0] sm:$0xff] }
 0x177   : > { %v13689_v2 = vrot.slane %v9046_v53, 4  ;;  %v7149_v55 = vcombine.high %v1975_v63, %v1021_v38  ;;  %v7148_v62 = vcombine.low %v1975_v63, %v1021_v38  ;;  %v1059_v63 = vrot.slane %v1045_v28, 4 }
 0x178   : > { %1413 = vrot.lane.b32.xlu1 %v8702_v20, %s8071_s27 }
 0x179   : > { %v1022_v4 = vsel %vm651_vm13, %v1010_v39, %v13689_v2  ;;  %1215 = vrot.lane.b32.xlu0 %v8911_v31, %s8067_s23  ;;  %2729 = vmatprep.subr.bf16.mxu0 %v7149_v55  ;;  %s8088_s23 = smov 91  }
 0x17a   : > { %v1023_v26 = vsel %vm1014_vm5, %v1000_v14, %v1022_v4  ;;  %v1043_v10 = vpop.permute.xlu1 %1042  ;;  %2730 = vmatpush1.bf16.msra.mxu0 %v7148_v62  ;;  %v1976_v3 = vld [vmem:[#allocation2 + $0xe8] sm:$0xff] }
 0x17b   : > { %v1058_v38 = vrot.slane %v1043_v10, 4  ;;  %v7151_v9 = vcombine.high %v1976_v3, %v1023_v26  ;;  %v7150_v6 = vcombine.low %v1976_v3, %v1023_v26 }
 0x17c   : > { %1417 = vrot.lane.b32.xlu1 %v8709_v22, %s8071_s27 }
 0x17d   : > { %v1066_v39 = vsel %vm651_vm13, %v1058_v38, %v1059_v63  ;;  %1256 = vrot.lane.b32.xlu0 %v8506_v25, %s8068_s24  ;;  %2790 = vmatprep.subr.bf16.mxu1 %v7151_v9  ;;  %v13873_v25 = vrot.slane %v8926_v51, 4 }
 0x17e   : > { %v9063_v55 = vsel %vm1067_vm7, %v1043_v10, %v1066_v39  ;;  %v1047_v14 = vpop.permute.xlu1 %1046  ;;  %2791 = vmatpush1.bf16.msra.mxu1 %v7150_v6  ;;  %v1063_v10 = vrot.slane %v1053_v30, 4 }
 0x17f   : > { %v1060_v62 = vrot.slane %v1047_v14, 4  ;;  %v837_v4 = vpop.permute.xlu0 %836 }
 0x180   : > { %v849_v2 = vrot.slane %v837_v4, 4  ;;  %878 = vst.msk [vmem:[#allocation2 + $0xa4] sm:$0xf] %vm588_vm6, %v837_v4  ;;  %1421 = vrot.lane.b32.xlu1 %v8721_v27, %s8071_s27 }
 0x181   : > { %v1069_v3 = vsel %vm651_vm13, %v1059_v63, %v1060_v62  ;;  %1260 = vrot.lane.b32.xlu0 %v8784_v48, %s8068_s24  ;;  %v13874_v63 = vrot.slane %v8943_v36, 4 }
 0x182   : > { %v9072_v9 = vsel %vm1067_vm7, %v1045_v28, %v1069_v3  ;;  %v859_v6 = vsel %vm651_vm13, %v13873_v25, %v849_v2  ;;  %v1051_v26 = vpop.permute.xlu1 %1050 }
 0x183   : > { %v860_v38 = vsel %vm855_vm1, %v8926_v51, %v859_v6  ;;  %v1062_v39 = vrot.slane %v1051_v26, 4  ;;  %v845_v4 = vpop.permute.xlu0 %844 }
 0x184   : > { %877 = vst [vmem:[#allocation2 + $0x9c] sm:$0xff] %v860_v38  ;;  %v853_v0 = vrot.slane %v845_v4, 4  ;;  %882 = vst.msk [vmem:[#allocation2 + $0xc0] sm:$0x1] %vm593_vm11, %v845_v4  ;;  %1425 = vrot.lane.b32.xlu1 %v8731_v35, %s8071_s27  ;;  %v9095_v4 = vld [vmem:[#allocation2] sm:$0xff] }
 0x185   : > { %v1073_v28 = vsel %vm651_vm13, %v1062_v39, %v1063_v10  ;;  %1264 = vrot.lane.b32.xlu0 %v8542_v40, %s8068_s24 }
 0x186   : > { %v1074_v2 = vsel %vm1067_vm7, %v1051_v26, %v1073_v28  ;;  %v865_v51 = vsel %vm651_vm13, %v13874_v63, %v853_v0  ;;  %v9089_v3 = vpop.permute.xlu1 %1054 }
 0x187   : > { %1091 = vst [vmem:[#allocation2 + $0x134] sm:$0x11] %v1074_v2  ;;  %v866_v25 = vsel %vm855_vm1, %v8943_v36, %v865_v51  ;;  %v1064_v6 = vrot.slane %v9089_v3, 4  ;;  %v1049_v38 = vpop.permute.xlu0 %1048  ;;  %vm755_vm1 = vcmask 387072  }
 0x188   : > { %881 = vst [vmem:[#allocation2 + $0xb8] sm:$0x11] %v866_v25  ;;  %v1061_v39 = vrot.slane %v1049_v38, 4  ;;  %1090 = vst.msk [vmem:[#allocation2 + $0x130] sm:$0xf] %vm588_vm6, %v1049_v38  ;;  %1466 = vrot.lane.b32.xlu1 %v9095_v4, %s8072_s28  ;;  %v9110_v25 = vld [vmem:[#allocation2 + $0x10] sm:$0xff] }
 0x189   : > { %v1075_v0 = vsel %vm651_vm13, %v1063_v10, %v1064_v6  ;;  %1268 = vrot.lane.b32.xlu0 %v8793_v47, %s8068_s24 }
 0x18a   : > { %v1076_v36 = vsel %vm1067_vm7, %v1053_v30, %v1075_v0  ;;  %v1071_v26 = vsel %vm651_vm13, %v1060_v62, %v1061_v39  ;;  %v9106_v28 = vpop.permute.xlu1 %1095  ;;  %v13875_v30 = vrot.slane %v8790_v61, 4  ;;  %v13876_v0 = vrot.slane %v8837_v37, 4 }
 0x18b   : > { %1092 = vst [vmem:[#allocation2 + $0x13c] sm:$0x11] %v1076_v36  ;;  %v1072_v2 = vsel %vm1067_vm7, %v1047_v14, %v1071_v26  ;;  %v634_v63 = vpop.permute.xlu0 %633 }
 0x18c   : > { %1089 = vst [vmem:[#allocation2 + $0x128] sm:$0xff] %v1072_v2  ;;  %v646_v51 = vrot.slane %v634_v63, 4  ;;  %677 = vst.msk [vmem:[#allocation2 + $0x34] sm:$0xe] %vm676_vm8, %v634_v63  ;;  %1470 = vrot.lane.b32.xlu1 %v9110_v25, %s8072_s28 }
 0x18d   : > { %1309 = vrot.lane.b32.xlu0 %v8520_v32, %s8069_s25 }
 0x18e   : > { %v657_v62 = vsel %vm651_vm13, %v13875_v30, %v646_v51  ;;  %v9119_v10 = vpop.permute.xlu1 %1099  ;;  %v13877_v51 = vrot.slane %v8875_v60, 4 }
 0x18f   : > { %v658_v14 = vsel %vm653_vm14, %v8790_v61, %v657_v62  ;;  %v709_v38 = vpop.permute.xlu0 %708 }
 0x190   : > { %675 = vst [vmem:[#allocation2 + $0x2c] sm:$0xee] %v658_v14  ;;  %v721_v39 = vrot.slane %v709_v38, 4  ;;  %751 = vst.msk [vmem:[#allocation2 + $0x50] sm:$0xc] %vm750_vm9, %v709_v38  ;;  %1474 = vrot.lane.b32.xlu1 %v8504_v24, %s8072_s28 }
 0x191   : > { %1313 = vrot.lane.b32.xlu0 %v8815_v45, %s8069_s25 }
 0x192   : > { %v731_v36 = vsel %vm651_vm13, %v13876_v0, %v721_v39  ;;  %v9131_v26 = vpop.permute.xlu1 %1103  ;;  %v13878_v39 = vrot.slane %v8960_v12, 4 }
 0x193   : > { %v732_v61 = vsel %vm727_vm15, %v8837_v37, %v731_v36  ;;  %v783_v2 = vpop.permute.xlu0 %782 }
 0x194   : > { %749 = vst [vmem:[#allocation2 + $0x48] sm:$0xcc] %v732_v61  ;;  %v795_v63 = vrot.slane %v783_v2, 4  ;;  %825 = vst.msk [vmem:[#allocation2 + $0x6c] sm:$0x8] %vm824_vm10, %v783_v2  ;;  %1478 = vrot.lane.b32.xlu1 %v8523_v33, %s8072_s28 }
 0x195   : > { %1317 = vrot.lane.b32.xlu0 %v8565_v49, %s8069_s25 }
 0x196   : > { %v805_v30 = vsel %vm651_vm13, %v13877_v51, %v795_v63  ;;  %v9143_v62 = vpop.permute.xlu1 %1107  ;;  %v13879_v63 = vrot.slane %v8995_v21, 4 }
 0x197   : > { %v806_v37 = vsel %vm801_vm0, %v8875_v60, %v805_v30  ;;  %v890_v14 = vpop.permute.xlu0 %889 }
 0x198   : > { %823 = vst [vmem:[#allocation2 + $0x64] sm:$0x88] %v806_v37  ;;  %v902_v38 = vrot.slane %v890_v14, 4  ;;  %931 = vst.msk [vmem:[#allocation2 + $0xc0] sm:$0xe] %vm676_vm8, %v890_v14  ;;  %1519 = vrot.lane.b32.xlu1 %v8514_v29, %s8073_s29 }
 0x199   : > { %1321 = vrot.lane.b32.xlu0 %v8882_v42, %s8069_s25 }
 0x19a   : > { %v912_v0 = vsel %vm651_vm13, %v13878_v39, %v902_v38  ;;  %v9155_v36 = vpop.permute.xlu1 %1148  ;;  %v13880_v38 = vrot.slane %v9029_v11, 4 }
 0x19b   : > { %v913_v60 = vsel %vm908_vm2, %v8960_v12, %v912_v0  ;;  %v943_v61 = vpop.permute.xlu0 %942 }
 0x19c   : > { %930 = vst [vmem:[#allocation2 + $0xb8] sm:$0xee] %v913_v60  ;;  %v955_v2 = vrot.slane %v943_v61, 4  ;;  %984 = vst.msk [vmem:[#allocation2 + $0xdc] sm:$0xc] %vm750_vm9, %v943_v61  ;;  %1523 = vrot.lane.b32.xlu1 %v8529_v34, %s8073_s29 }
 0x19d   : > { %1362 = vrot.lane.b32.xlu0 %v8556_v46, %s8070_s26 }
 0x19e   : > { %v965_v51 = vsel %vm651_vm13, %v13879_v63, %v955_v2  ;;  %v9167_v30 = vpop.permute.xlu1 %1152  ;;  %v13881_v2 = vrot.slane %v8810_v41, 4 }
 0x19f   : > { %v966_v12 = vsel %vm961_vm4, %v8995_v21, %v965_v51  ;;  %v996_v37 = vpop.permute.xlu0 %995 }
 0x1a0   : > { %983 = vst [vmem:[#allocation2 + $0xd4] sm:$0xcc] %v966_v12  ;;  %v1008_v14 = vrot.slane %v996_v37, 4  ;;  %1037 = vst.msk [vmem:[#allocation2 + $0xf8] sm:$0x8] %vm824_vm10, %v996_v37  ;;  %1527 = vrot.lane.b32.xlu1 %v8550_v43, %s8073_s29 }
 0x1a1   : > { %1366 = vrot.lane.b32.xlu0 %v8827_v17, %s8070_s26 }
 0x1a2   : > { %v1018_v39 = vsel %vm651_vm13, %v13880_v38, %v1008_v14  ;;  %v9179_v0 = vpop.permute.xlu1 %1156  ;;  %v13882_v14 = vrot.slane %v8857_v52, 4 }
 0x1a3   : > { %v1019_v21 = vsel %vm1014_vm5, %v9029_v11, %v1018_v39  ;;  %v642_v60 = vpop.permute.xlu0 %641 }
 0x1a4   : > { %1036 = vst [vmem:[#allocation2 + $0xf0] sm:$0x88] %v1019_v21  ;;  %v650_v61 = vrot.slane %v642_v60, 4  ;;  %682 = vst.msk [vmem:[#allocation2 + $0x50] sm:$0x3] %vm681_vm12, %v642_v60  ;;  %1531 = vrot.lane.b32.xlu1 %v8573_v50, %s8073_s29 }
 0x1a5   : > { %1370 = vrot.lane.b32.xlu0 %v8657_v56, %s8070_s26 }
 0x1a6   : > { %v663_v63 = vsel %vm651_vm13, %v13881_v2, %v650_v61  ;;  %v9191_v51 = vpop.permute.xlu1 %1160  ;;  %v13883_v61 = vrot.slane %v8904_v23, 4 }
 0x1a7   : > { %v664_v11 = vsel %vm653_vm14, %v8810_v41, %v663_v63  ;;  %v717_v12 = vpop.permute.xlu0 %716  ;;  %vm1120_vm14 = vcmask 973824  }
 0x1a8   : > { %680 = vst [vmem:[#allocation2 + $0x48] sm:$0x33] %v664_v11  ;;  %v725_v37 = vrot.slane %v717_v12, 4  ;;  %756 = vst.msk [vmem:[#allocation2 + $0x6c] sm:$0x7] %vm755_vm1, %v717_v12  ;;  %1572 = vrot.lane.b32.xlu1 %v8645_v54, %s8074_s30 }
 0x1a9   : > { %1374 = vrot.lane.b32.xlu0 %v8896_v16, %s8070_s26 }
 0x1aa   : > { %v737_v38 = vsel %vm651_vm13, %v13882_v14, %v725_v37  ;;  %v9203_v39 = vpop.permute.xlu1 %1201  ;;  %v13884_v37 = vrot.slane %v8977_v13, 4 }
 0x1ab   : > { %v738_v41 = vsel %vm727_vm15, %v8857_v52, %v737_v38  ;;  %v791_v21 = vpop.permute.xlu0 %790  ;;  %vm1173_vm15 = vcmask 965632  }
 0x1ac   : > { %754 = vst [vmem:[#allocation2 + $0x64] sm:$0x77] %v738_v41  ;;  %v799_v60 = vrot.slane %v791_v21, 4  ;;  %829 = vst.msk [vmem:[#allocation2 + $0x88] sm:$0xf] %vm588_vm6, %v791_v21  ;;  %1576 = vrot.lane.b32.xlu1 %v8665_v58, %s8074_s30 }
 0x1ad   : > { %1415 = vrot.lane.b32.xlu0 %v8660_v57, %s8071_s27 }
 0x1ae   : > { %v811_v2 = vsel %vm651_vm13, %v13883_v61, %v799_v60  ;;  %v9215_v63 = vpop.permute.xlu1 %1205  ;;  %v13885_v60 = vrot.slane %v9011_v44, 4 }
 0x1af   : > { %v812_v52 = vsel %vm801_vm0, %v8904_v23, %v811_v2  ;;  %v898_v11 = vpop.permute.xlu0 %897  ;;  %vm1226_vm0 = vcmask 957440  }
 0x1b0   : > { %828 = vst [vmem:[#allocation2 + $0x80] sm:$0xff] %v812_v52  ;;  %v906_v12 = vrot.slane %v898_v11, 4  ;;  %935 = vst.msk [vmem:[#allocation2 + $0xdc] sm:$0x3] %vm681_vm12, %v898_v11  ;;  %1580 = vrot.lane.b32.xlu1 %v8683_v15, %s8074_s30 }
 0x1b1   : > { %1419 = vrot.lane.b32.xlu0 %v8842_v59, %s8071_s27 }
 0x1b2   : > { %v918_v14 = vsel %vm651_vm13, %v13884_v37, %v906_v12  ;;  %v9227_v38 = vpop.permute.xlu1 %1209  ;;  %v13886_v12 = vrot.slane %v9046_v53, 4 }
 0x1b3   : > { %v919_v23 = vsel %vm908_vm2, %v8977_v13, %v918_v14  ;;  %v951_v41 = vpop.permute.xlu0 %950  ;;  %vm1279_vm2 = vcmask 949248  }
 0x1b4   : > { %934 = vst [vmem:[#allocation2 + $0xd4] sm:$0x33] %v919_v23  ;;  %v959_v21 = vrot.slane %v951_v41, 4  ;;  %988 = vst.msk [vmem:[#allocation2 + $0xf8] sm:$0x7] %vm755_vm1, %v951_v41  ;;  %1584 = vrot.lane.b32.xlu1 %v8697_v19, %s8074_s30 }
 0x1b5   : > { %1423 = vrot.lane.b32.xlu0 %v8689_v18, %s8071_s27 }
 0x1b6   : > { %v971_v61 = vsel %vm651_vm13, %v13885_v60, %v959_v21  ;;  %v9239_v2 = vpop.permute.xlu1 %1213  ;;  %v9258_v21 = vld [vmem:[#allocation2 + $0x8] sm:$0xff] }
 0x1b7   : > { %v972_v13 = vsel %vm961_vm4, %v9011_v44, %v971_v61  ;;  %v1004_v52 = vpop.permute.xlu0 %1003  ;;  %v1111_v61 = vrot.slane %v9106_v28, 4 }
 0x1b8   : > { %987 = vst [vmem:[#allocation2 + $0xf0] sm:$0x77] %v972_v13  ;;  %v1012_v11 = vrot.slane %v1004_v52, 4  ;;  %1041 = vst.msk [vmem:[#allocation2 + $0x114] sm:$0xf] %vm588_vm6, %v1004_v52  ;;  %1625 = vrot.lane.b32.xlu1 %v8702_v20, %s8075_s6 }
 0x1b9   : > { %1427 = vrot.lane.b32.xlu0 %v8911_v31, %s8071_s27 }
 0x1ba   : > { %v1024_v37 = vsel %vm651_vm13, %v13886_v12, %v1012_v11  ;;  %v9251_v14 = vpop.permute.xlu1 %1254 }
 0x1bb   : > { %v1025_v44 = vsel %vm1014_vm5, %v9046_v53, %v1024_v37  ;;  %v1057_v23 = vpop.permute.xlu0 %1056  ;;  %v1113_v53 = vrot.slane %v9119_v10, 4  ;;  %vm1332_vm5 = vcmask 941056  }
 0x1bc   : > { %1040 = vst [vmem:[#allocation2 + $0x10c] sm:$0xff] %v1025_v44  ;;  %v1065_v41 = vrot.slane %v1057_v23, 4  ;;  %1094 = vst.msk [vmem:[#allocation2 + $0x14c] sm:$0x1] %vm593_vm11, %v1057_v23  ;;  %1629 = vrot.lane.b32.xlu1 %v8709_v22, %s8075_s6 }
 0x1bd   : > { %1468 = vrot.lane.b32.xlu0 %v9258_v21, %s8072_s28 }
 0x1be   : > { %v1077_v60 = vsel %vm651_vm13, %v1064_v6, %v1065_v41  ;;  %v9267_v13 = vpop.permute.xlu1 %1258 }
 0x1bf   : > { %v1078_v52 = vsel %vm1067_vm7, %v9089_v3, %v1077_v60  ;;  %v1098_v11 = vpop.permute.xlu0 %1097  ;;  %vm1385_vm7 = vcmask 932864  }
 0x1c0   : > { %1093 = vst [vmem:[#allocation2 + $0x144] sm:$0x11] %v1078_v52  ;;  %v1112_v12 = vrot.slane %v1098_v11, 4  ;;  %1633 = vrot.lane.b32.xlu1 %v8721_v27, %s8075_s6  ;;  %v1115_v52 = vrot.slane %v9131_v26, 4 }
 0x1c1   : > { %1472 = vrot.lane.b32.xlu0 %v8784_v48, %s8072_s28 }
 0x1c2   : > { %v1119_v6 = vsel %vm651_vm13, %v1111_v61, %v1112_v12  ;;  %v1122_v37 = vsel %vm651_vm13, %v1112_v12, %v1113_v53  ;;  %v9277_v44 = vpop.permute.xlu1 %1262 }
 0x1c3   : > { %v1121_v23 = vsel %vm1120_vm14, %v9106_v28, %v1119_v6  ;;  %v1123_v3 = vsel %vm1120_vm14, %v1098_v11, %v1122_v37  ;;  %v1102_v41 = vpop.permute.xlu0 %1101  ;;  %v1117_v28 = vrot.slane %v9143_v62, 4 }
 0x1c4   : > { %1140 = vst [vmem:[#allocation2 + $0x134] sm:$0xee] %v1121_v23  ;;  %1141 = vst [vmem:[#allocation2 + $0x13c] sm:$0xee] %v1123_v3  ;;  %v1114_v60 = vrot.slane %v1102_v41, 4  ;;  %1637 = vrot.lane.b32.xlu1 %v8731_v35, %s8075_s6 }
 0x1c5   : > { %1143 = vst.msk [vmem:[#allocation2 + $0x14c] sm:$0xe] %vm676_vm8, %v1102_v41  ;;  %1476 = vrot.lane.b32.xlu0 %v8542_v40, %s8072_s28 }
 0x1c6   : > { %v1124_v61 = vsel %vm651_vm13, %v1113_v53, %v1114_v60  ;;  %v9290_v12 = vpop.permute.xlu1 %1266 }
 0x1c7   : > { %v1125_v11 = vsel %vm1120_vm14, %v9119_v10, %v1124_v61  ;;  %v1106_v6 = vpop.permute.xlu0 %1105 }
 0x1c8   : > { %1142 = vst [vmem:[#allocation2 + $0x144] sm:$0xee] %v1125_v11  ;;  %v1116_v37 = vrot.slane %v1106_v6, 4  ;;  %1678 = vrot.lane.b32.xlu1 %v9095_v4, %s8076_s7 }
 0x1c9   : > { %1480 = vrot.lane.b32.xlu0 %v8793_v47, %s8072_s28  ;;  %s8091_s28 = smov 99  }
 0x1ca   : > { %v1126_v53 = vsel %vm651_vm13, %v1115_v52, %v1116_v37  ;;  %v1128_v23 = vsel %vm651_vm13, %v1116_v37, %v1117_v28  ;;  %v9300_v3 = vpop.permute.xlu1 %1307 }
 0x1cb   : > { %v1127_v41 = vsel %vm1120_vm14, %v9131_v26, %v1126_v53  ;;  %v1129_v10 = vsel %vm1120_vm14, %v1106_v6, %v1128_v23  ;;  %v1110_v60 = vpop.permute.xlu0 %1109  ;;  %v1987_v61 = vld [vmem:[#allocation2 + $0x134] sm:$0xff]  ;;  %v1988_v11 = vld [vmem:[#allocation2 + $0x13c] sm:$0xff]  ;;  %v1164_v53 = vrot.slane %v9155_v36, 4  ;;  %v1166_v23 = vrot.slane %v9167_v30, 4 }
 0x1cc   : > { %1144 = vst [vmem:[#allocation2 + $0x150] sm:$0x33] %v1127_v41  ;;  %1145 = vst [vmem:[#allocation2 + $0x158] sm:$0x33] %v1129_v10  ;;  %v1118_v1 = vrot.slane %v1110_v60, 4  ;;  %v7156_v8 = vcombine.high %v9063_v55, %v1987_v61  ;;  %v7158_v52 = vcombine.high %v9072_v9, %v1988_v11  ;;  %v7157_v37 = vcombine.low %v9072_v9, %v1988_v11 }
 0x1cd   : > { %1147 = vst.msk [vmem:[#allocation2 + $0x168] sm:$0x3] %vm681_vm12, %v1110_v60  ;;  %1682 = vrot.lane.b32.xlu1 %v9110_v25, %s8076_s7  ;;  %1521 = vrot.lane.b32.xlu0 %v8520_v32, %s8073_s29  ;;  %v7155_v26 = vcombine.low %v9063_v55, %v1987_v61 }
 0x1ce   : > { %v1130_v6 = vsel %vm651_vm13, %v1117_v28, %v1118_v1  ;;  %2731 = vmatprep.subr.bf16.mxu0 %v7156_v8  ;;  %2792 = vmatprep.subr.bf16.mxu1 %v7158_v52  ;;  %v9317_v41 = vpop.permute.xlu1 %1311 }
 0x1cf   : > { %v1131_v9 = vsel %vm1120_vm14, %v9143_v62, %v1130_v6  ;;  %v1151_v10 = vpop.permute.xlu0 %1150  ;;  %2793 = vmatpush1.bf16.msra.mxu1 %v7157_v37  ;;  %2732 = vmatpush1.bf16.msra.mxu0 %v7155_v26  ;;  %v1168_v37 = vrot.slane %v9179_v0, 4  ;;  %vm1438_vm14 = vcmask 924672  }
 0x1d0   : > { %1146 = vst [vmem:[#allocation2 + $0x160] sm:$0x33] %v1131_v9  ;;  %v1165_v60 = vrot.slane %v1151_v10, 4 }
 0x1d1   : > { %1686 = vrot.lane.b32.xlu1 %v8504_v24, %s8076_s7  ;;  %1525 = vrot.lane.b32.xlu0 %v8815_v45, %s8073_s29 }
 0x1d2   : > { %v1172_v1 = vsel %vm651_vm13, %v1164_v53, %v1165_v60  ;;  %v1175_v8 = vsel %vm651_vm13, %v1165_v60, %v1166_v23  ;;  %v9327_v55 = vpop.permute.xlu1 %1315 }
 0x1d3   : > { %v1174_v62 = vsel %vm1173_vm15, %v9155_v36, %v1172_v1  ;;  %v1176_v28 = vsel %vm1173_vm15, %v1151_v10, %v1175_v8  ;;  %v1155_v61 = vpop.permute.xlu0 %1154  ;;  %v1170_v36 = vrot.slane %v9191_v51, 4 }
 0x1d4   : > { %1193 = vst [vmem:[#allocation2 + $0x150] sm:$0xcc] %v1174_v62  ;;  %1194 = vst [vmem:[#allocation2 + $0x158] sm:$0xcc] %v1176_v28  ;;  %v1167_v11 = vrot.slane %v1155_v61, 4  ;;  %v1217_v28 = vrot.slane %v9203_v39, 4 }
 0x1d5   : > { %1196 = vst.msk [vmem:[#allocation2 + $0x168] sm:$0xc] %vm750_vm9, %v1155_v61  ;;  %1690 = vrot.lane.b32.xlu1 %v8523_v33, %s8076_s7  ;;  %1529 = vrot.lane.b32.xlu0 %v8565_v49, %s8073_s29 }
 0x1d6   : > { %v1177_v52 = vsel %vm651_vm13, %v1166_v23, %v1167_v11  ;;  %v9340_v26 = vpop.permute.xlu1 %1319 }
 0x1d7   : > { %v1178_v6 = vsel %vm1173_vm15, %v9167_v30, %v1177_v52  ;;  %v1159_v53 = vpop.permute.xlu0 %1158 }
 0x1d8   : > { %1195 = vst [vmem:[#allocation2 + $0x160] sm:$0xcc] %v1178_v6  ;;  %v1169_v9 = vrot.slane %v1159_v53, 4 }
 0x1d9   : > { %1731 = vrot.lane.b32.xlu1 %v8514_v29, %s8077_s9  ;;  %1533 = vrot.lane.b32.xlu0 %v8882_v42, %s8073_s29  ;;  %s8092_s29 = smov 76  }
 0x1da   : > { %v1179_v23 = vsel %vm651_vm13, %v1168_v37, %v1169_v9  ;;  %v1181_v10 = vsel %vm651_vm13, %v1169_v9, %v1170_v36  ;;  %v9350_v60 = vpop.permute.xlu1 %1360 }
 0x1db   : > { %v1180_v1 = vsel %vm1173_vm15, %v9179_v0, %v1179_v23  ;;  %v1182_v30 = vsel %vm1173_vm15, %v1159_v53, %v1181_v10  ;;  %v1163_v8 = vpop.permute.xlu0 %1162  ;;  %v1219_v0 = vrot.slane %v9215_v63, 4  ;;  %v1221_v10 = vrot.slane %v9227_v38, 4 }
 0x1dc   : > { %1197 = vst [vmem:[#allocation2 + $0x16c] sm:$0x77] %v1180_v1  ;;  %1198 = vst [vmem:[#allocation2 + $0x174] sm:$0x77] %v1182_v30  ;;  %v1171_v62 = vrot.slane %v1163_v8, 4 }
 0x1dd   : > { %1200 = vst.msk [vmem:[#allocation2 + $0x184] sm:$0x7] %vm755_vm1, %v1163_v8  ;;  %1735 = vrot.lane.b32.xlu1 %v8529_v34, %s8077_s9  ;;  %1574 = vrot.lane.b32.xlu0 %v8556_v46, %s8074_s30 }
 0x1de   : > { %v1183_v29 = vsel %vm651_vm13, %v1170_v36, %v1171_v62  ;;  %v9363_v61 = vpop.permute.xlu1 %1364 }
 0x1df   : > { %v1184_v11 = vsel %vm1173_vm15, %v9191_v51, %v1183_v29  ;;  %v1204_v52 = vpop.permute.xlu0 %1203  ;;  %vm1491_vm15 = vcmask 916480  }
 0x1e0   : > { %1199 = vst [vmem:[#allocation2 + $0x17c] sm:$0x77] %v1184_v11  ;;  %v1218_v37 = vrot.slane %v1204_v52, 4 }
 0x1e1   : > { %1739 = vrot.lane.b32.xlu1 %v8550_v43, %s8077_s9  ;;  %1578 = vrot.lane.b32.xlu0 %v8827_v17, %s8074_s30 }
 0x1e2   : > { %v1225_v34 = vsel %vm651_vm13, %v1217_v28, %v1218_v37  ;;  %v1228_v36 = vsel %vm651_vm13, %v1218_v37, %v1219_v0  ;;  %v9373_v6 = vpop.permute.xlu1 %1368 }
 0x1e3   : > { %v1227_v53 = vsel %vm1226_vm0, %v9203_v39, %v1225_v34  ;;  %v1229_v51 = vsel %vm1226_vm0, %v1204_v52, %v1228_v36  ;;  %v1208_v9 = vpop.permute.xlu0 %1207  ;;  %v1223_v39 = vrot.slane %v9239_v2, 4 }
 0x1e4   : > { %1246 = vst [vmem:[#allocation2 + $0x16c] sm:$0x88] %v1227_v53  ;;  %1247 = vst [vmem:[#allocation2 + $0x174] sm:$0x88] %v1229_v51  ;;  %v1220_v23 = vrot.slane %v1208_v9, 4  ;;  %v1272_v51 = vrot.slane %v9267_v13, 4 }
 0x1e5   : > { %1249 = vst.msk [vmem:[#allocation2 + $0x184] sm:$0x8] %vm824_vm10, %v1208_v9  ;;  %1743 = vrot.lane.b32.xlu1 %v8573_v50, %s8077_s9  ;;  %1582 = vrot.lane.b32.xlu0 %v8657_v56, %s8074_s30 }
 0x1e6   : > { %v1230_v43 = vsel %vm651_vm13, %v1219_v0, %v1220_v23  ;;  %v9386_v1 = vpop.permute.xlu1 %1372 }
 0x1e7   : > { %v1231_v30 = vsel %vm1226_vm0, %v9215_v63, %v1230_v43  ;;  %v1212_v8 = vpop.permute.xlu0 %1211 }
 0x1e8   : > { %1248 = vst [vmem:[#allocation2 + $0x17c] sm:$0x88] %v1231_v30  ;;  %v1222_v62 = vrot.slane %v1212_v8, 4 }
 0x1e9   : > { %1784 = vrot.lane.b32.xlu1 %v8645_v54, %s8078_s10  ;;  %1586 = vrot.lane.b32.xlu0 %v8896_v16, %s8074_s30  ;;  %s8093_s30 = smov 39  }
 0x1ea   : > { %v1232_v50 = vsel %vm651_vm13, %v1221_v10, %v1222_v62  ;;  %v1234_v29 = vsel %vm651_vm13, %v1222_v62, %v1223_v39  ;;  %v9396_v28 = vpop.permute.xlu1 %1413 }
 0x1eb   : > { %v1233_v0 = vsel %vm1226_vm0, %v9227_v38, %v1232_v50  ;;  %v1235_v63 = vsel %vm1226_vm0, %v1212_v8, %v1234_v29  ;;  %v1216_v11 = vpop.permute.xlu0 %1215  ;;  %v7900_v52 = vld [vmem:[#allocation2 + $0x154] ss:$28 sps:$4 sm:$0xff]   ;;  %v7902_v54 = vld [vmem:[#allocation2 + $0x15c] ss:$28 sps:$4 sm:$0xff]   ;;  %v1270_v38 = vrot.slane %v9251_v14, 4 }
 0x1ec   : > { %v1224_v37 = vrot.slane %v1216_v11, 4  ;;  %1253 = vst.msk [vmem:[#allocation2 + $0x1a0] sm:$0xf] %vm588_vm6, %v1216_v11  ;;  %v7904_v34 = vld [vmem:[#allocation2 + $0x158] ss:$28 sps:$4 sm:$0xff]   ;;  %2733 = vmatprep.subr.bf16.mxu0 %v7900_v52  ;;  %2794 = vmatprep.subr.bf16.mxu1 %v7902_v54  ;;  %v1276_v54 = vrot.slane %v9290_v12, 4 }
 0x1ed   : > { %1788 = vrot.lane.b32.xlu1 %v8665_v58, %s8078_s10  ;;  %1627 = vrot.lane.b32.xlu0 %v8660_v57, %s8075_s6  ;;  %v7905_v36 = vld [vmem:[#allocation2 + $0x150] ss:$28 sps:$4 sm:$0xff]  }
 0x1ee   : > { %v1236_v53 = vsel %vm651_vm13, %v1223_v39, %v1224_v37  ;;  %v9409_v9 = vpop.permute.xlu1 %1417  ;;  %2795 = vmatpush1.bf16.msra.mxu1 %v7904_v34  ;;  %2734 = vmatpush1.bf16.msra.mxu0 %v7905_v36 }
 0x1ef   : > { %v1237_v23 = vsel %vm1226_vm0, %v9239_v2, %v1236_v53  ;;  %v1257_v43 = vpop.permute.xlu0 %1256  ;;  %vm525_vm0 = vcmask 1040768  }
 0x1f0   : > { %1252 = vst [vmem:[#allocation2 + $0x198] sm:$0xff] %v1237_v23  ;;  %v1271_v58 = vrot.slane %v1257_v43, 4 }
 0x1f1   : > { %1792 = vrot.lane.b32.xlu1 %v8683_v15, %s8078_s10  ;;  %1631 = vrot.lane.b32.xlu0 %v8842_v59, %s8075_s6 }
 0x1f2   : > { %v1278_v10 = vsel %vm651_vm13, %v1270_v38, %v1271_v58  ;;  %v1281_v39 = vsel %vm651_vm13, %v1271_v58, %v1272_v51  ;;  %v9419_v30 = vpop.permute.xlu1 %1421  ;;  %v1323_v58 = vrot.slane %v9300_v3, 4 }
 0x1f3   : > { %v1280_v2 = vsel %vm1279_vm2, %v9251_v14, %v1278_v10  ;;  %v1282_v8 = vsel %vm1279_vm2, %v1257_v43, %v1281_v39  ;;  %v1261_v62 = vpop.permute.xlu0 %1260  ;;  %v1274_v14 = vrot.slane %v9277_v44, 4 }
 0x1f4   : > { %v1273_v50 = vrot.slane %v1261_v62, 4  ;;  %1302 = vst.msk [vmem:[#allocation2 + $0x1bc] sm:$0xf] %vm588_vm6, %v1261_v62  ;;  %v7170_v29 = vcombine.high %v1233_v0, %v1280_v2  ;;  %v7172_v15 = vcombine.high %v1235_v63, %v1282_v8  ;;  %v7171_v11 = vcombine.low %v1235_v63, %v1282_v8 }
 0x1f5   : > { %1796 = vrot.lane.b32.xlu1 %v8697_v19, %s8078_s10  ;;  %1635 = vrot.lane.b32.xlu0 %v8689_v18, %s8075_s6  ;;  %v7169_v52 = vcombine.low %v1233_v0, %v1280_v2 }
 0x1f6   : > { %v1283_v37 = vsel %vm651_vm13, %v1272_v51, %v1273_v50  ;;  %2735 = vmatprep.subr.bf16.mxu0 %v7170_v29  ;;  %2796 = vmatprep.subr.bf16.mxu1 %v7172_v15  ;;  %v9432_v34 = vpop.permute.xlu1 %1425 }
 0x1f7   : > { %v1284_v63 = vsel %vm1279_vm2, %v9267_v13, %v1283_v37  ;;  %v1265_v36 = vpop.permute.xlu0 %1264  ;;  %2797 = vmatpush1.bf16.msra.mxu1 %v7171_v11  ;;  %2736 = vmatpush1.bf16.msra.mxu0 %v7169_v52  ;;  %v1327_v52 = vrot.slane %v9327_v55, 4 }
 0x1f8   : > { %1301 = vst [vmem:[#allocation2 + $0x1b4] sm:$0xff] %v1284_v63  ;;  %v1275_v19 = vrot.slane %v1265_v36, 4 }
 0x1f9   : > { %1837 = vrot.lane.b32.xlu1 %v8702_v20, %s8079_s19  ;;  %1639 = vrot.lane.b32.xlu0 %v8911_v31, %s8075_s6  ;;  %s8094_s6 = smov 84  }
 0x1fa   : > { %v1285_v0 = vsel %vm651_vm13, %v1274_v14, %v1275_v19  ;;  %v1287_v53 = vsel %vm651_vm13, %v1275_v19, %v1276_v54  ;;  %v9442_v38 = vpop.permute.xlu1 %1466 }
 0x1fb   : > { %v1286_v13 = vsel %vm1279_vm2, %v9277_v44, %v1285_v0  ;;  %v1288_v51 = vsel %vm1279_vm2, %v1265_v36, %v1287_v53  ;;  %v1269_v23 = vpop.permute.xlu0 %1268  ;;  %v1325_v44 = vrot.slane %v9317_v41, 4 }
 0x1fc   : > { %1303 = vst [vmem:[#allocation2 + $0x1c0] sm:$0x11] %v1286_v13  ;;  %1304 = vst [vmem:[#allocation2 + $0x1c8] sm:$0x11] %v1288_v51  ;;  %v1277_v43 = vrot.slane %v1269_v23, 4  ;;  %v1376_v51 = vrot.slane %v9350_v60, 4 }
 0x1fd   : > { %1306 = vst.msk [vmem:[#allocation2 + $0x1d8] sm:$0x1] %vm593_vm11, %v1269_v23  ;;  %1841 = vrot.lane.b32.xlu1 %v8709_v22, %s8079_s19  ;;  %1680 = vrot.lane.b32.xlu0 %v9258_v21, %s8076_s7 }
 0x1fe   : > { %v1289_v20 = vsel %vm651_vm13, %v1276_v54, %v1277_v43  ;;  %v9455_v10 = vpop.permute.xlu1 %1470 }
 0x1ff   : > { %v1290_v39 = vsel %vm1279_vm2, %v9290_v12, %v1289_v20  ;;  %v1310_v2 = vpop.permute.xlu0 %1309  ;;  %vm1544_vm2 = vcmask 908288  }
 0x200   : > { %1305 = vst [vmem:[#allocation2 + $0x1d0] sm:$0x11] %v1290_v39  ;;  %v1324_v8 = vrot.slane %v1310_v2, 4 }
 0x201   : > { %1845 = vrot.lane.b32.xlu1 %v8721_v27, %s8079_s19  ;;  %1684 = vrot.lane.b32.xlu0 %v8784_v48, %s8076_s7 }
 0x202   : > { %v1331_v22 = vsel %vm651_vm13, %v1323_v58, %v1324_v8  ;;  %v1334_v62 = vsel %vm651_vm13, %v1324_v8, %v1325_v44  ;;  %v9465_v50 = vpop.permute.xlu1 %1474 }
 0x203   : > { %v1333_v29 = vsel %vm1332_vm5, %v9300_v3, %v1331_v22  ;;  %v1335_v12 = vsel %vm1332_vm5, %v1310_v2, %v1334_v62  ;;  %v1314_v15 = vpop.permute.xlu0 %1313  ;;  %v1329_v3 = vrot.slane %v9340_v26, 4 }
 0x204   : > { %1352 = vst [vmem:[#allocation2 + $0x1c0] sm:$0xee] %v1333_v29  ;;  %1353 = vst [vmem:[#allocation2 + $0x1c8] sm:$0xee] %v1335_v12  ;;  %v1326_v11 = vrot.slane %v1314_v15, 4 }
 0x205   : > { %1355 = vst.msk [vmem:[#allocation2 + $0x1d8] sm:$0xe] %vm676_vm8, %v1314_v15  ;;  %1849 = vrot.lane.b32.xlu1 %v8731_v35, %s8079_s19  ;;  %1688 = vrot.lane.b32.xlu0 %v8542_v40, %s8076_s7 }
 0x206   : > { %v1336_v27 = vsel %vm651_vm13, %v1325_v44, %v1326_v11  ;;  %v9478_v37 = vpop.permute.xlu1 %1478 }
 0x207   : > { %v1337_v14 = vsel %vm1332_vm5, %v9317_v41, %v1336_v27  ;;  %v1318_v54 = vpop.permute.xlu0 %1317 }
 0x208   : > { %1354 = vst [vmem:[#allocation2 + $0x1d0] sm:$0xee] %v1337_v14  ;;  %v1328_v63 = vrot.slane %v1318_v54, 4 }
 0x209   : > { %1890 = vrot.lane.b32.xlu1 %v9095_v4, %s8080_s14  ;;  %1692 = vrot.lane.b32.xlu0 %v8793_v47, %s8076_s7 }
 0x20a   : > { %v1338_v35 = vsel %vm651_vm13, %v1327_v52, %v1328_v63  ;;  %v1340_v36 = vsel %vm651_vm13, %v1328_v63, %v1329_v3  ;;  %v9488_v19 = vpop.permute.xlu1 %1519  ;;  %v1431_v63 = vrot.slane %v9409_v9, 4 }
 0x20b   : > { %v1339_v0 = vsel %vm1332_vm5, %v9327_v55, %v1338_v35  ;;  %v1341_v41 = vsel %vm1332_vm5, %v1318_v54, %v1340_v36  ;;  %v1322_v53 = vpop.permute.xlu0 %1321  ;;  %v1378_v55 = vrot.slane %v9363_v61, 4  ;;  %v1429_v54 = vrot.slane %v9396_v28, 4 }
 0x20c   : > { %1356 = vst [vmem:[#allocation2 + $0x1dc] sm:$0x33] %v1339_v0  ;;  %1357 = vst [vmem:[#allocation2 + $0x1e4] sm:$0x33] %v1341_v41  ;;  %v1330_v13 = vrot.slane %v1322_v53, 4 }
 0x20d   : > { %1359 = vst.msk [vmem:[#allocation2 + $0x1f4] sm:$0x3] %vm681_vm12, %v1322_v53  ;;  %1894 = vrot.lane.b32.xlu1 %v9110_v25, %s8080_s14  ;;  %1733 = vrot.lane.b32.xlu0 %v8520_v32, %s8077_s9 }
 0x20e   : > { %v1342_v4 = vsel %vm651_vm13, %v1329_v3, %v1330_v13  ;;  %v9501_v23 = vpop.permute.xlu1 %1523 }
 0x20f   : > { %v1343_v43 = vsel %vm1332_vm5, %v9340_v26, %v1342_v4  ;;  %v1363_v20 = vpop.permute.xlu0 %1362  ;;  %vm1597_vm5 = vcmask 900096  }
 0x210   : > { %1358 = vst [vmem:[#allocation2 + $0x1ec] sm:$0x33] %v1343_v43  ;;  %v1377_v58 = vrot.slane %v1363_v20, 4  ;;  %v1433_v43 = vrot.slane %v9419_v30, 4 }
 0x211   : > { %1898 = vrot.lane.b32.xlu1 %v8504_v24, %s8080_s14  ;;  %1737 = vrot.lane.b32.xlu0 %v8815_v45, %s8077_s9  ;;  %v1380_v45 = vrot.slane %v9373_v6, 4 }
 0x212   : > { %v1384_v32 = vsel %vm651_vm13, %v1376_v51, %v1377_v58  ;;  %v1387_v25 = vsel %vm651_vm13, %v1377_v58, %v1378_v55  ;;  %v9511_v44 = vpop.permute.xlu1 %1527 }
 0x213   : > { %v1386_v39 = vsel %vm1385_vm7, %v9350_v60, %v1384_v32  ;;  %v1388_v26 = vsel %vm1385_vm7, %v1363_v20, %v1387_v25  ;;  %v1367_v2 = vpop.permute.xlu0 %1366  ;;  %v1382_v60 = vrot.slane %v9386_v1, 4  ;;  %v1435_v20 = vrot.slane %v9432_v34, 4 }
 0x214   : > { %1405 = vst [vmem:[#allocation2 + $0x1dc] sm:$0xcc] %v1386_v39  ;;  %1406 = vst [vmem:[#allocation2 + $0x1e4] sm:$0xcc] %v1388_v26  ;;  %v1379_v8 = vrot.slane %v1367_v2, 4 }
 0x215   : > { %1408 = vst.msk [vmem:[#allocation2 + $0x1f4] sm:$0xc] %vm750_vm9, %v1367_v2  ;;  %1902 = vrot.lane.b32.xlu1 %v8523_v33, %s8080_s14  ;;  %1741 = vrot.lane.b32.xlu0 %v8565_v49, %s8077_s9 }
 0x216   : > { %v1389_v24 = vsel %vm651_vm13, %v1378_v55, %v1379_v8  ;;  %v9524_v22 = vpop.permute.xlu1 %1531 }
 0x217   : > { %v1390_v62 = vsel %vm1385_vm7, %v9363_v61, %v1389_v24  ;;  %v1371_v29 = vpop.permute.xlu0 %1370 }
 0x218   : > { %1407 = vst [vmem:[#allocation2 + $0x1ec] sm:$0xcc] %v1390_v62  ;;  %v1381_v12 = vrot.slane %v1371_v29, 4 }
 0x219   : > { %2073 = vperm.xlu1 %7886, %v8189_v5   ;;  %1745 = vrot.lane.b32.xlu0 %v8882_v42, %s8077_s9 }
 0x21a   : > { %v1391_v33 = vsel %vm651_vm13, %v1380_v45, %v1381_v12  ;;  %v1393_v49 = vsel %vm651_vm13, %v1381_v12, %v1382_v60  ;;  %v9533_v15 = vpop.permute.xlu1 %1572 }
 0x21b   : > { %v1392_v11 = vsel %vm1385_vm7, %v9373_v6, %v1391_v33  ;;  %v1394_v27 = vsel %vm1385_vm7, %v1371_v29, %v1393_v49  ;;  %v1375_v61 = vpop.permute.xlu0 %1374  ;;  %v7906_v52 = vld [vmem:[#allocation2 + $0x1c4] ss:$28 sps:$4 sm:$0xff]   ;;  %v7908_v5 = vld [vmem:[#allocation2 + $0x1cc] ss:$28 sps:$4 sm:$0xff]   ;;  %v1482_v49 = vrot.slane %v9442_v38, 4 }
 0x21c   : > { %1409 = vst [vmem:[#allocation2 + $0x1f8] sm:$0x77] %v1392_v11  ;;  %1410 = vst [vmem:[#allocation2 + $0x200] sm:$0x77] %v1394_v27  ;;  %v1383_v3 = vrot.slane %v1375_v61, 4  ;;  %2737 = vmatprep.subr.bf16.mxu0 %v7906_v52  ;;  %2798 = vmatprep.subr.bf16.mxu1 %v7908_v5 }
 0x21d   : > { %1412 = vst.msk [vmem:[#allocation2 + $0x210] sm:$0x7] %vm755_vm1, %v1375_v61  ;;  %v7910_v42 = vld [vmem:[#allocation2 + $0x1c8] ss:$28 sps:$4 sm:$0xff]   ;;  %2083 = vperm.xlu1 %7886, %v8199_v7   ;;  %1786 = vrot.lane.b32.xlu0 %v8556_v46, %s8078_s10  ;;  %v7911_v14 = vld [vmem:[#allocation2 + $0x1c0] ss:$28 sps:$4 sm:$0xff]  }
 0x21e   : > { %v1395_v6 = vsel %vm651_vm13, %v1382_v60, %v1383_v3  ;;  %v9545_v35 = vpop.permute.xlu1 %1576  ;;  %2799 = vmatpush1.bf16.msra.mxu1 %v7910_v42  ;;  %2738 = vmatpush1.bf16.msra.mxu0 %v7911_v14  ;;  %v13887_v46 = vld [vmem:[#allocation11_spill] sm:$0xff] }
 0x21f   : > { %v1396_v36 = vsel %vm1385_vm7, %v9386_v1, %v1395_v6  ;;  %v1416_v0 = vpop.permute.xlu0 %1415  ;;  %vm1650_vm7 = vcmask 891904  }
 0x220   : > { %1411 = vst [vmem:[#allocation2 + $0x208] sm:$0x77] %v1396_v36  ;;  %v1430_v7 = vrot.slane %v1416_v0, 4 }
 0x221   : > { %2088 = vperm.xlu1 %7886, %v13887_v46   ;;  %1790 = vrot.lane.b32.xlu0 %v8827_v17, %s8078_s10 }
 0x222   : > { %v1437_v41 = vsel %vm651_vm13, %v1429_v54, %v1430_v7  ;;  %v1440_v53 = vsel %vm651_vm13, %v1430_v7, %v1431_v63  ;;  %v9554_v13 = vpop.permute.xlu1 %1580  ;;  %v1486_v54 = vrot.slane %v9465_v50, 4 }
 0x223   : > { %v1439_v1 = vsel %vm1438_vm14, %v9396_v28, %v1437_v41  ;;  %v1441_v4 = vsel %vm1438_vm14, %v1416_v0, %v1440_v53  ;;  %v1420_v51 = vpop.permute.xlu0 %1419 }
 0x224   : > { %1458 = vst [vmem:[#allocation2 + $0x1f8] sm:$0x88] %v1439_v1  ;;  %1459 = vst [vmem:[#allocation2 + $0x200] sm:$0x88] %v1441_v4  ;;  %v1432_v55 = vrot.slane %v1420_v51, 4 }
 0x225   : > { %1461 = vst.msk [vmem:[#allocation2 + $0x210] sm:$0x8] %vm824_vm10, %v1420_v51  ;;  %1794 = vrot.lane.b32.xlu0 %v8657_v56, %s8078_s10  ;;  %v1537_v51 = vrot.slane %v9501_v23, 4 }
 0x226   : > { %v1442_v17 = vsel %vm651_vm13, %v1431_v63, %v1432_v55  ;;  %v9565_v58 = vpop.permute.xlu1 %1584  ;;  %v1488_v63 = vrot.slane %v9478_v37, 4 }
 0x227   : > { %v1443_v28 = vsel %vm1438_vm14, %v9409_v9, %v1442_v17  ;;  %v1424_v32 = vpop.permute.xlu0 %1423 }
 0x228   : > { %1460 = vst [vmem:[#allocation2 + $0x208] sm:$0x88] %v1443_v28  ;;  %v1434_v25 = vrot.slane %v1424_v32, 4 }
 0x229   : > { %1798 = vrot.lane.b32.xlu0 %v8896_v16, %s8078_s10 }
 0x22a   : > { %v1444_v39 = vsel %vm651_vm13, %v1433_v43, %v1434_v25  ;;  %v1446_v56 = vsel %vm651_vm13, %v1434_v25, %v1435_v20  ;;  %v9573_v26 = vpop.permute.xlu1 %1625 }
 0x22b   : > { %v1445_v2 = vsel %vm1438_vm14, %v9419_v30, %v1444_v39  ;;  %v1447_v8 = vsel %vm1438_vm14, %v1424_v32, %v1446_v56  ;;  %v1428_v24 = vpop.permute.xlu0 %1427  ;;  %v2015_v45 = vld [vmem:[#allocation2 + $0x1f8] sm:$0xff]  ;;  %v2016_v9 = vld [vmem:[#allocation2 + $0x200] sm:$0xff]  ;;  %v1484_v30 = vrot.slane %v9455_v10, 4  ;;  %v1539_v56 = vrot.slane %v9511_v44, 4 }
 0x22c   : > { %v1436_v60 = vrot.slane %v1428_v24, 4  ;;  %1465 = vst.msk [vmem:[#allocation2 + $0x22c] sm:$0xf] %vm588_vm6, %v1428_v24  ;;  %v7184_v62 = vcombine.high %v2015_v45, %v1445_v2  ;;  %v7186_v29 = vcombine.high %v2016_v9, %v1447_v8  ;;  %v7185_v16 = vcombine.low %v2016_v9, %v1447_v8  ;;  %v13889_v9 = vld [vmem:[#allocation6_spill] sm:$0xff] }
 0x22d   : > { %1839 = vrot.lane.b32.xlu0 %v8660_v57, %s8079_s19  ;;  %v7183_v12 = vcombine.low %v2015_v45, %v1445_v2  ;;  %v1541_v2 = vrot.slane %v9524_v22, 4 }
 0x22e   : > { %v1448_v33 = vsel %vm651_vm13, %v1435_v20, %v1436_v60  ;;  %2739 = vmatprep.subr.bf16.mxu0 %v7184_v62  ;;  %2800 = vmatprep.subr.bf16.mxu1 %v7186_v29  ;;  %v9586_v61 = vpop.permute.xlu1 %1629  ;;  %v13890_v60 = vld [vmem:[#allocation5_spill] sm:$0xff] }
 0x22f   : > { %v1449_v11 = vsel %vm1438_vm14, %v9432_v34, %v1448_v33  ;;  %v1469_v27 = vpop.permute.xlu0 %1468  ;;  %2801 = vmatpush1.bf16.msra.mxu1 %v7185_v16  ;;  %2740 = vmatpush1.bf16.msra.mxu0 %v7183_v12  ;;  %v9648_v62 = vcombine.high %v13890_v60, %v13889_v9  ;;  %vm1703_vm14 = vcmask 883712  }
 0x230   : > { %1464 = vst [vmem:[#allocation2 + $0x224] sm:$0xff] %v1449_v11  ;;  %v1483_v57 = vrot.slane %v1469_v27, 4 }
 0x231   : > { %1843 = vrot.lane.b32.xlu0 %v8842_v59, %s8079_s19  ;;  %7233 = vmatprep.mubr.msk.bf16.mxu0 %vm961_vm4, %v9648_v62 }
 0x232   : > { %v1490_v52 = vsel %vm651_vm13, %v1482_v49, %v1483_v57  ;;  %v1493_v3 = vsel %vm651_vm13, %v1483_v57, %v1484_v30  ;;  %v9602_v6 = vpop.permute.xlu1 %1633  ;;  %7237 = vmatprep.mubr.msk.bf16.mxu1 %vm961_vm4, %v9648_v62 }
 0x233   : > { %v9594_v5 = vsel %vm1491_vm15, %v9442_v38, %v1490_v52  ;;  %v9597_v34 = vsel %vm1491_vm15, %v1469_v27, %v1493_v3  ;;  %v1473_v42 = vpop.permute.xlu0 %1472 }
 0x234   : > { %v1485_v14 = vrot.slane %v1473_v42, 4  ;;  %1514 = vst.msk [vmem:[#allocation2 + $0x248] sm:$0xf] %vm588_vm6, %v1473_v42  ;;  %v1588_v42 = vrot.slane %v9533_v15, 4 }
 0x235   : > { %1847 = vrot.lane.b32.xlu0 %v8689_v18, %s8079_s19 }
 0x236   : > { %v1495_v59 = vsel %vm651_vm13, %v1484_v30, %v1485_v14  ;;  %v9616_v1 = vpop.permute.xlu1 %1637  ;;  %v1590_v14 = vrot.slane %v9545_v35, 4 }
 0x237   : > { %v1496_v38 = vsel %vm1491_vm15, %v9455_v10, %v1495_v59  ;;  %v1477_v36 = vpop.permute.xlu0 %1476 }
 0x238   : > { %1513 = vst [vmem:[#allocation2 + $0x240] sm:$0xff] %v1496_v38  ;;  %v1487_v0 = vrot.slane %v1477_v36, 4 }
 0x239   : > { %1851 = vrot.lane.b32.xlu0 %v8911_v31, %s8079_s19  ;;  %v13888_v31 = vmov 0   ;;  %s8097_s19 = smov 61  }
 0x23a   : > { %v1497_v7 = vsel %vm651_vm13, %v1486_v54, %v1487_v0  ;;  %v1499_v18 = vsel %vm651_vm13, %v1487_v0, %v1488_v63  ;;  %526 = vst.msk [vmem:[#allocation2 + $0x37c] sm:$0x1] %vm525_vm0, %v13888_v31  ;;  %v9629_v20 = vpop.permute.xlu1 %1678 }
 0x23b   : > { %v1498_v46 = vsel %vm1491_vm15, %v9465_v50, %v1497_v7  ;;  %v1500_v41 = vsel %vm1491_vm15, %v1477_v36, %v1499_v18  ;;  %v1481_v53 = vpop.permute.xlu0 %1480  ;;  %v1535_v50 = vrot.slane %v9488_v19, 4 }
 0x23c   : > { %1515 = vst [vmem:[#allocation2 + $0x24c] sm:$0x11] %v1498_v46  ;;  %1516 = vst [vmem:[#allocation2 + $0x254] sm:$0x11] %v1500_v41  ;;  %v1489_v10 = vrot.slane %v1481_v53, 4  ;;  %v1592_v41 = vrot.slane %v9554_v13, 4 }
 0x23d   : > { %1518 = vst.msk [vmem:[#allocation2 + $0x264] sm:$0x1] %vm593_vm11, %v1481_v53  ;;  %1892 = vrot.lane.b32.xlu0 %v9258_v21, %s8080_s14  ;;  %v1594_v53 = vrot.slane %v9565_v58, 4 }
 0x23e   : > { %v1501_v4 = vsel %vm651_vm13, %v1488_v63, %v1489_v10 }
 0x23f   : > { %v1502_v55 = vsel %vm1491_vm15, %v9478_v37, %v1501_v4  ;;  %v1522_v17 = vpop.permute.xlu0 %1521  ;;  %v9644_v24 = vpop.permute.xlu1 %1682  ;;  %vm1756_vm15 = vcmask 875520  }
 0x240   : > { %1517 = vst [vmem:[#allocation2 + $0x25c] sm:$0x11] %v1502_v55  ;;  %v1536_v43 = vrot.slane %v1522_v17, 4 }
 0x241   : > { %1896 = vrot.lane.b32.xlu0 %v8784_v48, %s8080_s14 }
 0x242   : > { %v1543_v21 = vsel %vm651_vm13, %v1535_v50, %v1536_v43  ;;  %v1546_v28 = vsel %vm651_vm13, %v1536_v43, %v1537_v51 }
 0x243   : > { %v1545_v32 = vsel %vm1544_vm2, %v9488_v19, %v1543_v21  ;;  %v1547_v25 = vsel %vm1544_vm2, %v1522_v17, %v1546_v28  ;;  %v1526_v39 = vpop.permute.xlu0 %1525  ;;  %v9666_v52 = vpop.permute.xlu1 %1686  ;;  %v1641_v28 = vrot.slane %v9573_v26, 4 }
 0x244   : > { %1564 = vst [vmem:[#allocation2 + $0x24c] sm:$0xee] %v1545_v32  ;;  %1565 = vst [vmem:[#allocation2 + $0x254] sm:$0xee] %v1547_v25  ;;  %v1538_v37 = vrot.slane %v1526_v39, 4  ;;  %v1643_v32 = vrot.slane %v9586_v61, 4 }
 0x245   : > { %1567 = vst.msk [vmem:[#allocation2 + $0x264] sm:$0xe] %vm676_vm8, %v1526_v39  ;;  %1900 = vrot.lane.b32.xlu0 %v8542_v40, %s8080_s14 }
 0x246   : > { %v1548_v48 = vsel %vm651_vm13, %v1537_v51, %v1538_v37 }
 0x247   : > { %v1549_v19 = vsel %vm1544_vm2, %v9501_v23, %v1548_v48  ;;  %v1530_v8 = vpop.permute.xlu0 %1529  ;;  %v9680_v18 = vpop.permute.xlu1 %1690 }
 0x248   : > { %1566 = vst [vmem:[#allocation2 + $0x25c] sm:$0xee] %v1549_v19  ;;  %v1540_v45 = vrot.slane %v1530_v8, 4 }
 0x249   : > { %1904 = vrot.lane.b32.xlu0 %v8793_v47, %s8080_s14  ;;  %s8098_s14 = smov 69  }
 0x24a   : > { %v1550_v40 = vsel %vm651_vm13, %v1539_v56, %v1540_v45  ;;  %v1552_v29 = vsel %vm651_vm13, %v1540_v45, %v1541_v2 }
 0x24b   : > { %v1551_v23 = vsel %vm1544_vm2, %v9511_v44, %v1550_v40  ;;  %v1553_v16 = vsel %vm1544_vm2, %v1530_v8, %v1552_v29  ;;  %v1534_v12 = vpop.permute.xlu0 %1533  ;;  %v2027_v33 = vld [vmem:[#allocation2 + $0x24c] sm:$0xff]  ;;  %v2028_v49 = vld [vmem:[#allocation2 + $0x254] sm:$0xff]  ;;  %v9688_v4 = vpop.permute.xlu1 %1731  ;;  %v1645_v29 = vrot.slane %v9602_v6, 4 }
 0x24c   : > { %1568 = vst [vmem:[#allocation2 + $0x268] sm:$0x33] %v1551_v23  ;;  %1569 = vst [vmem:[#allocation2 + $0x270] sm:$0x33] %v1553_v16  ;;  %v1542_v47 = vrot.slane %v1534_v12, 4  ;;  %v7191_v30 = vcombine.high %v9594_v5, %v2027_v33  ;;  %v7193_v11 = vcombine.high %v9597_v34, %v2028_v49  ;;  %v7192_v27 = vcombine.low %v9597_v34, %v2028_v49  ;;  %v13891_v44 = vld [vmem:[#allocation10_spill] sm:$0xff] }
 0x24d   : > { %1571 = vst.msk [vmem:[#allocation2 + $0x280] sm:$0x3] %vm681_vm12, %v1534_v12  ;;  %v7190_v57 = vcombine.low %v9594_v5, %v2027_v33  ;;  %2078 = vperm.xlu0 %7887, %v13891_v44   ;;  %v13892_v34 = vld [vmem:[#allocation12_spill] sm:$0xff]  ;;  %v1647_v23 = vrot.slane %v9616_v1, 4 }
 0x24e   : > { %v1554_v3 = vsel %vm651_vm13, %v1541_v2, %v1542_v47  ;;  %2741 = vmatprep.subr.bf16.mxu0 %v7191_v30  ;;  %2802 = vmatprep.subr.bf16.mxu1 %v7193_v11 }
 0x24f   : > { %v1555_v59 = vsel %vm1544_vm2, %v9524_v22, %v1554_v3  ;;  %v1575_v54 = vpop.permute.xlu0 %1574  ;;  %2803 = vmatpush1.bf16.msra.mxu1 %v7192_v27  ;;  %2742 = vmatpush1.bf16.msra.mxu0 %v7190_v57  ;;  %v9701_v37 = vpop.permute.xlu1 %1735 }
 0x250   : > { %1570 = vst [vmem:[#allocation2 + $0x278] sm:$0x33] %v1555_v59  ;;  %v1589_v5 = vrot.slane %v1575_v54, 4  ;;  %v1694_v59 = vrot.slane %v9629_v20, 4 }
 0x251   : > { %2093 = vperm.xlu0 %7887, %v13892_v34  }
 0x252   : > { %v1596_v63 = vsel %vm651_vm13, %v1588_v42, %v1589_v5  ;;  %v1599_v38 = vsel %vm651_vm13, %v1589_v5, %v1590_v14 }
 0x253   : > { %v1598_v36 = vsel %vm1597_vm5, %v9533_v15, %v1596_v63  ;;  %v1600_v0 = vsel %vm1597_vm5, %v1575_v54, %v1599_v38  ;;  %v1579_v7 = vpop.permute.xlu0 %1578 }
 0x254   : > { %1617 = vst [vmem:[#allocation2 + $0x268] sm:$0xcc] %v1598_v36  ;;  %1618 = vst [vmem:[#allocation2 + $0x270] sm:$0xcc] %v1600_v0  ;;  %v1591_v22 = vrot.slane %v1579_v7, 4 }
 0x255   : > { %1620 = vst.msk [vmem:[#allocation2 + $0x280] sm:$0xc] %vm750_vm9, %v1579_v7 }
 0x256   : > { %v1601_v46 = vsel %vm651_vm13, %v1590_v14, %v1591_v22 }
 0x257   : > { %v1602_v10 = vsel %vm1597_vm5, %v9545_v35, %v1601_v46  ;;  %v1583_v15 = vpop.permute.xlu0 %1582 }
 0x258   : > { %1619 = vst [vmem:[#allocation2 + $0x278] sm:$0xcc] %v1602_v10  ;;  %v1593_v31 = vrot.slane %v1583_v15, 4 }
 0x25a   : > { %v1603_v50 = vsel %vm651_vm13, %v1592_v41, %v1593_v31  ;;  %v1605_v51 = vsel %vm651_vm13, %v1593_v31, %v1594_v53  ;;  %v1698_v31 = vrot.slane %v9666_v52, 4 }
 0x25b   : > { %v1604_v55 = vsel %vm1597_vm5, %v9554_v13, %v1603_v50  ;;  %v1606_v17 = vsel %vm1597_vm5, %v1583_v15, %v1605_v51  ;;  %v1587_v43 = vpop.permute.xlu0 %1586  ;;  %v1700_v50 = vrot.slane %v9680_v18, 4 }
 0x25c   : > { %1621 = vst [vmem:[#allocation2 + $0x284] sm:$0x77] %v1604_v55  ;;  %1622 = vst [vmem:[#allocation2 + $0x28c] sm:$0x77] %v1606_v17  ;;  %v1595_v21 = vrot.slane %v1587_v43, 4 }
 0x25d   : > { %1624 = vst.msk [vmem:[#allocation2 + $0x29c] sm:$0x7] %vm755_vm1, %v1587_v43 }
 0x25e   : > { %v1607_v35 = vsel %vm651_vm13, %v1594_v53, %v1595_v21 }
 0x25f   : > { %v1608_v25 = vsel %vm1597_vm5, %v9565_v58, %v1607_v35  ;;  %v1628_v39 = vpop.permute.xlu0 %1627  ;;  %v9709_v58 = vpop.permute.xlu1 %1739 }
 0x260   : > { %1623 = vst [vmem:[#allocation2 + $0x294] sm:$0x77] %v1608_v25  ;;  %v1642_v13 = vrot.slane %v1628_v39, 4 }
 0x262   : > { %v1649_v48 = vsel %vm651_vm13, %v1641_v28, %v1642_v13  ;;  %v1652_v56 = vsel %vm651_vm13, %v1642_v13, %v1643_v32 }
 0x263   : > { %v1651_v2 = vsel %vm1650_vm7, %v9573_v26, %v1649_v48  ;;  %v1653_v19 = vsel %vm1650_vm7, %v1628_v39, %v1652_v56  ;;  %v1632_v8 = vpop.permute.xlu0 %1631  ;;  %v9721_v57 = vpop.permute.xlu1 %1743  ;;  %v1747_v56 = vrot.slane %v9688_v4, 4 }
 0x264   : > { %1670 = vst [vmem:[#allocation2 + $0x284] sm:$0x88] %v1651_v2  ;;  %1671 = vst [vmem:[#allocation2 + $0x28c] sm:$0x88] %v1653_v19  ;;  %v1644_v45 = vrot.slane %v1632_v8, 4  ;;  %v1749_v2 = vrot.slane %v9701_v37, 4 }
 0x265   : > { %1673 = vst.msk [vmem:[#allocation2 + $0x29c] sm:$0x8] %vm824_vm10, %v1632_v8 }
 0x266   : > { %v1654_v40 = vsel %vm651_vm13, %v1643_v32, %v1644_v45 }
 0x267   : > { %v1655_v16 = vsel %vm1650_vm7, %v9586_v61, %v1654_v40  ;;  %v1636_v26 = vpop.permute.xlu0 %1635  ;;  %v9731_v63 = vpop.permute.xlu1 %1784 }
 0x268   : > { %1672 = vst [vmem:[#allocation2 + $0x294] sm:$0x88] %v1655_v16  ;;  %v1646_v12 = vrot.slane %v1636_v26, 4 }
 0x26a   : > { %v1656_v33 = vsel %vm651_vm13, %v1645_v29, %v1646_v12  ;;  %v1658_v49 = vsel %vm651_vm13, %v1646_v12, %v1647_v23 }
 0x26b   : > { %v1657_v47 = vsel %vm1650_vm7, %v9602_v6, %v1656_v33  ;;  %v1659_v30 = vsel %vm1650_vm7, %v1636_v26, %v1658_v49  ;;  %v1640_v11 = vpop.permute.xlu0 %1639  ;;  %v7912_v27 = vld [vmem:[#allocation2 + $0x26c] ss:$28 sps:$4 sm:$0xff]   ;;  %v7914_v61 = vld [vmem:[#allocation2 + $0x274] ss:$28 sps:$4 sm:$0xff]   ;;  %v1696_v6 = vrot.slane %v9644_v24, 4  ;;  %v9746_v55 = vpop.permute.xlu1 %1788  ;;  %v1751_v33 = vrot.slane %v9709_v58, 4 }
 0x26c   : > { %v1648_v44 = vrot.slane %v1640_v11, 4  ;;  %1677 = vst.msk [vmem:[#allocation2 + $0x2b8] sm:$0xf] %vm588_vm6, %v1640_v11  ;;  %v7916_v3 = vld [vmem:[#allocation2 + $0x270] ss:$28 sps:$4 sm:$0xff]   ;;  %2743 = vmatprep.subr.bf16.mxu0 %v7912_v27  ;;  %2804 = vmatprep.subr.bf16.mxu1 %v7914_v61  ;;  %v1753_v49 = vrot.slane %v9721_v57, 4 }
 0x26d   : > { %v7917_v42 = vld [vmem:[#allocation2 + $0x268] ss:$28 sps:$4 sm:$0xff]   ;;  %2805 = vmatpush1.bf16.msra.mxu1 %v7916_v3 }
 0x26e   : > { %v1660_v14 = vsel %vm651_vm13, %v1647_v23, %v1648_v44  ;;  %2744 = vmatpush1.bf16.msra.mxu0 %v7917_v42 }
 0x26f   : > { %v9729_v54 = vsel %vm1650_vm7, %v9616_v1, %v1660_v14  ;;  %v1681_v5 = vpop.permute.xlu0 %1680  ;;  %v9758_v13 = vpop.permute.xlu1 %1792 }
 0x270   : > { %v1695_v34 = vrot.slane %v1681_v5, 4 }
 0x272   : > { %v1702_v38 = vsel %vm651_vm13, %v1694_v59, %v1695_v34  ;;  %v1705_v36 = vsel %vm651_vm13, %v1695_v34, %v1696_v6  ;;  %v1800_v59 = vrot.slane %v9731_v63, 4 }
 0x273   : > { %v1704_v0 = vsel %vm1703_vm14, %v9629_v20, %v1702_v38  ;;  %v1706_v7 = vsel %vm1703_vm14, %v1681_v5, %v1705_v36  ;;  %v1685_v22 = vpop.permute.xlu0 %1684  ;;  %v9770_v26 = vpop.permute.xlu1 %1796 }
 0x274   : > { %v1697_v46 = vrot.slane %v1685_v22, 4  ;;  %1726 = vst.msk [vmem:[#allocation2 + $0x2d4] sm:$0xf] %vm588_vm6, %v1685_v22  ;;  %v7205_v1 = vcombine.high %v1657_v47, %v1704_v0  ;;  %v7207_v41 = vcombine.high %v1659_v30, %v1706_v7  ;;  %v7206_v53 = vcombine.low %v1659_v30, %v1706_v7 }
 0x275   : > { %v7204_v10 = vcombine.low %v1657_v47, %v1704_v0 }
 0x276   : > { %v1707_v15 = vsel %vm651_vm13, %v1696_v6, %v1697_v46  ;;  %2745 = vmatprep.subr.bf16.mxu0 %v7205_v1  ;;  %2806 = vmatprep.subr.bf16.mxu1 %v7207_v41  ;;  %v1802_v6 = vrot.slane %v9746_v55, 4 }
 0x277   : > { %v9744_v20 = vsel %vm1703_vm14, %v9644_v24, %v1707_v15  ;;  %v1689_v51 = vpop.permute.xlu0 %1688  ;;  %2807 = vmatpush1.bf16.msra.mxu1 %v7206_v53  ;;  %2746 = vmatpush1.bf16.msra.mxu0 %v7204_v10  ;;  %v9778_v11 = vpop.permute.xlu1 %1837  ;;  %v1804_v53 = vrot.slane %v9758_v13, 4  ;;  %v1806_v10 = vrot.slane %v9770_v26, 4 }
 0x278   : > { %v1699_v17 = vrot.slane %v1689_v51, 4  ;;  %v7208_v43 = vcombine.low %v9729_v54, %v9744_v20  ;;  %v7209_v21 = vcombine.high %v9729_v54, %v9744_v20 }
 0x27a   : > { %v1709_v35 = vsel %vm651_vm13, %v1698_v31, %v1699_v17  ;;  %v1711_v28 = vsel %vm651_vm13, %v1699_v17, %v1700_v50 }
 0x27b   : > { %v1710_v24 = vsel %vm1703_vm14, %v9666_v52, %v1709_v35  ;;  %v1712_v32 = vsel %vm1703_vm14, %v1689_v51, %v1711_v28  ;;  %v1693_v25 = vpop.permute.xlu0 %1692  ;;  %v1842_v38 = vpop.permute.xlu1 %1841 }
 0x27c   : > { %1727 = vst [vmem:[#allocation2 + $0x2d8] sm:$0x11] %v1710_v24  ;;  %1728 = vst [vmem:[#allocation2 + $0x2e0] sm:$0x11] %v1712_v32  ;;  %v1701_v39 = vrot.slane %v1693_v25, 4 }
 0x27d   : > { %1730 = vst.msk [vmem:[#allocation2 + $0x2f0] sm:$0x1] %vm593_vm11, %v1693_v25 }
 0x27e   : > { %v1713_v48 = vsel %vm651_vm13, %v1700_v50, %v1701_v39 }
 0x27f   : > { %v1714_v19 = vsel %vm1703_vm14, %v9680_v18, %v1713_v48  ;;  %v1734_v52 = vpop.permute.xlu0 %1733 }
 0x280   : > { %1729 = vst [vmem:[#allocation2 + $0x2e8] sm:$0x11] %v1714_v19  ;;  %v1748_v8 = vrot.slane %v1734_v52, 4 }
 0x282   : > { %v1755_v45 = vsel %vm651_vm13, %v1747_v56, %v1748_v8  ;;  %v1758_v40 = vsel %vm651_vm13, %v1748_v8, %v1749_v2 }
 0x283   : > { %v1757_v29 = vsel %vm1756_vm15, %v9688_v4, %v1755_v45  ;;  %v1759_v23 = vsel %vm1756_vm15, %v1734_v52, %v1758_v40  ;;  %v1738_v16 = vpop.permute.xlu0 %1737 }
 0x284   : > { %1776 = vst [vmem:[#allocation2 + $0x2d8] sm:$0xee] %v1757_v29  ;;  %1777 = vst [vmem:[#allocation2 + $0x2e0] sm:$0xee] %v1759_v23  ;;  %v1750_v12 = vrot.slane %v1738_v16, 4 }
 0x285   : > { %1779 = vst.msk [vmem:[#allocation2 + $0x2f0] sm:$0xe] %vm676_vm8, %v1738_v16  ;;  %vm1809_vm8 = vcmask 867328  }
 0x286   : > { %v1760_v18 = vsel %vm651_vm13, %v1749_v2, %v1750_v12  ;;  %v1853_v2 = vrot.slane %v9778_v11, 4 }
 0x287   : > { %v1761_v47 = vsel %vm1756_vm15, %v9701_v37, %v1760_v18  ;;  %v1742_v4 = vpop.permute.xlu0 %1741 }
 0x288   : > { %1778 = vst [vmem:[#allocation2 + $0x2e8] sm:$0xee] %v1761_v47  ;;  %v1752_v30 = vrot.slane %v1742_v4, 4 }
 0x28a   : > { %v1762_v27 = vsel %vm651_vm13, %v1751_v33, %v1752_v30  ;;  %v1764_v44 = vsel %vm651_vm13, %v1752_v30, %v1753_v49 }
 0x28b   : > { %v1763_v61 = vsel %vm1756_vm15, %v9709_v58, %v1762_v27  ;;  %v1765_v3 = vsel %vm1756_vm15, %v1742_v4, %v1764_v44  ;;  %v1746_v42 = vpop.permute.xlu0 %1745 }
 0x28c   : > { %1780 = vst [vmem:[#allocation2 + $0x2f4] sm:$0x33] %v1763_v61  ;;  %1781 = vst [vmem:[#allocation2 + $0x2fc] sm:$0x33] %v1765_v3  ;;  %v1754_v14 = vrot.slane %v1746_v42, 4 }
 0x28d   : > { %1783 = vst.msk [vmem:[#allocation2 + $0x30c] sm:$0x3] %vm681_vm12, %v1746_v42 }
 0x28e   : > { %v1766_v37 = vsel %vm651_vm13, %v1753_v49, %v1754_v14 }
 0x28f   : > { %v1767_v5 = vsel %vm1756_vm15, %v9721_v57, %v1766_v37  ;;  %v1787_v34 = vpop.permute.xlu0 %1786  ;;  %v1846_v57 = vpop.permute.xlu1 %1845  ;;  %vm4587_vm15 = vcmask 56320  }
 0x290   : > { %1782 = vst [vmem:[#allocation2 + $0x304] sm:$0x33] %v1767_v5  ;;  %v1801_v58 = vrot.slane %v1787_v34, 4  ;;  %v1857_v33 = vrot.slane %v1846_v57, 4 }
 0x292   : > { %v1808_v36 = vsel %vm651_vm13, %v1800_v59, %v1801_v58  ;;  %v1811_v0 = vsel %vm651_vm13, %v1801_v58, %v1802_v6 }
 0x293   : > { %v1810_v7 = vsel %vm1809_vm8, %v9731_v63, %v1808_v36  ;;  %v1812_v22 = vsel %vm1809_vm8, %v1787_v34, %v1811_v0  ;;  %v1791_v46 = vpop.permute.xlu0 %1790  ;;  %v1850_v32 = vpop.permute.xlu1 %1849 }
 0x294   : > { %1829 = vst [vmem:[#allocation2 + $0x2f4] sm:$0xcc] %v1810_v7  ;;  %1830 = vst [vmem:[#allocation2 + $0x2fc] sm:$0xcc] %v1812_v22  ;;  %v1803_v1 = vrot.slane %v1791_v46, 4  ;;  %v1859_v49 = vrot.slane %v1850_v32, 4 }
 0x295   : > { %1832 = vst.msk [vmem:[#allocation2 + $0x30c] sm:$0xc] %vm750_vm9, %v1791_v46  ;;  %vm1862_vm9 = vcmask 859136  }
 0x296   : > { %v1813_v41 = vsel %vm651_vm13, %v1802_v6, %v1803_v1 }
 0x297   : > { %v1814_v15 = vsel %vm1809_vm8, %v9746_v55, %v1813_v41  ;;  %v1795_v31 = vpop.permute.xlu0 %1794  ;;  %v1891_v45 = vpop.permute.xlu1 %1890 }
 0x298   : > { %1831 = vst [vmem:[#allocation2 + $0x304] sm:$0xcc] %v1814_v15  ;;  %v1805_v63 = vrot.slane %v1795_v31, 4  ;;  %v1906_v0 = vrot.slane %v1891_v45, 4 }
 0x29a   : > { %v1815_v50 = vsel %vm651_vm13, %v1804_v53, %v1805_v63  ;;  %v1817_v51 = vsel %vm651_vm13, %v1805_v63, %v1806_v10 }
 0x29b   : > { %v1816_v17 = vsel %vm1809_vm8, %v9758_v13, %v1815_v50  ;;  %v1818_v35 = vsel %vm1809_vm8, %v1795_v31, %v1817_v51  ;;  %v1799_v28 = vpop.permute.xlu0 %1798  ;;  %v7918_v24 = vld [vmem:[#allocation2 + $0x2dc] ss:$28 sps:$4 sm:$0xff]   ;;  %v7920_v55 = vld [vmem:[#allocation2 + $0x2e4] ss:$28 sps:$4 sm:$0xff]   ;;  %v1855_v13 = vrot.slane %v1842_v38, 4  ;;  %v1895_v30 = vpop.permute.xlu1 %1894 }
 0x29c   : > { %1833 = vst [vmem:[#allocation2 + $0x310] sm:$0x77] %v1816_v17  ;;  %1834 = vst [vmem:[#allocation2 + $0x318] sm:$0x77] %v1818_v35  ;;  %v1807_v25 = vrot.slane %v1799_v28, 4  ;;  %2747 = vmatprep.subr.bf16.mxu0 %v7918_v24  ;;  %2808 = vmatprep.subr.bf16.mxu1 %v7920_v55  ;;  %v1908_v7 = vrot.slane %v1895_v30, 4 }
 0x29d   : > { %1836 = vst.msk [vmem:[#allocation2 + $0x328] sm:$0x7] %vm755_vm1, %v1799_v28  ;;  %v7922_v39 = vld [vmem:[#allocation2 + $0x2e0] ss:$28 sps:$4 sm:$0xff]   ;;  %v7923_v48 = vld [vmem:[#allocation2 + $0x2d8] ss:$28 sps:$4 sm:$0xff]  }
 0x29e   : > { %v1819_v56 = vsel %vm651_vm13, %v1806_v10, %v1807_v25  ;;  %2809 = vmatpush1.bf16.msra.mxu1 %v7922_v39  ;;  %2748 = vmatpush1.bf16.msra.mxu0 %v7923_v48 }
 0x29f   : > { %v1820_v19 = vsel %vm1809_vm8, %v9770_v26, %v1819_v56  ;;  %v1840_v52 = vpop.permute.xlu0 %1839  ;;  %vm5113_vm8 = vcmask 7168  }
 0x2a0   : > { %1835 = vst [vmem:[#allocation2 + $0x320] sm:$0x77] %v1820_v19  ;;  %v1854_v8 = vrot.slane %v1840_v52, 4 }
 0x2a2   : > { %v1861_v40 = vsel %vm651_vm13, %v1853_v2, %v1854_v8  ;;  %v1864_v29 = vsel %vm651_vm13, %v1854_v8, %v1855_v13 }
 0x2a3   : > { %v1863_v23 = vsel %vm1862_vm9, %v9778_v11, %v1861_v40  ;;  %v1865_v16 = vsel %vm1862_vm9, %v1840_v52, %v1864_v29  ;;  %v1844_v12 = vpop.permute.xlu0 %1843 }
 0x2a4   : > { %1882 = vst [vmem:[#allocation2 + $0x310] sm:$0x88] %v1863_v23  ;;  %1883 = vst [vmem:[#allocation2 + $0x318] sm:$0x88] %v1865_v16  ;;  %v1856_v26 = vrot.slane %v1844_v12, 4 }
 0x2a5   : > { %1885 = vst.msk [vmem:[#allocation2 + $0x328] sm:$0x8] %vm824_vm10, %v1844_v12  ;;  %vm1915_vm10 = vcmask 850944   ;;  %v7926_v12 = vld [vmem:[#allocation2 + $0x14] ss:$28 sps:$4 sm:$0xff]  }
 0x2a6   : > { %v1866_v18 = vsel %vm651_vm13, %v1855_v13, %v1856_v26  ;;  %v7927_v26 = vld [vmem:[#allocation2 + $0x1d8] ss:$28 sps:$4 sm:$0xff]  }
 0x2a7   : > { %v1867_v47 = vsel %vm1862_vm9, %v1842_v38, %v1866_v18  ;;  %v1848_v4 = vpop.permute.xlu0 %1847  ;;  %v1899_v38 = vpop.permute.xlu1 %1898  ;;  %v9851_v18 = vcombine.low %v13890_v60, %v13889_v9  ;;  %v7931_v9 = vld [vmem:[#allocation2 + $0x4c] ss:$28 sps:$4 sm:$0xff]  }
 0x2a8   : > { %1884 = vst [vmem:[#allocation2 + $0x320] sm:$0x88] %v1867_v47  ;;  %v1858_v27 = vrot.slane %v1848_v4, 4  ;;  %v1910_v51 = vrot.slane %v1899_v38, 4  ;;  %v7924_v47 = vld [vmem:[#allocation2 + $0x10] ss:$28 sps:$4 sm:$0xff]  }
 0x2a9   : > { %v7932_v60 = vld [vmem:[#allocation2 + $0x210] ss:$28 sps:$4 sm:$0xff]  }
 0x2aa   : > { %v1868_v11 = vsel %vm651_vm13, %v1857_v33, %v1858_v27  ;;  %v1870_v44 = vsel %vm651_vm13, %v1858_v27, %v1859_v49  ;;  %v13894_v27 = vld [vmem:[#allocation7_spill] sm:$0xff] }
 0x2ab   : > { %v1869_v61 = vsel %vm1862_vm9, %v1846_v57, %v1868_v11  ;;  %v1871_v3 = vsel %vm1862_vm9, %v1848_v4, %v1870_v44  ;;  %v1852_v42 = vpop.permute.xlu0 %1851  ;;  %v2055_v14 = vld [vmem:[#allocation2 + $0x310] sm:$0xff]  ;;  %v2056_v37 = vld [vmem:[#allocation2 + $0x318] sm:$0xff]  ;;  %v1903_v31 = vpop.permute.xlu1 %1902 }
 0x2ac   : > { %v1860_v59 = vrot.slane %v1852_v42, 4  ;;  %1889 = vst.msk [vmem:[#allocation2 + $0x344] sm:$0xf] %vm588_vm6, %v1852_v42  ;;  %v7219_v6 = vcombine.high %v2055_v14, %v1869_v61  ;;  %v7221_v5 = vcombine.high %v2056_v37, %v1871_v3  ;;  %v7220_v34 = vcombine.low %v2056_v37, %v1871_v3  ;;  %v7928_v4 = vld [vmem:[#allocation2 + $0x18] ss:$28 sps:$4 sm:$0xff]  }
 0x2ad   : > { %v7218_v58 = vcombine.low %v2055_v14, %v1869_v61  ;;  %v1912_v17 = vrot.slane %v1903_v31, 4  ;;  %v7929_v61 = vld [vmem:[#allocation2 + $0x48] ss:$28 sps:$4 sm:$0xff]   ;;  %v7933_v3 = vld [vmem:[#allocation2 + $0x50] ss:$28 sps:$4 sm:$0xff]  }
 0x2ae   : > { %v1872_v36 = vsel %vm651_vm13, %v1859_v49, %v1860_v59  ;;  %2749 = vmatprep.subr.bf16.mxu0 %v7219_v6  ;;  %2810 = vmatprep.subr.bf16.mxu1 %v7221_v5  ;;  %v7936_v42 = vld [vmem:[#allocation2 + $0x84] ss:$28 sps:$4 sm:$0xff]   ;;  %v13895_v5 = vld [vmem:[#allocation9_spill] sm:$0xff] }
 0x2af   : > { %v9827_v22 = vsel %vm1862_vm9, %v1850_v32, %v1872_v36  ;;  %v1893_v46 = vpop.permute.xlu0 %1892  ;;  %2811 = vmatpush1.bf16.msra.mxu1 %v7220_v34  ;;  %2750 = vmatpush1.bf16.msra.mxu0 %v7218_v58  ;;  %v7937_v14 = vld [vmem:[#allocation2 + $0x248] ss:$28 sps:$4 sm:$0xff]   ;;  %v7934_v59 = vld [vmem:[#allocation2 + $0x80] ss:$28 sps:$4 sm:$0xff]   ;;  %v9876_v34 = vcombine.high %v13895_v5, %v13895_v5  ;;  %v7939_v36 = vld [vmem:[#allocation2 + $0xb8] ss:$28 sps:$4 sm:$0xff]   ;;  %v9921_v54 = vpop.permute.xlu1 %2073 }
 0x2b0   : > { %v1907_v1 = vrot.slane %v1893_v46, 4  ;;  %v7938_v6 = vld [vmem:[#allocation2 + $0x88] ss:$28 sps:$4 sm:$0xff]   ;;  %v7942_v58 = vld [vmem:[#allocation2 + $0x280] ss:$28 sps:$4 sm:$0xff]   ;;  %vm5649_vm9 = vcmask 15360  }
 0x2b2   : > { %v1914_v57 = vsel %vm651_vm13, %v1906_v0, %v1907_v1  ;;  %v1917_v41 = vsel %vm651_vm13, %v1907_v1, %v1908_v7  ;;  %v7943_v0 = vld [vmem:[#allocation2 + $0xc0] ss:$28 sps:$4 sm:$0xff]   ;;  %v9886_v1 = vcombine.low %v13895_v5, %v13895_v5 }
 0x2b3   : > { %v1916_v53 = vsel %vm1915_vm10, %v1891_v45, %v1914_v57  ;;  %v1918_v10 = vsel %vm1915_vm10, %v1893_v46, %v1917_v41  ;;  %v1897_v15 = vpop.permute.xlu0 %1896  ;;  %v7947_v46 = vld [vmem:[#allocation2 + $0x2b8] ss:$28 sps:$4 sm:$0xff]   ;;  %v7944_v57 = vld [vmem:[#allocation2 + $0xf0] ss:$28 sps:$4 sm:$0xff]  }
 0x2b4   : > { %v1909_v63 = vrot.slane %v1897_v15, 4  ;;  %1938 = vst.msk [vmem:[#allocation2 + $0x360] sm:$0xf] %vm588_vm6, %v1897_v15  ;;  %vm2699_vm6 = vcmask 1044480   ;;  %v7948_v41 = vld [vmem:[#allocation2 + $0xf8] ss:$28 sps:$4 sm:$0xff]  }
 0x2b5   : > { %v7949_v15 = vld [vmem:[#allocation2 + $0x128] ss:$28 sps:$4 sm:$0xff]  }
 0x2b6   : > { %v1919_v50 = vsel %vm651_vm13, %v1908_v7, %v1909_v63  ;;  %v7946_v7 = vld [vmem:[#allocation2 + $0xf4] ss:$28 sps:$4 sm:$0xff]   ;;  %v7956_v63 = vld [vmem:[#allocation2 + $0x164] ss:$28 sps:$4 sm:$0xff]  }
 0x2b7   : > { %v9836_v35 = vsel %vm1915_vm10, %v1895_v30, %v1919_v50  ;;  %v1901_v28 = vpop.permute.xlu0 %1900  ;;  %v13893_v30 = vld [vmem:[#allocation8_spill] sm:$0xff] }
 0x2b8   : > { %v1911_v24 = vrot.slane %v1901_v28, 4  ;;  %v9859_v11 = vcombine.high %v13894_v27, %v13893_v30  ;;  %v9872_v37 = vcombine.low %v13894_v27, %v13893_v30  ;;  %v7957_v50 = vld [vmem:[#allocation2 + $0x328] ss:$28 sps:$4 sm:$0xff]  }
 0x2ba   : > { %v1921_v32 = vsel %vm651_vm13, %v1910_v51, %v1911_v24  ;;  %v1923_v25 = vsel %vm651_vm13, %v1911_v24, %v1912_v17  ;;  %v7954_v51 = vld [vmem:[#allocation2 + $0x160] ss:$28 sps:$4 sm:$0xff]  }
 0x2bb   : > { %v1922_v55 = vsel %vm1915_vm10, %v1899_v38, %v1921_v32  ;;  %v1924_v39 = vsel %vm1915_vm10, %v1901_v28, %v1923_v25  ;;  %v1905_v48 = vpop.permute.xlu0 %1904  ;;  %v7941_v38 = vld [vmem:[#allocation2 + $0xbc] ss:$28 sps:$4 sm:$0xff]  }
 0x2bc   : > { %1939 = vst [vmem:[#allocation2 + $0x364] sm:$0x11] %v1922_v55  ;;  %1940 = vst [vmem:[#allocation2 + $0x36c] sm:$0x11] %v1924_v39  ;;  %v1913_v56 = vrot.slane %v1905_v48, 4 }
 0x2bd   : > { %1942 = vst.msk [vmem:[#allocation2 + $0x37c] sm:$0x1] %vm593_vm11, %v1905_v48  ;;  %v7961_v28 = vld [vmem:[#allocation2 + $0x19c] ss:$28 sps:$4 sm:$0xff]   ;;  %v7966_v55 = vld [vmem:[#allocation2 + $0x1d4] ss:$28 sps:$4 sm:$0xff]  }
 0x2be   : > { %v1925_v2 = vsel %vm651_vm13, %v1912_v17, %v1913_v56  ;;  %v7958_v17 = vld [vmem:[#allocation2 + $0x168] ss:$28 sps:$4 sm:$0xff]   ;;  %v7959_v32 = vld [vmem:[#allocation2 + $0x198] ss:$28 sps:$4 sm:$0xff]   ;;  %v7963_v25 = vld [vmem:[#allocation2 + $0x1a0] ss:$28 sps:$4 sm:$0xff]  }
 0x2bf   : > { %v1926_v13 = vsel %vm1915_vm10, %v1903_v31, %v1925_v2  ;;  %v7953_v31 = vld [vmem:[#allocation2 + $0x130] ss:$28 sps:$4 sm:$0xff]   ;;  %v7967_v48 = vld [vmem:[#allocation2 + $0x208] ss:$28 sps:$4 sm:$0xff]   ;;  %v7970_v2 = vld [vmem:[#allocation2 + $0x240] ss:$28 sps:$4 sm:$0xff]  }
 0x2c0   : > { %1941 = vst [vmem:[#allocation2 + $0x374] sm:$0x11] %v1926_v13  ;;  %v7969_v39 = vld [vmem:[#allocation2 + $0x20c] ss:$28 sps:$4 sm:$0xff]   ;;  %v7972_v56 = vld [vmem:[#allocation2 + $0x244] ss:$28 sps:$4 sm:$0xff]  }
 0x2c1   : > { %v7975_v13 = vld [vmem:[#allocation2 + $0x27c] ss:$28 sps:$4 sm:$0xff]   ;;  %vm6457_vm10 = vcmask 654336  }
 0x2c3   : > { %v2067_v19 = vld [vmem:[#allocation2 + $0x364] sm:$0x11]  ;;  %v2068_v52 = vld [vmem:[#allocation2 + $0x36c] sm:$0x11] }
 0x2c4   : > { %v7226_v8 = vcombine.high %v1916_v53, %v2067_v19  ;;  %v7228_v45 = vcombine.high %v1918_v10, %v2068_v52  ;;  %v7225_v40 = vcombine.low %v1916_v53, %v2067_v19  ;;  %v7227_v29 = vcombine.low %v1918_v10, %v2068_v52  ;;  %v7951_v53 = vld [vmem:[#allocation2 + $0x12c] ss:$28 sps:$4 sm:$0xff]   ;;  %v7962_v24 = vld [vmem:[#allocation2 + $0x360] ss:$28 sps:$4 sm:$0x1f]  }
 0x2c5   : > { %v7952_v10 = vld [vmem:[#allocation2 + $0x2f0] ss:$28 sps:$4 sm:$0xff]   ;;  %v7973_v19 = vld [vmem:[#allocation2 + $0x278] ss:$28 sps:$4 sm:$0xff]  }
 0x2c6   : > { %7232 = vmatprep.subr.msk.bf16.mxu0 %vm2699_vm6, %v7226_v8  ;;  %7236 = vmatprep.subr.msk.bf16.mxu1 %vm2699_vm6, %v7228_v45  ;;  %v2701_v23 = vsel %vm2699_vm6, %v7225_v40, 0  ;;  %v2707_v16 = vsel %vm2699_vm6, %v7227_v29, 0  ;;  %v7978_v52 = vld [vmem:[#allocation2 + $0x2ec] ss:$28 sps:$4 sm:$0xff]   ;;  %v2057_v8 = vld [vmem:[#allocation2 + $0x320] sm:$0xff] }
 0x2c7   : > { %2752 = vmatpush1.bf16.msra.mxu0 %v2701_v23  ;;  %2813 = vmatpush1.bf16.msra.mxu1 %v2707_v16  ;;  %v9853_v33 = vld [vmem:[#allocation2 + $0x374] sm:$0x11]  ;;  %v7976_v45 = vld [vmem:[#allocation2 + $0x2e8] ss:$28 sps:$4 sm:$0xff]   ;;  %v7223_v40 = vcombine.high %v2057_v8, %v9827_v22  ;;  %v7222_v29 = vcombine.low %v2057_v8, %v9827_v22 }
 0x2c8   : > { %2843 = vmatprep.subr.bf16.mxu0 %v7926_v12  ;;  %7260 = vmatprep.subr.bf16.mxu1 %v7927_v26  ;;  %v7229_v49 = vcombine.low %v9836_v35, %v9853_v33  ;;  %v7230_v23 = vcombine.high %v9836_v35, %v9853_v33 }
 0x2ca   : > { %2754 = vmatmul.mubr.bf16.vlgmr.msra.gmra.mrb[0].mxu0 %v9851_v18  ;;  %2815 = vmatmul.mubr.bf16.vlgmr.msra.gmra.mrb[0].mxu1 %v9851_v18  ;;  %v9864_v44 = vsel %vm2699_vm6, %v7229_v49, 0 }
 0x2cb   : > { %2844 = vmatpush1.bf16.msra.mxu0 %v7924_v47  ;;  %7261 = vmatpush3.bf16.msra.mxu1 %v7928_v4 }
 0x2cc   : > { %2845 = vmatprep.subr.bf16.mxu0 %v7931_v9  ;;  %7262 = vmatprep.subr.bf16.mxu1 %v7932_v60  ;;  %v9931_v27 = vpop.permute.xlu0 %2078 }
 0x2cd   : > { %7234 = vmatprep.mubr.msk.bf16.mxu0 %vm961_vm4, %v9859_v11  ;;  %7238 = vmatprep.mubr.msk.bf16.mxu1 %vm961_vm4, %v9859_v11 }
 0x2cf   : > { %2846 = vmatpush1.bf16.msra.mxu0 %v7929_v61  ;;  %7263 = vmatpush3.bf16.msra.mxu1 %v7933_v3 }
 0x2d0   : > { %2847 = vmatprep.subr.bf16.mxu0 %v7936_v42  ;;  %7264 = vmatprep.subr.bf16.mxu1 %v7937_v14 }
 0x2d2   : > { %2764 = vmatmul.mubr.bf16.gmra.mrb[4].mxu0 %v9872_v37  ;;  %2825 = vmatmul.mubr.bf16.gmra.mrb[4].mxu1 %v9872_v37 }
 0x2d3   : > { %2848 = vmatpush1.bf16.msra.mxu0 %v7934_v59  ;;  %7265 = vmatpush3.bf16.msra.mxu1 %v7938_v6 }
 0x2d4   : > { %2849 = vmatprep.subr.bf16.mxu0 %v7941_v38  ;;  %7266 = vmatprep.subr.bf16.mxu1 %v7942_v58 }
 0x2d5   : > { %7235 = vmatprep.mubr.msk.bf16.mxu0 %vm961_vm4, %v9876_v34  ;;  %7239 = vmatprep.mubr.msk.bf16.mxu1 %vm961_vm4, %v9876_v34 }
 0x2d7   : > { %2850 = vmatpush1.bf16.msra.mxu0 %v7939_v36  ;;  %7267 = vmatpush3.bf16.msra.mxu1 %v7943_v0 }
 0x2d8   : > { %2851 = vmatprep.subr.bf16.mxu0 %v7946_v7  ;;  %7268 = vmatprep.subr.bf16.mxu1 %v7947_v46 }
 0x2da   : > { %2774 = vmatmul.mubr.bf16.gmra.mrb[8].mxu0 %v9886_v1  ;;  %2835 = vmatmul.mubr.bf16.gmra.mrb[8].mxu1 %v9886_v1 }
 0x2db   : > { %2852 = vmatpush1.bf16.msra.mxu0 %v7944_v57  ;;  %7269 = vmatpush3.bf16.msra.mxu1 %v7948_v41 }
 0x2dc   : > { %2853 = vmatprep.subr.bf16.mxu0 %v7951_v53  ;;  %7270 = vmatprep.subr.bf16.mxu1 %v7952_v10 }
 0x2dd   : > { %7244 = vmatprep.mubr.msk.bf16.mxu1 %vm961_vm4, %v9648_v62  ;;  %7241 = vmatprep.mubr.msk.bf16.mxu0 %vm961_vm4, %v9648_v62  ;;  %v7964_v62 = vld [vmem:[#allocation2 + $0x1d0] ss:$28 sps:$4 sm:$0xff]  }
 0x2df   : > { %2854 = vmatpush1.bf16.msra.mxu0 %v7949_v15  ;;  %7271 = vmatpush3.bf16.msra.mxu1 %v7953_v31 }
 0x2e0   : > { %2855 = vmatprep.subr.bf16.mxu0 %v7956_v63  ;;  %7272 = vmatprep.subr.bf16.mxu1 %v7957_v50 }
 0x2e3   : > { %2856 = vmatpush1.bf16.msra.mxu0 %v7954_v51  ;;  %7273 = vmatpush3.bf16.msra.mxu1 %v7958_v17 }
 0x2e4   : > { %2857 = vmatprep.subr.bf16.mxu0 %v7961_v28  ;;  %7802 = vmatprep.subr.msk.bf16.mxu1 %vm2699_vm6, %v7962_v24 }
 0x2e7   : > { %2858 = vmatpush1.bf16.msra.mxu0 %v7959_v32  ;;  %7275 = vmatpush3.bf16.msra.mxu1 %v7963_v25 }
 0x2e8   : > { %2859 = vmatprep.subr.bf16.mxu0 %v7966_v55 }
 0x2ea   : > { %2937 = vmatmul.mubr.bf16.vlgmr.msra.gmra.mrb[12].mxu1 %v9851_v18 }
 0x2eb   : > { %2860 = vmatpush1.bf16.msra.mxu0 %v7964_v62  ;;  %7245 = vmatprep.mubr.msk.bf16.mxu1 %vm961_vm4, %v9859_v11 }
 0x2ec   : > { %2861 = vmatprep.subr.bf16.mxu0 %v7969_v39 }
 0x2ef   : > { %2862 = vmatpush1.bf16.msra.mxu0 %v7967_v48 }
 0x2f0   : > { %2863 = vmatprep.subr.bf16.mxu0 %v7972_v56  ;;  %v9989_v56 = vpop.permute.xlu0 %2093 }
 0x2f2   : > { %2945 = vmatmul.mubr.bf16.gmra.mrb[16].mxu1 %v9872_v37 }
 0x2f3   : > { %2864 = vmatpush1.bf16.msra.mxu0 %v7970_v2  ;;  %7246 = vmatprep.mubr.msk.bf16.mxu1 %vm961_vm4, %v9876_v34 }
 0x2f4   : > { %2865 = vmatprep.subr.bf16.mxu0 %v7975_v13 }
 0x2f7   : > { %2866 = vmatpush1.bf16.msra.mxu0 %v7973_v19 }
 0x2f8   : > { %2867 = vmatprep.subr.bf16.mxu0 %v7209_v21 }
 0x2fa   : > { %2953 = vmatmul.mubr.bf16.gmra.mrb[20].mxu1 %v9886_v1 }
 0x2fb   : > { %2868 = vmatpush1.bf16.msra.mxu0 %v7208_v43 }
 0x2fc   : > { %2869 = vmatprep.subr.bf16.mxu0 %v7978_v52 }
 0x2ff   : > { %2870 = vmatpush1.bf16.msra.mxu0 %v7976_v45 }
 0x300   : > { %2871 = vmatprep.subr.bf16.mxu0 %v7223_v40 }
 0x303   : > { %2872 = vmatpush1.bf16.msra.mxu0 %v7222_v29 }
 0x304   : > { %7240 = vmatprep.subr.msk.bf16.mxu0 %vm2699_vm6, %v7230_v23 }
 0x307   : > { %2874 = vmatpush1.bf16.msra.mxu0 %v9864_v44 }
 0x30a   : > { %2876 = vmatmul.mubr.bf16.vlgmr.msra.gmra.mrb[12].mxu0 %v9851_v18 }
 0x30b   : > { %7242 = vmatprep.mubr.msk.bf16.mxu0 %vm961_vm4, %v9859_v11  ;;  %v9937_v11 = vpop.permute.xlu1 %2083 }
 0x30f   : > { %v9959_v7 = vpop.permute.xlu1 %2088 }
 0x312   : > { %2886 = vmatmul.mubr.bf16.gmra.mrb[16].mxu0 %v9872_v37 }
 0x313   : > { %7243 = vmatprep.mubr.msk.bf16.mxu0 %vm961_vm4, %v9876_v34 }
 0x31a   : > { %2896 = vmatmul.mubr.bf16.gmra.mrb[20].mxu0 %v9886_v1 }
 0x39d   : > { %v2755_v20 = vpop.f32.mrb[0].mxu0  ;;  %v2816_v43 = vpop.f32.mrb[0].mxu1 }
 0x39e   : > { %v2756_v21 = vadd.f32 %v2755_v20, %v9921_v54  ;;  %v2757_v22 = vpop.f32.mrb[1].mxu0  ;;  %v2818_v35 = vpop.f32.mrb[1].mxu1  ;;  %v2817_v33 = vadd.f32 %v2816_v43, %v9921_v54 }
 0x39f   : > { %v2758_v16 = vadd.f32 %v2757_v22, %v9921_v54  ;;  %v2759_v12 = vpop.f32.mrb[2].mxu0  ;;  %v2820_v26 = vpop.f32.mrb[2].mxu1  ;;  %v2819_v30 = vadd.f32 %v2818_v35, %v9921_v54 }
 0x3a0   : > { %v9925_v18 = vmul.f32 %v2756_v21, %v2756_v21  ;;  %v2761_v49 = vpop.f32.mrb[3].mxu0  ;;  %v2822_v47 = vpop.f32.mrb[3].mxu1  ;;  %v9939_v9 = vmul.f32 %v2817_v33, %v2817_v33  ;;  %v2760_v42 = vadd.f32 %v2759_v12, %v9931_v27  ;;  %v2821_v36 = vadd.f32 %v2820_v26, %v9931_v27 }
 0x3a1   : > { %v9928_v4 = vmul.f32 %v2758_v16, %v2758_v16  ;;  %v2762_v60 = vadd.f32 %v2761_v49, %v9931_v27  ;;  %v9942_v44 = vmul.f32 %v2819_v30, %v2819_v30  ;;  %v2823_v34 = vadd.f32 %v2822_v47, %v9931_v27 }
 0x3a2   : > { %2995 = vrot.lane.b32.xlu1 %v9925_v18, %s8056_s11  ;;  %v9953_v0 = vmul.f32 %v2760_v42, %v2760_v42  ;;  %v9964_v57 = vmul.f32 %v2821_v36, %v2821_v36 }
 0x3a3   : > { %3005 = vrot.lane.b32.xlu0 %v9928_v4, %s8056_s11  ;;  %13896 = vst [vmem:[#allocation11_spill] sm:$0xff] %v9942_v44  ;;  %v9949_v5 = vmul.f32 %v2762_v60, %v2762_v60  ;;  %v9961_v46 = vmul.f32 %v2823_v34, %v2823_v34 }
 0x3a5   : > { %v2765_v61 = vpop.f32.mrb[4].mxu0  ;;  %v2826_v3 = vpop.f32.mrb[4].mxu1  ;;  %13897 = vst [vmem:[#allocation6_spill] sm:$0xff] %v9961_v46 }
 0x3a6   : > { %v2767_v14 = vpop.f32.mrb[5].mxu0  ;;  %v2828_v37 = vpop.f32.mrb[5].mxu1  ;;  %3015 = vrot.lane.b32.xlu1 %v9939_v9, %s8056_s11  ;;  %v2766_v1 = vadd.f32 %v2765_v61, %v9937_v11  ;;  %v2827_v17 = vadd.f32 %v2826_v3, %v9937_v11 }
 0x3a7   : > { %v2769_v59 = vpop.f32.mrb[6].mxu0  ;;  %v2830_v6 = vpop.f32.mrb[6].mxu1  ;;  %3025 = vrot.lane.b32.xlu0 %v9942_v44, %s8056_s11  ;;  %v2768_v41 = vadd.f32 %v2767_v14, %v9937_v11  ;;  %v2829_v40 = vadd.f32 %v2828_v37, %v9937_v11 }
 0x3a8   : > { %v2771_v38 = vpop.f32.mrb[7].mxu0  ;;  %v2832_v58 = vpop.f32.mrb[7].mxu1  ;;  %v9971_v51 = vmul.f32 %v2766_v1, %v2766_v1  ;;  %v2770_v25 = vadd.f32 %v2769_v59, %v9959_v7  ;;  %v9981_v55 = vmul.f32 %v2827_v17, %v2827_v17  ;;  %v2831_v48 = vadd.f32 %v2830_v6, %v9959_v7 }
 0x3a9   : > { %v9974_v32 = vmul.f32 %v2768_v41, %v2768_v41  ;;  %v2772_v62 = vadd.f32 %v2771_v38, %v9959_v7  ;;  %v2833_v22 = vadd.f32 %v2832_v58, %v9959_v7  ;;  %v10016_v12 = vmul.f32 %v2829_v40, %v2829_v40 }
 0x3aa   : > { %3007 = vrot.lane.b32.xlu1 %v9949_v5, %s8056_s11  ;;  %v9984_v39 = vmul.f32 %v2770_v25, %v2770_v25  ;;  %v9996_v19 = vmul.f32 %v2831_v48, %v2831_v48 }
 0x3ab   : > { %2997 = vrot.lane.b32.xlu0 %v9953_v0, %s8056_s11  ;;  %v9993_v2 = vmul.f32 %v2772_v62, %v2772_v62  ;;  %13898 = vst [vmem:[#allocation5_spill] sm:$0xff] %v10016_v12  ;;  %v10023_v49 = vmul.f32 %v2833_v22, %v2833_v22 }
 0x3ad   : > { %v2775_v53 = vpop.f32.mrb[8].mxu0  ;;  %v2836_v10 = vpop.f32.mrb[8].mxu1  ;;  %13899 = vst [vmem:[#allocation10_spill] sm:$0xff] %v10023_v49 }
 0x3ae   : > { %v2777_v15 = vpop.f32.mrb[9].mxu0  ;;  %v2838_v31 = vpop.f32.mrb[9].mxu1  ;;  %3027 = vrot.lane.b32.xlu1 %v9961_v46, %s8056_s11  ;;  %v2776_v13 = vadd.f32 %v2775_v53, %v9989_v56  ;;  %v2837_v45 = vadd.f32 %v2836_v10, %v9989_v56 }
 0x3af   : > { %3017 = vrot.lane.b32.xlu0 %v9964_v57, %s8056_s11  ;;  %v2779_v63 = vpop.f32.mrb[10].mxu0  ;;  %v2840_v50 = vpop.f32.mrb[10].mxu1  ;;  %v2778_v52 = vadd.f32 %v2777_v15, %v9989_v56  ;;  %v2839_v26 = vadd.f32 %v2838_v31, %v9989_v56 }
 0x3b0   : > { %v2780_v28 = vpop.f32.mrb[11].mxu0  ;;  %v2841_v24 = vpop.f32.mrb[11].mxu1  ;;  %v10003_v8 = vmul.f32 %v2776_v13, %v2776_v13  ;;  %v10014_v35 = vmul.f32 %v2837_v45, %v2837_v45 }
 0x3b1   : > { %v10007_v29 = vmul.f32 %v2778_v52, %v2778_v52  ;;  %v10025_v47 = vmul.f32 %v2839_v26, %v2839_v26 }
 0x3b2   : > { %2999 = vrot.lane.b32.xlu1 %v9971_v51, %s8056_s11 }
 0x3b3   : > { %3009 = vrot.lane.b32.xlu0 %v9974_v32, %s8056_s11  ;;  %13900 = vst [vmem:[#allocation12_spill] sm:$0xff] %v10025_v47 }
 0x3b6   : > { %3019 = vrot.lane.b32.xlu1 %v9981_v55, %s8056_s11 }
 0x3b7   : > { %3001 = vrot.lane.b32.xlu0 %v9984_v39, %s8056_s11 }
 0x3ba   : > { %3011 = vrot.lane.b32.xlu1 %v9993_v2, %s8056_s11 }
 0x3bb   : > { %3021 = vrot.lane.b32.xlu0 %v9996_v19, %s8056_s11 }
 0x3bd   : > { %v7276_v23 = vpop.f32.mrb[12].mxu1 }
 0x3be   : > { %3003 = vrot.lane.b32.xlu1 %v10003_v8, %s8056_s11  ;;  %v7277_v20 = vpop.f32.mrb[13].mxu1 }
 0x3bf   : > { %v7278_v43 = vadd.f32 %v7277_v20, %v7276_v23  ;;  %3013 = vrot.lane.b32.xlu0 %v10007_v29, %s8056_s11  ;;  %v7279_v21 = vpop.f32.mrb[14].mxu1 }
 0x3c0   : > { %v7280_v16 = vpop.f32.mrb[15].mxu1 }
 0x3c1   : > { %v7281_v33 = vadd.f32 %v7280_v16, %v7279_v21  ;;  %v2939_v63 = vadd.f32 %v7278_v43, %v9921_v54 }
 0x3c2   : > { %3023 = vrot.lane.b32.xlu1 %v10014_v35, %s8056_s11 }
 0x3c3   : > { %3029 = vrot.lane.b32.xlu0 %v10016_v12, %s8056_s11  ;;  %v10084_v24 = vmul.f32 %v2939_v63, %v2939_v63  ;;  %v2942_v25 = vadd.f32 %v7281_v33, %v9931_v27 }
 0x3c5   : > { %v7282_v30 = vpop.f32.mrb[16].mxu1  ;;  %v10091_v48 = vmul.f32 %v2942_v25, %v2942_v25 }
 0x3c6   : > { %3031 = vrot.lane.b32.xlu1 %v10023_v49, %s8056_s11  ;;  %v7283_v60 = vpop.f32.mrb[17].mxu1 }
 0x3c7   : > { %v7284_v61 = vadd.f32 %v7283_v60, %v7282_v30  ;;  %3033 = vrot.lane.b32.xlu0 %v10025_v47, %s8056_s11  ;;  %v7285_v3 = vpop.f32.mrb[18].mxu1 }
 0x3c8   : > { %v7286_v42 = vpop.f32.mrb[19].mxu1 }
 0x3c9   : > { %v7287_v14 = vadd.f32 %v7286_v42, %v7285_v3  ;;  %v2947_v13 = vadd.f32 %v7284_v61, %v9937_v11 }
 0x3ca   : > { %3140 = vrot.lane.b32.xlu1 %v9953_v0, %s8058_s12 }
 0x3cb   : > { %3138 = vrot.lane.b32.xlu0 %v9925_v18, %s8058_s12  ;;  %v10098_v52 = vmul.f32 %v2947_v13, %v2947_v13  ;;  %v2950_v45 = vadd.f32 %v7287_v14, %v9959_v7 }
 0x3cd   : > { %v7288_v37 = vpop.f32.mrb[20].mxu1  ;;  %v10105_v40 = vmul.f32 %v2950_v45, %v2950_v45 }
 0x3ce   : > { %3144 = vrot.lane.b32.xlu1 %v9984_v39, %s8058_s12  ;;  %v7289_v59 = vpop.f32.mrb[21].mxu1 }
 0x3cf   : > { %v7290_v6 = vadd.f32 %v7289_v59, %v7288_v37  ;;  %3142 = vrot.lane.b32.xlu0 %v9971_v51, %s8058_s12  ;;  %v7291_v34 = vpop.f32.mrb[22].mxu1  ;;  %13901 = vst [vmem:[#allocation8_spill] sm:$0xff] %v10105_v40 }
 0x3d0   : > { %v7292_v38 = vpop.f32.mrb[23].mxu1 }
 0x3d1   : > { %v2955_v23 = vadd.f32 %v7290_v6, %v9989_v56 }
 0x3d2   : > { %3148 = vrot.lane.b32.xlu1 %v9928_v4, %s8058_s12 }
 0x3d3   : > { %3146 = vrot.lane.b32.xlu0 %v10003_v8, %s8058_s12  ;;  %v10112_v20 = vmul.f32 %v2955_v23, %v2955_v23 }
 0x3d6   : > { %3152 = vrot.lane.b32.xlu1 %v9974_v32, %s8058_s12 }
 0x3d7   : > { %3150 = vrot.lane.b32.xlu0 %v9949_v5, %s8058_s12 }
 0x3da   : > { %3156 = vrot.lane.b32.xlu1 %v10007_v29, %s8058_s12 }
 0x3db   : > { %3154 = vrot.lane.b32.xlu0 %v9993_v2, %s8058_s12 }
 0x3dd   : > { %v2877_v58 = vpop.f32.mrb[12].mxu0 }
 0x3de   : > { %v2879_v36 = vpop.f32.mrb[13].mxu0  ;;  %3160 = vrot.lane.b32.xlu1 %v9964_v57, %s8058_s12  ;;  %v2878_v43 = vadd.f32 %v2877_v58, %v9921_v54 }
 0x3df   : > { %v2881_v1 = vpop.f32.mrb[14].mxu0  ;;  %3158 = vrot.lane.b32.xlu0 %v9939_v9, %s8058_s12  ;;  %v2880_v22 = vadd.f32 %v2879_v36, %v9921_v54 }
 0x3e0   : > { %v2883_v41 = vpop.f32.mrb[15].mxu0  ;;  %v10119_v21 = vmul.f32 %v2878_v43, %v2878_v43  ;;  %v2882_v26 = vadd.f32 %v2881_v1, %v9931_v27 }
 0x3e1   : > { %v10126_v16 = vmul.f32 %v2880_v22, %v2880_v22  ;;  %v2884_v54 = vadd.f32 %v2883_v41, %v9931_v27 }
 0x3e2   : > { %3164 = vrot.lane.b32.xlu1 %v9996_v19, %s8058_s12  ;;  %13902 = vst [vmem:[#allocation7_spill] sm:$0xff] %v10119_v21  ;;  %v10133_v33 = vmul.f32 %v2882_v26, %v2882_v26 }
 0x3e3   : > { %3162 = vrot.lane.b32.xlu0 %v9981_v55, %s8058_s12  ;;  %13903 = vst [vmem:[#allocation9_spill] sm:$0xff] %v10126_v16  ;;  %v10140_v30 = vmul.f32 %v2884_v54, %v2884_v54 }
 0x3e4   : > { %13904 = vst [vmem:[#allocation18_spill] sm:$0xff] %v10133_v33 }
 0x3e5   : > { %v10059_v53 = vpop.f32.mrb[16].mxu0  ;;  %13905 = vst [vmem:[#allocation19_spill] sm:$0xff] %v10140_v30 }
 0x3e6   : > { %v10061_v10 = vpop.f32.mrb[17].mxu0  ;;  %3168 = vrot.lane.b32.xlu1 %v9942_v44, %s8058_s12 }
 0x3e7   : > { %v10065_v15 = vpop.f32.mrb[18].mxu0  ;;  %3166 = vrot.lane.b32.xlu0 %v10014_v35, %s8058_s12  ;;  %v2890_v44 = vadd.f32 %v10061_v10, %v9937_v11 }
 0x3e8   : > { %v10069_v31 = vpop.f32.mrb[19].mxu0 }
 0x3e9   : > { %v2894_v10 = vadd.f32 %v10069_v31, %v9959_v7 }
 0x3ea   : > { %3172 = vrot.lane.b32.xlu1 %v10016_v12, %s8058_s12 }
 0x3eb   : > { %3170 = vrot.lane.b32.xlu0 %v9961_v46, %s8058_s12 }
 0x3ed   : > { %v10076_v50 = vpop.f32.mrb[20].mxu0 }
 0x3ee   : > { %v10078_v17 = vpop.f32.mrb[21].mxu0  ;;  %3176 = vrot.lane.b32.xlu1 %v10025_v47, %s8058_s12  ;;  %v2898_v31 = vadd.f32 %v10076_v50, %v9989_v56 }
 0x3ef   : > { %3174 = vrot.lane.b32.xlu0 %v10023_v49, %s8058_s12  ;;  %v2901_v28 = vpop.f32.mrb[22].mxu0 }
 0x3f0   : > { %v2902_v62 = vpop.f32.mrb[23].mxu0 }
 0x3f1   : > { %v13693_v62 = vlaneseq }
 0x3f2   : > { %3055 = vrot.lane.b32.xlu1 %v10084_v24, %s8056_s11 }
 0x3f3   : > { %3198 = vrot.lane.b32.xlu0 %v10084_v24, %s8058_s12  ;;  %v10187_v23 = vand.u32 127, %v13693_v62 }
 0x3f5   : > { %vm3067_vm11 = vcmp.lt.s32.totalorder %v10187_v23, 127  ;;  %vm3208_vm13 = vcmp.lt.s32.totalorder %v10187_v23, 126  ;;  %vm3349_vm4 = vcmp.lt.s32.totalorder %v10187_v23, 125  ;;  %vm3490_vm12 = vcmp.lt.s32.totalorder %v10187_v23, 122 }
 0x3f6   : > { %3200 = vrot.lane.b32.xlu1 %v10091_v48, %s8058_s12  ;;  %vm3631_vm1 = vcmp.lt.s32.totalorder %v10187_v23, 119  ;;  %vm3772_vm0 = vcmp.lt.s32.totalorder %v10187_v23, 116  ;;  %vm3913_vm2 = vcmp.lt.s32.totalorder %v10187_v23, 113  ;;  %vm4054_vm5 = vcmp.lt.s32.totalorder %v10187_v23, 98 }
 0x3f7   : > { %3057 = vrot.lane.b32.xlu0 %v10091_v48, %s8056_s11  ;;  %vm4195_vm7 = vcmp.lt.s32.totalorder %v10187_v23, 83  ;;  %vm4336_vm14 = vcmp.lt.s32.totalorder %v10187_v23, 68 }
 0x3fa   : > { %3059 = vrot.lane.b32.xlu1 %v10098_v52, %s8056_s11 }
 0x3fb   : > { %3202 = vrot.lane.b32.xlu0 %v10098_v52, %s8058_s12 }
 0x3fe   : > { %3204 = vrot.lane.b32.xlu1 %v10105_v40, %s8058_s12 }
 0x3ff   : > { %3061 = vrot.lane.b32.xlu0 %v10105_v40, %s8056_s11 }
 0x402   : > { %3063 = vrot.lane.b32.xlu1 %v10112_v20, %s8056_s11 }
 0x403   : > { %3206 = vrot.lane.b32.xlu0 %v10112_v20, %s8058_s12 }
 0x406   : > { %3035 = vrot.lane.b32.xlu1 %v10119_v21, %s8056_s11 }
 0x407   : > { %3178 = vrot.lane.b32.xlu0 %v10119_v21, %s8058_s12 }
 0x40a   : > { %3188 = vrot.lane.b32.xlu1 %v10126_v16, %s8058_s12 }
 0x40b   : > { %3045 = vrot.lane.b32.xlu0 %v10126_v16, %s8056_s11 }
 0x40e   : > { %3180 = vrot.lane.b32.xlu1 %v10133_v33, %s8058_s12 }
 0x40f   : > { %3037 = vrot.lane.b32.xlu0 %v10133_v33, %s8056_s11 }
 0x412   : > { %3047 = vrot.lane.b32.xlu1 %v10140_v30, %s8056_s11 }
 0x413   : > { %3190 = vrot.lane.b32.xlu0 %v10140_v30, %s8058_s12  ;;  %v2888_v30 = vadd.f32 %v10059_v53, %v9937_v11 }
 0x414   : > { %v10146_v60 = vpop.permute.xlu1 %2995 }
 0x415   : > { %v10148_v61 = vpop.permute.xlu0 %3005  ;;  %v10220_v21 = vmul.f32 %v2888_v30, %v2888_v30 }
 0x416   : > { %v3093_v54 = vsel %vm3067_vm11, %v10146_v60, %v10148_v61 }
 0x417   : > { %v3103_v62 = vadd.f32 %v3093_v54, %v9925_v18  ;;  %13906 = vst [vmem:[#allocation20_spill] sm:$0xff] %v10220_v21 }
 0x418   : > { %v10150_v3 = vpop.permute.xlu1 %3015 }
 0x419   : > { %v10152_v27 = vpop.permute.xlu0 %3025 }
 0x41c   : > { %v10154_v42 = vpop.permute.xlu1 %3007 }
 0x41d   : > { %v10156_v14 = vpop.permute.xlu0 %2997 }
 0x41e   : > { %v3094_v46 = vsel %vm3067_vm11, %v10156_v14, %v10154_v42 }
 0x41f   : > { %v3110_v18 = vadd.f32 %v3094_v46, %v9953_v0  ;;  %v2892_v0 = vadd.f32 %v10065_v15, %v9959_v7  ;;  %v10253_v15 = vmul.f32 %v2894_v10, %v2894_v10 }
 0x420   : > { %v10158_v37 = vpop.permute.xlu1 %3027 }
 0x421   : > { %v10160_v59 = vpop.permute.xlu0 %3017  ;;  %v10241_v11 = vmul.f32 %v2892_v0, %v2892_v0 }
 0x422   : > { %v3089_v50 = vsel %vm3067_vm11, %v10154_v42, %v10160_v59 }
 0x423   : > { %13908 = vst [vmem:[#allocation22_spill] sm:$0xff] %v10241_v11 }
 0x424   : > { %v10162_v6 = vpop.permute.xlu1 %2999 }
 0x425   : > { %v10164_v34 = vpop.permute.xlu0 %3009 }
 0x428   : > { %v10166_v38 = vpop.permute.xlu1 %3019 }
 0x429   : > { %v10168_v58 = vpop.permute.xlu0 %3001 }
 0x42c   : > { %v10170_v36 = vpop.permute.xlu1 %3011 }
 0x42d   : > { %v10172_v1 = vpop.permute.xlu0 %3021 }
 0x430   : > { %v10174_v41 = vpop.permute.xlu1 %3003 }
 0x431   : > { %v10176_v63 = vpop.permute.xlu0 %3013 }
 0x434   : > { %v10178_v28 = vpop.permute.xlu1 %3023 }
 0x435   : > { %v10180_v25 = vpop.permute.xlu0 %3029 }
 0x438   : > { %v10182_v13 = vpop.permute.xlu1 %3031 }
 0x439   : > { %v10184_v45 = vpop.permute.xlu0 %3033 }
 0x43c   : > { %v10189_v43 = vpop.permute.xlu1 %3140 }
 0x43d   : > { %v10191_v22 = vpop.permute.xlu0 %3138 }
 0x440   : > { %v10194_v26 = vpop.permute.xlu1 %3144 }
 0x441   : > { %v10200_v47 = vpop.permute.xlu0 %3142 }
 0x444   : > { %v3149_v49 = vpop.permute.xlu1 %3148 }
 0x445   : > { %v3234_v12 = vsel %vm3208_vm13, %v10191_v22, %v3149_v49  ;;  %v10207_v33 = vpop.permute.xlu0 %3146 }
 0x446   : > { %v10215_v16 = vadd.f32 %v3234_v12, %v3103_v62  ;;  %v10233_v12 = vmul.f32 %v2890_v44, %v2890_v44  ;;  %v3095_v44 = vsel %vm3067_vm11, %v10162_v6, %v10164_v34 }
 0x447   : > { %v3117_v7 = vadd.f32 %v3095_v44, %v9971_v51 }
 0x448   : > { %3279 = vrot.lane.b32.xlu1 %v10215_v16, %s8059_s13  ;;  %13907 = vst [vmem:[#allocation21_spill] sm:$0xff] %v10233_v12  ;;  %v3153_v46 = vpop.permute.xlu1 %3152 }
 0x449   : > { %v3151_v54 = vpop.permute.xlu0 %3150  ;;  %v3236_v62 = vsel %vm3208_vm13, %v10200_v47, %v3153_v46 }
 0x44a   : > { %v3235_v53 = vsel %vm3208_vm13, %v10189_v43, %v3151_v54  ;;  %v10269_v0 = vadd.f32 %v3236_v62, %v3117_v7  ;;  %v10283_v62 = vmul.f32 %v2898_v31, %v2898_v31 }
 0x44b   : > { %v10227_v40 = vadd.f32 %v3235_v53, %v3110_v18  ;;  %v3096_v53 = vsel %vm3067_vm11, %v10168_v58, %v10170_v36 }
 0x44c   : > { %3039 = vrot.lane.b32.xlu1 %v10220_v21, %s8056_s11  ;;  %v3157_v30 = vpop.permute.xlu1 %3156  ;;  %v3124_v44 = vadd.f32 %v3096_v53, %v9984_v39  ;;  %v2900_v39 = vadd.f32 %v10078_v17, %v9989_v56  ;;  %v3088_v56 = vsel %vm3067_vm11, %v10148_v61, %v10150_v3  ;;  %v3091_v61 = vsel %vm3067_vm11, %v10170_v36, %v10172_v1 }
 0x44d   : > { %3281 = vrot.lane.b32.xlu0 %v10227_v40, %s8059_s13  ;;  %v3155_v18 = vpop.permute.xlu0 %3154  ;;  %v3238_v17 = vsel %vm3208_vm13, %v10207_v33, %v3157_v30 }
 0x44e   : > { %v3237_v51 = vsel %vm3208_vm13, %v10194_v26, %v3155_v18 }
 0x44f   : > { %v10285_v7 = vadd.f32 %v3237_v51, %v3124_v44 }
 0x450   : > { %3192 = vrot.lane.b32.xlu1 %v10233_v12, %s8058_s12  ;;  %v3161_v10 = vpop.permute.xlu1 %3160 }
 0x451   : > { %3182 = vrot.lane.b32.xlu0 %v10220_v21, %s8058_s12  ;;  %v3111_v21 = vadd.f32 %v3089_v50, %v9949_v5  ;;  %v3097_v5 = vsel %vm3067_vm11, %v10174_v41, %v10176_v63  ;;  %v3104_v50 = vadd.f32 %v3088_v56, %v9928_v4 }
 0x454   : > { %3184 = vrot.lane.b32.xlu1 %v10241_v11, %s8058_s12  ;;  %v3165_v31 = vpop.permute.xlu1 %3164 }
 0x455   : > { %3049 = vrot.lane.b32.xlu0 %v10233_v12, %s8056_s11  ;;  %v3230_v12 = vsel %vm3208_vm13, %v3151_v54, %v3161_v10  ;;  %v10306_v54 = vmul.f32 %v2900_v39, %v2900_v39  ;;  %v3232_v4 = vsel %vm3208_vm13, %v3155_v18, %v3165_v31 }
 0x456   : > { %v10296_v42 = vadd.f32 %v3230_v12, %v3111_v21  ;;  %v3131_v21 = vadd.f32 %v3097_v5, %v10003_v8  ;;  %v3090_v8 = vsel %vm3067_vm11, %v10164_v34, %v10166_v38  ;;  %v3125_v5 = vadd.f32 %v3091_v61, %v9993_v2 }
 0x457   : > { %v3083_v34 = vsel %vm3067_vm11, %v10150_v3, %v10152_v27  ;;  %v3118_v56 = vadd.f32 %v3090_v8, %v9974_v32  ;;  %v3092_v2 = vsel %vm3067_vm11, %v10176_v63, %v10178_v28 }
 0x458   : > { %3051 = vrot.lane.b32.xlu1 %v10253_v15, %s8056_s11  ;;  %v10318_v51 = vpop.permute.xlu1 %3168  ;;  %v10355_v18 = vadd.f32 %v3232_v4, %v3125_v5  ;;  %v3105_v32 = vadd.f32 %v3083_v34, %v9939_v9  ;;  %v3132_v63 = vadd.f32 %v3092_v2, %v10007_v29  ;;  %v3084_v9 = vsel %vm3067_vm11, %v10160_v59, %v10158_v37 }
 0x459   : > { %3041 = vrot.lane.b32.xlu0 %v10241_v11, %s8056_s11  ;;  %v3159_v11 = vpop.permute.xlu0 %3158  ;;  %v3112_v59 = vadd.f32 %v3084_v9, %v9964_v57  ;;  %v3087_v4 = vsel %vm3067_vm11, %v10178_v28, %v10184_v45 }
 0x45a   : > { %v3229_v12 = vsel %vm3208_vm13, %v3149_v49, %v3159_v11  ;;  %v10333_v49 = vadd.f32 %v3238_v17, %v3131_v21  ;;  %v3224_v3 = vsel %vm3208_vm13, %v3159_v11, %v10318_v51  ;;  %v3133_v28 = vadd.f32 %v3087_v4, %v10014_v35 }
 0x45b   : > { %v10335_v39 = vadd.f32 %v3229_v12, %v3104_v50  ;;  %v3085_v50 = vsel %vm3067_vm11, %v10166_v38, %v10180_v25  ;;  %v10382_v11 = vadd.f32 %v3224_v3, %v3105_v32 }
 0x45c   : > { %3283 = vrot.lane.b32.xlu1 %v10269_v0, %s8059_s13  ;;  %v3119_v61 = vadd.f32 %v3085_v50, %v9981_v55  ;;  %v3086_v55 = vsel %vm3067_vm11, %v10172_v1, %v10182_v13 }
 0x45d   : > { %3194 = vrot.lane.b32.xlu0 %v10253_v15, %s8058_s12  ;;  %v3163_v53 = vpop.permute.xlu0 %3162  ;;  %v3126_v34 = vadd.f32 %v3086_v55, %v9996_v19 }
 0x45e   : > { %v3231_v36 = vsel %vm3208_vm13, %v3153_v46, %v3163_v53  ;;  %v10357_v46 = vpop.permute.xlu1 %3172 }
 0x45f   : > { %v10359_v17 = vadd.f32 %v3231_v36, %v3118_v56  ;;  %v3226_v29 = vsel %vm3208_vm13, %v3163_v53, %v10357_v46 }
 0x460   : > { %3043 = vrot.lane.b32.xlu1 %v10283_v62, %s8056_s11 }
 0x461   : > { %3285 = vrot.lane.b32.xlu0 %v10285_v7, %s8059_s13  ;;  %v3167_v44 = vpop.permute.xlu0 %3166 }
 0x462   : > { %v3233_v12 = vsel %vm3208_vm13, %v3157_v30, %v3167_v44  ;;  %v10393_v8 = vpop.permute.xlu1 %3176 }
 0x463   : > { %v10384_v30 = vadd.f32 %v3233_v12, %v3132_v63  ;;  %v3228_v57 = vsel %vm3208_vm13, %v3167_v44, %v10393_v8 }
 0x464   : > { %3291 = vrot.lane.b32.xlu1 %v10296_v42, %s8059_s13  ;;  %v10426_v1 = vadd.f32 %v3228_v57, %v3133_v28  ;;  %v13913_v28 = vld [vmem:[#allocation8_spill] sm:$0xff] }
 0x465   : > { %3186 = vrot.lane.b32.xlu0 %v10283_v62, %s8058_s12  ;;  %v10364_v21 = vpop.permute.xlu0 %3170 }
 0x466   : > { %v3225_v38 = vsel %vm3208_vm13, %v3161_v10, %v10364_v21  ;;  %v10410_v10 = vadd.f32 %v3226_v29, %v3119_v61  ;;  %13911 = vst [vmem:[#allocation25_spill] sm:$0xff] %v10426_v1  ;;  %v3056_v2 = vpop.permute.xlu1 %3055 }
 0x467   : > { %v10412_v53 = vadd.f32 %v3225_v38, %v3112_v59  ;;  %v3098_v63 = vsel %vm3067_vm11, %v3056_v2, %v10146_v60 }
 0x468   : > { %3196 = vrot.lane.b32.xlu1 %v10306_v54, %s8058_s12  ;;  %13909 = vst [vmem:[#allocation23_spill] sm:$0xff] %v10410_v10  ;;  %v3109_v29 = vadd.f32 %v3098_v63, %v10084_v24  ;;  %s8082_s12 = smov 83  }
 0x469   : > { %3053 = vrot.lane.b32.xlu0 %v10306_v54, %s8056_s11  ;;  %v10402_v5 = vpop.permute.xlu0 %3174  ;;  %13910 = vst [vmem:[#allocation24_spill] sm:$0xff] %v10412_v53  ;;  %s8081_s11 = smov 98  }
 0x46a   : > { %v3227_v36 = vsel %vm3208_vm13, %v3165_v31, %v10402_v5  ;;  %v10440_v19 = vpop.permute.xlu1 %3200 }
 0x46b   : > { %v10428_v56 = vadd.f32 %v3227_v36, %v3126_v34 }
 0x46c   : > { %3287 = vrot.lane.b32.xlu1 %v10333_v49, %s8059_s13 }
 0x46d   : > { %3289 = vrot.lane.b32.xlu0 %v10335_v39, %s8059_s13  ;;  %13912 = vst [vmem:[#allocation26_spill] sm:$0xff] %v10428_v56  ;;  %v10430_v44 = vpop.permute.xlu0 %3198 }
 0x46e   : > { %v10448_v31 = vpop.permute.xlu1 %3059  ;;  %v3239_v61 = vsel %vm3208_vm13, %v10430_v44, %v10191_v22 }
 0x46f   : > { %v3100_v60 = vsel %vm3067_vm11, %v10448_v31, %v10162_v6  ;;  %v10496_v24 = vadd.f32 %v3239_v61, %v3109_v29 }
 0x470   : > { %3295 = vrot.lane.b32.xlu1 %v10355_v18, %s8059_s13  ;;  %v3123_v22 = vadd.f32 %v3100_v60, %v10098_v52 }
 0x471   : > { %3293 = vrot.lane.b32.xlu0 %v10359_v17, %s8059_s13  ;;  %v10442_v35 = vpop.permute.xlu0 %3057 }
 0x472   : > { %v10460_v32 = vpop.permute.xlu1 %3204  ;;  %v3099_v38 = vsel %vm3067_vm11, %v10442_v35, %v10156_v14 }
 0x473   : > { %v3116_v55 = vadd.f32 %v3099_v38, %v10091_v48 }
 0x474   : > { %3299 = vrot.lane.b32.xlu1 %v10382_v11, %s8059_s13 }
 0x475   : > { %3297 = vrot.lane.b32.xlu0 %v10384_v30, %s8059_s13  ;;  %v10450_v3 = vpop.permute.xlu0 %3202 }
 0x476   : > { %v10471_v50 = vpop.permute.xlu1 %3063  ;;  %v3241_v6 = vsel %vm3208_vm13, %v10450_v3, %v10200_v47  ;;  %v3240_v47 = vsel %vm3208_vm13, %v10440_v19, %v10189_v43 }
 0x477   : > { %v3102_v14 = vsel %vm3067_vm11, %v10471_v50, %v10174_v41  ;;  %v10520_v48 = vadd.f32 %v3241_v6, %v3123_v22  ;;  %v10523_v41 = vadd.f32 %v3240_v47, %v3116_v55  ;;  %v13916_v55 = vld [vmem:[#allocation7_spill] sm:$0xff] }
 0x478   : > { %3303 = vrot.lane.b32.xlu1 %v10410_v10, %s8059_s13  ;;  %v3137_v52 = vadd.f32 %v3102_v14, %v10112_v20  ;;  %v3242_v20 = vsel %vm3208_vm13, %v10460_v32, %v10194_v26 }
 0x479   : > { %3301 = vrot.lane.b32.xlu0 %v10412_v53, %s8059_s13  ;;  %v10462_v12 = vpop.permute.xlu0 %3061 }
 0x47a   : > { %v3036_v59 = vpop.permute.xlu1 %3035  ;;  %v3101_v57 = vsel %vm3067_vm11, %v10462_v12, %v10168_v58 }
 0x47b   : > { %v3130_v36 = vadd.f32 %v3101_v57, %v13913_v28  ;;  %v3078_v34 = vsel %vm3067_vm11, %v10152_v27, %v3036_v59  ;;  %v13917_v57 = vld [vmem:[#allocation9_spill] sm:$0xff] }
 0x47c   : > { %3307 = vrot.lane.b32.xlu1 %v10426_v1, %s8059_s13 }
 0x47d   : > { %3305 = vrot.lane.b32.xlu0 %v10428_v56, %s8059_s13  ;;  %v10473_v9 = vpop.permute.xlu0 %3206  ;;  %v10544_v60 = vadd.f32 %v3242_v20, %v3130_v36 }
 0x47e   : > { %v3243_v58 = vsel %vm3208_vm13, %v10473_v9, %v10207_v33  ;;  %v3189_v63 = vpop.permute.xlu1 %3188  ;;  %v13914_v33 = vld [vmem:[#allocation11_spill] sm:$0xff] }
 0x47f   : > { %v10541_v43 = vadd.f32 %v3243_v58, %v3137_v52  ;;  %v3106_v61 = vadd.f32 %v3078_v34, %v13914_v33  ;;  %v13922_v33 = vld [vmem:[#allocation19_spill] sm:$0xff] }
 0x480   : > { %3422 = vrot.lane.b32.xlu1 %v10227_v40, %s8062_s16 }
 0x481   : > { %3420 = vrot.lane.b32.xlu0 %v10215_v16, %s8062_s16  ;;  %v3179_v4 = vpop.permute.xlu0 %3178 }
 0x482   : > { %v3219_v27 = vsel %vm3208_vm13, %v10318_v51, %v3179_v4  ;;  %v3181_v14 = vpop.permute.xlu1 %3180 }
 0x483   : > { %v10557_v26 = vadd.f32 %v3219_v27, %v3106_v61  ;;  %v13923_v27 = vld [vmem:[#allocation18_spill] sm:$0xff] }
 0x484   : > { %3426 = vrot.lane.b32.xlu1 %v10285_v7, %s8062_s16 }
 0x485   : > { %3424 = vrot.lane.b32.xlu0 %v10269_v0, %s8062_s16  ;;  %v3046_v29 = vpop.permute.xlu0 %3045  ;;  %13915 = vst [vmem:[#allocation8_spill] sm:$0xff] %v10557_v26 }
 0x486   : > { %v3073_v38 = vsel %vm3067_vm11, %v3036_v59, %v3046_v29  ;;  %v3068_v22 = vsel %vm3067_vm11, %v3046_v29, %v3056_v2  ;;  %v3214_v2 = vsel %vm3208_vm13, %v3179_v4, %v3189_v63  ;;  %v3209_v59 = vsel %vm3208_vm13, %v3189_v63, %v10430_v44  ;;  %v3048_v58 = vpop.permute.xlu1 %3047  ;;  %v13920_v4 = vld [vmem:[#allocation6_spill] sm:$0xff] }
 0x487   : > { %v3107_v6 = vadd.f32 %v3073_v38, %v13916_v55  ;;  %v3108_v47 = vadd.f32 %v3068_v22, %v13917_v57  ;;  %v3069_v44 = vsel %vm3067_vm11, %v3048_v58, %v10442_v35 }
 0x488   : > { %3430 = vrot.lane.b32.xlu1 %v10335_v39, %s8062_s16  ;;  %v3115_v61 = vadd.f32 %v3069_v44, %v13922_v33 }
 0x489   : > { %3428 = vrot.lane.b32.xlu0 %v10333_v49, %s8062_s16  ;;  %v3038_v51 = vpop.permute.xlu0 %3037  ;;  %v10570_v52 = vadd.f32 %v3214_v2, %v3107_v6  ;;  %v10572_v28 = vadd.f32 %v3209_v59, %v3108_v47 }
 0x48a   : > { %v3079_v36 = vsel %vm3067_vm11, %v10158_v37, %v3038_v51  ;;  %v3074_v63 = vsel %vm3067_vm11, %v3038_v51, %v3048_v58  ;;  %v3220_v37 = vsel %vm3208_vm13, %v10364_v21, %v3181_v14  ;;  %v13926_v51 = vld [vmem:[#allocation5_spill] sm:$0xff] }
 0x48b   : > { %13918 = vst [vmem:[#allocation11_spill] sm:$0xff] %v10570_v52  ;;  %13919 = vst [vmem:[#allocation7_spill] sm:$0xff] %v10572_v28  ;;  %v3113_v34 = vadd.f32 %v3079_v36, %v13920_v4  ;;  %v3114_v35 = vadd.f32 %v3074_v63, %v13923_v27  ;;  %v13928_v63 = vld [vmem:[#allocation20_spill] sm:$0xff] }
 0x48c   : > { %3434 = vrot.lane.b32.xlu1 %v10359_v17, %s8062_s16 }
 0x48d   : > { %3432 = vrot.lane.b32.xlu0 %v10296_v42, %s8062_s16  ;;  %v3191_v29 = vpop.permute.xlu0 %3190  ;;  %v10594_v20 = vadd.f32 %v3220_v37, %v3113_v34 }
 0x48e   : > { %v3210_v38 = vsel %vm3208_vm13, %v3191_v29, %v10440_v19  ;;  %v3215_v22 = vsel %vm3208_vm13, %v3181_v14, %v3191_v29 }
 0x48f   : > { %13921 = vst [vmem:[#allocation9_spill] sm:$0xff] %v10594_v20  ;;  %v10607_v21 = vadd.f32 %v3210_v38, %v3115_v61  ;;  %v10609_v55 = vadd.f32 %v3215_v22, %v3114_v35 }
 0x490   : > { %3438 = vrot.lane.b32.xlu1 %v10384_v30, %s8062_s16 }
 0x491   : > { %3436 = vrot.lane.b32.xlu0 %v10355_v18, %s8062_s16  ;;  %13924 = vst [vmem:[#allocation6_spill] sm:$0xff] %v10607_v21  ;;  %13925 = vst [vmem:[#allocation19_spill] sm:$0xff] %v10609_v55 }
 0x494   : > { %3442 = vrot.lane.b32.xlu1 %v10412_v53, %s8062_s16 }
 0x495   : > { %3440 = vrot.lane.b32.xlu0 %v10382_v11, %s8062_s16 }
 0x498   : > { %3446 = vrot.lane.b32.xlu1 %v10428_v56, %s8062_s16 }
 0x499   : > { %3444 = vrot.lane.b32.xlu0 %v10410_v10, %s8062_s16 }
 0x49c   : > { %3339 = vrot.lane.b32.xlu1 %v10496_v24, %s8059_s13 }
 0x49d   : > { %3448 = vrot.lane.b32.xlu0 %v10426_v1, %s8062_s16 }
 0x4a0   : > { %3343 = vrot.lane.b32.xlu1 %v10520_v48, %s8059_s13 }
 0x4a1   : > { %3341 = vrot.lane.b32.xlu0 %v10523_v41, %s8059_s13 }
 0x4a4   : > { %3347 = vrot.lane.b32.xlu1 %v10541_v43, %s8059_s13 }
 0x4a5   : > { %3345 = vrot.lane.b32.xlu0 %v10544_v60, %s8059_s13 }
 0x4a8   : > { %3450 = vrot.lane.b32.xlu1 %v10557_v26, %s8062_s16 }
 0x4a9   : > { %3309 = vrot.lane.b32.xlu0 %v10557_v26, %s8059_s13 }
 0x4ac   : > { %3319 = vrot.lane.b32.xlu1 %v10570_v52, %s8059_s13 }
 0x4ad   : > { %3329 = vrot.lane.b32.xlu0 %v10572_v28, %s8059_s13 }
 0x4b0   : > { %3470 = vrot.lane.b32.xlu1 %v10572_v28, %s8062_s16 }
 0x4b1   : > { %3460 = vrot.lane.b32.xlu0 %v10570_v52, %s8062_s16 }
 0x4b4   : > { %3311 = vrot.lane.b32.xlu1 %v10594_v20, %s8059_s13 }
 0x4b5   : > { %3452 = vrot.lane.b32.xlu0 %v10594_v20, %s8062_s16 }
 0x4b8   : > { %3331 = vrot.lane.b32.xlu1 %v10607_v21, %s8059_s13 }
 0x4b9   : > { %3321 = vrot.lane.b32.xlu0 %v10609_v55, %s8059_s13 }
 0x4ba   : > { %v10615_v19 = vpop.permute.xlu1 %3279 }
 0x4bc   : > { %3462 = vrot.lane.b32.xlu1 %v10609_v55, %s8062_s16 }
 0x4bd   : > { %3472 = vrot.lane.b32.xlu0 %v10607_v21, %s8062_s16 }
 0x4be   : > { %v3040_v6 = vpop.permute.xlu1 %3039 }
 0x4bf   : > { %v10621_v14 = vpop.permute.xlu0 %3281  ;;  %v3080_v57 = vsel %vm3067_vm11, %v10180_v25, %v3040_v6 }
 0x4c0   : > { %v3120_v2 = vadd.f32 %v3080_v57, %v13926_v51 }
 0x4c2   : > { %v3193_v47 = vpop.permute.xlu1 %3192 }
 0x4c3   : > { %v3183_v59 = vpop.permute.xlu0 %3182  ;;  %v3211_v33 = vsel %vm3208_vm13, %v3193_v47, %v10450_v3 }
 0x4c4   : > { %v3221_v36 = vsel %vm3208_vm13, %v10357_v46, %v3183_v59  ;;  %v13929_v46 = vld [vmem:[#allocation21_spill] sm:$0xff]  ;;  %v3216_v61 = vsel %vm3208_vm13, %v3183_v59, %v3193_v47 }
 0x4c5   : > { %v10630_v58 = vadd.f32 %v3221_v36, %v3120_v2 }
 0x4c6   : > { %v3185_v4 = vpop.permute.xlu1 %3184 }
 0x4c7   : > { %13927 = vst [vmem:[#allocation18_spill] sm:$0xff] %v10630_v58  ;;  %v3050_v34 = vpop.permute.xlu0 %3049  ;;  %3454 = vrot.lane.b32.xlu1 %v10630_v58, %s8062_s16  ;;  %3313 = vrot.lane.b32.xlu0 %v10630_v58, %s8059_s13 }
 0x4c8   : > { %v3070_v25 = vsel %vm3067_vm11, %v3050_v34, %v10448_v31  ;;  %v3075_v44 = vsel %vm3067_vm11, %v3040_v6, %v3050_v34  ;;  %v13932_v6 = vld [vmem:[#allocation10_spill] sm:$0xff] }
 0x4c9   : > { %v3121_v29 = vadd.f32 %v3075_v44, %v13928_v63  ;;  %v3122_v37 = vadd.f32 %v3070_v25, %v13929_v46  ;;  %v13934_v63 = vld [vmem:[#allocation22_spill] sm:$0xff] }
 0x4ca   : > { %v3052_v27 = vpop.permute.xlu1 %3051 }
 0x4cb   : > { %v10648_v35 = vadd.f32 %v3216_v61, %v3121_v29  ;;  %v10650_v38 = vadd.f32 %v3211_v33, %v3122_v37  ;;  %v3042_v31 = vpop.permute.xlu0 %3041  ;;  %v3071_v51 = vsel %vm3067_vm11, %v3052_v27, %v10462_v12 }
 0x4cc   : > { %v3081_v22 = vsel %vm3067_vm11, %v10182_v13, %v3042_v31  ;;  %v3222_v13 = vsel %vm3208_vm13, %v10402_v5, %v3185_v4  ;;  %v3076_v2 = vsel %vm3067_vm11, %v3042_v31, %v3052_v27  ;;  %v3129_v5 = vadd.f32 %v3071_v51, %v10253_v15 }
 0x4cd   : > { %13930 = vst [vmem:[#allocation5_spill] sm:$0xff] %v10648_v35  ;;  %13931 = vst [vmem:[#allocation20_spill] sm:$0xff] %v10650_v38  ;;  %3323 = vrot.lane.b32.xlu1 %v10648_v35, %s8059_s13  ;;  %3333 = vrot.lane.b32.xlu0 %v10650_v38, %s8059_s13  ;;  %v3127_v57 = vadd.f32 %v3081_v22, %v13932_v6  ;;  %v3128_v29 = vadd.f32 %v3076_v2, %v13934_v63  ;;  %v13937_v22 = vld [vmem:[#allocation12_spill] sm:$0xff] }
 0x4ce   : > { %v10659_v3 = vpop.permute.xlu1 %3283 }
 0x4cf   : > { %v3195_v47 = vpop.permute.xlu0 %3194  ;;  %v10674_v36 = vadd.f32 %v3222_v13, %v3127_v57 }
 0x4d0   : > { %v3212_v25 = vsel %vm3208_vm13, %v3195_v47, %v10460_v32  ;;  %v3217_v44 = vsel %vm3208_vm13, %v3185_v4, %v3195_v47 }
 0x4d1   : > { %3474 = vrot.lane.b32.xlu1 %v10650_v38, %s8062_s16  ;;  %3464 = vrot.lane.b32.xlu0 %v10648_v35, %s8062_s16  ;;  %13933 = vst [vmem:[#allocation21_spill] sm:$0xff] %v10674_v36  ;;  %v10691_v46 = vadd.f32 %v3217_v44, %v3128_v29  ;;  %v10693_v37 = vadd.f32 %v3212_v25, %v3129_v5 }
 0x4d2   : > { %v3044_v59 = vpop.permute.xlu1 %3043 }
 0x4d3   : > { %v10676_v34 = vpop.permute.xlu0 %3285  ;;  %13935 = vst [vmem:[#allocation10_spill] sm:$0xff] %v10691_v46  ;;  %13936 = vst [vmem:[#allocation22_spill] sm:$0xff] %v10693_v37  ;;  %v3082_v15 = vsel %vm3067_vm11, %v10184_v45, %v3044_v59 }
 0x4d4   : > { %v3134_v6 = vadd.f32 %v3082_v15, %v13937_v22 }
 0x4d5   : > { %3456 = vrot.lane.b32.xlu0 %v10674_v36, %s8062_s16  ;;  %3315 = vrot.lane.b32.xlu1 %v10674_v36, %s8059_s13 }
 0x4d6   : > { %v10689_v12 = vpop.permute.xlu1 %3291 }
 0x4d7   : > { %v3187_v32 = vpop.permute.xlu0 %3186 }
 0x4d8   : > { %v3223_v61 = vsel %vm3208_vm13, %v10393_v8, %v3187_v32 }
 0x4d9   : > { %3325 = vrot.lane.b32.xlu0 %v10691_v46, %s8059_s13  ;;  %3335 = vrot.lane.b32.xlu1 %v10693_v37, %s8059_s13  ;;  %v10717_v57 = vadd.f32 %v3223_v61, %v3134_v6 }
 0x4da   : > { %v3197_v4 = vpop.permute.xlu1 %3196 }
 0x4db   : > { %v3054_v33 = vpop.permute.xlu0 %3053  ;;  %13938 = vst [vmem:[#allocation12_spill] sm:$0xff] %v10717_v57  ;;  %v3213_v13 = vsel %vm3208_vm13, %v3197_v4, %v10473_v9  ;;  %v3218_v51 = vsel %vm3208_vm13, %v3187_v32, %v3197_v4 }
 0x4dc   : > { %v3072_v27 = vsel %vm3067_vm11, %v3054_v33, %v10471_v50  ;;  %v3077_v31 = vsel %vm3067_vm11, %v3044_v59, %v3054_v33 }
 0x4dd   : > { %3476 = vrot.lane.b32.xlu0 %v10693_v37, %s8062_s16  ;;  %3466 = vrot.lane.b32.xlu1 %v10691_v46, %s8062_s16  ;;  %v3135_v8 = vadd.f32 %v3077_v31, %v10283_v62  ;;  %v3136_v47 = vadd.f32 %v3072_v27, %v10306_v54 }
 0x4de   : > { %v10715_v45 = vpop.permute.xlu1 %3287 }
 0x4df   : > { %v10721_v50 = vpop.permute.xlu0 %3289  ;;  %v10734_v62 = vadd.f32 %v3218_v51, %v3135_v8  ;;  %v10736_v54 = vadd.f32 %v3213_v13, %v3136_v47 }
 0x4e1   : > { %3458 = vrot.lane.b32.xlu1 %v10717_v57, %s8062_s16  ;;  %3317 = vrot.lane.b32.xlu0 %v10717_v57, %s8059_s13  ;;  %13939 = vst [vmem:[#allocation27_spill] sm:$0xff] %v10734_v62  ;;  %13940 = vst [vmem:[#allocation28_spill] sm:$0xff] %v10736_v54 }
 0x4e2   : > { %v10732_v2 = vpop.permute.xlu1 %3295 }
 0x4e3   : > { %v10738_v59 = vpop.permute.xlu0 %3293 }
 0x4e5   : > { %3327 = vrot.lane.b32.xlu1 %v10734_v62, %s8059_s13  ;;  %3337 = vrot.lane.b32.xlu0 %v10736_v54, %s8059_s13  ;;  %s8083_s13 = smov 68  }
 0x4e6   : > { %v10744_v25 = vpop.permute.xlu1 %3299 }
 0x4e7   : > { %v10746_v9 = vpop.permute.xlu0 %3297 }
 0x4e9   : > { %3478 = vrot.lane.b32.xlu1 %v10736_v54, %s8062_s16  ;;  %3468 = vrot.lane.b32.xlu0 %v10734_v62, %s8062_s16 }
 0x4ea   : > { %v10752_v44 = vpop.permute.xlu1 %3303 }
 0x4eb   : > { %v10754_v5 = vpop.permute.xlu0 %3301 }
 0x4ed   : > { %3482 = vrot.lane.b32.xlu1 %v10523_v41, %s8062_s16  ;;  %3480 = vrot.lane.b32.xlu0 %v10496_v24, %s8062_s16 }
 0x4ee   : > { %v10760_v63 = vpop.permute.xlu1 %3307 }
 0x4ef   : > { %13941 = vst [vmem:[#allocation29_spill] sm:$0xff] %v10760_v63  ;;  %v10762_v29 = vpop.permute.xlu0 %3305 }
 0x4f1   : > { %3486 = vrot.lane.b32.xlu1 %v10544_v60, %s8062_s16  ;;  %3484 = vrot.lane.b32.xlu0 %v10520_v48, %s8062_s16 }
 0x4f2   : > { %v10768_v32 = vpop.permute.xlu1 %3422 }
 0x4f3   : > { %13942 = vst [vmem:[#allocation30_spill] sm:$0xff] %v10768_v32  ;;  %v10770_v15 = vpop.permute.xlu0 %3420 }
 0x4f4   : > { %13943 = vst [vmem:[#allocation31_spill] sm:$0xff] %v10770_v15 }
 0x4f5   : > { %3561 = vrot.lane.b32.xlu1 %v10215_v16, %s8065_s21  ;;  %3488 = vrot.lane.b32.xlu0 %v10541_v43, %s8062_s16 }
 0x4f6   : > { %v10776_v4 = vpop.permute.xlu1 %3426 }
 0x4f7   : > { %13944 = vst [vmem:[#allocation32_spill] sm:$0xff] %v10776_v4  ;;  %v10778_v33 = vpop.permute.xlu0 %3424 }
 0x4f8   : > { %13945 = vst [vmem:[#allocation33_spill] sm:$0xff] %v10778_v33 }
 0x4f9   : > { %3565 = vrot.lane.b32.xlu1 %v10269_v0, %s8065_s21  ;;  %3563 = vrot.lane.b32.xlu0 %v10227_v40, %s8065_s21 }
 0x4fa   : > { %v10784_v61 = vpop.permute.xlu1 %3430 }
 0x4fb   : > { %v10786_v27 = vpop.permute.xlu0 %3428 }
 0x4fc   : > { %13946 = vst [vmem:[#allocation34_spill] sm:$0xff] %v10786_v27 }
 0x4fd   : > { %3569 = vrot.lane.b32.xlu1 %v10333_v49, %s8065_s21  ;;  %3567 = vrot.lane.b32.xlu0 %v10285_v7, %s8065_s21 }
 0x4fe   : > { %v10792_v31 = vpop.permute.xlu1 %3434 }
 0x4ff   : > { %v10794_v22 = vpop.permute.xlu0 %3432 }
 0x501   : > { %3573 = vrot.lane.b32.xlu1 %v10296_v42, %s8065_s21  ;;  %3571 = vrot.lane.b32.xlu0 %v10335_v39, %s8065_s21 }
 0x502   : > { %v10800_v6 = vpop.permute.xlu1 %3438 }
 0x503   : > { %v10802_v8 = vpop.permute.xlu0 %3436 }
 0x504   : > { %13947 = vst [vmem:[#allocation35_spill] sm:$0xff] %v10802_v8 }
 0x505   : > { %3577 = vrot.lane.b32.xlu1 %v10355_v18, %s8065_s21  ;;  %3575 = vrot.lane.b32.xlu0 %v10359_v17, %s8065_s21 }
 0x506   : > { %v10808_v47 = vpop.permute.xlu1 %3442 }
 0x507   : > { %13948 = vst [vmem:[#allocation36_spill] sm:$0xff] %v10808_v47  ;;  %v10810_v13 = vpop.permute.xlu0 %3440 }
 0x508   : > { %13949 = vst [vmem:[#allocation37_spill] sm:$0xff] %v10810_v13 }
 0x509   : > { %3581 = vrot.lane.b32.xlu1 %v10382_v11, %s8065_s21  ;;  %3579 = vrot.lane.b32.xlu0 %v10384_v30, %s8065_s21 }
 0x50a   : > { %v10816_v51 = vpop.permute.xlu1 %3446 }
 0x50b   : > { %13950 = vst [vmem:[#allocation38_spill] sm:$0xff] %v10816_v51  ;;  %v10818_v4 = vpop.permute.xlu0 %3444 }
 0x50c   : > { %13951 = vst [vmem:[#allocation39_spill] sm:$0xff] %v10818_v4 }
 0x50d   : > { %3585 = vrot.lane.b32.xlu1 %v10410_v10, %s8065_s21  ;;  %3583 = vrot.lane.b32.xlu0 %v10412_v53, %s8065_s21 }
 0x50e   : > { %v10824_v8 = vpop.permute.xlu1 %3339 }
 0x50f   : > { %13952 = vst [vmem:[#allocation40_spill] sm:$0xff] %v10824_v8  ;;  %v10826_v47 = vpop.permute.xlu0 %3448 }
 0x510   : > { %13953 = vst [vmem:[#allocation41_spill] sm:$0xff] %v10826_v47 }
 0x511   : > { %3589 = vrot.lane.b32.xlu1 %v10426_v1, %s8065_s21  ;;  %3587 = vrot.lane.b32.xlu0 %v10428_v56, %s8065_s21 }
 0x512   : > { %v10832_v13 = vpop.permute.xlu1 %3343 }
 0x513   : > { %13954 = vst [vmem:[#allocation42_spill] sm:$0xff] %v10832_v13  ;;  %v10834_v51 = vpop.permute.xlu0 %3341 }
 0x514   : > { %13955 = vst [vmem:[#allocation43_spill] sm:$0xff] %v10834_v51 }
 0x515   : > { %3593 = vrot.lane.b32.xlu1 %v10594_v20, %s8065_s21  ;;  %3591 = vrot.lane.b32.xlu0 %v10557_v26, %s8065_s21 }
 0x516   : > { %v10840_v4 = vpop.permute.xlu1 %3347 }
 0x517   : > { %13956 = vst [vmem:[#allocation44_spill] sm:$0xff] %v10840_v4  ;;  %v10842_v8 = vpop.permute.xlu0 %3345 }
 0x518   : > { %13957 = vst [vmem:[#allocation45_spill] sm:$0xff] %v10842_v8 }
 0x519   : > { %3597 = vrot.lane.b32.xlu1 %v10674_v36, %s8065_s21  ;;  %3595 = vrot.lane.b32.xlu0 %v10630_v58, %s8065_s21 }
 0x51a   : > { %v10848_v47 = vpop.permute.xlu1 %3450 }
 0x51b   : > { %13958 = vst [vmem:[#allocation46_spill] sm:$0xff] %v10848_v47  ;;  %v10850_v13 = vpop.permute.xlu0 %3309 }
 0x51c   : > { %13959 = vst [vmem:[#allocation47_spill] sm:$0xff] %v10850_v13 }
 0x51d   : > { %3601 = vrot.lane.b32.xlu1 %v10570_v52, %s8065_s21  ;;  %3599 = vrot.lane.b32.xlu0 %v10717_v57, %s8065_s21 }
 0x51e   : > { %v10856_v51 = vpop.permute.xlu1 %3319 }
 0x51f   : > { %13960 = vst [vmem:[#allocation48_spill] sm:$0xff] %v10856_v51  ;;  %v10858_v4 = vpop.permute.xlu0 %3329 }
 0x520   : > { %13961 = vst [vmem:[#allocation49_spill] sm:$0xff] %v10858_v4 }
 0x521   : > { %3605 = vrot.lane.b32.xlu1 %v10648_v35, %s8065_s21  ;;  %3603 = vrot.lane.b32.xlu0 %v10609_v55, %s8065_s21 }
 0x522   : > { %v10864_v8 = vpop.permute.xlu1 %3470 }
 0x523   : > { %13962 = vst [vmem:[#allocation50_spill] sm:$0xff] %v10864_v8  ;;  %v10866_v47 = vpop.permute.xlu0 %3460 }
 0x524   : > { %13963 = vst [vmem:[#allocation51_spill] sm:$0xff] %v10866_v47 }
 0x525   : > { %3609 = vrot.lane.b32.xlu1 %v10734_v62, %s8065_s21  ;;  %3607 = vrot.lane.b32.xlu0 %v10691_v46, %s8065_s21 }
 0x526   : > { %v10876_v4 = vpop.permute.xlu1 %3311 }
 0x527   : > { %13964 = vst [vmem:[#allocation52_spill] sm:$0xff] %v10876_v4  ;;  %v10878_v51 = vpop.permute.xlu0 %3452 }
 0x528   : > { %13965 = vst [vmem:[#allocation53_spill] sm:$0xff] %v10878_v51 }
 0x529   : > { %3613 = vrot.lane.b32.xlu1 %v10607_v21, %s8065_s21  ;;  %3611 = vrot.lane.b32.xlu0 %v10572_v28, %s8065_s21 }
 0x52a   : > { %v10884_v47 = vpop.permute.xlu1 %3331 }
 0x52b   : > { %13966 = vst [vmem:[#allocation54_spill] sm:$0xff] %v10884_v47  ;;  %v10886_v8 = vpop.permute.xlu0 %3321 }
 0x52c   : > { %13967 = vst [vmem:[#allocation55_spill] sm:$0xff] %v10886_v8 }
 0x52d   : > { %3617 = vrot.lane.b32.xlu1 %v10693_v37, %s8065_s21  ;;  %3615 = vrot.lane.b32.xlu0 %v10650_v38, %s8065_s21 }
 0x52e   : > { %v10896_v51 = vpop.permute.xlu1 %3462 }
 0x52f   : > { %13968 = vst [vmem:[#allocation56_spill] sm:$0xff] %v10896_v51  ;;  %v10898_v4 = vpop.permute.xlu0 %3472 }
 0x530   : > { %13969 = vst [vmem:[#allocation57_spill] sm:$0xff] %v10898_v4 }
 0x531   : > { %3621 = vrot.lane.b32.xlu1 %v10496_v24, %s8065_s21  ;;  %3619 = vrot.lane.b32.xlu0 %v10736_v54, %s8065_s21 }
 0x535   : > { %3625 = vrot.lane.b32.xlu1 %v10520_v48, %s8065_s21  ;;  %3623 = vrot.lane.b32.xlu0 %v10523_v41, %s8065_s21 }
 0x539   : > { %3627 = vrot.lane.b32.xlu0 %v10544_v60, %s8065_s21  ;;  %3629 = vrot.lane.b32.xlu1 %v10541_v43, %s8065_s21  ;;  %v10904_v8 = vpop.permute.xlu0 %3313  ;;  %v10906_v47 = vpop.permute.xlu1 %3454  ;;  %s8085_s21 = smov 38  }
 0x53a   : > { %13970 = vst [vmem:[#allocation58_spill] sm:$0xff] %v10904_v8  ;;  %13971 = vst [vmem:[#allocation59_spill] sm:$0xff] %v10906_v47 }
 0x53d   : > { %3702 = vrot.lane.b32.xlu0 %v10215_v16, %s8068_s24  ;;  %3704 = vrot.lane.b32.xlu1 %v10227_v40, %s8068_s24 }
 0x53f   : > { %v10912_v13 = vpop.permute.xlu0 %3333  ;;  %v10914_v51 = vpop.permute.xlu1 %3323 }
 0x540   : > { %13972 = vst [vmem:[#allocation60_spill] sm:$0xff] %v10912_v13  ;;  %13973 = vst [vmem:[#allocation61_spill] sm:$0xff] %v10914_v51 }
 0x541   : > { %3706 = vrot.lane.b32.xlu0 %v10269_v0, %s8068_s24  ;;  %3708 = vrot.lane.b32.xlu1 %v10285_v7, %s8068_s24 }
 0x543   : > { %v10920_v4 = vpop.permute.xlu0 %3464  ;;  %v10922_v8 = vpop.permute.xlu1 %3474 }
 0x544   : > { %13974 = vst [vmem:[#allocation62_spill] sm:$0xff] %v10920_v4  ;;  %13975 = vst [vmem:[#allocation63_spill] sm:$0xff] %v10922_v8 }
 0x545   : > { %3710 = vrot.lane.b32.xlu0 %v10333_v49, %s8068_s24  ;;  %3712 = vrot.lane.b32.xlu1 %v10335_v39, %s8068_s24 }
 0x547   : > { %v10928_v47 = vpop.permute.xlu0 %3456  ;;  %v10930_v13 = vpop.permute.xlu1 %3315 }
 0x548   : > { %13976 = vst [vmem:[#allocation64_spill] sm:$0xff] %v10928_v47  ;;  %13977 = vst [vmem:[#allocation65_spill] sm:$0xff] %v10930_v13 }
 0x549   : > { %3714 = vrot.lane.b32.xlu0 %v10296_v42, %s8068_s24  ;;  %3716 = vrot.lane.b32.xlu1 %v10359_v17, %s8068_s24 }
 0x54b   : > { %v10936_v51 = vpop.permute.xlu0 %3325  ;;  %v10938_v4 = vpop.permute.xlu1 %3335 }
 0x54c   : > { %13978 = vst [vmem:[#allocation66_spill] sm:$0xff] %v10936_v51  ;;  %13979 = vst [vmem:[#allocation67_spill] sm:$0xff] %v10938_v4 }
 0x54d   : > { %3718 = vrot.lane.b32.xlu0 %v10355_v18, %s8068_s24  ;;  %3720 = vrot.lane.b32.xlu1 %v10384_v30, %s8068_s24 }
 0x54f   : > { %v10944_v8 = vpop.permute.xlu0 %3476  ;;  %v10946_v47 = vpop.permute.xlu1 %3466 }
 0x550   : > { %13980 = vst [vmem:[#allocation68_spill] sm:$0xff] %v10944_v8  ;;  %13981 = vst [vmem:[#allocation69_spill] sm:$0xff] %v10946_v47 }
 0x551   : > { %3722 = vrot.lane.b32.xlu0 %v10382_v11, %s8068_s24  ;;  %3724 = vrot.lane.b32.xlu1 %v10412_v53, %s8068_s24 }
 0x553   : > { %v10952_v13 = vpop.permute.xlu0 %3317  ;;  %v10954_v51 = vpop.permute.xlu1 %3458 }
 0x554   : > { %13982 = vst [vmem:[#allocation70_spill] sm:$0xff] %v10952_v13  ;;  %13983 = vst [vmem:[#allocation71_spill] sm:$0xff] %v10954_v51 }
 0x555   : > { %3726 = vrot.lane.b32.xlu0 %v10410_v10, %s8068_s24  ;;  %3728 = vrot.lane.b32.xlu1 %v10428_v56, %s8068_s24 }
 0x557   : > { %v10960_v4 = vpop.permute.xlu0 %3337  ;;  %v10962_v8 = vpop.permute.xlu1 %3327 }
 0x558   : > { %13984 = vst [vmem:[#allocation72_spill] sm:$0xff] %v10960_v4  ;;  %13985 = vst [vmem:[#allocation73_spill] sm:$0xff] %v10962_v8 }
 0x559   : > { %3730 = vrot.lane.b32.xlu0 %v10426_v1, %s8068_s24  ;;  %3732 = vrot.lane.b32.xlu1 %v10557_v26, %s8068_s24 }
 0x55b   : > { %v10968_v47 = vpop.permute.xlu0 %3468  ;;  %v10970_v13 = vpop.permute.xlu1 %3478 }
 0x55c   : > { %13986 = vst [vmem:[#allocation74_spill] sm:$0xff] %v10968_v47  ;;  %13987 = vst [vmem:[#allocation75_spill] sm:$0xff] %v10970_v13 }
 0x55d   : > { %3734 = vrot.lane.b32.xlu0 %v10594_v20, %s8068_s24  ;;  %3736 = vrot.lane.b32.xlu1 %v10630_v58, %s8068_s24 }
 0x55f   : > { %v10976_v51 = vpop.permute.xlu0 %3480  ;;  %v10978_v4 = vpop.permute.xlu1 %3482 }
 0x560   : > { %13988 = vst [vmem:[#allocation76_spill] sm:$0xff] %v10976_v51  ;;  %13989 = vst [vmem:[#allocation77_spill] sm:$0xff] %v10978_v4 }
 0x561   : > { %3738 = vrot.lane.b32.xlu0 %v10674_v36, %s8068_s24  ;;  %3740 = vrot.lane.b32.xlu1 %v10717_v57, %s8068_s24 }
 0x563   : > { %v10984_v8 = vpop.permute.xlu0 %3484  ;;  %v10986_v47 = vpop.permute.xlu1 %3486 }
 0x564   : > { %13990 = vst [vmem:[#allocation78_spill] sm:$0xff] %v10984_v8  ;;  %13991 = vst [vmem:[#allocation79_spill] sm:$0xff] %v10986_v47 }
 0x565   : > { %3742 = vrot.lane.b32.xlu0 %v10570_v52, %s8068_s24  ;;  %3744 = vrot.lane.b32.xlu1 %v10609_v55, %s8068_s24 }
 0x567   : > { %v10992_v13 = vpop.permute.xlu0 %3488  ;;  %v10994_v51 = vpop.permute.xlu1 %3561 }
 0x568   : > { %13992 = vst [vmem:[#allocation80_spill] sm:$0xff] %v10992_v13  ;;  %13993 = vst [vmem:[#allocation81_spill] sm:$0xff] %v10994_v51 }
 0x569   : > { %3746 = vrot.lane.b32.xlu0 %v10648_v35, %s8068_s24  ;;  %3748 = vrot.lane.b32.xlu1 %v10691_v46, %s8068_s24 }
 0x56b   : > { %v11000_v4 = vpop.permute.xlu0 %3563  ;;  %v11002_v8 = vpop.permute.xlu1 %3565 }
 0x56c   : > { %13994 = vst [vmem:[#allocation82_spill] sm:$0xff] %v11002_v8 }
 0x56d   : > { %3750 = vrot.lane.b32.xlu0 %v10734_v62, %s8068_s24  ;;  %3752 = vrot.lane.b32.xlu1 %v10572_v28, %s8068_s24 }
 0x56f   : > { %v11008_v47 = vpop.permute.xlu0 %3567  ;;  %v11010_v13 = vpop.permute.xlu1 %3569 }
 0x571   : > { %3754 = vrot.lane.b32.xlu0 %v10607_v21, %s8068_s24  ;;  %3756 = vrot.lane.b32.xlu1 %v10650_v38, %s8068_s24 }
 0x573   : > { %v11016_v57 = vpop.permute.xlu0 %3571  ;;  %v11018_v46 = vpop.permute.xlu1 %3573 }
 0x575   : > { %3758 = vrot.lane.b32.xlu0 %v10693_v37, %s8068_s24  ;;  %3760 = vrot.lane.b32.xlu1 %v10736_v54, %s8068_s24 }
 0x577   : > { %v11024_v62 = vpop.permute.xlu0 %3575  ;;  %v11026_v36 = vpop.permute.xlu1 %3577 }
 0x579   : > { %3762 = vrot.lane.b32.xlu0 %v10496_v24, %s8068_s24  ;;  %3764 = vrot.lane.b32.xlu1 %v10523_v41, %s8068_s24 }
 0x57b   : > { %v11032_v38 = vpop.permute.xlu0 %3579  ;;  %v11034_v35 = vpop.permute.xlu1 %3581 }
 0x57d   : > { %3766 = vrot.lane.b32.xlu0 %v10520_v48, %s8068_s24  ;;  %3768 = vrot.lane.b32.xlu1 %v10544_v60, %s8068_s24 }
 0x57f   : > { %v11040_v54 = vpop.permute.xlu0 %3583  ;;  %v11042_v37 = vpop.permute.xlu1 %3585 }
 0x580   : > { %13995 = vst [vmem:[#allocation83_spill] sm:$0xff] %v11040_v54  ;;  %13996 = vst [vmem:[#allocation84_spill] sm:$0xff] %v11042_v37 }
 0x581   : > { %3770 = vrot.lane.b32.xlu0 %v10541_v43, %s8068_s24  ;;  %s8089_s24 = smov 8  }
 0x583   : > { %v11046_v58 = vpop.permute.xlu0 %3587  ;;  %v11048_v1 = vpop.permute.xlu1 %3589 }
 0x584   : > { %13997 = vst [vmem:[#allocation85_spill] sm:$0xff] %v11046_v58  ;;  %13998 = vst [vmem:[#allocation86_spill] sm:$0xff] %v11048_v1 }
 0x587   : > { %v11050_v55 = vpop.permute.xlu0 %3591  ;;  %v11052_v20 = vpop.permute.xlu1 %3593 }
 0x588   : > { %13999 = vst [vmem:[#allocation87_spill] sm:$0xff] %v11050_v55  ;;  %14000 = vst [vmem:[#allocation88_spill] sm:$0xff] %v11052_v20 }
 0x58b   : > { %v11054_v56 = vpop.permute.xlu0 %3595  ;;  %v11056_v10 = vpop.permute.xlu1 %3597 }
 0x58c   : > { %14001 = vst [vmem:[#allocation89_spill] sm:$0xff] %v11054_v56  ;;  %14002 = vst [vmem:[#allocation90_spill] sm:$0xff] %v11056_v10 }
 0x58f   : > { %v11058_v21 = vpop.permute.xlu0 %3599  ;;  %v11060_v28 = vpop.permute.xlu1 %3601 }
 0x590   : > { %14003 = vst [vmem:[#allocation91_spill] sm:$0xff] %v11058_v21  ;;  %14004 = vst [vmem:[#allocation92_spill] sm:$0xff] %v11060_v28 }
 0x593   : > { %v11062_v37 = vpop.permute.xlu0 %3603  ;;  %v11064_v53 = vpop.permute.xlu1 %3605 }
 0x594   : > { %14005 = vst [vmem:[#allocation93_spill] sm:$0xff] %v11062_v37  ;;  %14006 = vst [vmem:[#allocation94_spill] sm:$0xff] %v11064_v53 }
 0x597   : > { %v11066_v52 = vpop.permute.xlu0 %3607  ;;  %v11068_v58 = vpop.permute.xlu1 %3609 }
 0x598   : > { %14007 = vst [vmem:[#allocation95_spill] sm:$0xff] %v11066_v52  ;;  %14008 = vst [vmem:[#allocation96_spill] sm:$0xff] %v11068_v58 }
 0x59b   : > { %v11070_v1 = vpop.permute.xlu0 %3611  ;;  %v11072_v55 = vpop.permute.xlu1 %3613 }
 0x59c   : > { %14009 = vst [vmem:[#allocation97_spill] sm:$0xff] %v11070_v1  ;;  %14010 = vst [vmem:[#allocation98_spill] sm:$0xff] %v11072_v55  ;;  %v3376_v1 = vsel %vm3349_vm4, %v10621_v14, %v10689_v12 }
 0x59f   : > { %v11074_v20 = vpop.permute.xlu0 %3615  ;;  %v11076_v56 = vpop.permute.xlu1 %3617 }
 0x5a0   : > { %14011 = vst [vmem:[#allocation99_spill] sm:$0xff] %v11074_v20  ;;  %14012 = vst [vmem:[#allocation100_spill] sm:$0xff] %v11076_v56  ;;  %v3375_v56 = vsel %vm3349_vm4, %v10615_v19, %v10721_v50 }
 0x5a1   : > { %v3385_v55 = vadd.f32 %v3375_v56, %v10215_v16  ;;  %v3371_v16 = vsel %vm3349_vm4, %v10689_v12, %v10754_v5  ;;  %v3520_v56 = vsel %vm3490_vm12, %v10786_v27, %v10800_v6 }
 0x5a3   : > { %v11078_v10 = vpop.permute.xlu0 %3619  ;;  %v11080_v21 = vpop.permute.xlu1 %3621 }
 0x5a4   : > { %14013 = vst [vmem:[#allocation101_spill] sm:$0xff] %v11078_v10  ;;  %14014 = vst [vmem:[#allocation102_spill] sm:$0xff] %v11080_v21  ;;  %v3370_v21 = vsel %vm3349_vm4, %v10721_v50, %v10744_v25  ;;  %v3372_v50 = vsel %vm3349_vm4, %v10738_v59, %v10752_v44 }
 0x5a5   : > { %v3386_v53 = vadd.f32 %v3370_v21, %v10335_v39  ;;  %v3518_v39 = vsel %vm3490_vm12, %v10778_v33, %v10792_v31  ;;  %v14020_v21 = vld [vmem:[#allocation32_spill] sm:$0xff] }
 0x5a7   : > { %v11082_v28 = vpop.permute.xlu0 %3623  ;;  %v11084_v37 = vpop.permute.xlu1 %3625 }
 0x5a8   : > { %14015 = vst [vmem:[#allocation103_spill] sm:$0xff] %v11082_v28  ;;  %14016 = vst [vmem:[#allocation104_spill] sm:$0xff] %v11084_v37  ;;  %v3378_v37 = vsel %vm3349_vm4, %v10676_v34, %v10732_v2  ;;  %v3377_v28 = vsel %vm3349_vm4, %v10659_v3, %v10738_v59  ;;  %v3393_v59 = vadd.f32 %v3371_v16, %v10296_v42 }
 0x5a9   : > { %v3406_v58 = vadd.f32 %v3378_v37, %v10285_v7  ;;  %v3399_v52 = vadd.f32 %v3377_v28, %v10269_v0  ;;  %v3374_v0 = vsel %vm3349_vm4, %v10746_v9, %v10760_v63  ;;  %v3373_v7 = vsel %vm3349_vm4, %v10732_v2, %v10762_v29  ;;  %v14019_v28 = vld [vmem:[#allocation35_spill] sm:$0xff]  ;;  %v14021_v37 = vld [vmem:[#allocation36_spill] sm:$0xff] }
 0x5aa   : > { %v3519_v12 = vsel %vm3490_vm12, %v14020_v21, %v14019_v28  ;;  %v3512_v2 = vsel %vm3490_vm12, %v10794_v22, %v14021_v37  ;;  %v3657_v42 = vsel %vm3631_vm1, %v10994_v51, %v11016_v57  ;;  %v14032_v51 = vld [vmem:[#allocation44_spill] sm:$0xff] }
 0x5ab   : > { %v11095_v20 = vpop.permute.xlu0 %3627  ;;  %v11097_v10 = vpop.permute.xlu1 %3629 }
 0x5ac   : > { %14017 = vst [vmem:[#allocation105_spill] sm:$0xff] %v11095_v20  ;;  %14018 = vst [vmem:[#allocation106_spill] sm:$0xff] %v11097_v10  ;;  %v3379_v10 = vsel %vm3349_vm4, %v10715_v45, %v10746_v9  ;;  %v3392_v20 = vadd.f32 %v3376_v1, %v10227_v40  ;;  %v3400_v1 = vadd.f32 %v3372_v50, %v10359_v17  ;;  %v14022_v50 = vld [vmem:[#allocation37_spill] sm:$0xff] }
 0x5ad   : > { %v3413_v40 = vadd.f32 %v3379_v10, %v10333_v49  ;;  %v3516_v49 = vsel %vm3490_vm12, %v10770_v15, %v10784_v61  ;;  %v3517_v10 = vsel %vm3490_vm12, %v10768_v32, %v10794_v22  ;;  %v3414_v9 = vadd.f32 %v3374_v0, %v10384_v30 }
 0x5ae   : > { %v3407_v17 = vadd.f32 %v3373_v7, %v10355_v18  ;;  %v3511_v27 = vsel %vm3490_vm12, %v10784_v61, %v14022_v50  ;;  %v3526_v21 = vadd.f32 %v3516_v49, %v3385_v55  ;;  %v3540_v15 = vadd.f32 %v3518_v39, %v3399_v52  ;;  %v14023_v61 = vld [vmem:[#allocation38_spill] sm:$0xff]  ;;  %v14024_v55 = vld [vmem:[#allocation39_spill] sm:$0xff] }
 0x5af   : > { %v11125_v26 = vpop.permute.xlu0 %3702  ;;  %v11127_v54 = vpop.permute.xlu1 %3704  ;;  %v3533_v63 = vadd.f32 %v3517_v10, %v3392_v20  ;;  %v3554_v30 = vadd.f32 %v3520_v56, %v3413_v40  ;;  %v3547_v22 = vadd.f32 %v3519_v12, %v3406_v58  ;;  %v11183_v18 = vadd.f32 %v3512_v2, %v3393_v59  ;;  %v14025_v20 = vld [vmem:[#allocation40_spill] sm:$0xff]  ;;  %v14026_v40 = vld [vmem:[#allocation41_spill] sm:$0xff]  ;;  %v14028_v49 = vld [vmem:[#allocation47_spill] sm:$0xff] }
 0x5b0   : > { %v3527_v16 = vadd.f32 %v3511_v27, %v3386_v53  ;;  %v3514_v0 = vsel %vm3490_vm12, %v14019_v28, %v14023_v61  ;;  %v3513_v52 = vsel %vm3490_vm12, %v10792_v31, %v14024_v55  ;;  %v3380_v58 = vsel %vm3349_vm4, %v14025_v20, %v10615_v19  ;;  %v14027_v27 = vld [vmem:[#allocation42_spill] sm:$0xff]  ;;  %v14030_v19 = vld [vmem:[#allocation43_spill] sm:$0xff] }
 0x5b1   : > { %v3515_v53 = vsel %vm3490_vm12, %v10800_v6, %v14026_v40  ;;  %v3382_v7 = vsel %vm3349_vm4, %v14027_v27, %v10659_v3  ;;  %v3365_v31 = vsel %vm3349_vm4, %v10744_v25, %v14028_v49  ;;  %v3667_v39 = vadd.f32 %v3657_v42, %v3526_v21 }
 0x5b2   : > { %v3381_v28 = vsel %vm3349_vm4, %v14030_v19, %v10621_v14  ;;  %v3658_v6 = vsel %vm3631_vm1, %v11000_v4, %v11018_v46  ;;  %v3659_v3 = vsel %vm3631_vm1, %v11002_v8, %v11024_v62  ;;  %v11227_v21 = vadd.f32 %v3514_v0, %v3407_v17 }
 0x5b3   : > { %v11175_v33 = vpop.permute.xlu0 %3706  ;;  %v11177_v32 = vpop.permute.xlu1 %3708  ;;  %v11229_v12 = vadd.f32 %v3513_v52, %v3400_v1  ;;  %v11232_v14 = vadd.f32 %v3380_v58, %v10496_v24  ;;  %v11236_v59 = vadd.f32 %v3515_v53, %v3414_v9  ;;  %v11239_v42 = vadd.f32 %v3382_v7, %v10520_v48  ;;  %v14033_v24 = vld [vmem:[#allocation45_spill] sm:$0xff] }
 0x5b4   : > { %v3384_v8 = vsel %vm3349_vm4, %v14032_v51, %v10715_v45  ;;  %v3387_v17 = vadd.f32 %v3365_v31, %v10382_v11  ;;  %v11247_v1 = vadd.f32 %v3381_v28, %v10523_v41  ;;  %v3383_v0 = vsel %vm3349_vm4, %v14033_v24, %v10676_v34  ;;  %v14037_v28 = vld [vmem:[#allocation48_spill] sm:$0xff] }
 0x5b5   : > { %v3674_v9 = vadd.f32 %v3658_v6, %v3533_v63  ;;  %v3681_v52 = vadd.f32 %v3659_v3, %v3540_v15  ;;  %v3660_v11 = vsel %vm3631_vm1, %v11008_v47, %v11026_v36  ;;  %v3661_v41 = vsel %vm3631_vm1, %v11010_v13, %v11032_v38  ;;  %v14034_v15 = vld [vmem:[#allocation46_spill] sm:$0xff]  ;;  %v14038_v3 = vld [vmem:[#allocation49_spill] sm:$0xff] }
 0x5b6   : > { %v11270_v63 = vadd.f32 %v3384_v8, %v10541_v43  ;;  %v3506_v53 = vsel %vm3490_vm12, %v14022_v50, %v14034_v15  ;;  %v3360_v6 = vsel %vm3349_vm4, %v14028_v49, %v14037_v28  ;;  %v3355_v43 = vsel %vm3349_vm4, %v14037_v28, %v14038_v3  ;;  %v14045_v28 = vld [vmem:[#allocation50_spill] sm:$0xff] }
 0x5b7   : > { %v11210_v10 = vpop.permute.xlu0 %3710  ;;  %v3713_v56 = vpop.permute.xlu1 %3712  ;;  %v3528_v8 = vadd.f32 %v3506_v53, %v3387_v17  ;;  %v3652_v17 = vsel %vm3631_vm1, %v11016_v57, %v11034_v35  ;;  %v3350_v57 = vsel %vm3349_vm4, %v14038_v3, %v14025_v20 }
 0x5b8   : > { %14029 = vst [vmem:[#allocation35_spill] sm:$0xff] %v11210_v10  ;;  %v3798_v25 = vsel %vm3772_vm0, %v11125_v26, %v3713_v56  ;;  %v3668_v3 = vadd.f32 %v3652_v17, %v3527_v16 }
 0x5b9   : > { %v11234_v2 = vadd.f32 %v3798_v25, %v3667_v39  ;;  %v11281_v39 = vadd.f32 %v3383_v0, %v10544_v60  ;;  %v14039_v25 = vld [vmem:[#allocation52_spill] sm:$0xff]  ;;  %v14040_v0 = vld [vmem:[#allocation83_spill] sm:$0xff] }
 0x5ba   : > { %v3366_v50 = vsel %vm3349_vm4, %v10754_v5, %v14039_v25  ;;  %v3653_v5 = vsel %vm3631_vm1, %v11018_v46, %v14040_v0  ;;  %v14044_v46 = vld [vmem:[#allocation11_spill] sm:$0xff] }
 0x5bb   : > { %14031 = vst [vmem:[#allocation36_spill] sm:$0xff] %v11234_v2  ;;  %v3715_v58 = vpop.permute.xlu0 %3714  ;;  %3843 = vrot.lane.b32.xlu1 %v11234_v2, %s8071_s27  ;;  %v3717_v48 = vpop.permute.xlu1 %3716  ;;  %v3389_v53 = vadd.f32 %v3355_v43, %v14044_v46  ;;  %v3675_v43 = vadd.f32 %v3653_v5, %v11183_v18 }
 0x5bc   : > { %v3799_v34 = vsel %vm3772_vm0, %v11127_v54, %v3715_v58  ;;  %v3800_v45 = vsel %vm3772_vm0, %v11175_v33, %v3717_v48 }
 0x5bd   : > { %v11276_v7 = vadd.f32 %v3799_v34, %v3674_v9  ;;  %v11278_v31 = vadd.f32 %v3800_v45, %v3681_v52  ;;  %v3688_v9 = vadd.f32 %v3660_v11, %v3547_v22  ;;  %v3695_v52 = vadd.f32 %v3661_v41, %v3554_v30  ;;  %v14041_v11 = vld [vmem:[#allocation8_spill] sm:$0xff] }
 0x5be   : > { %v3388_v41 = vadd.f32 %v3360_v6, %v14041_v11  ;;  %v14047_v11 = vld [vmem:[#allocation24_spill] sm:$0xff] }
 0x5bf   : > { %14035 = vst [vmem:[#allocation37_spill] sm:$0xff] %v11276_v7  ;;  %14036 = vst [vmem:[#allocation38_spill] sm:$0xff] %v11278_v31  ;;  %v3719_v60 = vpop.permute.xlu0 %3718  ;;  %3845 = vrot.lane.b32.xlu0 %v11276_v7, %s8071_s27  ;;  %3847 = vrot.lane.b32.xlu1 %v11278_v31, %s8071_s27  ;;  %v3721_v49 = vpop.permute.xlu1 %3720  ;;  %v14046_v31 = vld [vmem:[#allocation51_spill] sm:$0xff]  ;;  %v3394_v2 = vadd.f32 %v3366_v50, %v14047_v11 }
 0x5c0   : > { %v3801_v30 = vsel %vm3772_vm0, %v11177_v32, %v3719_v60  ;;  %v3802_v22 = vsel %vm3772_vm0, %v11210_v10, %v3721_v49  ;;  %v3496_v7 = vsel %vm3490_vm12, %v14046_v31, %v14045_v28  ;;  %v3501_v6 = vsel %vm3490_vm12, %v14034_v15, %v14046_v31  ;;  %v14048_v10 = vld [vmem:[#allocation53_spill] sm:$0xff]  ;;  %v14051_v50 = vld [vmem:[#allocation7_spill] sm:$0xff] }
 0x5c1   : > { %v11318_v34 = vadd.f32 %v3801_v30, %v3688_v9  ;;  %v11320_v45 = vadd.f32 %v3802_v22, %v3695_v52  ;;  %v3507_v20 = vsel %vm3490_vm12, %v14021_v37, %v14048_v10  ;;  %v14049_v30 = vld [vmem:[#allocation84_spill] sm:$0xff]  ;;  %v14050_v31 = vld [vmem:[#allocation85_spill] sm:$0xff]  ;;  %v11354_v17 = vadd.f32 %v3350_v57, %v14051_v50 }
 0x5c2   : > { %v3654_v15 = vsel %vm3631_vm1, %v11024_v62, %v14049_v30  ;;  %v3655_v37 = vsel %vm3631_vm1, %v11026_v36, %v14050_v31  ;;  %v11356_v5 = vadd.f32 %v3501_v6, %v3388_v41  ;;  %v11362_v62 = vadd.f32 %v3496_v7, %v3389_v53  ;;  %v14054_v36 = vld [vmem:[#allocation54_spill] sm:$0xff]  ;;  %v14056_v57 = vld [vmem:[#allocation65_spill] sm:$0xff] }
 0x5c3   : > { %14042 = vst [vmem:[#allocation39_spill] sm:$0xff] %v11318_v34  ;;  %14043 = vst [vmem:[#allocation40_spill] sm:$0xff] %v11320_v45  ;;  %v3723_v9 = vpop.permute.xlu0 %3722  ;;  %3849 = vrot.lane.b32.xlu0 %v11318_v34, %s8071_s27  ;;  %3851 = vrot.lane.b32.xlu1 %v11320_v45, %s8071_s27  ;;  %v3725_v52 = vpop.permute.xlu1 %3724  ;;  %v3535_v11 = vadd.f32 %v3507_v20, %v3394_v2  ;;  %v14055_v45 = vld [vmem:[#allocation58_spill] sm:$0xff]  ;;  %v3368_v41 = vsel %vm3349_vm4, %v10762_v29, %v14056_v57  ;;  %v14058_v20 = vld [vmem:[#allocation87_spill] sm:$0xff] }
 0x5c4   : > { %v3793_v18 = vsel %vm3772_vm0, %v3713_v56, %v3723_v9  ;;  %v3794_v16 = vsel %vm3772_vm0, %v3715_v58, %v3725_v52  ;;  %v3351_v56 = vsel %vm3349_vm4, %v14054_v36, %v14030_v19  ;;  %v3367_v58 = vsel %vm3349_vm4, %v10752_v44, %v14055_v45  ;;  %v14057_v53 = vld [vmem:[#allocation86_spill] sm:$0xff] }
 0x5c5   : > { %v11358_v22 = vadd.f32 %v3793_v18, %v3668_v3  ;;  %v11360_v46 = vadd.f32 %v3794_v16, %v3675_v43  ;;  %v3682_v6 = vadd.f32 %v3654_v15, %v11229_v12  ;;  %v3689_v7 = vadd.f32 %v3655_v37, %v11227_v21  ;;  %v14059_v3 = vld [vmem:[#allocation6_spill] sm:$0xff]  ;;  %v14060_v15 = vld [vmem:[#allocation23_spill] sm:$0xff] }
 0x5c6   : > { %v3656_v44 = vsel %vm3631_vm1, %v11032_v38, %v14057_v53  ;;  %v3647_v29 = vsel %vm3631_vm1, %v11034_v35, %v14058_v20  ;;  %v11395_v43 = vadd.f32 %v3351_v56, %v14059_v3  ;;  %v3401_v37 = vadd.f32 %v3367_v58, %v14060_v15  ;;  %v14063_v38 = vld [vmem:[#allocation55_spill] sm:$0xff]  ;;  %v14065_v56 = vld [vmem:[#allocation26_spill] sm:$0xff]  ;;  %v14068_v15 = vld [vmem:[#allocation88_spill] sm:$0xff] }
 0x5c7   : > { %14052 = vst [vmem:[#allocation41_spill] sm:$0xff] %v11358_v22  ;;  %14053 = vst [vmem:[#allocation42_spill] sm:$0xff] %v11360_v46  ;;  %v3727_v2 = vpop.permute.xlu0 %3726  ;;  %3853 = vrot.lane.b32.xlu0 %v11358_v22, %s8071_s27  ;;  %3855 = vrot.lane.b32.xlu1 %v11360_v46, %s8071_s27  ;;  %v3729_v19 = vpop.permute.xlu1 %3728  ;;  %v3356_v35 = vsel %vm3349_vm4, %v14063_v38, %v14054_v36  ;;  %v3408_v58 = vadd.f32 %v3368_v41, %v14065_v56  ;;  %v14069_v41 = vld [vmem:[#allocation89_spill] sm:$0xff]  ;;  %v14072_v46 = vld [vmem:[#allocation56_spill] sm:$0xff] }
 0x5c8   : > { %v3795_v21 = vsel %vm3772_vm0, %v3717_v48, %v3727_v2  ;;  %v3796_v12 = vsel %vm3772_vm0, %v3719_v60, %v3729_v19  ;;  %v3361_v48 = vsel %vm3349_vm4, %v14039_v25, %v14063_v38  ;;  %v14064_v60 = vld [vmem:[#allocation59_spill] sm:$0xff]  ;;  %v3669_v36 = vadd.f32 %v3647_v29, %v3528_v8  ;;  %v14073_v22 = vld [vmem:[#allocation57_spill] sm:$0xff] }
 0x5c9   : > { %v11398_v18 = vadd.f32 %v3795_v21, %v3682_v6  ;;  %v11400_v16 = vadd.f32 %v3796_v12, %v3689_v7  ;;  %v3508_v50 = vsel %vm3490_vm12, %v14024_v55, %v14064_v60  ;;  %v14066_v6 = vld [vmem:[#allocation70_spill] sm:$0xff]  ;;  %v14067_v7 = vld [vmem:[#allocation29_spill] sm:$0xff]  ;;  %v3696_v12 = vadd.f32 %v3656_v44, %v11236_v59 }
 0x5ca   : > { %v3369_v21 = vsel %vm3349_vm4, %v14067_v7, %v14066_v6  ;;  %v3648_v55 = vsel %vm3631_vm1, %v14040_v0, %v14068_v15  ;;  %v3649_v38 = vsel %vm3631_vm1, %v14049_v30, %v14069_v41  ;;  %v14070_v44 = vld [vmem:[#allocation9_spill] sm:$0xff]  ;;  %v3542_v56 = vadd.f32 %v3508_v50, %v3401_v37 }
 0x5cb   : > { %14061 = vst [vmem:[#allocation47_spill] sm:$0xff] %v11398_v18  ;;  %14062 = vst [vmem:[#allocation43_spill] sm:$0xff] %v11400_v16  ;;  %v3731_v3 = vpop.permute.xlu0 %3730  ;;  %3857 = vrot.lane.b32.xlu0 %v11398_v18, %s8071_s27  ;;  %3859 = vrot.lane.b32.xlu1 %v11400_v16, %s8071_s27  ;;  %v3733_v25 = vpop.permute.xlu1 %3732  ;;  %v3395_v29 = vadd.f32 %v3361_v48, %v14070_v44  ;;  %v14071_v18 = vld [vmem:[#allocation19_spill] sm:$0xff]  ;;  %v3502_v30 = vsel %vm3490_vm12, %v14048_v10, %v14072_v46  ;;  %v14075_v48 = vld [vmem:[#allocation64_spill] sm:$0xff] }
 0x5cc   : > { %v3797_v59 = vsel %vm3772_vm0, %v3721_v49, %v3731_v3  ;;  %v3788_v8 = vsel %vm3772_vm0, %v3723_v9, %v3733_v25  ;;  %v3396_v0 = vadd.f32 %v3356_v35, %v14071_v18  ;;  %v3497_v49 = vsel %vm3490_vm12, %v14072_v46, %v14073_v22  ;;  %v14074_v9 = vld [vmem:[#allocation25_spill] sm:$0xff] }
 0x5cd   : > { %v11437_v7 = vadd.f32 %v3797_v59, %v3696_v12  ;;  %v11439_v16 = vadd.f32 %v3788_v8, %v3669_v36  ;;  %v3415_v34 = vadd.f32 %v3369_v21, %v14074_v9  ;;  %v3509_v37 = vsel %vm3490_vm12, %v14023_v61, %v14075_v48  ;;  %v14076_v36 = vld [vmem:[#allocation90_spill] sm:$0xff] }
 0x5ce   : > { %v3676_v50 = vadd.f32 %v3648_v55, %v3535_v11  ;;  %v3683_v12 = vadd.f32 %v3649_v38, %v3542_v56  ;;  %v3549_v35 = vadd.f32 %v3509_v37, %v3408_v58  ;;  %v3650_v46 = vsel %vm3631_vm1, %v14050_v31, %v14076_v36  ;;  %v14077_v11 = vld [vmem:[#allocation71_spill] sm:$0xff] }
 0x5cf   : > { %v3735_v18 = vpop.permute.xlu0 %3734  ;;  %3861 = vrot.lane.b32.xlu0 %v11437_v7, %s8071_s27  ;;  %3863 = vrot.lane.b32.xlu1 %v11439_v16, %s8071_s27  ;;  %v3737_v10 = vpop.permute.xlu1 %3736  ;;  %v3510_v55 = vsel %vm3490_vm12, %v14026_v40, %v14077_v11  ;;  %v14078_v38 = vld [vmem:[#allocation91_spill] sm:$0xff]  ;;  %v3536_v31 = vadd.f32 %v3502_v30, %v3395_v29  ;;  %v11479_v44 = vadd.f32 %v3497_v49, %v3396_v0  ;;  %v14082_v40 = vld [vmem:[#allocation60_spill] sm:$0xff] }
 0x5d0   : > { %v3789_v21 = vsel %vm3772_vm0, %v3725_v52, %v3735_v18  ;;  %v3790_v61 = vsel %vm3772_vm0, %v3727_v2, %v3737_v10  ;;  %v3651_v58 = vsel %vm3631_vm1, %v14057_v53, %v14078_v38  ;;  %v14081_v52 = vld [vmem:[#allocation61_spill] sm:$0xff]  ;;  %v3556_v56 = vadd.f32 %v3510_v55, %v3415_v34 }
 0x5d1   : > { %v11475_v59 = vadd.f32 %v3789_v21, %v3676_v50  ;;  %v11477_v8 = vadd.f32 %v3790_v61, %v3683_v12  ;;  %v3362_v2 = vsel %vm3349_vm4, %v14055_v45, %v14081_v52  ;;  %v3352_v9 = vsel %vm3349_vm4, %v14082_v40, %v14027_v27  ;;  %v14083_v45 = vld [vmem:[#allocation66_spill] sm:$0xff]  ;;  %v14084_v27 = vld [vmem:[#allocation92_spill] sm:$0xff]  ;;  %v14088_v55 = vld [vmem:[#allocation5_spill] sm:$0xff] }
 0x5d2   : > { %v3357_v53 = vsel %vm3349_vm4, %v14081_v52, %v14082_v40  ;;  %v3690_v37 = vadd.f32 %v3650_v46, %v3549_v35  ;;  %v3363_v34 = vsel %vm3349_vm4, %v14056_v57, %v14083_v45  ;;  %v3697_v0 = vadd.f32 %v3651_v58, %v3556_v56  ;;  %v14085_v12 = vld [vmem:[#allocation18_spill] sm:$0xff]  ;;  %v14086_v46 = vld [vmem:[#allocation93_spill] sm:$0xff] }
 0x5d3   : > { %14079 = vst [vmem:[#allocation44_spill] sm:$0xff] %v11475_v59  ;;  %14080 = vst [vmem:[#allocation45_spill] sm:$0xff] %v11477_v8  ;;  %v3739_v29 = vpop.permute.xlu0 %3738  ;;  %3865 = vrot.lane.b32.xlu0 %v11475_v59, %s8071_s27  ;;  %3867 = vrot.lane.b32.xlu1 %v11477_v8, %s8071_s27  ;;  %v3642_v30 = vsel %vm3631_vm1, %v14058_v20, %v14084_v27  ;;  %v3741_v50 = vpop.permute.xlu1 %3740  ;;  %v3402_v35 = vadd.f32 %v3362_v2, %v14085_v12  ;;  %v14089_v52 = vld [vmem:[#allocation62_spill] sm:$0xff]  ;;  %v14090_v20 = vld [vmem:[#allocation63_spill] sm:$0xff] }
 0x5d4   : > { %v3791_v49 = vsel %vm3772_vm0, %v3729_v19, %v3739_v29  ;;  %v3643_v21 = vsel %vm3631_vm1, %v14068_v15, %v14086_v46  ;;  %v3792_v57 = vsel %vm3772_vm0, %v3731_v3, %v3741_v50  ;;  %v3403_v58 = vadd.f32 %v3357_v53, %v14088_v55  ;;  %v14092_v15 = vld [vmem:[#allocation21_spill] sm:$0xff]  ;;  %v14096_v55 = vld [vmem:[#allocation94_spill] sm:$0xff] }
 0x5d5   : > { %v11512_v61 = vadd.f32 %v3791_v49, %v3690_v37  ;;  %v3503_v19 = vsel %vm3490_vm12, %v14064_v60, %v14089_v52  ;;  %v3498_v2 = vsel %vm3490_vm12, %v14089_v52, %v14090_v20  ;;  %v11525_v56 = vadd.f32 %v3792_v57, %v3697_v0  ;;  %v14093_v37 = vld [vmem:[#allocation67_spill] sm:$0xff]  ;;  %v14094_v53 = vld [vmem:[#allocation69_spill] sm:$0xff] }
 0x5d6   : > { %v3409_v40 = vadd.f32 %v3363_v34, %v14092_v15  ;;  %v3358_v3 = vsel %vm3349_vm4, %v14083_v45, %v14093_v37  ;;  %v3504_v49 = vsel %vm3490_vm12, %v14075_v48, %v14094_v53  ;;  %v3670_v60 = vadd.f32 %v3642_v30, %v11356_v5  ;;  %v14095_v0 = vld [vmem:[#allocation73_spill] sm:$0xff]  ;;  %v14097_v52 = vld [vmem:[#allocation95_spill] sm:$0xff] }
 0x5d7   : > { %14087 = vst [vmem:[#allocation46_spill] sm:$0xff] %v11512_v61  ;;  %14091 = vst [vmem:[#allocation48_spill] sm:$0xff] %v11525_v56  ;;  %v3743_v12 = vpop.permute.xlu0 %3742  ;;  %3869 = vrot.lane.b32.xlu0 %v11512_v61, %s8071_s27  ;;  %v3364_v34 = vsel %vm3349_vm4, %v14066_v6, %v14095_v0  ;;  %v3677_v57 = vadd.f32 %v3643_v21, %v3536_v31  ;;  %v3644_v45 = vsel %vm3631_vm1, %v14069_v41, %v14096_v55  ;;  %v3745_v5 = vpop.permute.xlu1 %3744  ;;  %v14098_v21 = vld [vmem:[#allocation74_spill] sm:$0xff] }
 0x5d8   : > { %v3783_v48 = vsel %vm3772_vm0, %v3733_v25, %v3743_v12  ;;  %3871 = vrot.lane.b32.xlu1 %v11525_v56, %s8071_s27  ;;  %v3543_v30 = vadd.f32 %v3503_v19, %v3402_v35  ;;  %v3645_v15 = vsel %vm3631_vm1, %v14076_v36, %v14097_v52  ;;  %v3784_v31 = vsel %vm3772_vm0, %v3735_v18, %v3745_v5  ;;  %v14099_v56 = vld [vmem:[#allocation10_spill] sm:$0xff] }
 0x5d9   : > { %v11555_v6 = vadd.f32 %v3783_v48, %v3670_v60  ;;  %v3353_v25 = vsel %vm3349_vm4, %v14093_v37, %v14033_v24  ;;  %v3550_v41 = vadd.f32 %v3504_v49, %v3409_v40  ;;  %v3505_v35 = vsel %vm3490_vm12, %v14077_v11, %v14098_v21  ;;  %v14100_v60 = vld [vmem:[#allocation68_spill] sm:$0xff] }
 0x5da   : > { %v11567_v19 = vadd.f32 %v3784_v31, %v3677_v57  ;;  %v3410_v36 = vadd.f32 %v3358_v3, %v14099_v56  ;;  %v3499_v18 = vsel %vm3490_vm12, %v14094_v53, %v14100_v60  ;;  %v14101_v48 = vld [vmem:[#allocation12_spill] sm:$0xff]  ;;  %v3684_v8 = vadd.f32 %v3644_v45, %v3543_v30 }
 0x5db   : > { %v3416_v61 = vadd.f32 %v3364_v34, %v14101_v48  ;;  %v3747_v59 = vpop.permute.xlu0 %3746  ;;  %3873 = vrot.lane.b32.xlu0 %v11555_v6, %s8071_s27  ;;  %v14102_v24 = vld [vmem:[#allocation72_spill] sm:$0xff]  ;;  %v3691_v40 = vadd.f32 %v3645_v15, %v3550_v41  ;;  %v3749_v53 = vpop.permute.xlu1 %3748  ;;  %v14104_v34 = vld [vmem:[#allocation97_spill] sm:$0xff]  ;;  %v3544_v15 = vadd.f32 %v3498_v2, %v3403_v58  ;;  %v14107_v48 = vld [vmem:[#allocation75_spill] sm:$0xff] }
 0x5dc   : > { %v3359_v11 = vsel %vm3349_vm4, %v14095_v0, %v14102_v24  ;;  %v14103_v37 = vld [vmem:[#allocation96_spill] sm:$0xff]  ;;  %v3785_v3 = vsel %vm3772_vm0, %v3737_v10, %v3747_v59  ;;  %3875 = vrot.lane.b32.xlu1 %v11567_v19, %s8071_s27  ;;  %v3637_v57 = vsel %vm3631_vm1, %v14084_v27, %v14104_v34  ;;  %v3786_v45 = vsel %vm3772_vm0, %v3739_v29, %v3749_v53 }
 0x5dd   : > { %v3646_v56 = vsel %vm3631_vm1, %v14078_v38, %v14103_v37  ;;  %v3557_v49 = vadd.f32 %v3505_v35, %v3416_v61  ;;  %v11593_v0 = vadd.f32 %v3785_v3, %v3684_v8  ;;  %v14105_v30 = vld [vmem:[#allocation20_spill] sm:$0xff]  ;;  %v3354_v10 = vsel %vm3349_vm4, %v14102_v24, %v14032_v51  ;;  %v14106_v61 = vld [vmem:[#allocation22_spill] sm:$0xff] }
 0x5de   : > { %v3404_v38 = vadd.f32 %v3352_v9, %v14105_v30  ;;  %v11602_v31 = vadd.f32 %v3786_v45, %v3691_v40  ;;  %v3411_v41 = vadd.f32 %v3353_v25, %v14106_v61  ;;  %v3551_v35 = vadd.f32 %v3499_v18, %v3410_v36  ;;  %v14108_v9 = vld [vmem:[#allocation27_spill] sm:$0xff]  ;;  %v14109_v51 = vld [vmem:[#allocation98_spill] sm:$0xff]  ;;  %v14110_v18 = vld [vmem:[#allocation28_spill] sm:$0xff] }
 0x5df   : > { %v3500_v8 = vsel %vm3490_vm12, %v14098_v21, %v14107_v48  ;;  %v3698_v27 = vadd.f32 %v3646_v56, %v3557_v49  ;;  %v3751_v29 = vpop.permute.xlu0 %3750  ;;  %3877 = vrot.lane.b32.xlu0 %v11593_v0, %s8071_s27  ;;  %v3417_v58 = vadd.f32 %v3359_v11, %v14108_v9  ;;  %v3671_v2 = vadd.f32 %v3637_v57, %v11362_v62  ;;  %v3753_v21 = vpop.permute.xlu1 %3752  ;;  %v14111_v40 = vld [vmem:[#allocation99_spill] sm:$0xff]  ;;  %v14112_v3 = vld [vmem:[#allocation76_spill] sm:$0xff]  ;;  %v14116_v61 = vld [vmem:[#allocation78_spill] sm:$0xff] }
 0x5e0   : > { %v3638_v25 = vsel %vm3631_vm1, %v14086_v46, %v14109_v51  ;;  %v3787_v36 = vsel %vm3772_vm0, %v3741_v50, %v3751_v29  ;;  %3879 = vrot.lane.b32.xlu1 %v11602_v31, %s8071_s27  ;;  %v3418_v24 = vadd.f32 %v3354_v10, %v14110_v18  ;;  %v3639_v11 = vsel %vm3631_vm1, %v14096_v55, %v14111_v40  ;;  %v14113_v49 = vld [vmem:[#allocation31_spill] sm:$0xff]  ;;  %v14114_v55 = vld [vmem:[#allocation77_spill] sm:$0xff] }
 0x5e1   : > { %v11626_v62 = vadd.f32 %v3787_v36, %v3698_v27  ;;  %v3778_v56 = vsel %vm3772_vm0, %v3743_v12, %v3753_v21  ;;  %v3558_v46 = vadd.f32 %v3500_v8, %v3417_v58  ;;  %v3491_v50 = vsel %vm3490_vm12, %v14045_v28, %v14112_v3  ;;  %v14115_v12 = vld [vmem:[#allocation30_spill] sm:$0xff]  ;;  %v14117_v9 = vld [vmem:[#allocation33_spill] sm:$0xff] }
 0x5e2   : > { %v11638_v57 = vsel %vm3490_vm12, %v14112_v3, %v14113_v49  ;;  %v11640_v45 = vadd.f32 %v3778_v56, %v3671_v2  ;;  %v3492_v30 = vsel %vm3490_vm12, %v14073_v22, %v14114_v55  ;;  %v3522_v10 = vsel %vm3490_vm12, %v14114_v55, %v14115_v12  ;;  %v14118_v2 = vld [vmem:[#allocation100_spill] sm:$0xff]  ;;  %v14119_v18 = vld [vmem:[#allocation101_spill] sm:$0xff]  ;;  %v14120_v3 = vld [vmem:[#allocation79_spill] sm:$0xff] }
 0x5e3   : > { %v3493_v28 = vsel %vm3490_vm12, %v14090_v20, %v14116_v61  ;;  %v3678_v8 = vadd.f32 %v3638_v25, %v11479_v44  ;;  %v3755_v27 = vpop.permute.xlu0 %3754  ;;  %3881 = vrot.lane.b32.xlu0 %v11626_v62, %s8071_s27  ;;  %v3523_v22 = vsel %vm3490_vm12, %v14116_v61, %v14117_v9  ;;  %v3685_v58 = vadd.f32 %v3639_v11, %v3544_v15  ;;  %v3757_v44 = vpop.permute.xlu1 %3756  ;;  %v14125_v9 = vld [vmem:[#allocation34_spill] sm:$0xff] }
 0x5e4   : > { %v3640_v36 = vsel %vm3631_vm1, %v14097_v52, %v14118_v2  ;;  %v3779_v20 = vsel %vm3772_vm0, %v3745_v5, %v3755_v27  ;;  %3883 = vrot.lane.b32.xlu1 %v11640_v45, %s8071_s27  ;;  %v3531_v25 = vadd.f32 %v3491_v50, %v11354_v17  ;;  %v3641_v56 = vsel %vm3631_vm1, %v14103_v37, %v14119_v18  ;;  %v14121_v37 = vld [vmem:[#allocation32_spill] sm:$0xff] }
 0x5e5   : > { %v11674_v15 = vadd.f32 %v3779_v20, %v3678_v8  ;;  %v3780_v11 = vsel %vm3772_vm0, %v3747_v59, %v3757_v44  ;;  %v3538_v52 = vadd.f32 %v3492_v30, %v11395_v43  ;;  %v3539_v5 = vadd.f32 %v3522_v10, %v11247_v1  ;;  %v14122_v1 = vld [vmem:[#allocation80_spill] sm:$0xff]  ;;  %v14123_v30 = vld [vmem:[#allocation102_spill] sm:$0xff]  ;;  %v14124_v10 = vld [vmem:[#allocation103_spill] sm:$0xff] }
 0x5e6   : > { %v3494_v49 = vsel %vm3490_vm12, %v14100_v60, %v14120_v3  ;;  %v11684_v17 = vadd.f32 %v3780_v11, %v3685_v58  ;;  %v3545_v50 = vadd.f32 %v3493_v28, %v3404_v38  ;;  %v3546_v55 = vadd.f32 %v3523_v22, %v11239_v42  ;;  %v14126_v20 = vld [vmem:[#allocation104_spill] sm:$0xff] }
 0x5e7   : > { %v3524_v12 = vsel %vm3490_vm12, %v14120_v3, %v14121_v37  ;;  %v3692_v59 = vadd.f32 %v3640_v36, %v3551_v35  ;;  %v3759_v61 = vpop.permute.xlu0 %3758  ;;  %3885 = vrot.lane.b32.xlu0 %v11674_v15, %s8071_s27  ;;  %v3495_v43 = vsel %vm3490_vm12, %v14107_v48, %v14122_v1  ;;  %v3699_v60 = vadd.f32 %v3641_v56, %v3558_v46  ;;  %v3761_v35 = vpop.permute.xlu1 %3760  ;;  %v14127_v56 = vld [vmem:[#allocation82_spill] sm:$0xff]  ;;  %v14128_v3 = vld [vmem:[#allocation105_spill] sm:$0xff] }
 0x5e8   : > { %v3632_v42 = vsel %vm3631_vm1, %v14104_v34, %v14123_v30  ;;  %v3781_v38 = vsel %vm3772_vm0, %v3749_v53, %v3759_v61  ;;  %3887 = vrot.lane.b32.xlu1 %v11684_v17, %s8071_s27  ;;  %v3633_v28 = vsel %vm3631_vm1, %v14109_v51, %v14124_v10  ;;  %v3663_v48 = vsel %vm3631_vm1, %v14124_v10, %v11000_v4 }
 0x5e9   : > { %v11713_v46 = vadd.f32 %v3781_v38, %v3692_v59  ;;  %v3782_v34 = vsel %vm3772_vm0, %v3751_v29, %v3761_v35  ;;  %v3552_v53 = vadd.f32 %v3494_v49, %v3411_v41  ;;  %v3553_v8 = vadd.f32 %v3524_v12, %v11281_v39 }
 0x5ea   : > { %v3525_v22 = vsel %vm3490_vm12, %v14122_v1, %v14125_v9  ;;  %v11722_v58 = vadd.f32 %v3782_v34, %v3699_v60  ;;  %v3559_v51 = vadd.f32 %v3495_v43, %v3418_v24  ;;  %v3672_v36 = vadd.f32 %v3632_v42, %v3531_v25  ;;  %v14132_v60 = vld [vmem:[#allocation106_spill] sm:$0xff] }
 0x5eb   : > { %v3634_v4 = vsel %vm3631_vm1, %v14111_v40, %v14126_v20  ;;  %v3664_v41 = vsel %vm3631_vm1, %v14126_v20, %v14127_v56  ;;  %v3763_v39 = vpop.permute.xlu0 %3762  ;;  %3889 = vrot.lane.b32.xlu0 %v11713_v46, %s8071_s27  ;;  %v3679_v29 = vadd.f32 %v3633_v28, %v3538_v52  ;;  %v3680_v11 = vadd.f32 %v3663_v48, %v3539_v5  ;;  %v3765_v40 = vpop.permute.xlu1 %3764  ;;  %v14129_v5 = vld [vmem:[#allocation81_spill] sm:$0xff]  ;;  %v14141_v20 = vld [vmem:[#allocation38_spill] sm:$0xff]  ;;  %v14143_v56 = vld [vmem:[#allocation40_spill] sm:$0xff] }
 0x5ec   : > { %v3635_v24 = vsel %vm3631_vm1, %v14118_v2, %v14128_v3  ;;  %v3773_v25 = vsel %vm3772_vm0, %v3753_v21, %v3763_v39  ;;  %3891 = vrot.lane.b32.xlu1 %v11722_v58, %s8071_s27  ;;  %v3665_v49 = vsel %vm3631_vm1, %v14128_v3, %v11008_v47  ;;  %v3774_v52 = vsel %vm3772_vm0, %v3755_v27, %v3765_v40  ;;  %v14148_v3 = vld [vmem:[#allocation44_spill] sm:$0xff] }
 0x5ed   : > { %v11746_v37 = vadd.f32 %v3773_v25, %v3672_v36  ;;  %v3804_v2 = vsel %vm3772_vm0, %v3765_v40, %v11127_v54  ;;  %v3560_v21 = vadd.f32 %v3525_v22, %v11270_v63  ;;  %v3662_v12 = vsel %vm3631_vm1, %v14123_v30, %v14129_v5  ;;  %v14136_v22 = vld [vmem:[#allocation35_spill] sm:$0xff]  ;;  %v14140_v36 = vld [vmem:[#allocation37_spill] sm:$0xff]  ;;  %v14150_v25 = vld [vmem:[#allocation46_spill] sm:$0xff] }
 0x5ee   : > { %v11758_v59 = vadd.f32 %v3774_v52, %v3679_v29  ;;  %v11760_v1 = vadd.f32 %v3804_v2, %v3680_v11  ;;  %v3686_v47 = vadd.f32 %v3634_v4, %v3545_v50  ;;  %v3687_v43 = vadd.f32 %v3664_v41, %v3546_v55  ;;  %v14142_v4 = vld [vmem:[#allocation39_spill] sm:$0xff]  ;;  %v14144_v41 = vld [vmem:[#allocation41_spill] sm:$0xff]  ;;  %v14151_v40 = vld [vmem:[#allocation48_spill] sm:$0xff] }
 0x5ef   : > { %v3636_v27 = vsel %vm3631_vm1, %v14119_v18, %v14132_v60  ;;  %v3666_v54 = vsel %vm3631_vm1, %v14132_v60, %v11010_v13  ;;  %v3767_v63 = vpop.permute.xlu0 %3766  ;;  %3893 = vrot.lane.b32.xlu0 %v11746_v37, %s8071_s27  ;;  %v3693_v30 = vadd.f32 %v3635_v24, %v3552_v53  ;;  %v3694_v42 = vadd.f32 %v3665_v49, %v3553_v8  ;;  %v3769_v18 = vpop.permute.xlu1 %3768  ;;  %v14146_v29 = vld [vmem:[#allocation47_spill] sm:$0xff]  ;;  %v14149_v24 = vld [vmem:[#allocation45_spill] sm:$0xff] }
 0x5f0   : > { %14130 = vst [vmem:[#allocation49_spill] sm:$0xff] %v11758_v59  ;;  %14131 = vst [vmem:[#allocation52_spill] sm:$0xff] %v11760_v1  ;;  %v3775_v50 = vsel %vm3772_vm0, %v3757_v44, %v3767_v63  ;;  %v3805_v55 = vsel %vm3772_vm0, %v3767_v63, %v11175_v33  ;;  %3895 = vrot.lane.b32.xlu1 %v11758_v59, %s8071_s27  ;;  %v3776_v10 = vsel %vm3772_vm0, %v3759_v61, %v3769_v18  ;;  %v14147_v11 = vld [vmem:[#allocation43_spill] sm:$0xff] }
 0x5f1   : > { %v11779_v38 = vadd.f32 %v3775_v50, %v3686_v47  ;;  %v11781_v13 = vadd.f32 %v3805_v55, %v3687_v43  ;;  %v3806_v28 = vsel %vm3772_vm0, %v3769_v18, %v11177_v32  ;;  %v3532_v44 = vadd.f32 %v11638_v57, %v11232_v14 }
 0x5f2   : > { %v11790_v48 = vadd.f32 %v3776_v10, %v3693_v30  ;;  %v11792_v33 = vadd.f32 %v3806_v28, %v3694_v42  ;;  %v3700_v34 = vadd.f32 %v3636_v27, %v3559_v51  ;;  %v3701_v53 = vadd.f32 %v3666_v54, %v3560_v21 }
 0x5f3   : > { %14133 = vst [vmem:[#allocation83_spill] sm:$0xff] %v11779_v38  ;;  %14134 = vst [vmem:[#allocation8_spill] sm:$0xff] %v11781_v13  ;;  %v3803_v8 = vsel %vm3772_vm0, %v3763_v39, %v11125_v26  ;;  %v3771_v9 = vpop.permute.xlu0 %3770  ;;  %3897 = vrot.lane.b32.xlu0 %v11779_v38, %s8071_s27  ;;  %v3673_v61 = vadd.f32 %v3662_v12, %v3532_v44  ;;  %v14145_v39 = vld [vmem:[#allocation42_spill] sm:$0xff] }
 0x5f4   : > { %14135 = vst [vmem:[#allocation11_spill] sm:$0xff] %v11790_v48  ;;  %v3777_v32 = vsel %vm3772_vm0, %v3761_v35, %v3771_v9  ;;  %v3807_v14 = vsel %vm3772_vm0, %v3771_v9, %v14136_v22  ;;  %3899 = vrot.lane.b32.xlu1 %v11790_v48, %s8071_s27  ;;  %v14139_v35 = vld [vmem:[#allocation36_spill] sm:$0xff] }
 0x5f5   : > { %v11806_v57 = vadd.f32 %v3777_v32, %v3700_v34  ;;  %v11808_v51 = vadd.f32 %v3807_v14, %v3701_v53  ;;  %v11810_v26 = vadd.f32 %v3803_v8, %v3673_v61 }
 0x5f7   : > { %14137 = vst [vmem:[#allocation50_spill] sm:$0xff] %v11806_v57  ;;  %14138 = vst [vmem:[#allocation51_spill] sm:$0xff] %v11810_v26  ;;  %3901 = vrot.lane.b32.xlu0 %v11806_v57, %s8071_s27 }
 0x5f8   : > { %3903 = vrot.lane.b32.xlu1 %v11810_v26, %s8071_s27 }
 0x5fb   : > { %3905 = vrot.lane.b32.xlu0 %v11760_v1, %s8071_s27 }
 0x5fc   : > { %3907 = vrot.lane.b32.xlu1 %v11781_v13, %s8071_s27 }
 0x5ff   : > { %3909 = vrot.lane.b32.xlu0 %v11792_v33, %s8071_s27 }
 0x600   : > { %3911 = vrot.lane.b32.xlu1 %v11808_v51, %s8071_s27 }
 0x603   : > { %3984 = vrot.lane.b32.xlu0 %v14139_v35, %s8081_s11 }
 0x604   : > { %3986 = vrot.lane.b32.xlu1 %v14140_v36, %s8081_s11 }
 0x607   : > { %3988 = vrot.lane.b32.xlu0 %v14141_v20, %s8081_s11 }
 0x608   : > { %3990 = vrot.lane.b32.xlu1 %v14142_v4, %s8081_s11 }
 0x60b   : > { %3992 = vrot.lane.b32.xlu0 %v14143_v56, %s8081_s11 }
 0x60c   : > { %3994 = vrot.lane.b32.xlu1 %v14144_v41, %s8081_s11 }
 0x60f   : > { %3996 = vrot.lane.b32.xlu0 %v14145_v39, %s8081_s11 }
 0x610   : > { %3998 = vrot.lane.b32.xlu1 %v14146_v29, %s8081_s11 }
 0x613   : > { %4000 = vrot.lane.b32.xlu0 %v14147_v11, %s8081_s11 }
 0x614   : > { %4002 = vrot.lane.b32.xlu1 %v11437_v7, %s8081_s11 }
 0x617   : > { %4004 = vrot.lane.b32.xlu0 %v11439_v16, %s8081_s11 }
 0x618   : > { %4006 = vrot.lane.b32.xlu1 %v14148_v3, %s8081_s11 }
 0x61b   : > { %4008 = vrot.lane.b32.xlu0 %v14149_v24, %s8081_s11 }
 0x61c   : > { %4010 = vrot.lane.b32.xlu1 %v14150_v25, %s8081_s11 }
 0x61f   : > { %4012 = vrot.lane.b32.xlu0 %v14151_v40, %s8081_s11 }
 0x620   : > { %4014 = vrot.lane.b32.xlu1 %v11555_v6, %s8081_s11 }
 0x623   : > { %4016 = vrot.lane.b32.xlu0 %v11567_v19, %s8081_s11 }
 0x624   : > { %4018 = vrot.lane.b32.xlu1 %v11593_v0, %s8081_s11 }
 0x627   : > { %4020 = vrot.lane.b32.xlu0 %v11602_v31, %s8081_s11 }
 0x628   : > { %4022 = vrot.lane.b32.xlu1 %v11626_v62, %s8081_s11 }
 0x62b   : > { %4024 = vrot.lane.b32.xlu0 %v11640_v45, %s8081_s11 }
 0x62c   : > { %4026 = vrot.lane.b32.xlu1 %v11674_v15, %s8081_s11 }
 0x62d   : > { %v11868_v49 = vpop.permute.xlu1 %3843 }
 0x62e   : > { %14152 = vst [vmem:[#allocation24_spill] sm:$0xff] %v11868_v49 }
 0x62f   : > { %4028 = vrot.lane.b32.xlu0 %v11684_v17, %s8081_s11 }
 0x630   : > { %4030 = vrot.lane.b32.xlu1 %v11713_v46, %s8081_s11 }
 0x631   : > { %v11874_v52 = vpop.permute.xlu0 %3845  ;;  %v11876_v2 = vpop.permute.xlu1 %3847 }
 0x632   : > { %14153 = vst [vmem:[#allocation53_spill] sm:$0xff] %v11874_v52  ;;  %14154 = vst [vmem:[#allocation84_spill] sm:$0xff] %v11876_v2 }
 0x633   : > { %4032 = vrot.lane.b32.xlu0 %v11722_v58, %s8081_s11 }
 0x634   : > { %4034 = vrot.lane.b32.xlu1 %v11746_v37, %s8081_s11 }
 0x635   : > { %v11882_v21 = vpop.permute.xlu0 %3849  ;;  %v11884_v5 = vpop.permute.xlu1 %3851 }
 0x636   : > { %14155 = vst [vmem:[#allocation85_spill] sm:$0xff] %v11882_v21  ;;  %14156 = vst [vmem:[#allocation7_spill] sm:$0xff] %v11884_v5 }
 0x637   : > { %4036 = vrot.lane.b32.xlu0 %v11758_v59, %s8081_s11 }
 0x638   : > { %4038 = vrot.lane.b32.xlu1 %v11779_v38, %s8081_s11 }
 0x639   : > { %v11890_v12 = vpop.permute.xlu0 %3853  ;;  %v11892_v47 = vpop.permute.xlu1 %3855 }
 0x63a   : > { %14157 = vst [vmem:[#allocation54_spill] sm:$0xff] %v11890_v12  ;;  %14158 = vst [vmem:[#allocation58_spill] sm:$0xff] %v11892_v47 }
 0x63b   : > { %4040 = vrot.lane.b32.xlu0 %v11790_v48, %s8081_s11 }
 0x63c   : > { %4042 = vrot.lane.b32.xlu1 %v11806_v57, %s8081_s11 }
 0x63d   : > { %v11898_v43 = vpop.permute.xlu0 %3857  ;;  %v11900_v60 = vpop.permute.xlu1 %3859 }
 0x63e   : > { %14159 = vst [vmem:[#allocation65_spill] sm:$0xff] %v11898_v43  ;;  %14160 = vst [vmem:[#allocation86_spill] sm:$0xff] %v11900_v60 }
 0x63f   : > { %4044 = vrot.lane.b32.xlu0 %v11810_v26, %s8081_s11 }
 0x640   : > { %4046 = vrot.lane.b32.xlu1 %v11760_v1, %s8081_s11 }
 0x641   : > { %v11906_v27 = vpop.permute.xlu0 %3861  ;;  %v11908_v54 = vpop.permute.xlu1 %3863 }
 0x642   : > { %14161 = vst [vmem:[#allocation87_spill] sm:$0xff] %v11906_v27 }
 0x643   : > { %4048 = vrot.lane.b32.xlu0 %v11781_v13, %s8081_s11 }
 0x644   : > { %4050 = vrot.lane.b32.xlu1 %v11792_v33, %s8081_s11 }
 0x645   : > { %v11914_v63 = vpop.permute.xlu0 %3865  ;;  %v11916_v30 = vpop.permute.xlu1 %3867 }
 0x647   : > { %4052 = vrot.lane.b32.xlu0 %v11808_v51, %s8081_s11 }
 0x648   : > { %4125 = vrot.lane.b32.xlu1 %v14139_v35, %s8082_s12 }
 0x649   : > { %v11922_v42 = vpop.permute.xlu0 %3869 }
 0x64a   : > { %v11924_v50 = vpop.permute.xlu1 %3871 }
 0x64b   : > { %4127 = vrot.lane.b32.xlu0 %v14140_v36, %s8082_s12 }
 0x64c   : > { %4129 = vrot.lane.b32.xlu1 %v14141_v20, %s8082_s12 }
 0x64d   : > { %v11930_v55 = vpop.permute.xlu0 %3873 }
 0x64e   : > { %v11932_v18 = vpop.permute.xlu1 %3875 }
 0x64f   : > { %4131 = vrot.lane.b32.xlu0 %v14142_v4, %s8082_s12 }
 0x650   : > { %4133 = vrot.lane.b32.xlu1 %v14143_v56, %s8082_s12 }
 0x651   : > { %v11938_v10 = vpop.permute.xlu0 %3877 }
 0x652   : > { %v11940_v28 = vpop.permute.xlu1 %3879 }
 0x653   : > { %4135 = vrot.lane.b32.xlu0 %v14144_v41, %s8082_s12 }
 0x654   : > { %4137 = vrot.lane.b32.xlu1 %v14145_v39, %s8082_s12 }
 0x655   : > { %v11946_v44 = vpop.permute.xlu0 %3881 }
 0x656   : > { %v11948_v34 = vpop.permute.xlu1 %3883 }
 0x657   : > { %4139 = vrot.lane.b32.xlu0 %v14146_v29, %s8082_s12 }
 0x658   : > { %4141 = vrot.lane.b32.xlu1 %v14147_v11, %s8082_s12 }
 0x659   : > { %v11954_v53 = vpop.permute.xlu0 %3885 }
 0x65a   : > { %v11956_v8 = vpop.permute.xlu1 %3887 }
 0x65b   : > { %4143 = vrot.lane.b32.xlu0 %v11437_v7, %s8082_s12 }
 0x65c   : > { %4145 = vrot.lane.b32.xlu1 %v11439_v16, %s8082_s12 }
 0x65d   : > { %v11962_v9 = vpop.permute.xlu0 %3889 }
 0x65e   : > { %v11964_v61 = vpop.permute.xlu1 %3891 }
 0x65f   : > { %4147 = vrot.lane.b32.xlu0 %v14148_v3, %s8082_s12 }
 0x660   : > { %4149 = vrot.lane.b32.xlu1 %v14149_v24, %s8082_s12 }
 0x661   : > { %v11970_v32 = vpop.permute.xlu0 %3893 }
 0x662   : > { %v11972_v22 = vpop.permute.xlu1 %3895 }
 0x663   : > { %4151 = vrot.lane.b32.xlu0 %v14150_v25, %s8082_s12 }
 0x664   : > { %4153 = vrot.lane.b32.xlu1 %v14151_v40, %s8082_s12 }
 0x665   : > { %v11978_v14 = vpop.permute.xlu0 %3897 }
 0x666   : > { %v11980_v49 = vpop.permute.xlu1 %3899 }
 0x667   : > { %4155 = vrot.lane.b32.xlu0 %v11555_v6, %s8082_s12 }
 0x668   : > { %4157 = vrot.lane.b32.xlu1 %v11567_v19, %s8082_s12 }
 0x669   : > { %v11986_v5 = vpop.permute.xlu0 %3901 }
 0x66a   : > { %14162 = vst [vmem:[#allocation6_spill] sm:$0xff] %v11986_v5  ;;  %v11988_v21 = vpop.permute.xlu1 %3903 }
 0x66b   : > { %14163 = vst [vmem:[#allocation23_spill] sm:$0xff] %v11988_v21  ;;  %4159 = vrot.lane.b32.xlu0 %v11593_v0, %s8082_s12 }
 0x66c   : > { %4161 = vrot.lane.b32.xlu1 %v11602_v31, %s8082_s12 }
 0x66d   : > { %v11994_v60 = vpop.permute.xlu0 %3905 }
 0x66e   : > { %14164 = vst [vmem:[#allocation55_spill] sm:$0xff] %v11994_v60  ;;  %v11996_v2 = vpop.permute.xlu1 %3907 }
 0x66f   : > { %14165 = vst [vmem:[#allocation59_spill] sm:$0xff] %v11996_v2  ;;  %4163 = vrot.lane.b32.xlu0 %v11626_v62, %s8082_s12 }
 0x670   : > { %4165 = vrot.lane.b32.xlu1 %v11640_v45, %s8082_s12 }
 0x671   : > { %v12002_v52 = vpop.permute.xlu0 %3909 }
 0x672   : > { %14166 = vst [vmem:[#allocation26_spill] sm:$0xff] %v12002_v52  ;;  %v12004_v5 = vpop.permute.xlu1 %3911 }
 0x673   : > { %14167 = vst [vmem:[#allocation70_spill] sm:$0xff] %v12004_v5  ;;  %4167 = vrot.lane.b32.xlu0 %v11674_v15, %s8082_s12 }
 0x674   : > { %4169 = vrot.lane.b32.xlu1 %v11684_v17, %s8082_s12 }
 0x675   : > { %v12010_v21 = vpop.permute.xlu0 %3984 }
 0x676   : > { %14168 = vst [vmem:[#allocation29_spill] sm:$0xff] %v12010_v21  ;;  %v12012_v60 = vpop.permute.xlu1 %3986 }
 0x677   : > { %14169 = vst [vmem:[#allocation88_spill] sm:$0xff] %v12012_v60  ;;  %4171 = vrot.lane.b32.xlu0 %v11713_v46, %s8082_s12 }
 0x678   : > { %4173 = vrot.lane.b32.xlu1 %v11722_v58, %s8082_s12 }
 0x679   : > { %v12018_v2 = vpop.permute.xlu0 %3988 }
 0x67a   : > { %14170 = vst [vmem:[#allocation89_spill] sm:$0xff] %v12018_v2  ;;  %v12020_v52 = vpop.permute.xlu1 %3990 }
 0x67b   : > { %14171 = vst [vmem:[#allocation9_spill] sm:$0xff] %v12020_v52  ;;  %4175 = vrot.lane.b32.xlu0 %v11746_v37, %s8082_s12  ;;  %v3934_v52 = vsel %vm3913_vm2, %v11890_v12, %v11908_v54 }
 0x67c   : > { %4177 = vrot.lane.b32.xlu1 %v11758_v59, %s8082_s12 }
 0x67d   : > { %v12026_v5 = vpop.permute.xlu0 %3992 }
 0x67e   : > { %14172 = vst [vmem:[#allocation19_spill] sm:$0xff] %v12026_v5  ;;  %v12028_v21 = vpop.permute.xlu1 %3994 }
 0x67f   : > { %14173 = vst [vmem:[#allocation56_spill] sm:$0xff] %v12028_v21  ;;  %4179 = vrot.lane.b32.xlu0 %v11779_v38, %s8082_s12  ;;  %v3935_v38 = vsel %vm3913_vm2, %v11892_v47, %v11914_v63 }
 0x680   : > { %4181 = vrot.lane.b32.xlu1 %v11790_v48, %s8082_s12  ;;  %v3957_v12 = vadd.f32 %v3935_v38, %v14145_v39 }
 0x681   : > { %v12034_v60 = vpop.permute.xlu0 %3996 }
 0x682   : > { %14174 = vst [vmem:[#allocation57_spill] sm:$0xff] %v12034_v60  ;;  %v12036_v2 = vpop.permute.xlu1 %3998 }
 0x683   : > { %14175 = vst [vmem:[#allocation25_spill] sm:$0xff] %v12036_v2  ;;  %4183 = vrot.lane.b32.xlu0 %v11806_v57, %s8082_s12  ;;  %v3936_v57 = vsel %vm3913_vm2, %v11898_v43, %v11916_v30 }
 0x684   : > { %4185 = vrot.lane.b32.xlu1 %v11810_v26, %s8082_s12  ;;  %v3964_v43 = vadd.f32 %v3936_v57, %v14146_v29 }
 0x685   : > { %v12043_v5 = vpop.permute.xlu0 %4000 }
 0x686   : > { %14176 = vst [vmem:[#allocation64_spill] sm:$0xff] %v12043_v5  ;;  %v12049_v48 = vpop.permute.xlu1 %4002  ;;  %v3950_v5 = vadd.f32 %v3934_v52, %v14144_v41 }
 0x687   : > { %14177 = vst [vmem:[#allocation90_spill] sm:$0xff] %v12049_v48  ;;  %4187 = vrot.lane.b32.xlu0 %v11760_v1, %s8082_s12 }
 0x688   : > { %4189 = vrot.lane.b32.xlu1 %v11781_v13, %s8082_s12 }
 0x689   : > { %v4005_v26 = vpop.permute.xlu0 %4004 }
 0x68a   : > { %v4075_v47 = vsel %vm4054_vm5, %v12028_v21, %v4005_v26  ;;  %v4007_v1 = vpop.permute.xlu1 %4006 }
 0x68b   : > { %v12069_v59 = vadd.f32 %v4075_v47, %v3950_v5  ;;  %v4076_v52 = vsel %vm4054_vm5, %v12034_v60, %v4007_v1  ;;  %4191 = vrot.lane.b32.xlu0 %v11792_v33, %s8082_s12  ;;  %v3938_v5 = vsel %vm3913_vm2, %v11906_v27, %v11924_v50  ;;  %v3930_v60 = vsel %vm3913_vm2, %v11914_v63, %v11932_v18 }
 0x68c   : > { %v12076_v38 = vadd.f32 %v4076_v52, %v3957_v12  ;;  %4193 = vrot.lane.b32.xlu1 %v11808_v51, %s8082_s12  ;;  %v3929_v12 = vsel %vm3913_vm2, %v11908_v54, %v11930_v55  ;;  %v3978_v57 = vadd.f32 %v3938_v5, %v11437_v7  ;;  %v3958_v63 = vadd.f32 %v3930_v60, %v14148_v3 }
 0x68d   : > { %v4009_v13 = vpop.permute.xlu0 %4008 }
 0x68e   : > { %v4077_v47 = vsel %vm4054_vm5, %v12036_v2, %v4009_v13  ;;  %v12088_v21 = vpop.permute.xlu1 %4010  ;;  %v3951_v2 = vadd.f32 %v3929_v12, %v11439_v16 }
 0x68f   : > { %v12094_v52 = vadd.f32 %v4077_v47, %v3964_v43  ;;  %4266 = vrot.lane.b32.xlu0 %v14139_v35, %s8083_s13  ;;  %v3931_v47 = vsel %vm3913_vm2, %v11916_v30, %v11938_v10  ;;  %v3932_v30 = vsel %vm3913_vm2, %v11922_v42, %v11940_v28 }
 0x690   : > { %4268 = vrot.lane.b32.xlu1 %v14140_v36, %s8083_s13  ;;  %v3965_v36 = vadd.f32 %v3931_v47, %v14149_v24 }
 0x691   : > { %v4013_v27 = vpop.permute.xlu0 %4012 }
 0x692   : > { %v4079_v43 = vsel %vm4054_vm5, %v12049_v48, %v4013_v27  ;;  %v4015_v54 = vpop.permute.xlu1 %4014 }
 0x693   : > { %v12113_v35 = vadd.f32 %v4079_v43, %v3978_v57  ;;  %v4070_v5 = vsel %vm4054_vm5, %v4005_v26, %v4015_v54  ;;  %4270 = vrot.lane.b32.xlu0 %v14141_v20, %s8083_s13 }
 0x694   : > { %v12119_v12 = vadd.f32 %v4070_v5, %v3951_v2  ;;  %4278 = vrot.lane.b32.xlu1 %v14145_v39, %s8083_s13  ;;  %v3933_v2 = vsel %vm3913_vm2, %v11924_v50, %v11946_v44  ;;  %v3924_v50 = vsel %vm3913_vm2, %v11930_v55, %v11948_v34 }
 0x695   : > { %v4017_v48 = vpop.permute.xlu0 %4016  ;;  %v3979_v5 = vadd.f32 %v3933_v2, %v14151_v40  ;;  %v3952_v55 = vadd.f32 %v3924_v50, %v11555_v6 }
 0x696   : > { %v4071_v26 = vsel %vm4054_vm5, %v4007_v1, %v4017_v48  ;;  %v4019_v57 = vpop.permute.xlu1 %4018  ;;  %v3972_v1 = vadd.f32 %v3932_v30, %v14150_v25 }
 0x697   : > { %v12135_v39 = vadd.f32 %v4071_v26, %v3958_v63  ;;  %v4072_v60 = vsel %vm4054_vm5, %v4009_v13, %v4019_v57  ;;  %4280 = vrot.lane.b32.xlu0 %v14146_v29, %s8083_s13 }
 0x698   : > { %v12141_v43 = vadd.f32 %v4072_v60, %v3965_v36  ;;  %4272 = vrot.lane.b32.xlu1 %v14142_v4, %s8083_s13  ;;  %v3925_v36 = vsel %vm3913_vm2, %v11932_v18, %v11954_v53  ;;  %v3926_v18 = vsel %vm3913_vm2, %v11938_v10, %v11956_v8 }
 0x699   : > { %v4021_v47 = vpop.permute.xlu0 %4020  ;;  %v3959_v60 = vadd.f32 %v3925_v36, %v11567_v19  ;;  %v3966_v10 = vadd.f32 %v3926_v18, %v11593_v0 }
 0x69a   : > { %v4073_v13 = vsel %vm4054_vm5, %v12088_v21, %v4021_v47  ;;  %v4023_v29 = vpop.permute.xlu1 %4022 }
 0x69b   : > { %v12158_v63 = vadd.f32 %v4073_v13, %v3972_v1  ;;  %v4074_v30 = vsel %vm4054_vm5, %v4013_v27, %v4023_v29  ;;  %4274 = vrot.lane.b32.xlu0 %v14143_v56, %s8083_s13 }
 0x69c   : > { %v12164_v26 = vadd.f32 %v4074_v30, %v3979_v5  ;;  %4282 = vrot.lane.b32.xlu1 %v14147_v11, %s8083_s13  ;;  %v3927_v5 = vsel %vm3913_vm2, %v11940_v28, %v11962_v9  ;;  %v3928_v28 = vsel %vm3913_vm2, %v11946_v44, %v11964_v61 }
 0x69d   : > { %v4025_v2 = vpop.permute.xlu0 %4024  ;;  %v3973_v30 = vadd.f32 %v3927_v5, %v11602_v31  ;;  %v3980_v44 = vadd.f32 %v3928_v28, %v11626_v62 }
 0x69e   : > { %v4065_v27 = vsel %vm4054_vm5, %v4015_v54, %v4025_v2  ;;  %v4027_v1 = vpop.permute.xlu1 %4026 }
 0x69f   : > { %v12180_v13 = vadd.f32 %v4065_v27, %v3952_v55  ;;  %v4066_v50 = vsel %vm4054_vm5, %v4017_v48, %v4027_v1  ;;  %4284 = vrot.lane.b32.xlu0 %v11437_v7, %s8083_s13  ;;  %v3919_v7 = vsel %vm3913_vm2, %v11948_v34, %v11970_v32  ;;  %v3920_v34 = vsel %vm3913_vm2, %v11954_v53, %v11972_v22 }
 0x6a0   : > { %v12186_v36 = vadd.f32 %v4066_v50, %v3959_v60  ;;  %4276 = vrot.lane.b32.xlu1 %v14144_v41, %s8083_s13  ;;  %v3953_v27 = vadd.f32 %v3919_v7, %v11640_v45  ;;  %v3960_v53 = vadd.f32 %v3920_v34, %v11674_v15 }
 0x6a1   : > { %v4029_v54 = vpop.permute.xlu0 %4028 }
 0x6a2   : > { %v4067_v48 = vsel %vm4054_vm5, %v4019_v57, %v4029_v54  ;;  %v4031_v55 = vpop.permute.xlu1 %4030 }
 0x6a3   : > { %v12202_v41 = vadd.f32 %v4067_v48, %v3966_v10  ;;  %v4068_v60 = vsel %vm4054_vm5, %v4021_v47, %v4031_v55  ;;  %4286 = vrot.lane.b32.xlu0 %v11439_v16, %s8083_s13  ;;  %v3921_v16 = vsel %vm3913_vm2, %v11956_v8, %v11978_v14  ;;  %v3922_v8 = vsel %vm3913_vm2, %v11962_v9, %v11980_v49 }
 0x6a4   : > { %v12208_v18 = vadd.f32 %v4068_v60, %v3973_v30  ;;  %4288 = vrot.lane.b32.xlu1 %v14148_v3, %s8083_s13  ;;  %v3967_v30 = vadd.f32 %v3921_v16, %v11684_v17  ;;  %v3974_v9 = vadd.f32 %v3922_v8, %v11713_v46  ;;  %v14182_v8 = vld [vmem:[#allocation59_spill] sm:$0xff] }
 0x6a5   : > { %v4033_v57 = vpop.permute.xlu0 %4032 }
 0x6a6   : > { %v4069_v47 = vsel %vm4054_vm5, %v4023_v29, %v4033_v57  ;;  %v4035_v5 = vpop.permute.xlu1 %4034 }
 0x6a7   : > { %v12224_v3 = vadd.f32 %v4069_v47, %v3980_v44  ;;  %v4060_v50 = vsel %vm4054_vm5, %v4025_v2, %v4035_v5  ;;  %4290 = vrot.lane.b32.xlu0 %v14149_v24, %s8083_s13  ;;  %v14178_v24 = vld [vmem:[#allocation6_spill] sm:$0xff] }
 0x6a8   : > { %v12230_v10 = vadd.f32 %v4060_v50, %v3953_v27  ;;  %4292 = vrot.lane.b32.xlu1 %v14150_v25, %s8083_s13  ;;  %v3923_v48 = vsel %vm3913_vm2, %v11964_v61, %v14178_v24  ;;  %v14179_v27 = vld [vmem:[#allocation23_spill] sm:$0xff] }
 0x6a9   : > { %v4037_v29 = vpop.permute.xlu0 %4036  ;;  %v3981_v44 = vadd.f32 %v3923_v48, %v11722_v58  ;;  %v3914_v61 = vsel %vm3913_vm2, %v11970_v32, %v14179_v27  ;;  %v14185_v27 = vld [vmem:[#allocation11_spill] sm:$0xff] }
 0x6aa   : > { %v4061_v2 = vsel %vm4054_vm5, %v4027_v1, %v4037_v29  ;;  %v4039_v28 = vpop.permute.xlu1 %4038  ;;  %v3954_v32 = vadd.f32 %v3914_v61, %v11746_v37 }
 0x6ab   : > { %v12246_v25 = vadd.f32 %v4061_v2, %v3960_v53  ;;  %v4062_v7 = vsel %vm4054_vm5, %v4029_v54, %v4039_v28  ;;  %4294 = vrot.lane.b32.xlu0 %v14151_v40, %s8083_s13  ;;  %v14180_v40 = vld [vmem:[#allocation55_spill] sm:$0xff]  ;;  %v14181_v53 = vld [vmem:[#allocation49_spill] sm:$0xff] }
 0x6ac   : > { %v12252_v60 = vadd.f32 %v4062_v7, %v3967_v30  ;;  %4296 = vrot.lane.b32.xlu1 %v11555_v6, %s8083_s13  ;;  %v3915_v47 = vsel %vm3913_vm2, %v11972_v22, %v14180_v40  ;;  %v3916_v22 = vsel %vm3913_vm2, %v11978_v14, %v14182_v8  ;;  %v14184_v14 = vld [vmem:[#allocation83_spill] sm:$0xff] }
 0x6ad   : > { %v4041_v1 = vpop.permute.xlu0 %4040  ;;  %v3961_v30 = vadd.f32 %v3915_v47, %v14181_v53  ;;  %v14188_v8 = vld [vmem:[#allocation51_spill] sm:$0xff] }
 0x6ae   : > { %v4063_v54 = vsel %vm4054_vm5, %v4031_v55, %v4041_v1  ;;  %v4043_v34 = vpop.permute.xlu1 %4042 }
 0x6af   : > { %v12268_v6 = vadd.f32 %v4063_v54, %v3974_v9  ;;  %v4064_v16 = vsel %vm4054_vm5, %v4033_v57, %v4043_v34  ;;  %4298 = vrot.lane.b32.xlu0 %v11567_v19, %s8083_s13  ;;  %v14183_v19 = vld [vmem:[#allocation26_spill] sm:$0xff] }
 0x6b0   : > { %v12274_v50 = vadd.f32 %v4064_v16, %v3981_v44  ;;  %4300 = vrot.lane.b32.xlu1 %v11593_v0, %s8083_s13  ;;  %v3917_v48 = vsel %vm3913_vm2, %v11980_v49, %v14183_v19  ;;  %v14186_v54 = vld [vmem:[#allocation70_spill] sm:$0xff]  ;;  %v14190_v19 = vld [vmem:[#allocation8_spill] sm:$0xff] }
 0x6b1   : > { %v4045_v55 = vpop.permute.xlu0 %4044  ;;  %v3975_v61 = vadd.f32 %v3917_v48, %v14185_v27  ;;  %v3918_v49 = vsel %vm3913_vm2, %v14178_v24, %v14186_v54  ;;  %v14187_v16 = vld [vmem:[#allocation50_spill] sm:$0xff] }
 0x6b2   : > { %v4055_v57 = vsel %vm4054_vm5, %v4035_v5, %v4045_v55  ;;  %v4047_v2 = vpop.permute.xlu1 %4046  ;;  %v3968_v5 = vadd.f32 %v3916_v22, %v14184_v14 }
 0x6b3   : > { %v12290_v0 = vadd.f32 %v4055_v57, %v3954_v32  ;;  %v4056_v7 = vsel %vm4054_vm5, %v4037_v29, %v4047_v2  ;;  %4302 = vrot.lane.b32.xlu0 %v11602_v31, %s8083_s13  ;;  %v3982_v32 = vadd.f32 %v3918_v49, %v14187_v16 }
 0x6b4   : > { %v12296_v9 = vadd.f32 %v4056_v7, %v3961_v30  ;;  %4304 = vrot.lane.b32.xlu1 %v11626_v62, %s8083_s13 }
 0x6b5   : > { %v4049_v44 = vpop.permute.xlu0 %4048 }
 0x6b6   : > { %v4057_v29 = vsel %vm4054_vm5, %v4039_v28, %v4049_v44  ;;  %v4051_v40 = vpop.permute.xlu1 %4050 }
 0x6b7   : > { %v12308_v31 = vadd.f32 %v4057_v29, %v3968_v5  ;;  %v4058_v47 = vsel %vm4054_vm5, %v4041_v1, %v4051_v40  ;;  %4306 = vrot.lane.b32.xlu0 %v11640_v45, %s8083_s13 }
 0x6b8   : > { %v12314_v62 = vadd.f32 %v4058_v47, %v3975_v61  ;;  %4308 = vrot.lane.b32.xlu1 %v11674_v15, %s8083_s13 }
 0x6b9   : > { %v4053_v24 = vpop.permute.xlu0 %4052 }
 0x6ba   : > { %v4059_v28 = vsel %vm4054_vm5, %v4043_v34, %v4053_v24  ;;  %v12321_v55 = vpop.permute.xlu1 %4125 }
 0x6bb   : > { %v12323_v30 = vadd.f32 %v4059_v28, %v3982_v32  ;;  %4310 = vrot.lane.b32.xlu0 %v11684_v17, %s8083_s13 }
 0x6bc   : > { %4312 = vrot.lane.b32.xlu1 %v11713_v46, %s8083_s13 }
 0x6bd   : > { %v12329_v45 = vpop.permute.xlu0 %4127 }
 0x6be   : > { %v12331_v1 = vpop.permute.xlu1 %4129 }
 0x6bf   : > { %4314 = vrot.lane.b32.xlu0 %v11722_v58, %s8083_s13 }
 0x6c0   : > { %4316 = vrot.lane.b32.xlu1 %v11746_v37, %s8083_s13 }
 0x6c1   : > { %v12337_v15 = vpop.permute.xlu0 %4131 }
 0x6c2   : > { %v12339_v34 = vpop.permute.xlu1 %4133 }
 0x6c3   : > { %4318 = vrot.lane.b32.xlu0 %v14181_v53, %s8083_s13  ;;  %v14189_v53 = vld [vmem:[#allocation52_spill] sm:$0xff] }
 0x6c4   : > { %4320 = vrot.lane.b32.xlu1 %v14184_v14, %s8083_s13 }
 0x6c5   : > { %v12345_v17 = vpop.permute.xlu0 %4135 }
 0x6c6   : > { %v12347_v46 = vpop.permute.xlu1 %4137 }
 0x6c7   : > { %4322 = vrot.lane.b32.xlu0 %v14185_v27, %s8083_s13 }
 0x6c8   : > { %4324 = vrot.lane.b32.xlu1 %v14187_v16, %s8083_s13 }
 0x6c9   : > { %v12353_v58 = vpop.permute.xlu0 %4139 }
 0x6ca   : > { %v12355_v37 = vpop.permute.xlu1 %4141 }
 0x6cb   : > { %4326 = vrot.lane.b32.xlu0 %v14188_v8, %s8083_s13 }
 0x6cc   : > { %4328 = vrot.lane.b32.xlu1 %v14189_v53, %s8083_s13 }
 0x6cd   : > { %v12361_v22 = vpop.permute.xlu0 %4143 }
 0x6ce   : > { %v4146_v57 = vpop.permute.xlu1 %4145 }
 0x6cf   : > { %v4216_v2 = vsel %vm4195_vm7, %v12345_v17, %v4146_v57  ;;  %4330 = vrot.lane.b32.xlu0 %v14190_v19, %s8083_s13 }
 0x6d0   : > { %v12370_v48 = vadd.f32 %v4216_v2, %v12069_v59  ;;  %4332 = vrot.lane.b32.xlu1 %v11792_v33, %s8083_s13 }
 0x6d1   : > { %v4148_v7 = vpop.permute.xlu0 %4147 }
 0x6d2   : > { %v4217_v14 = vsel %vm4195_vm7, %v12347_v46, %v4148_v7  ;;  %v4150_v5 = vpop.permute.xlu1 %4149 }
 0x6d3   : > { %v12378_v44 = vadd.f32 %v4217_v14, %v12076_v38  ;;  %v4218_v27 = vsel %vm4195_vm7, %v12353_v58, %v4150_v5  ;;  %4334 = vrot.lane.b32.xlu0 %v11808_v51, %s8083_s13 }
 0x6d4   : > { %v12386_v59 = vadd.f32 %v4218_v27, %v12094_v52 }
 0x6d5   : > { %v12388_v33 = vpop.permute.xlu0 %4151 }
 0x6d6   : > { %v4154_v61 = vpop.permute.xlu1 %4153 }
 0x6d7   : > { %v4220_v54 = vsel %vm4195_vm7, %v12361_v22, %v4154_v61 }
 0x6d8   : > { %v12394_v38 = vadd.f32 %v4220_v54, %v12113_v35 }
 0x6d9   : > { %v4156_v49 = vpop.permute.xlu0 %4155 }
 0x6da   : > { %v4211_v29 = vsel %vm4195_vm7, %v4146_v57, %v4156_v49  ;;  %v4158_v40 = vpop.permute.xlu1 %4157 }
 0x6db   : > { %v12399_v51 = vadd.f32 %v4211_v29, %v12119_v12  ;;  %v4212_v52 = vsel %vm4195_vm7, %v4148_v7, %v4158_v40 }
 0x6dc   : > { %v12404_v47 = vadd.f32 %v4212_v52, %v12135_v39 }
 0x6dd   : > { %v4160_v16 = vpop.permute.xlu0 %4159 }
 0x6de   : > { %v4213_v32 = vsel %vm4195_vm7, %v4150_v5, %v4160_v16  ;;  %v4162_v35 = vpop.permute.xlu1 %4161 }
 0x6df   : > { %v12409_v24 = vadd.f32 %v4213_v32, %v12141_v43  ;;  %v4214_v28 = vsel %vm4195_vm7, %v12388_v33, %v4162_v35 }
 0x6e0   : > { %v12415_v12 = vadd.f32 %v4214_v28, %v12158_v63 }
 0x6e1   : > { %v4164_v8 = vpop.permute.xlu0 %4163 }
 0x6e2   : > { %v4215_v39 = vsel %vm4195_vm7, %v4154_v61, %v4164_v8  ;;  %v4166_v53 = vpop.permute.xlu1 %4165 }
 0x6e3   : > { %v12420_v57 = vadd.f32 %v4215_v39, %v12164_v26  ;;  %v4206_v2 = vsel %vm4195_vm7, %v4156_v49, %v4166_v53 }
 0x6e4   : > { %v12425_v43 = vadd.f32 %v4206_v2, %v12180_v13 }
 0x6e5   : > { %v4168_v19 = vpop.permute.xlu0 %4167 }
 0x6e6   : > { %v4207_v7 = vsel %vm4195_vm7, %v4158_v40, %v4168_v19  ;;  %v4170_v63 = vpop.permute.xlu1 %4169 }
 0x6e7   : > { %v12430_v14 = vadd.f32 %v4207_v7, %v12186_v36  ;;  %v4208_v5 = vsel %vm4195_vm7, %v4160_v16, %v4170_v63 }
 0x6e8   : > { %v12435_v26 = vadd.f32 %v4208_v5, %v12202_v41 }
 0x6e9   : > { %v4172_v27 = vpop.permute.xlu0 %4171 }
 0x6ea   : > { %v4209_v61 = vsel %vm4195_vm7, %v4162_v35, %v4172_v27  ;;  %v4174_v13 = vpop.permute.xlu1 %4173 }
 0x6eb   : > { %v12440_v54 = vadd.f32 %v4209_v61, %v12208_v18  ;;  %v4210_v49 = vsel %vm4195_vm7, %v4164_v8, %v4174_v13 }
 0x6ec   : > { %v12445_v36 = vadd.f32 %v4210_v49, %v12224_v3  ;;  %v14191_v49 = vld [vmem:[#allocation58_spill] sm:$0xff] }
 0x6ed   : > { %v4176_v29 = vpop.permute.xlu0 %4175 }
 0x6ee   : > { %v4201_v40 = vsel %vm4195_vm7, %v4166_v53, %v4176_v29  ;;  %v4178_v41 = vpop.permute.xlu1 %4177 }
 0x6ef   : > { %v12450_v52 = vadd.f32 %v4201_v40, %v12230_v10  ;;  %v4202_v16 = vsel %vm4195_vm7, %v4168_v19, %v4178_v41 }
 0x6f0   : > { %v12455_v18 = vadd.f32 %v4202_v16, %v12246_v25 }
 0x6f1   : > { %v4180_v32 = vpop.permute.xlu0 %4179 }
 0x6f2   : > { %v4203_v35 = vsel %vm4195_vm7, %v4170_v63, %v4180_v32  ;;  %v4182_v3 = vpop.permute.xlu1 %4181 }
 0x6f3   : > { %v12460_v28 = vadd.f32 %v4203_v35, %v12252_v60  ;;  %v4204_v8 = vsel %vm4195_vm7, %v4172_v27, %v4182_v3 }
 0x6f4   : > { %v12465_v10 = vadd.f32 %v4204_v8, %v12268_v6  ;;  %v14195_v8 = vld [vmem:[#allocation37_spill] sm:$0xff] }
 0x6f5   : > { %v4184_v39 = vpop.permute.xlu0 %4183 }
 0x6f6   : > { %v4205_v53 = vsel %vm4195_vm7, %v4174_v13, %v4184_v39  ;;  %v4186_v25 = vpop.permute.xlu1 %4185 }
 0x6f7   : > { %v12470_v2 = vadd.f32 %v4205_v53, %v12274_v50  ;;  %v4196_v19 = vsel %vm4195_vm7, %v4176_v29, %v4186_v25  ;;  %v14192_v29 = vld [vmem:[#allocation53_spill] sm:$0xff] }
 0x6f8   : > { %v12475_v60 = vadd.f32 %v4196_v19, %v12290_v0  ;;  %v3940_v40 = vsel %vm3913_vm2, %v14192_v29, %v14191_v49  ;;  %v14196_v25 = vld [vmem:[#allocation65_spill] sm:$0xff]  ;;  %v14197_v19 = vld [vmem:[#allocation84_spill] sm:$0xff]  ;;  %v4223_v49 = vsel %vm4195_vm7, %v12331_v1, %v12353_v58  ;;  %v14204_v58 = vld [vmem:[#allocation87_spill] sm:$0xff] }
 0x6f9   : > { %v4188_v7 = vpop.permute.xlu0 %4187  ;;  %v3956_v53 = vadd.f32 %v3940_v40, %v14195_v8  ;;  %v14200_v40 = vld [vmem:[#allocation86_spill] sm:$0xff] }
 0x6fa   : > { %v4197_v63 = vsel %vm4195_vm7, %v4178_v41, %v4188_v7  ;;  %v4190_v6 = vpop.permute.xlu1 %4189 }
 0x6fb   : > { %v12480_v5 = vadd.f32 %v4197_v63, %v12296_v9  ;;  %v4198_v27 = vsel %vm4195_vm7, %v4180_v32, %v4190_v6  ;;  %v14194_v32 = vld [vmem:[#allocation88_spill] sm:$0xff]  ;;  %v14198_v63 = vld [vmem:[#allocation25_spill] sm:$0xff] }
 0x6fc   : > { %v12485_v50 = vadd.f32 %v4198_v27, %v12308_v31  ;;  %v14193_v31 = vld [vmem:[#allocation57_spill] sm:$0xff] }
 0x6fd   : > { %v4192_v61 = vpop.permute.xlu0 %4191  ;;  %v4081_v35 = vsel %vm4054_vm5, %v14194_v32, %v14193_v31  ;;  %v14199_v6 = vld [vmem:[#allocation89_spill] sm:$0xff] }
 0x6fe   : > { %v4199_v13 = vsel %vm4195_vm7, %v4182_v3, %v4192_v61  ;;  %v4194_v0 = vpop.permute.xlu1 %4193  ;;  %v4082_v27 = vsel %vm4054_vm5, %v14199_v6, %v14198_v63  ;;  %v14206_v63 = vld [vmem:[#allocation54_spill] sm:$0xff]  ;;  %v14207_v6 = vld [vmem:[#allocation24_spill] sm:$0xff] }
 0x6ff   : > { %v12494_v41 = vadd.f32 %v4199_v13, %v12314_v62  ;;  %v4200_v9 = vsel %vm4195_vm7, %v4184_v39, %v4194_v0  ;;  %v3941_v62 = vsel %vm3913_vm2, %v14197_v19, %v14196_v25  ;;  %v4097_v39 = vadd.f32 %v4081_v35, %v3956_v53  ;;  %v14202_v35 = vld [vmem:[#allocation64_spill] sm:$0xff]  ;;  %v14205_v19 = vld [vmem:[#allocation7_spill] sm:$0xff] }
 0x700   : > { %v12499_v16 = vadd.f32 %v4200_v9, %v12323_v30  ;;  %v4222_v30 = vsel %vm4195_vm7, %v12329_v45, %v12347_v46  ;;  %v3963_v61 = vadd.f32 %v3941_v62, %v14141_v20  ;;  %v14201_v45 = vld [vmem:[#allocation85_spill] sm:$0xff]  ;;  %v3943_v62 = vsel %vm3913_vm2, %v14205_v19, %v14204_v58 }
 0x701   : > { %v4267_v3 = vpop.permute.xlu0 %4266  ;;  %v4238_v0 = vadd.f32 %v4222_v30, %v4097_v39  ;;  %v3942_v46 = vsel %vm3913_vm2, %v14201_v45, %v14200_v40  ;;  %v14203_v20 = vld [vmem:[#allocation9_spill] sm:$0xff]  ;;  %v14209_v45 = vld [vmem:[#allocation19_spill] sm:$0xff] }
 0x702   : > { %v4269_v7 = vpop.permute.xlu1 %4268  ;;  %v4104_v9 = vadd.f32 %v4082_v27, %v3963_v61  ;;  %v4083_v8 = vsel %vm4054_vm5, %v14203_v20, %v14202_v35  ;;  %v3970_v1 = vadd.f32 %v3942_v46, %v14142_v4  ;;  %v3939_v27 = vsel %vm3913_vm2, %v14207_v6, %v14206_v63  ;;  %v14212_v63 = vld [vmem:[#allocation36_spill] sm:$0xff] }
 0x703   : > { %v4224_v4 = vsel %vm4195_vm7, %v12337_v15, %v12355_v37  ;;  %v3949_v6 = vadd.f32 %v3939_v27, %v14212_v63 }
 0x704   : > { %v4245_v53 = vadd.f32 %v4223_v49, %v4104_v9  ;;  %v14208_v49 = vld [vmem:[#allocation90_spill] sm:$0xff] }
 0x705   : > { %v4271_v13 = vpop.permute.xlu0 %4270  ;;  %v4084_v46 = vsel %vm4054_vm5, %v14209_v45, %v14208_v49 }
 0x706   : > { %v4279_v29 = vpop.permute.xlu1 %4278 }
 0x707   : > { %v4363_v31 = vsel %vm4336_vm14, %v4269_v7, %v4279_v29 }
 0x708   : > { %v4379_v32 = vadd.f32 %v4363_v31, %v4238_v0  ;;  %v4111_v0 = vadd.f32 %v4083_v8, %v3970_v1  ;;  %v14210_v31 = vld [vmem:[#allocation56_spill] sm:$0xff]  ;;  %v4225_v8 = vsel %vm4195_vm7, %v12339_v34, %v12361_v22 }
 0x709   : > { %v4281_v25 = vpop.permute.xlu0 %4280 }
 0x70a   : > { %v4414_v30 = vmul.f32 0.013333334, %v4379_v32  ;;  %v4364_v39 = vsel %vm4336_vm14, %v4271_v13, %v4281_v25  ;;  %v4273_v7 = vpop.permute.xlu1 %4272  ;;  %v3977_v13 = vadd.f32 %v3943_v62, %v14143_v56  ;;  %v14211_v32 = vld [vmem:[#allocation29_spill] sm:$0xff]  ;;  %v4252_v15 = vadd.f32 %v4224_v4, %v4111_v0 }
 0x70b   : > { %v4386_v61 = vadd.f32 %v4364_v39, %v4245_v53  ;;  %v4080_v20 = vsel %vm4054_vm5, %v14211_v32, %v14210_v31  ;;  %v4221_v56 = vsel %vm4195_vm7, %v12321_v55, %v12345_v17 }
 0x70c   : > { %v4449_v9 = vmax.f32 %v4414_v30, 1e-06  ;;  %v4118_v1 = vadd.f32 %v4084_v46, %v3977_v13  ;;  %v4090_v39 = vadd.f32 %v4080_v20, %v3949_v6 }
 0x70d   : > { %v4421_v58 = vmul.f32 0.013333334, %v4386_v61  ;;  %v4275_v19 = vpop.permute.xlu0 %4274 }
 0x70e   : > { %7979 = vlog2.f32 %v4449_v9  ;;  %v12563_v53 = vpop.permute.xlu1 %4282  ;;  %v4259_v4 = vadd.f32 %v4225_v8, %v4118_v1  ;;  %v4231_v34 = vadd.f32 %v4221_v56, %v4090_v39 }
 0x70f   : > { %v4456_v62 = vmax.f32 %v4421_v58, 1e-06  ;;  %v4365_v30 = vsel %vm4336_vm14, %v4273_v7, %v12563_v53 }
 0x710   : > { %v4393_v27 = vadd.f32 %v4365_v30, %v4252_v15 }
 0x711   : > { %7981 = vlog2.f32 %v4456_v62  ;;  %v4285_v61 = vpop.permute.xlu0 %4284 }
 0x712   : > { %v4428_v22 = vmul.f32 0.013333334, %v4393_v27  ;;  %v4366_v0 = vsel %vm4336_vm14, %v4275_v19, %v4285_v61  ;;  %v4277_v49 = vpop.permute.xlu1 %4276 }
 0x713   : > { %v4400_v45 = vadd.f32 %v4366_v0, %v4259_v4  ;;  %v4362_v55 = vsel %vm4336_vm14, %v4267_v3, %v4277_v49 }
 0x714   : > { %v4463_v17 = vmax.f32 %v4428_v22, 1e-06  ;;  %v4372_v46 = vadd.f32 %v4362_v55, %v4231_v34 }
 0x715   : > { %v4435_v9 = vmul.f32 0.013333334, %v4400_v45  ;;  %v4287_v13 = vpop.permute.xlu0 %4286 }
 0x716   : > { %7983 = vlog2.f32 %v4463_v17  ;;  %v4407_v7 = vmul.f32 0.013333334, %v4372_v46  ;;  %v4357_v31 = vsel %vm4336_vm14, %v4277_v49, %v4287_v13  ;;  %v4289_v32 = vpop.permute.xlu1 %4288 }
 0x717   : > { %v4470_v20 = vmax.f32 %v4435_v9, 1e-06  ;;  %v12579_v58 = vadd.f32 %v4357_v31, %v12370_v48  ;;  %v4358_v19 = vsel %vm4336_vm14, %v4279_v29, %v4289_v32 }
 0x718   : > { %v7980_v63 = vpop.eup %7979  ;;  %v4442_v6 = vmax.f32 %v4407_v7, 1e-06  ;;  %v12584_v3 = vadd.f32 %v4358_v19, %v12378_v44 }
 0x719   : > { %v12586_v15 = vmul.f32 0.6931472, %v7980_v63  ;;  %7985 = vlog2.f32 %v4470_v20  ;;  %v4291_v8 = vpop.permute.xlu0 %4290 }
 0x71a   : > { %7987 = vlog2.f32 %v4442_v6  ;;  %v4359_v1 = vsel %vm4336_vm14, %v4281_v25, %v4291_v8  ;;  %v12590_v56 = vpop.permute.xlu1 %4292 }
 0x71b   : > { %v7982_v48 = vpop.eup %7981  ;;  %v12593_v62 = vadd.f32 %v4359_v1, %v12386_v59  ;;  %4605 = vrot.lane.b32.xlu0 %v12586_v15, %s8071_s27  ;;  %4589 = vst.msk [vmem:[#allocation4 + $0x8] sm:$0xff] %vm4587_vm15, %v12586_v15 }
 0x71c   : > { %v12599_v44 = vmul.f32 0.6931472, %v7982_v48 }
 0x71d   : > { %v4295_v29 = vpop.permute.xlu0 %4294  ;;  %v4422_v23 = vmul.f32 0.013333334, %v12593_v62 }
 0x71e   : > { %v4361_v30 = vsel %vm4336_vm14, %v4285_v61, %v4295_v29  ;;  %v4297_v39 = vpop.permute.xlu1 %4296  ;;  %4590 = vst.msk [vmem:[#allocation4 + $0x10] sm:$0xff] %vm4587_vm15, %v12599_v44 }
 0x71f   : > { %v12606_v25 = vadd.f32 %v4361_v30, %v12394_v38  ;;  %v4352_v59 = vsel %vm4336_vm14, %v4287_v13, %v4297_v39 }
 0x720   : > { %v7984_v27 = vpop.eup %7983  ;;  %v12611_v4 = vadd.f32 %v4352_v59, %v12399_v51  ;;  %v4219_v59 = vsel %vm4195_vm7, %v12355_v37, %v12388_v33  ;;  %v4360_v37 = vsel %vm4336_vm14, %v12563_v53, %v12590_v56 }
 0x721   : > { %v12613_v34 = vmul.f32 0.6931472, %v7984_v27  ;;  %v4299_v22 = vpop.permute.xlu0 %4298 }
 0x722   : > { %v4353_v61 = vsel %vm4336_vm14, %v4289_v32, %v4299_v22  ;;  %v4301_v0 = vpop.permute.xlu1 %4300 }
 0x723   : > { %v7986_v49 = vpop.eup %7985  ;;  %v12618_v45 = vadd.f32 %v4353_v61, %v12404_v47  ;;  %v4354_v38 = vsel %vm4336_vm14, %v4291_v8, %v4301_v0  ;;  %4609 = vrot.lane.b32.xlu0 %v12613_v34, %s8071_s27  ;;  %4591 = vst.msk [vmem:[#allocation4 + $0x18] sm:$0xff] %vm4587_vm15, %v12613_v34 }
 0x724   : > { %v7988_v51 = vpop.eup %7987  ;;  %v12626_v55 = vmul.f32 0.6931472, %v7986_v49  ;;  %v12629_v17 = vadd.f32 %v4354_v38, %v12409_v24 }
 0x725   : > { %v12631_v46 = vmul.f32 0.6931472, %v7988_v51  ;;  %v4303_v9 = vpop.permute.xlu0 %4302 }
 0x726   : > { %v4355_v47 = vsel %vm4336_vm14, %v12590_v56, %v4303_v9  ;;  %v4305_v13 = vpop.permute.xlu1 %4304  ;;  %4592 = vst.msk [vmem:[#allocation4 + $0x20] sm:$0xff] %vm4587_vm15, %v12626_v55 }
 0x727   : > { %v12639_v7 = vadd.f32 %v4355_v47, %v12415_v12  ;;  %v4356_v31 = vsel %vm4336_vm14, %v4295_v29, %v4305_v13  ;;  %4665 = vrot.lane.b32.xlu0 %v12586_v15, %s8082_s12  ;;  %4603 = vrot.lane.b32.xlu1 %v12631_v46, %s8071_s27  ;;  %4588 = vst.msk [vmem:[#allocation4] sm:$0xff] %vm4587_vm15, %v12631_v46 }
 0x728   : > { %v12650_v24 = vadd.f32 %v4356_v31, %v12420_v57 }
 0x729   : > { %v4307_v32 = vpop.permute.xlu0 %4306 }
 0x72a   : > { %v4347_v12 = vsel %vm4336_vm14, %v4297_v39, %v4307_v32  ;;  %v4309_v20 = vpop.permute.xlu1 %4308 }
 0x72b   : > { %v12655_v19 = vadd.f32 %v4347_v12, %v12425_v43  ;;  %v4348_v63 = vsel %vm4336_vm14, %v4299_v22, %v4309_v20  ;;  %4669 = vrot.lane.b32.xlu0 %v12613_v34, %s8082_s12  ;;  %4607 = vrot.lane.b32.xlu1 %v12599_v44, %s8071_s27  ;;  %v3937_v43 = vsel %vm3913_vm2, %v14200_v40, %v11922_v42 }
 0x72c   : > { %v12664_v57 = vadd.f32 %v4348_v63, %v12430_v14  ;;  %v4078_v42 = vsel %vm4054_vm5, %v14202_v35, %v12088_v21 }
 0x72d   : > { %v4311_v6 = vpop.permute.xlu0 %4310 }
 0x72e   : > { %v4349_v8 = vsel %vm4336_vm14, %v4301_v0, %v4311_v6  ;;  %v4313_v1 = vpop.permute.xlu1 %4312 }
 0x72f   : > { %v12673_v48 = vadd.f32 %v4349_v8, %v12435_v26  ;;  %v4350_v29 = vsel %vm4336_vm14, %v4303_v9, %v4313_v1  ;;  %4693 = vrot.lane.b32.xlu0 %v12631_v46, %s8083_s13  ;;  %4611 = vrot.lane.b32.xlu1 %v12626_v55, %s8071_s27  ;;  %v3971_v26 = vadd.f32 %v3937_v43, %v14147_v11  ;;  %s8090_s27 = smov 54  }
 0x730   : > { %v12682_v14 = vadd.f32 %v4350_v29, %v12440_v54 }
 0x731   : > { %v4315_v40 = vpop.permute.xlu0 %4314  ;;  %v4112_v11 = vadd.f32 %v4078_v42, %v3971_v26 }
 0x732   : > { %v4351_v30 = vsel %vm4336_vm14, %v4305_v13, %v4315_v40  ;;  %v4317_v39 = vpop.permute.xlu1 %4316 }
 0x733   : > { %v12696_v54 = vadd.f32 %v4351_v30, %v12445_v36  ;;  %v4342_v27 = vsel %vm4336_vm14, %v4307_v32, %v4317_v39  ;;  %4697 = vrot.lane.b32.xlu0 %v12599_v44, %s8083_s13  ;;  %4667 = vrot.lane.b32.xlu1 %v12599_v44, %s8082_s12  ;;  %v4253_v36 = vadd.f32 %v4219_v59, %v4112_v11 }
 0x734   : > { %v12705_v21 = vadd.f32 %v4342_v27, %v12450_v52  ;;  %v14213_v27 = vlaneseq }
 0x735   : > { %v4319_v33 = vpop.permute.xlu0 %4318  ;;  %v4394_v52 = vadd.f32 %v4360_v37, %v4253_v36 }
 0x736   : > { %v4343_v35 = vsel %vm4336_vm14, %v4309_v20, %v4319_v33  ;;  %v4321_v22 = vpop.permute.xlu1 %4320  ;;  %v6379_v11 = vshrl.u32 %v14213_v27, 7 }
 0x737   : > { %v12714_v61 = vadd.f32 %v4343_v35, %v12455_v18  ;;  %v4344_v0 = vsel %vm4336_vm14, %v4311_v6, %v4321_v22  ;;  %4701 = vrot.lane.b32.xlu0 %v12626_v55, %s8083_s13  ;;  %4671 = vrot.lane.b32.xlu1 %v12626_v55, %s8082_s12  ;;  %v14214_v35 = vld [vmem:[#allocation13_spill] sm:$0xff] }
 0x738   : > { %v12723_v53 = vadd.f32 %v4344_v0, %v12460_v28  ;;  %v4429_v28 = vmul.f32 0.013333334, %v4394_v52 }
 0x739   : > { %v4323_v56 = vpop.permute.xlu0 %4322 }
 0x73a   : > { %v4345_v49 = vsel %vm4336_vm14, %v4313_v1, %v4323_v56  ;;  %v4325_v38 = vpop.permute.xlu1 %4324  ;;  %v4464_v12 = vmax.f32 %v4429_v28, 1e-06 }
 0x73b   : > { %v12728_v18 = vadd.f32 %v4345_v49, %v12465_v10  ;;  %v4346_v51 = vsel %vm4336_vm14, %v4315_v40, %v4325_v38  ;;  %4725 = vrot.lane.b32.xlu0 %v12586_v15, %s8084_s20  ;;  %4695 = vrot.lane.b32.xlu1 %v12586_v15, %s8083_s13  ;;  %v4457_v40 = vmax.f32 %v4422_v23, 1e-06 }
 0x73c   : > { %v12737_v9 = vadd.f32 %v4346_v51, %v12470_v2  ;;  %7989 = vlog2.f32 %v4464_v12  ;;  %v4423_v51 = vmul.f32 0.013333334, %v12629_v17  ;;  %v4430_v17 = vmul.f32 0.013333334, %v12639_v7 }
 0x73d   : > { %v4327_v47 = vpop.permute.xlu0 %4326 }
 0x73e   : > { %v4337_v13 = vsel %vm4336_vm14, %v4317_v39, %v4327_v47  ;;  %v4329_v10 = vpop.permute.xlu1 %4328  ;;  %v8086_v39 = vmov 1983009808   ;;  %v4416_v47 = vmul.f32 0.013333334, %v12618_v45  ;;  %v4465_v45 = vmax.f32 %v4430_v17, 1e-06 }
 0x73f   : > { %v12742_v31 = vadd.f32 %v4337_v13, %v12475_v60  ;;  %v4338_v32 = vsel %vm4336_vm14, %v4319_v33, %v4329_v10  ;;  %4633 = vrot.lane.b32.xlu0 %v12631_v46, %s8081_s11  ;;  %4699 = vrot.lane.b32.xlu1 %v12613_v34, %s8083_s13  ;;  %v6376_v59 = vunpack.c.l.s4 %v8086_v39  ;;  %v4458_v13 = vmax.f32 %v4423_v51, 1e-06  ;;  %v6115_v39 = vld [vmem:[#allocation4] sm:$0xff]  ;;  %s8101_s13 = smov 46  }
 0x740   : > { %v12751_v2 = vadd.f32 %v4338_v32, %v12480_v5  ;;  %v4408_v5 = vmul.f32 0.013333334, %v12579_v58  ;;  %v4436_v58 = vmul.f32 0.013333334, %v12606_v25  ;;  %v4415_v25 = vmul.f32 0.013333334, %v12584_v3 }
 0x741   : > { %v4331_v20 = vpop.permute.xlu0 %4330  ;;  %v6377_v3 = vunpack.c.0.s8 %v6376_v59  ;;  %v4451_v10 = vmax.f32 %v4416_v47, 1e-06  ;;  %v4437_v32 = vmul.f32 0.013333334, %v12650_v24 }
 0x742   : > { %v4339_v63 = vsel %vm4336_vm14, %v4321_v22, %v4331_v20  ;;  %v4333_v6 = vpop.permute.xlu1 %4332  ;;  %v4443_v42 = vmax.f32 %v4408_v5, 1e-06  ;;  %v4450_v62 = vmax.f32 %v4415_v25, 1e-06 }
 0x743   : > { %v12756_v60 = vadd.f32 %v4339_v63, %v12485_v50  ;;  %v4340_v8 = vsel %vm4336_vm14, %v4323_v56, %v4333_v6  ;;  %4729 = vrot.lane.b32.xlu0 %v12613_v34, %s8084_s20  ;;  %4723 = vrot.lane.b32.xlu1 %v12631_v46, %s8084_s20  ;;  %v12801_v36 = vsub.s32 %v6377_v3, %v6379_v11  ;;  %v4472_v20 = vmax.f32 %v4437_v32, 1e-06 }
 0x744   : > { %v12766_v1 = vadd.f32 %v4340_v8, %v12494_v41  ;;  %7991 = vlog2.f32 %v4443_v42  ;;  %v4471_v41 = vmax.f32 %v4436_v58, 1e-06 }
 0x745   : > { %v4335_v43 = vpop.permute.xlu0 %4334  ;;  %v12809_v22 = vrot.slane %v14214_v35, %v12801_v36 }
 0x746   : > { %v4341_v50 = vsel %vm4336_vm14, %v4325_v38, %v4335_v43  ;;  %7993 = vlog2.f32 %v4471_v41 }
 0x747   : > { %v12771_v29 = vadd.f32 %v4341_v50, %v12499_v16  ;;  %4637 = vrot.lane.b32.xlu0 %v12599_v44, %s8081_s11  ;;  %4727 = vrot.lane.b32.xlu1 %v12599_v44, %s8084_s20  ;;  %v7990_v16 = vpop.eup %7989  ;;  %7995 = vlog2.f32 %v4457_v40  ;;  %v6389_v56 = vcombine.high %v12809_v22, %v12809_v22 }
 0x748   : > { %v12788_v26 = vmul.f32 0.6931472, %v7990_v16  ;;  %7997 = vlog2.f32 %v4450_v62 }
 0x749   : > { %6524 = vmatprep.mubr.f32.mxu1 %v6389_v56  ;;  %7999 = vlog2.f32 %v4458_v13 }
 0x74a   : > { %8001 = vlog2.f32 %v4451_v10 }
 0x74b   : > { %4753 = vrot.lane.b32.xlu0 %v12631_v46, %s8085_s21  ;;  %4635 = vrot.lane.b32.xlu1 %v12586_v15, %s8081_s11  ;;  %8003 = vlog2.f32 %v4465_v45  ;;  %v6117_v45 = vld [vmem:[#allocation4 + $0x10] sm:$0xff] }
 0x74c   : > { %8005 = vlog2.f32 %v4472_v20 }
 0x74e   : > { %v7992_v30 = vpop.eup %7991 }
 0x74f   : > { %4641 = vrot.lane.b32.xlu0 %v12626_v55, %s8081_s11  ;;  %4731 = vrot.lane.b32.xlu1 %v12626_v55, %s8084_s20  ;;  %v12799_v37 = vmul.f32 0.6931472, %v7992_v30  ;;  %s8102_s20 = smov 32  }
 0x750   : > { %v7994_v33 = vpop.eup %7993 }
 0x751   : > { %v12811_v0 = vmul.f32 0.6931472, %v7994_v33  ;;  %v7996_v52 = vpop.eup %7995 }
 0x752   : > { %v12819_v49 = vmul.f32 0.6931472, %v7996_v52  ;;  %v7998_v38 = vpop.eup %7997  ;;  %v6116_v52 = vld [vmem:[#allocation4 + $0x8] sm:$0xff] }
 0x753   : > { %4639 = vrot.lane.b32.xlu1 %v12613_v34, %s8081_s11  ;;  %4849 = vrot.lane.b32.xlu0 %v12788_v26, %s8063_s17  ;;  %v12826_v28 = vmul.f32 0.6931472, %v7998_v38  ;;  %v8000_v12 = vpop.eup %7999  ;;  %v7541_v56 = vpack.c.bf16 %v6116_v52, %v6115_v39  ;;  %v6118_v38 = vld [vmem:[#allocation4 + $0x18] sm:$0xff]  ;;  %s8099_s11 = smov 1  }
 0x754   : > { %v12847_v7 = vmul.f32 0.6931472, %v8000_v12  ;;  %v8002_v63 = vpop.eup %8001  ;;  %v7545_v32 = vpack.c.bf16 %v6118_v38, %v6117_v45 }
 0x755   : > { %v12852_v24 = vmul.f32 0.6931472, %v8002_v63  ;;  %v8004_v6 = vpop.eup %8003 }
 0x756   : > { %v12863_v5 = vmul.f32 0.6931472, %v8004_v6  ;;  %v8006_v43 = vpop.eup %8005 }
 0x757   : > { %4755 = vrot.lane.b32.xlu1 %v12586_v15, %s8085_s21  ;;  %4757 = vrot.lane.b32.xlu0 %v12599_v44, %s8085_s21  ;;  %v12869_v50 = vmul.f32 0.6931472, %v8006_v43  ;;  %v6119_v43 = vld [vmem:[#allocation4 + $0x20] sm:$0xff] }
 0x75b   : > { %4663 = vrot.lane.b32.xlu1 %v12631_v46, %s8082_s12  ;;  %4873 = vrot.lane.b32.xlu0 %v12799_v37, %s8078_s10  ;;  %s8100_s12 = smov 9  }
 0x75f   : > { %4851 = vrot.lane.b32.xlu1 %v12811_v0, %s8063_s17  ;;  %4761 = vrot.lane.b32.xlu0 %v12626_v55, %s8085_s21 }
 0x763   : > { %4759 = vrot.lane.b32.xlu1 %v12613_v34, %s8085_s21  ;;  %4877 = vrot.lane.b32.xlu0 %v12819_v49, %s8078_s10  ;;  %s8103_s21 = smov 31  }
 0x767   : > { %4875 = vrot.lane.b32.xlu1 %v12826_v28, %s8078_s10  ;;  %4785 = vrot.lane.b32.xlu0 %v12586_v15, %s8087_s22 }
 0x76b   : > { %4783 = vrot.lane.b32.xlu1 %v12631_v46, %s8087_s22  ;;  %4881 = vrot.lane.b32.xlu0 %v12811_v0, %s8078_s10 }
 0x76f   : > { %4879 = vrot.lane.b32.xlu1 %v12788_v26, %s8078_s10  ;;  %4789 = vrot.lane.b32.xlu0 %v12613_v34, %s8087_s22  ;;  %s8095_s10 = smov 16  }
 0x773   : > { %4787 = vrot.lane.b32.xlu1 %v12599_v44, %s8087_s22  ;;  %4905 = vrot.lane.b32.xlu0 %v12826_v28, %s8088_s23 }
 0x777   : > { %4903 = vrot.lane.b32.xlu1 %v12799_v37, %s8088_s23  ;;  %4813 = vrot.lane.b32.xlu0 %v12631_v46, %s8089_s24  ;;  %v4409_v46 = vmul.f32 0.013333334, %v12611_v4 }
 0x779   : > { %v4444_v8 = vmax.f32 %v4409_v46, 1e-06 }
 0x77b   : > { %4791 = vrot.lane.b32.xlu1 %v12626_v55, %s8087_s22  ;;  %5263 = vrot.lane.b32.xlu0 %v12847_v7, %s8090_s27  ;;  %8007 = vlog2.f32 %v4444_v8  ;;  %s8104_s22 = smov 100  }
 0x77f   : > { %4907 = vrot.lane.b32.xlu1 %v12819_v49, %s8088_s23  ;;  %5171 = vrot.lane.b32.xlu0 %v12852_v24, %s8091_s28 }
 0x783   : > { %4815 = vrot.lane.b32.xlu1 %v12586_v15, %s8089_s24  ;;  %4909 = vrot.lane.b32.xlu0 %v12788_v26, %s8088_s23 }
 0x785   : > { %v8008_v4 = vpop.eup %8007 }
 0x787   : > { %5265 = vrot.lane.b32.xlu1 %v12863_v5, %s8090_s27  ;;  %4817 = vrot.lane.b32.xlu0 %v12599_v44, %s8089_s24  ;;  %v12884_v44 = vmul.f32 0.6931472, %v8008_v4 }
 0x78b   : > { %5173 = vrot.lane.b32.xlu1 %v12847_v7, %s8091_s28  ;;  %5267 = vrot.lane.b32.xlu0 %v12869_v50, %s8090_s27 }
 0x78d   : > { %v4606_v15 = vpop.permute.xlu0 %4605 }
 0x78e   : > { %4619 = vst.msk [vmem:[#allocation4 + $0x30] sm:$0xff] %vm4587_vm15, %v4606_v15 }
 0x78f   : > { %4911 = vrot.lane.b32.xlu1 %v12811_v0, %s8088_s23  ;;  %5175 = vrot.lane.b32.xlu0 %v12863_v5, %s8091_s28  ;;  %s8105_s23 = smov 17  }
 0x793   : > { %4819 = vrot.lane.b32.xlu1 %v12613_v34, %s8089_s24  ;;  %4933 = vrot.lane.b32.xlu0 %v12799_v37, %s8092_s29 }
 0x795   : > { %v4610_v42 = vpop.permute.xlu0 %4609 }
 0x796   : > { %4621 = vst.msk [vmem:[#allocation4 + $0x40] sm:$0xff] %vm4587_vm15, %v4610_v42 }
 0x797   : > { %5289 = vrot.lane.b32.xlu1 %v12884_v44, %s8093_s30  ;;  %4821 = vrot.lane.b32.xlu0 %v12626_v55, %s8089_s24  ;;  %s8107_s24 = smov 85  }
 0x799   : > { %v4666_v58 = vpop.permute.xlu0 %4665  ;;  %v4604_v23 = vpop.permute.xlu1 %4603 }
 0x79a   : > { %4679 = vst.msk [vmem:[#allocation4 + $0x80] sm:$0xff] %vm4587_vm15, %v4666_v58  ;;  %4618 = vst.msk [vmem:[#allocation4 + $0x28] sm:$0xff] %vm4587_vm15, %v4604_v23 }
 0x79b   : > { %5177 = vrot.lane.b32.xlu1 %v12869_v50, %s8091_s28  ;;  %5291 = vrot.lane.b32.xlu0 %v12852_v24, %s8093_s30 }
 0x79d   : > { %v4670_v34 = vpop.permute.xlu0 %4669  ;;  %v4608_v41 = vpop.permute.xlu1 %4607 }
 0x79e   : > { %4681 = vst.msk [vmem:[#allocation4 + $0x90] sm:$0xff] %vm4587_vm15, %v4670_v34  ;;  %4620 = vst.msk [vmem:[#allocation4 + $0x38] sm:$0xff] %vm4587_vm15, %v4608_v41 }
 0x79f   : > { %4935 = vrot.lane.b32.xlu1 %v12826_v28, %s8092_s29  ;;  %5199 = vrot.lane.b32.xlu0 %v12884_v44, %s8094_s6 }
 0x7a1   : > { %v4694_v55 = vpop.permute.xlu0 %4693  ;;  %v4612_v16 = vpop.permute.xlu1 %4611  ;;  %v6131_v27 = vld [vmem:[#allocation4 + $0x80] sm:$0xff]  ;;  %v6120_v12 = vld [vmem:[#allocation4 + $0x28] sm:$0xff] }
 0x7a2   : > { %4708 = vst.msk [vmem:[#allocation4 + $0xa0] sm:$0xff] %vm4587_vm15, %v4694_v55  ;;  %4622 = vst.msk [vmem:[#allocation4 + $0x48] sm:$0xff] %vm4587_vm15, %v4612_v16  ;;  %v7549_v15 = vpack.c.bf16 %v6120_v12, %v6119_v43  ;;  %v6121_v55 = vld [vmem:[#allocation4 + $0x30] sm:$0xff] }
 0x7a3   : > { %4843 = vrot.lane.b32.xlu1 %v12799_v37, %s8063_s17  ;;  %4937 = vrot.lane.b32.xlu0 %v12819_v49, %s8092_s29 }
 0x7a5   : > { %v4698_v25 = vpop.permute.xlu0 %4697  ;;  %v4668_v40 = vpop.permute.xlu1 %4667  ;;  %v6133_v13 = vld [vmem:[#allocation4 + $0x90] sm:$0xff]  ;;  %v6122_v4 = vld [vmem:[#allocation4 + $0x38] sm:$0xff] }
 0x7a6   : > { %4710 = vst.msk [vmem:[#allocation4 + $0xb0] sm:$0xff] %vm4587_vm15, %v4698_v25  ;;  %4680 = vst.msk [vmem:[#allocation4 + $0x88] sm:$0xff] %vm4587_vm15, %v4668_v40  ;;  %v7553_v16 = vpack.c.bf16 %v6122_v4, %v6121_v55 }
 0x7a7   : > { %5293 = vrot.lane.b32.xlu1 %v12847_v7, %s8093_s30  ;;  %4845 = vrot.lane.b32.xlu0 %v12826_v28, %s8063_s17 }
 0x7a9   : > { %v4702_v62 = vpop.permute.xlu0 %4701  ;;  %v4672_v30 = vpop.permute.xlu1 %4671  ;;  %v6135_v46 = vld [vmem:[#allocation4 + $0xa0] sm:$0xff]  ;;  %v6124_v25 = vld [vmem:[#allocation4 + $0x48] sm:$0xff] }
 0x7aa   : > { %4712 = vst.msk [vmem:[#allocation4 + $0xc0] sm:$0xff] %vm4587_vm15, %v4702_v62  ;;  %4682 = vst.msk [vmem:[#allocation4 + $0x98] sm:$0xff] %vm4587_vm15, %v4672_v30 }
 0x7ab   : > { %5201 = vrot.lane.b32.xlu1 %v12852_v24, %s8094_s6  ;;  %5295 = vrot.lane.b32.xlu0 %v12863_v5, %s8093_s30 }
 0x7ad   : > { %v4726_v59 = vpop.permute.xlu0 %4725  ;;  %v4696_v3 = vpop.permute.xlu1 %4695  ;;  %v6132_v11 = vld [vmem:[#allocation4 + $0x88] sm:$0xff]  ;;  %v6137_v23 = vld [vmem:[#allocation4 + $0xb0] sm:$0xff] }
 0x7ae   : > { %4739 = vst.msk [vmem:[#allocation4 + $0xd0] sm:$0xff] %vm4587_vm15, %v4726_v59  ;;  %4709 = vst.msk [vmem:[#allocation4 + $0xa8] sm:$0xff] %vm4587_vm15, %v4696_v3  ;;  %v7539_v33 = vpack.c.bf16 %v6132_v11, %v6131_v27  ;;  %v6123_v3 = vld [vmem:[#allocation4 + $0x40] sm:$0xff] }
 0x7af   : > { %4939 = vrot.lane.b32.xlu1 %v12788_v26, %s8092_s29  ;;  %5203 = vrot.lane.b32.xlu0 %v12847_v7, %s8094_s6  ;;  %v7557_v27 = vpack.c.bf16 %v6124_v25, %v6123_v3 }
 0x7b0   : > { %7540 = vmatprep.subr.bf16.mxu1 %v7539_v33 }
 0x7b1   : > { %v4634_v51 = vpop.permute.xlu0 %4633  ;;  %7542 = vmatpush3.bf16.msra.mxu1 %v7541_v56  ;;  %v4700_v47 = vpop.permute.xlu1 %4699  ;;  %v6134_v10 = vld [vmem:[#allocation4 + $0x98] sm:$0xff]  ;;  %v6139_v30 = vld [vmem:[#allocation4 + $0xc0] sm:$0xff] }
 0x7b2   : > { %4648 = vst.msk [vmem:[#allocation4 + $0x50] sm:$0xff] %vm4587_vm15, %v4634_v51  ;;  %4711 = vst.msk [vmem:[#allocation4 + $0xb8] sm:$0xff] %vm4587_vm15, %v4700_v47  ;;  %v7543_v17 = vpack.c.bf16 %v6134_v10, %v6133_v13 }
 0x7b3   : > { %4847 = vrot.lane.b32.xlu1 %v12819_v49, %s8063_s17  ;;  %5053 = vrot.lane.b32.xlu0 %v12799_v37, %s8095_s10  ;;  %s8096_s17 = smov 24  }
 0x7b4   : > { %7544 = vmatprep.subr.bf16.mxu1 %v7543_v17 }
 0x7b5   : > { %v4730_v20 = vpop.permute.xlu0 %4729  ;;  %7546 = vmatpush3.bf16.msra.mxu1 %v7545_v32  ;;  %v4724_v63 = vpop.permute.xlu1 %4723  ;;  %v6136_v6 = vld [vmem:[#allocation4 + $0xa8] sm:$0xff]  ;;  %v6141_v52 = vld [vmem:[#allocation4 + $0xd0] sm:$0xff] }
 0x7b6   : > { %4741 = vst.msk [vmem:[#allocation4 + $0xe0] sm:$0xff] %vm4587_vm15, %v4730_v20  ;;  %4738 = vst.msk [vmem:[#allocation4 + $0xc8] sm:$0xff] %vm4587_vm15, %v4724_v63  ;;  %v7547_v8 = vpack.c.bf16 %v6136_v6, %v6135_v46 }
 0x7b7   : > { %5297 = vrot.lane.b32.xlu1 %v12869_v50, %s8093_s30  ;;  %4941 = vrot.lane.b32.xlu0 %v12811_v0, %s8092_s29  ;;  %s8110_s29 = smov 62   ;;  %s8111_s30 = smov 70  }
 0x7b8   : > { %7548 = vmatprep.subr.bf16.mxu1 %v7547_v8 }
 0x7b9   : > { %v4638_v42 = vpop.permute.xlu0 %4637  ;;  %7550 = vmatpush3.bf16.msra.mxu1 %v7549_v15  ;;  %v4728_v58 = vpop.permute.xlu1 %4727  ;;  %v6138_v34 = vld [vmem:[#allocation4 + $0xb8] sm:$0xff]  ;;  %v6125_v13 = vld [vmem:[#allocation4 + $0x50] sm:$0xff] }
 0x7ba   : > { %4650 = vst.msk [vmem:[#allocation4 + $0x60] sm:$0xff] %vm4587_vm15, %v4638_v42  ;;  %4740 = vst.msk [vmem:[#allocation4 + $0xd8] sm:$0xff] %vm4587_vm15, %v4728_v58  ;;  %v7551_v41 = vpack.c.bf16 %v6138_v34, %v6137_v23  ;;  %v6374_v34 = vcombine.high %v14214_v35, %v14214_v35 }
 0x7bb   : > { %5205 = vrot.lane.b32.xlu1 %v12863_v5, %s8094_s6  ;;  %5319 = vrot.lane.b32.xlu0 %v12884_v44, %s8096_s17 }
 0x7bc   : > { %7552 = vmatprep.subr.bf16.mxu1 %v7551_v41 }
 0x7bd   : > { %v4754_v40 = vpop.permute.xlu0 %4753  ;;  %7554 = vmatpush3.bf16.msra.mxu1 %v7553_v16  ;;  %v4636_v62 = vpop.permute.xlu1 %4635  ;;  %v6140_v39 = vld [vmem:[#allocation4 + $0xc8] sm:$0xff]  ;;  %v6143_v12 = vld [vmem:[#allocation4 + $0xe0] sm:$0xff] }
 0x7be   : > { %4768 = vst.msk [vmem:[#allocation4 + $0xf0] sm:$0xff] %vm4587_vm15, %v4754_v40  ;;  %4649 = vst.msk [vmem:[#allocation4 + $0x58] sm:$0xff] %vm4587_vm15, %v4636_v62  ;;  %v7555_v59 = vpack.c.bf16 %v6140_v39, %v6139_v30  ;;  %v12984_v62 = vrot.slane %v6374_v34, %v12801_v36 }
 0x7bf   : > { %5055 = vrot.lane.b32.xlu1 %v12826_v28, %s8095_s10  ;;  %5207 = vrot.lane.b32.xlu0 %v12869_v50, %s8094_s6  ;;  %s8115_s6 = smov 25  }
 0x7c0   : > { %7556 = vmatprep.subr.bf16.mxu1 %v7555_v59 }
 0x7c1   : > { %v4642_v11 = vpop.permute.xlu0 %4641  ;;  %7558 = vmatpush3.bf16.msra.mxu1 %v7557_v27  ;;  %v4732_v33 = vpop.permute.xlu1 %4731  ;;  %v6142_v56 = vld [vmem:[#allocation4 + $0xd8] sm:$0xff]  ;;  %v6127_v8 = vld [vmem:[#allocation4 + $0x60] sm:$0xff]  ;;  %v6390_v27 = vcombine.high %v12984_v62, %v12984_v62 }
 0x7c2   : > { %4652 = vst.msk [vmem:[#allocation4 + $0x70] sm:$0xff] %vm4587_vm15, %v4642_v11  ;;  %4742 = vst.msk [vmem:[#allocation4 + $0xe8] sm:$0xff] %vm4587_vm15, %v4732_v33  ;;  %v7559_v38 = vpack.c.bf16 %v6142_v56, %v6141_v52 }
 0x7c3   : > { %4963 = vrot.lane.b32.xlu1 %v12799_v37, %s8097_s19  ;;  %5057 = vrot.lane.b32.xlu0 %v12819_v49, %s8095_s10 }
 0x7c4   : > { %7560 = vmatprep.subr.bf16.mxu1 %v7559_v38 }
 0x7c5   : > { %v4850_v51 = vpop.permute.xlu0 %4849  ;;  %v4640_v47 = vpop.permute.xlu1 %4639  ;;  %v6126_v10 = vld [vmem:[#allocation4 + $0x58] sm:$0xff]  ;;  %v6145_v58 = vld [vmem:[#allocation4 + $0xf0] sm:$0xff] }
 0x7c6   : > { %4861 = vst.msk [vmem:[#allocation4 + $0x180] sm:$0xff] %vm4587_vm15, %v4850_v51  ;;  %4651 = vst.msk [vmem:[#allocation4 + $0x68] sm:$0xff] %vm4587_vm15, %v4640_v47  ;;  %v7561_v17 = vpack.c.bf16 %v6126_v10, %v6125_v13 }
 0x7c7   : > { %5321 = vrot.lane.b32.xlu1 %v12852_v24, %s8096_s17  ;;  %4965 = vrot.lane.b32.xlu0 %v12826_v28, %s8097_s19 }
 0x7c8   : > { %7562 = vmatpush3.bf16.msra.mxu1 %v7561_v17 }
 0x7c9   : > { %v4758_v45 = vpop.permute.xlu0 %4757  ;;  %v4756_v32 = vpop.permute.xlu1 %4755  ;;  %v6144_v20 = vld [vmem:[#allocation4 + $0xe8] sm:$0xff]  ;;  %v6129_v25 = vld [vmem:[#allocation4 + $0x70] sm:$0xff] }
 0x7ca   : > { %4770 = vst.msk [vmem:[#allocation4 + $0x100] sm:$0xff] %vm4587_vm15, %v4758_v45  ;;  %4769 = vst.msk [vmem:[#allocation4 + $0xf8] sm:$0xff] %vm4587_vm15, %v4756_v32  ;;  %v7563_v63 = vpack.c.bf16 %v6144_v20, %v6143_v12 }
 0x7cb   : > { %5229 = vrot.lane.b32.xlu1 %v12884_v44, %s8098_s14  ;;  %5323 = vrot.lane.b32.xlu0 %v12847_v7, %s8096_s17 }
 0x7cc   : > { %7564 = vmatprep.subr.bf16.mxu1 %v7563_v63 }
 0x7cd   : > { %v4874_v46 = vpop.permute.xlu0 %4873  ;;  %v4664_v6 = vpop.permute.xlu1 %4663  ;;  %v6128_v43 = vld [vmem:[#allocation4 + $0x68] sm:$0xff]  ;;  %v6163_v59 = vld [vmem:[#allocation4 + $0x180] sm:$0xff] }
 0x7ce   : > { %4888 = vst.msk [vmem:[#allocation4 + $0x190] sm:$0xff] %vm4587_vm15, %v4874_v46  ;;  %4678 = vst.msk [vmem:[#allocation4 + $0x78] sm:$0xff] %vm4587_vm15, %v4664_v6  ;;  %v7565_v15 = vpack.c.bf16 %v6128_v43, %v6127_v8 }
 0x7cf   : > { %5231 = vrot.lane.b32.xlu0 %v12852_v24, %s8098_s14  ;;  %5059 = vrot.lane.b32.xlu1 %v12788_v26, %s8095_s10 }
 0x7d0   : > { %7566 = vmatpush3.bf16.msra.mxu1 %v7565_v15 }
 0x7d1   : > { %v4762_v4 = vpop.permute.xlu0 %4761  ;;  %v4852_v42 = vpop.permute.xlu1 %4851  ;;  %v6146_v23 = vld [vmem:[#allocation4 + $0xf8] sm:$0xff]  ;;  %v6147_v56 = vld [vmem:[#allocation4 + $0x100] sm:$0xff] }
 0x7d2   : > { %4772 = vst.msk [vmem:[#allocation4 + $0x110] sm:$0xff] %vm4587_vm15, %v4762_v4  ;;  %4862 = vst.msk [vmem:[#allocation4 + $0x188] sm:$0xff] %vm4587_vm15, %v4852_v42  ;;  %v7567_v41 = vpack.c.bf16 %v6146_v23, %v6145_v58 }
 0x7d3   : > { %5093 = vrot.lane.b32.xlu0 %v12799_v37, %s8099_s11  ;;  %4967 = vrot.lane.b32.xlu1 %v12819_v49, %s8097_s19 }
 0x7d4   : > { %7568 = vmatprep.subr.bf16.mxu1 %v7567_v41  ;;  %v4425_v41 = vmul.f32 0.013333334, %v12723_v53 }
 0x7d5   : > { %v4878_v55 = vpop.permute.xlu0 %4877  ;;  %v4760_v16 = vpop.permute.xlu1 %4759  ;;  %v6130_v40 = vld [vmem:[#allocation4 + $0x78] sm:$0xff]  ;;  %v6165_v13 = vld [vmem:[#allocation4 + $0x190] sm:$0xff] }
 0x7d6   : > { %4890 = vst.msk [vmem:[#allocation4 + $0x1a0] sm:$0xff] %vm4587_vm15, %v4878_v55  ;;  %4771 = vst.msk [vmem:[#allocation4 + $0x108] sm:$0xff] %vm4587_vm15, %v4760_v16  ;;  %v7569_v35 = vpack.c.bf16 %v6130_v40, %v6129_v25 }
 0x7d7   : > { %5061 = vrot.lane.b32.xlu0 %v12811_v0, %s8095_s10  ;;  %5325 = vrot.lane.b32.xlu1 %v12863_v5, %s8096_s17  ;;  %s8116_s10 = smov 10  }
 0x7d8   : > { %7570 = vmatpush3.bf16.msra.mxu1 %v7569_v35 }
 0x7d9   : > { %v4786_v30 = vpop.permute.xlu0 %4785  ;;  %v4876_v39 = vpop.permute.xlu1 %4875  ;;  %v6164_v3 = vld [vmem:[#allocation4 + $0x188] sm:$0xff]  ;;  %v6149_v12 = vld [vmem:[#allocation4 + $0x110] sm:$0xff] }
 0x7da   : > { %4799 = vst.msk [vmem:[#allocation4 + $0x120] sm:$0xff] %vm4587_vm15, %v4786_v30  ;;  %4889 = vst.msk [vmem:[#allocation4 + $0x198] sm:$0xff] %vm4587_vm15, %v4876_v39  ;;  %v7571_v11 = vpack.c.bf16 %v6164_v3, %v6163_v59  ;;  %v4417_v30 = vmul.f32 0.013333334, %v12664_v57  ;;  %v4460_v39 = vmax.f32 %v4425_v41, 1e-06 }
 0x7db   : > { %4971 = vrot.lane.b32.xlu0 %v12811_v0, %s8097_s19  ;;  %5233 = vrot.lane.b32.xlu1 %v12847_v7, %s8098_s14  ;;  %v4418_v57 = vmul.f32 0.013333334, %v12714_v61 }
 0x7dc   : > { %7572 = vmatprep.subr.bf16.mxu1 %v7571_v11  ;;  %6525 = vmatmul.mubr.f32.vlgmr.msra.gmra.mrb[24].mxu1 %v12809_v22  ;;  %8009 = vlog2.f32 %v4460_v39 }
 0x7dd   : > { %v4882_v33 = vpop.permute.xlu0 %4881  ;;  %v4784_v52 = vpop.permute.xlu1 %4783  ;;  %v6148_v38 = vld [vmem:[#allocation4 + $0x108] sm:$0xff]  ;;  %6594 = vmatprep.mubr.f32.mxu1 %v6390_v27  ;;  %v6167_v8 = vld [vmem:[#allocation4 + $0x1a0] sm:$0xff]  ;;  %v4453_v61 = vmax.f32 %v4418_v57, 1e-06 }
 0x7de   : > { %4892 = vst.msk [vmem:[#allocation4 + $0x1b0] sm:$0xff] %vm4587_vm15, %v4882_v33  ;;  %4798 = vst.msk [vmem:[#allocation4 + $0x118] sm:$0xff] %vm4587_vm15, %v4784_v52  ;;  %v7573_v51 = vpack.c.bf16 %v6148_v38, %v6147_v56  ;;  %v4452_v33 = vmax.f32 %v4417_v30, 1e-06 }
 0x7df   : > { %5349 = vrot.lane.b32.xlu0 %v12884_v44, %s8100_s12  ;;  %5095 = vrot.lane.b32.xlu1 %v12884_v44, %s8099_s11 }
 0x7e0   : > { %7574 = vmatpush3.bf16.msra.mxu1 %v7573_v51  ;;  %8011 = vlog2.f32 %v4452_v33 }
 0x7e1   : > { %v4790_v47 = vpop.permute.xlu0 %4789  ;;  %v4880_v22 = vpop.permute.xlu1 %4879  ;;  %v6166_v10 = vld [vmem:[#allocation4 + $0x198] sm:$0xff]  ;;  %v6151_v58 = vld [vmem:[#allocation4 + $0x120] sm:$0xff]  ;;  %8013 = vlog2.f32 %v4453_v61 }
 0x7e2   : > { %4801 = vst.msk [vmem:[#allocation4 + $0x130] sm:$0xff] %vm4587_vm15, %v4790_v47  ;;  %4891 = vst.msk [vmem:[#allocation4 + $0x1a8] sm:$0xff] %vm4587_vm15, %v4880_v22  ;;  %v7575_v17 = vpack.c.bf16 %v6166_v10, %v6165_v13  ;;  %v4410_v22 = vmul.f32 0.013333334, %v12655_v19  ;;  %v4439_v19 = vmul.f32 0.013333334, %v12737_v9 }
 0x7e3   : > { %5237 = vrot.lane.b32.xlu0 %v12869_v50, %s8098_s14  ;;  %4969 = vrot.lane.b32.xlu1 %v12788_v26, %s8097_s19  ;;  %v4431_v9 = vmul.f32 0.013333334, %v12682_v14  ;;  %s8118_s19 = smov 63  }
 0x7e4   : > { %7576 = vmatprep.subr.bf16.mxu1 %v7575_v17 }
 0x7e5   : > { %v4906_v45 = vpop.permute.xlu0 %4905  ;;  %v4788_v32 = vpop.permute.xlu1 %4787  ;;  %v6150_v20 = vld [vmem:[#allocation4 + $0x118] sm:$0xff]  ;;  %v6169_v25 = vld [vmem:[#allocation4 + $0x1b0] sm:$0xff]  ;;  %v4466_v14 = vmax.f32 %v4431_v9, 1e-06 }
 0x7e6   : > { %4919 = vst.msk [vmem:[#allocation4 + $0x1c0] sm:$0xff] %vm4587_vm15, %v4906_v45  ;;  %4800 = vst.msk [vmem:[#allocation4 + $0x128] sm:$0xff] %vm4587_vm15, %v4788_v32  ;;  %v7577_v63 = vpack.c.bf16 %v6150_v20, %v6149_v12  ;;  %v4445_v12 = vmax.f32 %v4410_v22, 1e-06 }
 0x7e7   : > { %5099 = vrot.lane.b32.xlu0 %v12852_v24, %s8099_s11  ;;  %5327 = vrot.lane.b32.xlu1 %v12869_v50, %s8096_s17  ;;  %s8117_s17 = smov 55  }
 0x7e8   : > { %7578 = vmatpush3.bf16.msra.mxu1 %v7577_v63  ;;  %8015 = vlog2.f32 %v4445_v12 }
 0x7e9   : > { %v4814_v46 = vpop.permute.xlu0 %4813  ;;  %v4904_v6 = vpop.permute.xlu1 %4903  ;;  %v6168_v43 = vld [vmem:[#allocation4 + $0x1a8] sm:$0xff]  ;;  %v6153_v3 = vld [vmem:[#allocation4 + $0x130] sm:$0xff] }
 0x7ea   : > { %4828 = vst.msk [vmem:[#allocation4 + $0x140] sm:$0xff] %vm4587_vm15, %v4814_v46  ;;  %4918 = vst.msk [vmem:[#allocation4 + $0x1b8] sm:$0xff] %vm4587_vm15, %v4904_v6  ;;  %v7579_v15 = vpack.c.bf16 %v6168_v43, %v6167_v8  ;;  %v8010_v8 = vpop.eup %8009 }
 0x7eb   : > { %5103 = vrot.lane.b32.xlu0 %v12847_v7, %s8099_s11  ;;  %5235 = vrot.lane.b32.xlu1 %v12863_v5, %s8098_s14  ;;  %v8012_v41 = vpop.eup %8011  ;;  %s8119_s14 = smov 40  }
 0x7ec   : > { %7580 = vmatprep.subr.bf16.mxu1 %v7579_v15  ;;  %v4474_v15 = vmax.f32 %v4439_v19, 1e-06 }
 0x7ed   : > { %v5264_v4 = vpop.permute.xlu0 %5263  ;;  %v4792_v42 = vpop.permute.xlu1 %4791  ;;  %v6152_v23 = vld [vmem:[#allocation4 + $0x128] sm:$0xff]  ;;  %v6171_v38 = vld [vmem:[#allocation4 + $0x1c0] sm:$0xff] }
 0x7ee   : > { %5276 = vst.msk [vmem:[#allocation4 + $0x380] sm:$0xff] %vm4587_vm15, %v5264_v4  ;;  %4802 = vst.msk [vmem:[#allocation4 + $0x138] sm:$0xff] %vm4587_vm15, %v4792_v42  ;;  %v7581_v34 = vpack.c.bf16 %v6152_v23, %v6151_v58  ;;  %v13067_v4 = vmul.f32 0.6931472, %v8010_v8  ;;  %8017 = vlog2.f32 %v4474_v15 }
 0x7ef   : > { %4995 = vrot.lane.b32.xlu0 %v12826_v28, %s8101_s13  ;;  %5097 = vrot.lane.b32.xlu1 %v12826_v28, %s8099_s11  ;;  %8019 = vlog2.f32 %v4466_v14 }
 0x7f0   : > { %7582 = vmatpush3.bf16.msra.mxu1 %v7581_v34 }
 0x7f1   : > { %v5172_v55 = vpop.permute.xlu0 %5171  ;;  %v4908_v16 = vpop.permute.xlu1 %4907  ;;  %v6170_v40 = vld [vmem:[#allocation4 + $0x1b8] sm:$0xff]  ;;  %v6155_v17 = vld [vmem:[#allocation4 + $0x140] sm:$0xff] }
 0x7f2   : > { %5185 = vst.msk [vmem:[#allocation4 + $0x300] sm:$0xff] %vm4587_vm15, %v5172_v55  ;;  %4920 = vst.msk [vmem:[#allocation4 + $0x1c8] sm:$0xff] %vm4587_vm15, %v4908_v16  ;;  %v7583_v35 = vpack.c.bf16 %v6170_v40, %v6169_v25  ;;  %v4432_v16 = vmul.f32 0.013333334, %v12728_v18  ;;  %v13076_v25 = vmul.f32 0.6931472, %v8012_v41 }
 0x7f3   : > { %5353 = vrot.lane.b32.xlu0 %v12847_v7, %s8100_s12  ;;  %5101 = vrot.lane.b32.xlu1 %v12819_v49, %s8099_s11  ;;  %v4424_v18 = vmul.f32 0.013333334, %v12673_v48 }
 0x7f4   : > { %7584 = vmatprep.subr.bf16.mxu1 %v7583_v35 }
 0x7f5   : > { %v4910_v53 = vpop.permute.xlu0 %4909  ;;  %v4816_v59 = vpop.permute.xlu1 %4815  ;;  %v6154_v27 = vld [vmem:[#allocation4 + $0x138] sm:$0xff]  ;;  %v6227_v46 = vld [vmem:[#allocation4 + $0x380] sm:$0xff]  ;;  %v4459_v61 = vmax.f32 %v4424_v18, 1e-06 }
 0x7f6   : > { %4921 = vst.msk [vmem:[#allocation4 + $0x1d0] sm:$0xff] %vm4587_vm15, %v4910_v53  ;;  %4829 = vst.msk [vmem:[#allocation4 + $0x148] sm:$0xff] %vm4587_vm15, %v4816_v59  ;;  %v7585_v11 = vpack.c.bf16 %v6154_v27, %v6153_v3  ;;  %v8014_v53 = vpop.eup %8013  ;;  %v14215_v3 = vld [vmem:[#allocation14_spill] sm:$0xff] }
 0x7f7   : > { %5261 = vrot.lane.b32.xlu0 %v12852_v24, %s8090_s27  ;;  %4993 = vrot.lane.b32.xlu1 %v12799_v37, %s8101_s13  ;;  %v6391_v27 = vcombine.high %v14215_v3, %v14215_v3  ;;  %v13090_v57 = vmul.f32 0.6931472, %v8014_v53 }
 0x7f8   : > { %7586 = vmatpush3.bf16.msra.mxu1 %v7585_v11  ;;  %v4467_v11 = vmax.f32 %v4432_v16, 1e-06 }
 0x7f9   : > { %v4818_v52 = vpop.permute.xlu0 %4817  ;;  %v5266_v56 = vpop.permute.xlu1 %5265  ;;  %v6172_v51 = vld [vmem:[#allocation4 + $0x1c8] sm:$0xff]  ;;  %v6211_v23 = vld [vmem:[#allocation4 + $0x300] sm:$0xff]  ;;  %v13088_v33 = vrot.slane %v6391_v27, %v12801_v36 }
 0x7fa   : > { %4830 = vst.msk [vmem:[#allocation4 + $0x150] sm:$0xff] %vm4587_vm15, %v4818_v52  ;;  %5277 = vst.msk [vmem:[#allocation4 + $0x388] sm:$0xff] %vm4587_vm15, %v5266_v56  ;;  %v7587_v47 = vpack.c.bf16 %v6172_v51, %v6171_v38  ;;  %8021 = vlog2.f32 %v4467_v11 }
 0x7fb   : > { %5107 = vrot.lane.b32.xlu0 %v12863_v5, %s8099_s11  ;;  %5351 = vrot.lane.b32.xlu1 %v12852_v24, %s8100_s12  ;;  %v6407_v48 = vcombine.high %v13088_v33, %v13088_v33  ;;  %8023 = vlog2.f32 %v4459_v61 }
 0x7fc   : > { %7588 = vmatprep.subr.bf16.mxu1 %v7587_v47  ;;  %v8016_v47 = vpop.eup %8015 }
 0x7fd   : > { %v5268_v13 = vpop.permute.xlu0 %5267  ;;  %v5174_v10 = vpop.permute.xlu1 %5173  ;;  %v6156_v45 = vld [vmem:[#allocation4 + $0x148] sm:$0xff]  ;;  %v6173_v30 = vld [vmem:[#allocation4 + $0x1d0] sm:$0xff]  ;;  %6734 = vmatprep.mubr.f32.mxu0 %v6407_v48 }
 0x7fe   : > { %5278 = vst.msk [vmem:[#allocation4 + $0x390] sm:$0xff] %vm4587_vm15, %v5268_v13  ;;  %5186 = vst.msk [vmem:[#allocation4 + $0x308] sm:$0xff] %vm4587_vm15, %v5174_v10  ;;  %v7589_v32 = vpack.c.bf16 %v6156_v45, %v6155_v17  ;;  %v13100_v13 = vmul.f32 0.6931472, %v8016_v47  ;;  %v8018_v12 = vpop.eup %8017 }
 0x7ff   : > { %5111 = vrot.lane.b32.xlu0 %v12869_v50, %s8099_s11  ;;  %5259 = vrot.lane.b32.xlu1 %v12884_v44, %s8090_s27  ;;  %v8020_v8 = vpop.eup %8019  ;;  %s8108_s27 = smov 92  }
 0x800   : > { %7590 = vmatpush3.bf16.msra.mxu1 %v7589_v32  ;;  %v13117_v9 = vmul.f32 0.6931472, %v8020_v8 }
 0x801   : > { %v5176_v20 = vpop.permute.xlu0 %5175  ;;  %v4912_v63 = vpop.permute.xlu1 %4911  ;;  %v6228_v6 = vld [vmem:[#allocation4 + $0x388] sm:$0xff]  ;;  %v6157_v38 = vld [vmem:[#allocation4 + $0x150] sm:$0xff] }
 0x802   : > { %5187 = vst.msk [vmem:[#allocation4 + $0x310] sm:$0xff] %vm4587_vm15, %v5176_v20  ;;  %4922 = vst.msk [vmem:[#allocation4 + $0x1d8] sm:$0xff] %vm4587_vm15, %v4912_v63  ;;  %v7635_v43 = vpack.c.bf16 %v6228_v6, %v6227_v46 }
 0x803   : > { %4999 = vrot.lane.b32.xlu0 %v12788_v26, %s8101_s13  ;;  %5105 = vrot.lane.b32.xlu1 %v12788_v26, %s8099_s11 }
 0x804   : > { %7636 = vmatprep.subr.bf16.mxu0 %v7635_v43 }
 0x805   : > { %v4934_v42 = vpop.permute.xlu0 %4933  ;;  %v4820_v58 = vpop.permute.xlu1 %4819  ;;  %v6212_v34 = vld [vmem:[#allocation4 + $0x308] sm:$0xff]  ;;  %v6229_v45 = vld [vmem:[#allocation4 + $0x390] sm:$0xff] }
 0x806   : > { %4948 = vst.msk [vmem:[#allocation4 + $0x1e0] sm:$0xff] %vm4587_vm15, %v4934_v42  ;;  %4831 = vst.msk [vmem:[#allocation4 + $0x158] sm:$0xff] %vm4587_vm15, %v4820_v58  ;;  %v7637_v55 = vpack.c.bf16 %v6212_v34, %v6211_v23  ;;  %v8022_v34 = vpop.eup %8021 }
 0x807   : > { %5679 = vrot.lane.b32.xlu0 %v13067_v4, %s8069_s25  ;;  %5109 = vrot.lane.b32.xlu1 %v12811_v0, %s8099_s11  ;;  %v13126_v14 = vmul.f32 0.6931472, %v8022_v34  ;;  %s8120_s11 = smov 48  }
 0x808   : > { %7638 = vmatpush3.bf16.msra.mxu0 %v7637_v55 }
 0x809   : > { %v4822_v40 = vpop.permute.xlu0 %4821  ;;  %v5290_v35 = vpop.permute.xlu1 %5289  ;;  %v6174_v39 = vld [vmem:[#allocation4 + $0x1d8] sm:$0xff]  ;;  %v6213_v46 = vld [vmem:[#allocation4 + $0x310] sm:$0xff] }
 0x80a   : > { %4832 = vst.msk [vmem:[#allocation4 + $0x160] sm:$0xff] %vm4587_vm15, %v4822_v40  ;;  %5304 = vst.msk [vmem:[#allocation4 + $0x398] sm:$0xff] %vm4587_vm15, %v5290_v35  ;;  %v7591_v59 = vpack.c.bf16 %v6174_v39, %v6173_v30  ;;  %v8024_v39 = vpop.eup %8023 }
 0x80b   : > { %5561 = vrot.lane.b32.xlu0 %v13076_v25, %s8102_s20  ;;  %4997 = vrot.lane.b32.xlu1 %v12819_v49, %s8101_s13 }
 0x80c   : > { %7592 = vmatprep.subr.bf16.mxu1 %v7591_v59  ;;  %v13134_v59 = vmul.f32 0.6931472, %v8024_v39 }
 0x80d   : > { %v5292_v52 = vpop.permute.xlu0 %5291  ;;  %v5178_v56 = vpop.permute.xlu1 %5177  ;;  %v6158_v51 = vld [vmem:[#allocation4 + $0x158] sm:$0xff]  ;;  %v6175_v58 = vld [vmem:[#allocation4 + $0x1e0] sm:$0xff] }
 0x80e   : > { %5305 = vst.msk [vmem:[#allocation4 + $0x3a0] sm:$0xff] %vm4587_vm15, %v5292_v52  ;;  %5188 = vst.msk [vmem:[#allocation4 + $0x318] sm:$0xff] %vm4587_vm15, %v5178_v56  ;;  %v7593_v22 = vpack.c.bf16 %v6158_v51, %v6157_v38 }
 0x80f   : > { %5141 = vrot.lane.b32.xlu0 %v12852_v24, %s8070_s26  ;;  %5677 = vrot.lane.b32.xlu1 %v13090_v57, %s8069_s25  ;;  %v13108_v24 = vmul.f32 0.6931472, %v8018_v12 }
 0x810   : > { %7594 = vmatpush3.bf16.msra.mxu1 %v7593_v22 }
 0x811   : > { %v5200_v10 = vpop.permute.xlu0 %5199  ;;  %v4936_v17 = vpop.permute.xlu1 %4935  ;;  %v6230_v32 = vld [vmem:[#allocation4 + $0x398] sm:$0xff]  ;;  %v6159_v35 = vld [vmem:[#allocation4 + $0x160] sm:$0xff] }
 0x812   : > { %5214 = vst.msk [vmem:[#allocation4 + $0x320] sm:$0xff] %vm4587_vm15, %v5200_v10  ;;  %4949 = vst.msk [vmem:[#allocation4 + $0x1e8] sm:$0xff] %vm4587_vm15, %v4936_v17  ;;  %v7639_v19 = vpack.c.bf16 %v6230_v32, %v6229_v45 }
 0x813   : > { %5023 = vrot.lane.b32.xlu0 %v12799_v37, %s8103_s21  ;;  %5559 = vrot.lane.b32.xlu1 %v13100_v13, %s8102_s20  ;;  %v4411_v37 = vmul.f32 0.013333334, %v12705_v21  ;;  %v4438_v21 = vmul.f32 0.013333334, %v12696_v54 }
 0x814   : > { %7640 = vmatprep.subr.bf16.mxu0 %v7639_v19 }
 0x815   : > { %v4938_v20 = vpop.permute.xlu0 %4937  ;;  %v4844_v63 = vpop.permute.xlu1 %4843  ;;  %v6214_v6 = vld [vmem:[#allocation4 + $0x318] sm:$0xff]  ;;  %v4446_v55 = vmax.f32 %v4411_v37, 1e-06  ;;  %v4473_v54 = vmax.f32 %v4438_v21, 1e-06  ;;  %v6231_v11 = vld [vmem:[#allocation4 + $0x3a0] sm:$0xff] }
 0x816   : > { %4950 = vst.msk [vmem:[#allocation4 + $0x1f0] sm:$0xff] %vm4587_vm15, %v4938_v20  ;;  %4858 = vst.msk [vmem:[#allocation4 + $0x168] sm:$0xff] %vm4587_vm15, %v4844_v63  ;;  %v7641_v43 = vpack.c.bf16 %v6214_v6, %v6213_v46 }
 0x817   : > { %5683 = vrot.lane.b32.xlu0 %v13108_v24, %s8069_s25  ;;  %5139 = vrot.lane.b32.xlu1 %v12884_v44, %s8070_s26  ;;  %8025 = vlog2.f32 %v4446_v55 }
 0x818   : > { %7642 = vmatpush3.bf16.msra.mxu0 %v7641_v43  ;;  %8027 = vlog2.f32 %v4473_v54 }
 0x819   : > { %v4846_v15 = vpop.permute.xlu0 %4845  ;;  %v5294_v42 = vpop.permute.xlu1 %5293  ;;  %v6176_v23 = vld [vmem:[#allocation4 + $0x1e8] sm:$0xff]  ;;  %v6215_v47 = vld [vmem:[#allocation4 + $0x320] sm:$0xff] }
 0x81a   : > { %4859 = vst.msk [vmem:[#allocation4 + $0x170] sm:$0xff] %vm4587_vm15, %v4846_v15  ;;  %5306 = vst.msk [vmem:[#allocation4 + $0x3a8] sm:$0xff] %vm4587_vm15, %v5294_v42  ;;  %v7595_v41 = vpack.c.bf16 %v6176_v23, %v6175_v58 }
 0x81b   : > { %5565 = vrot.lane.b32.xlu0 %v13117_v9, %s8102_s20  ;;  %5001 = vrot.lane.b32.xlu1 %v12811_v0, %s8101_s13 }
 0x81c   : > { %7596 = vmatprep.subr.bf16.mxu1 %v7595_v41 }
 0x81d   : > { %v5296_v16 = vpop.permute.xlu0 %5295  ;;  %v5202_v40 = vpop.permute.xlu1 %5201  ;;  %v6160_v30 = vld [vmem:[#allocation4 + $0x168] sm:$0xff]  ;;  %v6177_v10 = vld [vmem:[#allocation4 + $0x1f0] sm:$0xff] }
 0x81e   : > { %5307 = vst.msk [vmem:[#allocation4 + $0x3b0] sm:$0xff] %vm4587_vm15, %v5296_v16  ;;  %5215 = vst.msk [vmem:[#allocation4 + $0x328] sm:$0xff] %vm4587_vm15, %v5202_v40  ;;  %v7597_v53 = vpack.c.bf16 %v6160_v30, %v6159_v35 }
 0x81f   : > { %5145 = vrot.lane.b32.xlu0 %v12863_v5, %s8070_s26  ;;  %5681 = vrot.lane.b32.xlu1 %v13126_v14, %s8069_s25 }
 0x820   : > { %7598 = vmatpush3.bf16.msra.mxu1 %v7597_v53 }
 0x821   : > { %v5204_v27 = vpop.permute.xlu0 %5203  ;;  %v4940_v18 = vpop.permute.xlu1 %4939  ;;  %v6232_v52 = vld [vmem:[#allocation4 + $0x3a8] sm:$0xff]  ;;  %v6161_v20 = vld [vmem:[#allocation4 + $0x170] sm:$0xff] }
 0x822   : > { %5216 = vst.msk [vmem:[#allocation4 + $0x330] sm:$0xff] %vm4587_vm15, %v5204_v27  ;;  %4951 = vst.msk [vmem:[#allocation4 + $0x1f8] sm:$0xff] %vm4587_vm15, %v4940_v18  ;;  %v7643_v56 = vpack.c.bf16 %v6232_v52, %v6231_v11  ;;  %v8026_v45 = vpop.eup %8025  ;;  %v13197_v52 = vrot.slane %v14215_v3, %v12801_v36 }
 0x823   : > { %5027 = vrot.lane.b32.xlu0 %v12819_v49, %s8103_s21  ;;  %5563 = vrot.lane.b32.xlu1 %v13134_v59, %s8102_s20  ;;  %v8028_v46 = vpop.eup %8027 }
 0x824   : > { %7644 = vmatprep.subr.bf16.mxu0 %v7643_v56 }
 0x825   : > { %v5054_v38 = vpop.permute.xlu0 %5053  ;;  %v4848_v51 = vpop.permute.xlu1 %4847  ;;  %v6216_v22 = vld [vmem:[#allocation4 + $0x328] sm:$0xff]  ;;  %v6233_v37 = vld [vmem:[#allocation4 + $0x3b0] sm:$0xff] }
 0x826   : > { %5068 = vst.msk [vmem:[#allocation4 + $0x280] sm:$0xff] %vm4587_vm15, %v5054_v38  ;;  %4860 = vst.msk [vmem:[#allocation4 + $0x178] sm:$0xff] %vm4587_vm15, %v4848_v51  ;;  %v7645_v48 = vpack.c.bf16 %v6216_v22, %v6215_v47 }
 0x827   : > { %5707 = vrot.lane.b32.xlu0 %v13090_v57, %s8104_s22  ;;  %5143 = vrot.lane.b32.xlu1 %v12847_v7, %s8070_s26  ;;  %v13154_v7 = vmul.f32 0.6931472, %v8026_v45 }
 0x828   : > { %7646 = vmatpush3.bf16.msra.mxu0 %v7645_v48  ;;  %v6406_v48 = vcombine.high %v13197_v52, %v13197_v52 }
 0x829   : > { %v4942_v49 = vpop.permute.xlu0 %4941  ;;  %v5298_v61 = vpop.permute.xlu1 %5297  ;;  %v6178_v17 = vld [vmem:[#allocation4 + $0x1f8] sm:$0xff]  ;;  %v6217_v23 = vld [vmem:[#allocation4 + $0x330] sm:$0xff] }
 0x82a   : > { %4952 = vst.msk [vmem:[#allocation4 + $0x200] sm:$0xff] %vm4587_vm15, %v4942_v49  ;;  %5308 = vst.msk [vmem:[#allocation4 + $0x3b8] sm:$0xff] %vm4587_vm15, %v5298_v61  ;;  %v7599_v32 = vpack.c.bf16 %v6178_v17, %v6177_v10 }
 0x82b   : > { %5589 = vrot.lane.b32.xlu0 %v13100_v13, %s8105_s23  ;;  %5025 = vrot.lane.b32.xlu1 %v12826_v28, %s8103_s21  ;;  %v13162_v28 = vmul.f32 0.6931472, %v8028_v46 }
 0x82c   : > { %7600 = vmatprep.subr.bf16.mxu1 %v7599_v32 }
 0x82d   : > { %v5320_v12 = vpop.permute.xlu0 %5319  ;;  %v5206_v19 = vpop.permute.xlu1 %5205  ;;  %v6162_v63 = vld [vmem:[#allocation4 + $0x178] sm:$0xff]  ;;  %v6195_v55 = vld [vmem:[#allocation4 + $0x280] sm:$0xff] }
 0x82e   : > { %5334 = vst.msk [vmem:[#allocation4 + $0x3c0] sm:$0xff] %vm4587_vm15, %v5320_v12  ;;  %5217 = vst.msk [vmem:[#allocation4 + $0x338] sm:$0xff] %vm4587_vm15, %v5206_v19  ;;  %v7601_v6 = vpack.c.bf16 %v6162_v63, %v6161_v20 }
 0x82f   : > { %5169 = vrot.lane.b32.xlu0 %v12884_v44, %s8091_s28  ;;  %5705 = vrot.lane.b32.xlu1 %v13154_v7, %s8104_s22  ;;  %s8109_s28 = smov 2  }
 0x830   : > { %7602 = vmatpush3.bf16.msra.mxu1 %v7601_v6 }
 0x831   : > { %v5208_v8 = vpop.permute.xlu0 %5207  ;;  %v5056_v43 = vpop.permute.xlu1 %5055  ;;  %v6234_v15 = vld [vmem:[#allocation4 + $0x3b8] sm:$0xff]  ;;  %v6179_v30 = vld [vmem:[#allocation4 + $0x200] sm:$0xff] }
 0x832   : > { %5218 = vst.msk [vmem:[#allocation4 + $0x340] sm:$0xff] %vm4587_vm15, %v5208_v8  ;;  %5069 = vst.msk [vmem:[#allocation4 + $0x288] sm:$0xff] %vm4587_vm15, %v5056_v43  ;;  %v7647_v42 = vpack.c.bf16 %v6234_v15, %v6233_v37 }
 0x833   : > { %5031 = vrot.lane.b32.xlu0 %v12811_v0, %s8103_s21  ;;  %5567 = vrot.lane.b32.xlu1 %v13162_v28, %s8102_s20 }
 0x834   : > { %7648 = vmatprep.subr.bf16.mxu0 %v7647_v42  ;;  %6595 = vmatmul.mubr.f32.vlgmr.msra.gmra.mrb[26].mxu1 %v12984_v62 }
 0x835   : > { %v5058_v44 = vpop.permute.xlu0 %5057  ;;  %v4964_v58 = vpop.permute.xlu1 %4963  ;;  %v6218_v34 = vld [vmem:[#allocation4 + $0x338] sm:$0xff]  ;;  %v6235_v27 = vld [vmem:[#allocation4 + $0x3c0] sm:$0xff]  ;;  %6664 = vmatprep.mubr.f32.mxu1 %v6406_v48 }
 0x836   : > { %5070 = vst.msk [vmem:[#allocation4 + $0x290] sm:$0xff] %vm4587_vm15, %v5058_v44  ;;  %4978 = vst.msk [vmem:[#allocation4 + $0x208] sm:$0xff] %vm4587_vm15, %v4964_v58  ;;  %v7649_v41 = vpack.c.bf16 %v6218_v34, %v6217_v23 }
 0x837   : > { %5711 = vrot.lane.b32.xlu0 %v13126_v14, %s8104_s22  ;;  %5147 = vrot.lane.b32.xlu1 %v12869_v50, %s8070_s26  ;;  %s8106_s26 = smov 77  }
 0x838   : > { %7650 = vmatpush3.bf16.msra.mxu0 %v7649_v41 }
 0x839   : > { %v4966_v0 = vpop.permute.xlu0 %4965  ;;  %v5322_v21 = vpop.permute.xlu1 %5321  ;;  %v6196_v62 = vld [vmem:[#allocation4 + $0x288] sm:$0xff]  ;;  %v6219_v51 = vld [vmem:[#allocation4 + $0x340] sm:$0xff] }
 0x83a   : > { %4979 = vst.msk [vmem:[#allocation4 + $0x210] sm:$0xff] %vm4587_vm15, %v4966_v0  ;;  %5335 = vst.msk [vmem:[#allocation4 + $0x3c8] sm:$0xff] %vm4587_vm15, %v5322_v21  ;;  %v7603_v16 = vpack.c.bf16 %v6196_v62, %v6195_v55 }
 0x83b   : > { %5593 = vrot.lane.b32.xlu0 %v13134_v59, %s8105_s23  ;;  %5029 = vrot.lane.b32.xlu1 %v12788_v26, %s8103_s21 }
 0x83c   : > { %7604 = vmatprep.subr.bf16.mxu1 %v7603_v16 }
 0x83d   : > { %v5324_v40 = vpop.permute.xlu0 %5323  ;;  %v5230_v35 = vpop.permute.xlu1 %5229  ;;  %v6180_v39 = vld [vmem:[#allocation4 + $0x208] sm:$0xff]  ;;  %v6197_v49 = vld [vmem:[#allocation4 + $0x290] sm:$0xff] }
 0x83e   : > { %5336 = vst.msk [vmem:[#allocation4 + $0x3d0] sm:$0xff] %vm4587_vm15, %v5324_v40  ;;  %5244 = vst.msk [vmem:[#allocation4 + $0x348] sm:$0xff] %vm4587_vm15, %v5230_v35  ;;  %v7605_v53 = vpack.c.bf16 %v6180_v39, %v6179_v30 }
 0x83f   : > { %5469 = vrot.lane.b32.xlu0 %v13100_v13, %s8106_s26  ;;  %5709 = vrot.lane.b32.xlu1 %v13067_v4, %s8104_s22 }
 0x840   : > { %7606 = vmatpush3.bf16.msra.mxu1 %v7605_v53 }
 0x841   : > { %v5232_v54 = vpop.permute.xlu0 %5231  ;;  %v5060_v26 = vpop.permute.xlu1 %5059  ;;  %v6236_v18 = vld [vmem:[#allocation4 + $0x3c8] sm:$0xff]  ;;  %v6181_v32 = vld [vmem:[#allocation4 + $0x210] sm:$0xff] }
 0x842   : > { %5245 = vst.msk [vmem:[#allocation4 + $0x350] sm:$0xff] %vm4587_vm15, %v5232_v54  ;;  %5071 = vst.msk [vmem:[#allocation4 + $0x298] sm:$0xff] %vm4587_vm15, %v5060_v26  ;;  %v7651_v11 = vpack.c.bf16 %v6236_v18, %v6235_v27 }
 0x843   : > { %5357 = vrot.lane.b32.xlu0 %v12869_v50, %s8100_s12  ;;  %5591 = vrot.lane.b32.xlu1 %v13076_v25, %s8105_s23 }
 0x844   : > { %7652 = vmatprep.subr.bf16.mxu0 %v7651_v11 }
 0x845   : > { %v5094_v56 = vpop.permute.xlu0 %5093  ;;  %v4968_v38 = vpop.permute.xlu1 %4967  ;;  %v6220_v47 = vld [vmem:[#allocation4 + $0x348] sm:$0xff]  ;;  %v6237_v63 = vld [vmem:[#allocation4 + $0x3d0] sm:$0xff] }
 0x846   : > { %4980 = vst.msk [vmem:[#allocation4 + $0x218] sm:$0xff] %vm4587_vm15, %v4968_v38  ;;  %v7653_v22 = vpack.c.bf16 %v6220_v47, %v6219_v51 }
 0x847   : > { %5735 = vrot.lane.b32.xlu0 %v13154_v7, %s8107_s24  ;;  %5447 = vrot.lane.b32.xlu1 %v13162_v28, %s8108_s27 }
 0x848   : > { %7654 = vmatpush3.bf16.msra.mxu0 %v7653_v22 }
 0x849   : > { %v5062_v50 = vpop.permute.xlu0 %5061  ;;  %v5326_v3 = vpop.permute.xlu1 %5325  ;;  %v6198_v61 = vld [vmem:[#allocation4 + $0x298] sm:$0xff]  ;;  %v6221_v15 = vld [vmem:[#allocation4 + $0x350] sm:$0xff] }
 0x84a   : > { %5072 = vst.msk [vmem:[#allocation4 + $0x2a0] sm:$0xff] %vm4587_vm15, %v5062_v50  ;;  %5337 = vst.msk [vmem:[#allocation4 + $0x3d8] sm:$0xff] %vm4587_vm15, %v5326_v3  ;;  %v7607_v10 = vpack.c.bf16 %v6198_v61, %v6197_v49 }
 0x84b   : > { %5597 = vrot.lane.b32.xlu0 %v13162_v28, %s8105_s23  ;;  %5355 = vrot.lane.b32.xlu1 %v12863_v5, %s8100_s12 }
 0x84c   : > { %7608 = vmatprep.subr.bf16.mxu1 %v7607_v10 }
 0x84d   : > { %v4972_v17 = vpop.permute.xlu0 %4971  ;;  %v5234_v45 = vpop.permute.xlu1 %5233  ;;  %v6182_v12 = vld [vmem:[#allocation4 + $0x218] sm:$0xff] }
 0x84e   : > { %4982 = vst.msk [vmem:[#allocation4 + $0x228] sm:$0xff] %vm4587_vm15, %v4972_v17  ;;  %5246 = vst.msk [vmem:[#allocation4 + $0x358] sm:$0xff] %vm4587_vm15, %v5234_v45  ;;  %v7609_v19 = vpack.c.bf16 %v6182_v12, %v6181_v32 }
 0x84f   : > { %5473 = vrot.lane.b32.xlu0 %v13134_v59, %s8106_s26  ;;  %5713 = vrot.lane.b32.xlu1 %v13108_v24, %s8104_s22 }
 0x850   : > { %7610 = vmatpush3.bf16.msra.mxu1 %v7609_v19 }
 0x851   : > { %v5350_v20 = vpop.permute.xlu0 %5349  ;;  %v5096_v5 = vpop.permute.xlu1 %5095  ;;  %v6238_v46 = vld [vmem:[#allocation4 + $0x3d8] sm:$0xff]  ;;  %v6199_v34 = vld [vmem:[#allocation4 + $0x2a0] sm:$0xff] }
 0x852   : > { %5364 = vst.msk [vmem:[#allocation4 + $0x3e8] sm:$0xff] %vm4587_vm15, %v5350_v20  ;;  %v5114_v6 = vsel %vm5113_vm8, %v5094_v56, %v5096_v5  ;;  %v7655_v8 = vpack.c.bf16 %v6238_v46, %v6237_v63 }
 0x853   : > { %5124 = vst.msk [vmem:[#allocation4 + $0x2a8] sm:$0xff] %vm4587_vm15, %v5114_v6  ;;  %5381 = vrot.lane.b32.xlu0 %v13076_v25, %s8062_s16  ;;  %5595 = vrot.lane.b32.xlu1 %v13117_v9, %s8105_s23 }
 0x854   : > { %7656 = vmatprep.subr.bf16.mxu0 %v7655_v8  ;;  %v4440_v8 = vmul.f32 0.013333334, %v12771_v29 }
 0x855   : > { %v5238_v43 = vpop.permute.xlu0 %5237  ;;  %v4970_v37 = vpop.permute.xlu1 %4969  ;;  %v6222_v42 = vld [vmem:[#allocation4 + $0x358] sm:$0xff]  ;;  %v6184_v16 = vld [vmem:[#allocation4 + $0x228] sm:$0xff] }
 0x856   : > { %5248 = vst.msk [vmem:[#allocation4 + $0x368] sm:$0xff] %vm4587_vm15, %v5238_v43  ;;  %4981 = vst.msk [vmem:[#allocation4 + $0x220] sm:$0xff] %vm4587_vm15, %v4970_v37  ;;  %v7657_v44 = vpack.c.bf16 %v6222_v42, %v6221_v15 }
 0x857   : > { %5631 = vrot.lane.b32.xlu0 %v13154_v7, %s8109_s28  ;;  %5471 = vrot.lane.b32.xlu1 %v13076_v25, %s8106_s26 }
 0x858   : > { %7658 = vmatpush3.bf16.msra.mxu0 %v7657_v44 }
 0x859   : > { %v5100_v58 = vpop.permute.xlu0 %5099  ;;  %v5328_v23 = vpop.permute.xlu1 %5327  ;;  %v6240_v53 = vld [vmem:[#allocation4 + $0x3e8] sm:$0xff] }
 0x85a   : > { %5338 = vst.msk [vmem:[#allocation4 + $0x3e0] sm:$0xff] %vm4587_vm15, %v5328_v23  ;;  %v6200_v41 = vld [vmem:[#allocation4 + $0x2a8] sm:$0xff]  ;;  %v4475_v23 = vmax.f32 %v4440_v8, 1e-06 }
 0x85b   : > { %5635 = vrot.lane.b32.xlu0 %v13090_v57, %s8109_s28  ;;  %5379 = vrot.lane.b32.xlu1 %v13100_v13, %s8062_s16  ;;  %v7611_v0 = vpack.c.bf16 %v6200_v41, %v6199_v34 }
 0x85c   : > { %8029 = vlog2.f32 %v4475_v23 }
 0x85d   : > { %v5104_v21 = vpop.permute.xlu0 %5103  ;;  %7612 = vmatprep.subr.bf16.mxu1 %v7611_v0  ;;  %v5236_v55 = vpop.permute.xlu1 %5235  ;;  %v6183_v62 = vld [vmem:[#allocation4 + $0x220] sm:$0xff]  ;;  %v6224_v56 = vld [vmem:[#allocation4 + $0x368] sm:$0xff] }
 0x85e   : > { %5247 = vst.msk [vmem:[#allocation4 + $0x360] sm:$0xff] %vm4587_vm15, %v5236_v55  ;;  %v7613_v40 = vpack.c.bf16 %v6184_v16, %v6183_v62  ;;  %v4412_v62 = vmul.f32 0.013333334, %v12742_v31 }
 0x85f   : > { %5739 = vrot.lane.b32.xlu0 %v13067_v4, %s8107_s24  ;;  %5629 = vrot.lane.b32.xlu1 %v13100_v13, %s8109_s28 }
 0x860   : > { %7614 = vmatpush3.bf16.msra.mxu1 %v7613_v40 }
 0x861   : > { %v4996_v35 = vpop.permute.xlu0 %4995  ;;  %v5098_v30 = vpop.permute.xlu1 %5097  ;;  %v6239_v39 = vld [vmem:[#allocation4 + $0x3e0] sm:$0xff] }
 0x862   : > { %5009 = vst.msk [vmem:[#allocation4 + $0x238] sm:$0xff] %vm4587_vm15, %v4996_v35  ;;  %v5115_v54 = vsel %vm5113_vm8, %v5098_v30, %v5100_v58  ;;  %v7659_v26 = vpack.c.bf16 %v6240_v53, %v6239_v39  ;;  %v4447_v53 = vmax.f32 %v4412_v62, 1e-06 }
 0x863   : > { %5125 = vst.msk [vmem:[#allocation4 + $0x2b0] sm:$0xff] %vm4587_vm15, %v5115_v54  ;;  %5477 = vrot.lane.b32.xlu0 %v13162_v28, %s8106_s26  ;;  %5633 = vrot.lane.b32.xlu1 %v13076_v25, %s8109_s28 }
 0x864   : > { %7660 = vmatprep.subr.bf16.mxu0 %v7659_v26  ;;  %8031 = vlog2.f32 %v4447_v53 }
 0x865   : > { %v5354_v27 = vpop.permute.xlu0 %5353  ;;  %v5102_v18 = vpop.permute.xlu1 %5101  ;;  %v6223_v11 = vld [vmem:[#allocation4 + $0x360] sm:$0xff] }
 0x866   : > { %5366 = vst.msk [vmem:[#allocation4 + $0x3f8] sm:$0xff] %vm4587_vm15, %v5354_v27  ;;  %v5116_v38 = vsel %vm5113_vm8, %v5102_v18, %v5104_v21  ;;  %v7661_v51 = vpack.c.bf16 %v6224_v56, %v6223_v11  ;;  %v8030_v11 = vpop.eup %8029 }
 0x867   : > { %5126 = vst.msk [vmem:[#allocation4 + $0x2b8] sm:$0xff] %vm4587_vm15, %v5116_v38  ;;  %5385 = vrot.lane.b32.xlu0 %v13117_v9, %s8062_s16  ;;  %5737 = vrot.lane.b32.xlu1 %v13090_v57, %s8107_s24  ;;  %v13313_v38 = vmul.f32 0.6931472, %v8030_v11 }
 0x868   : > { %7662 = vmatpush3.bf16.msra.mxu0 %v7661_v51 }
 0x869   : > { %v5262_v47 = vpop.permute.xlu0 %5261  ;;  %v4994_v22 = vpop.permute.xlu1 %4993  ;;  %v6186_v32 = vld [vmem:[#allocation4 + $0x238] sm:$0xff] }
 0x86a   : > { %5275 = vst.msk [vmem:[#allocation4 + $0x378] sm:$0xff] %vm4587_vm15, %v5262_v47  ;;  %5008 = vst.msk [vmem:[#allocation4 + $0x230] sm:$0xff] %vm4587_vm15, %v4994_v22  ;;  %v6201_v3 = vld [vmem:[#allocation4 + $0x2b0] sm:$0xff] }
 0x86b   : > { %5639 = vrot.lane.b32.xlu0 %v13067_v4, %s8109_s28  ;;  %5475 = vrot.lane.b32.xlu1 %v13117_v9, %s8106_s26 }
 0x86d   : > { %v5108_v48 = vpop.permute.xlu0 %5107  ;;  %v5352_v50 = vpop.permute.xlu1 %5351  ;;  %v6242_v63 = vld [vmem:[#allocation4 + $0x3f8] sm:$0xff] }
 0x86e   : > { %5365 = vst.msk [vmem:[#allocation4 + $0x3f0] sm:$0xff] %vm4587_vm15, %v5352_v50  ;;  %v6202_v49 = vld [vmem:[#allocation4 + $0x2b8] sm:$0xff] }
 0x86f   : > { %5643 = vrot.lane.b32.xlu0 %v13126_v14, %s8109_s28  ;;  %5383 = vrot.lane.b32.xlu1 %v13134_v59, %s8062_s16  ;;  %v7615_v61 = vpack.c.bf16 %v6202_v49, %v6201_v3  ;;  %v4426_v3 = vmul.f32 0.013333334, %v12756_v60  ;;  %v4433_v49 = vmul.f32 0.013333334, %v12766_v1 }
 0x871   : > { %v5112_v10 = vpop.permute.xlu0 %5111  ;;  %7616 = vmatprep.subr.bf16.mxu1 %v7615_v61  ;;  %v5260_v17 = vpop.permute.xlu1 %5259  ;;  %v6185_v45 = vld [vmem:[#allocation4 + $0x230] sm:$0xff]  ;;  %v6226_v42 = vld [vmem:[#allocation4 + $0x378] sm:$0xff]  ;;  %v4468_v1 = vmax.f32 %v4433_v49, 1e-06 }
 0x872   : > { %5274 = vst.msk [vmem:[#allocation4 + $0x370] sm:$0xff] %vm4587_vm15, %v5260_v17  ;;  %v7617_v12 = vpack.c.bf16 %v6186_v32, %v6185_v45 }
 0x873   : > { %5743 = vrot.lane.b32.xlu0 %v13108_v24, %s8107_s24  ;;  %5637 = vrot.lane.b32.xlu1 %v13134_v59, %s8109_s28 }
 0x874   : > { %7618 = vmatpush3.bf16.msra.mxu1 %v7617_v12  ;;  %v14216_v12 = vld [vmem:[#allocation15_spill] sm:$0xff] }
 0x875   : > { %v5000_v19 = vpop.permute.xlu0 %4999  ;;  %v5106_v20 = vpop.permute.xlu1 %5105  ;;  %v6241_v5 = vld [vmem:[#allocation4 + $0x3f0] sm:$0xff]  ;;  %v6408_v60 = vcombine.high %v14216_v12, %v14216_v12 }
 0x876   : > { %5011 = vst.msk [vmem:[#allocation4 + $0x248] sm:$0xff] %vm4587_vm15, %v5000_v19  ;;  %v5117_v46 = vsel %vm5113_vm8, %v5106_v20, %v5108_v48  ;;  %v7663_v6 = vpack.c.bf16 %v6242_v63, %v6241_v5  ;;  %v4461_v19 = vmax.f32 %v4426_v3, 1e-06  ;;  %v8032_v5 = vpop.eup %8031 }
 0x877   : > { %5127 = vst.msk [vmem:[#allocation4 + $0x2c0] sm:$0xff] %vm4587_vm15, %v5117_v46  ;;  %5501 = vrot.lane.b32.xlu0 %v13076_v25, %s8110_s29  ;;  %5641 = vrot.lane.b32.xlu1 %v13117_v9, %s8109_s28  ;;  %v13332_v20 = vrot.slane %v6408_v60, %v12801_v36 }
 0x878   : > { %7664 = vmatprep.subr.bf16.mxu0 %v7663_v6 }
 0x879   : > { %v5680_v43 = vpop.permute.xlu0 %5679  ;;  %v5110_v37 = vpop.permute.xlu1 %5109  ;;  %v6225_v15 = vld [vmem:[#allocation4 + $0x370] sm:$0xff] }
 0x87a   : > { %5692 = vst.msk [vmem:[#allocation4 + $0x588] sm:$0xff] %vm4587_vm15, %v5680_v43  ;;  %v5118_v44 = vsel %vm5113_vm8, %v5110_v37, %v5112_v10  ;;  %v7665_v58 = vpack.c.bf16 %v6226_v42, %v6225_v15  ;;  %v6424_v15 = vcombine.high %v13332_v20, %v13332_v20  ;;  %v13342_v42 = vmul.f32 0.6931472, %v8032_v5 }
 0x87b   : > { %5128 = vst.msk [vmem:[#allocation4 + $0x2c8] sm:$0xff] %vm4587_vm15, %v5118_v44  ;;  %5409 = vrot.lane.b32.xlu0 %v13100_v13, %s8077_s9  ;;  %5741 = vrot.lane.b32.xlu1 %v13126_v14, %s8107_s24 }
 0x87c   : > { %7666 = vmatpush3.bf16.msra.mxu0 %v7665_v58 }
 0x87d   : > { %v5562_v29 = vpop.permute.xlu0 %5561  ;;  %v4998_v34 = vpop.permute.xlu1 %4997  ;;  %v6188_v39 = vld [vmem:[#allocation4 + $0x248] sm:$0xff] }
 0x87e   : > { %5575 = vst.msk [vmem:[#allocation4 + $0x508] sm:$0xff] %vm4587_vm15, %v5562_v29  ;;  %5010 = vst.msk [vmem:[#allocation4 + $0x240] sm:$0xff] %vm4587_vm15, %v4998_v34  ;;  %v6203_v21 = vld [vmem:[#allocation4 + $0x2c0] sm:$0xff] }
 0x87f   : > { %5647 = vrot.lane.b32.xlu0 %v13108_v24, %s8109_s28  ;;  %5499 = vrot.lane.b32.xlu1 %v13100_v13, %s8110_s29 }
 0x880   : > { %6735 = vmatmul.mubr.f32.vlgmr.msra.gmra.mrb[24].mxu0 %v13088_v33  ;;  %v4419_v33 = vmul.f32 0.013333334, %v12751_v2 }
 0x881   : > { %v5142_v41 = vpop.permute.xlu0 %5141  ;;  %v5678_v0 = vpop.permute.xlu1 %5677  ;;  %v6292_v18 = vld [vmem:[#allocation4 + $0x588] sm:$0xff]  ;;  %6874 = vmatprep.mubr.f32.mxu0 %v6424_v15 }
 0x882   : > { %5155 = vst.msk [vmem:[#allocation4 + $0x2d8] sm:$0xff] %vm4587_vm15, %v5142_v41  ;;  %5691 = vst.msk [vmem:[#allocation4 + $0x580] sm:$0xff] %vm4587_vm15, %v5678_v0  ;;  %v6204_v55 = vld [vmem:[#allocation4 + $0x2c8] sm:$0xff]  ;;  %v4454_v54 = vmax.f32 %v4419_v33, 1e-06 }
 0x883   : > { %5767 = vrot.lane.b32.xlu0 %v13090_v57, %s8111_s30  ;;  %5387 = vrot.lane.b32.xlu1 %v13162_v28, %s8062_s16  ;;  %v7619_v16 = vpack.c.bf16 %v6204_v55, %v6203_v21  ;;  %s8112_s16 = smov 93  }
 0x884   : > { %8033 = vlog2.f32 %v4454_v54 }
 0x885   : > { %v5024_v40 = vpop.permute.xlu0 %5023  ;;  %7620 = vmatprep.subr.bf16.mxu1 %v7619_v16  ;;  %v5560_v35 = vpop.permute.xlu1 %5559  ;;  %v6187_v30 = vld [vmem:[#allocation4 + $0x240] sm:$0xff]  ;;  %v6276_v48 = vld [vmem:[#allocation4 + $0x508] sm:$0xff]  ;;  %8035 = vlog2.f32 %v4461_v19 }
 0x886   : > { %5038 = vst.msk [vmem:[#allocation4 + $0x258] sm:$0xff] %vm4587_vm15, %v5024_v40  ;;  %5574 = vst.msk [vmem:[#allocation4 + $0x500] sm:$0xff] %vm4587_vm15, %v5560_v35  ;;  %v7621_v31 = vpack.c.bf16 %v6188_v39, %v6187_v30  ;;  %8037 = vlog2.f32 %v4468_v1 }
 0x887   : > { %5503 = vrot.lane.b32.xlu0 %v13134_v59, %s8110_s29  ;;  %5645 = vrot.lane.b32.xlu1 %v13162_v28, %s8109_s28 }
 0x888   : > { %7622 = vmatpush3.bf16.msra.mxu1 %v7621_v31 }
 0x889   : > { %v5684_v2 = vpop.permute.xlu0 %5683  ;;  %v5140_v26 = vpop.permute.xlu1 %5139  ;;  %v6291_v27 = vld [vmem:[#allocation4 + $0x580] sm:$0xff]  ;;  %v6206_v45 = vld [vmem:[#allocation4 + $0x2d8] sm:$0xff] }
 0x88a   : > { %5694 = vst.msk [vmem:[#allocation4 + $0x598] sm:$0xff] %vm4587_vm15, %v5684_v2  ;;  %5154 = vst.msk [vmem:[#allocation4 + $0x2d0] sm:$0xff] %vm4587_vm15, %v5140_v26  ;;  %v7699_v56 = vpack.c.bf16 %v6292_v18, %v6291_v27 }
 0x88b   : > { %5411 = vrot.lane.b32.xlu0 %v13076_v25, %s8077_s9  ;;  %5765 = vrot.lane.b32.xlu1 %v13154_v7, %s8111_s30 }
 0x88c   : > { %7700 = vmatprep.subr.bf16.mxu0 %v7699_v56 }
 0x88d   : > { %v5566_v51 = vpop.permute.xlu0 %5565  ;;  %v5002_v47 = vpop.permute.xlu1 %5001  ;;  %v6275_v22 = vld [vmem:[#allocation4 + $0x500] sm:$0xff]  ;;  %v6190_v8 = vld [vmem:[#allocation4 + $0x258] sm:$0xff] }
 0x88e   : > { %5577 = vst.msk [vmem:[#allocation4 + $0x518] sm:$0xff] %vm4587_vm15, %v5566_v51  ;;  %5012 = vst.msk [vmem:[#allocation4 + $0x250] sm:$0xff] %vm4587_vm15, %v5002_v47  ;;  %v7701_v50 = vpack.c.bf16 %v6276_v48, %v6275_v22  ;;  %v8034_v43 = vpop.eup %8033 }
 0x88f   : > { %5953 = vrot.lane.b32.xlu0 %v13313_v38, %s8076_s7  ;;  %5675 = vrot.lane.b32.xlu1 %v13154_v7, %s8069_s25  ;;  %v13344_v44 = vmul.f32 0.6931472, %v8034_v43  ;;  %s8113_s25 = smov 47   ;;  %v8036_v33 = vpop.eup %8035 }
 0x890   : > { %7702 = vmatpush3.bf16.msra.mxu0 %v7701_v50  ;;  %v8038_v31 = vpop.eup %8037  ;;  %v13364_v54 = vmul.f32 0.6931472, %v8036_v33 }
 0x891   : > { %v5146_v61 = vpop.permute.xlu0 %5145  ;;  %v5682_v10 = vpop.permute.xlu1 %5681  ;;  %v6205_v17 = vld [vmem:[#allocation4 + $0x2d0] sm:$0xff]  ;;  %v6294_v34 = vld [vmem:[#allocation4 + $0x598] sm:$0xff]  ;;  %v13366_v2 = vmul.f32 0.6931472, %v8038_v31 }
 0x892   : > { %5157 = vst.msk [vmem:[#allocation4 + $0x2e8] sm:$0xff] %vm4587_vm15, %v5146_v61  ;;  %5693 = vst.msk [vmem:[#allocation4 + $0x590] sm:$0xff] %vm4587_vm15, %v5682_v10  ;;  %v7623_v32 = vpack.c.bf16 %v6206_v45, %v6205_v17 }
 0x893   : > { %5507 = vrot.lane.b32.xlu0 %v13162_v28, %s8110_s29  ;;  %5505 = vrot.lane.b32.xlu1 %v13117_v9, %s8110_s29 }
 0x894   : > { %7624 = vmatprep.subr.bf16.mxu1 %v7623_v32 }
 0x895   : > { %v5028_v63 = vpop.permute.xlu0 %5027  ;;  %v5564_v46 = vpop.permute.xlu1 %5563  ;;  %v6189_v6 = vld [vmem:[#allocation4 + $0x250] sm:$0xff]  ;;  %v6278_v62 = vld [vmem:[#allocation4 + $0x518] sm:$0xff] }
 0x896   : > { %5040 = vst.msk [vmem:[#allocation4 + $0x268] sm:$0xff] %vm4587_vm15, %v5028_v63  ;;  %5576 = vst.msk [vmem:[#allocation4 + $0x510] sm:$0xff] %vm4587_vm15, %v5564_v46  ;;  %v7625_v37 = vpack.c.bf16 %v6190_v8, %v6189_v6  ;;  %v13400_v46 = vrot.slane %v14216_v12, %v12801_v36 }
 0x897   : > { %5415 = vrot.lane.b32.xlu0 %v13117_v9, %s8077_s9  ;;  %5413 = vrot.lane.b32.xlu1 %v13134_v59, %s8077_s9 }
 0x898   : > { %7626 = vmatpush3.bf16.msra.mxu1 %v7625_v37  ;;  %v6423_v15 = vcombine.high %v13400_v46, %v13400_v46 }
 0x899   : > { %v5708_v58 = vpop.permute.xlu0 %5707  ;;  %v5144_v23 = vpop.permute.xlu1 %5143  ;;  %v6293_v29 = vld [vmem:[#allocation4 + $0x590] sm:$0xff]  ;;  %v6208_v39 = vld [vmem:[#allocation4 + $0x2e8] sm:$0xff] }
 0x89a   : > { %5721 = vst.msk [vmem:[#allocation4 + $0x5a8] sm:$0xff] %vm4587_vm15, %v5708_v58  ;;  %5156 = vst.msk [vmem:[#allocation4 + $0x2e0] sm:$0xff] %vm4587_vm15, %v5144_v23  ;;  %v7703_v41 = vpack.c.bf16 %v6294_v34, %v6293_v29 }
 0x89b   : > { %5977 = vrot.lane.b32.xlu0 %v13344_v44, %s8112_s16  ;;  %5975 = vrot.lane.b32.xlu1 %v13342_v42, %s8112_s16 }
 0x89c   : > { %7704 = vmatprep.subr.bf16.mxu0 %v7703_v41 }
 0x89d   : > { %v5590_v0 = vpop.permute.xlu0 %5589  ;;  %v5026_v21 = vpop.permute.xlu1 %5025  ;;  %v6277_v55 = vld [vmem:[#allocation4 + $0x510] sm:$0xff]  ;;  %v6192_v11 = vld [vmem:[#allocation4 + $0x268] sm:$0xff] }
 0x89e   : > { %5604 = vst.msk [vmem:[#allocation4 + $0x528] sm:$0xff] %vm4587_vm15, %v5590_v0  ;;  %5039 = vst.msk [vmem:[#allocation4 + $0x260] sm:$0xff] %vm4587_vm15, %v5026_v21  ;;  %v7705_v16 = vpack.c.bf16 %v6278_v62, %v6277_v55 }
 0x89f   : > { %5531 = vrot.lane.b32.xlu0 %v13076_v25, %s8113_s25  ;;  %5529 = vrot.lane.b32.xlu1 %v13100_v13, %s8113_s25 }
 0x8a0   : > { %7706 = vmatpush3.bf16.msra.mxu0 %v7705_v16 }
 0x8a1   : > { %v5170_v40 = vpop.permute.xlu0 %5169  ;;  %v5706_v35 = vpop.permute.xlu1 %5705  ;;  %v6207_v30 = vld [vmem:[#allocation4 + $0x2e0] sm:$0xff]  ;;  %v6296_v22 = vld [vmem:[#allocation4 + $0x5a8] sm:$0xff] }
 0x8a2   : > { %5184 = vst.msk [vmem:[#allocation4 + $0x2f8] sm:$0xff] %vm4587_vm15, %v5170_v40  ;;  %5720 = vst.msk [vmem:[#allocation4 + $0x5a0] sm:$0xff] %vm4587_vm15, %v5706_v35  ;;  %v7627_v53 = vpack.c.bf16 %v6208_v39, %v6207_v30 }
 0x8a3   : > { %5439 = vrot.lane.b32.xlu0 %v13100_v13, %s8108_s27  ;;  %5417 = vrot.lane.b32.xlu1 %v13162_v28, %s8077_s9  ;;  %s8114_s9 = smov 78  }
 0x8a4   : > { %7628 = vmatprep.subr.bf16.mxu1 %v7627_v53 }
 0x8a5   : > { %v5032_v26 = vpop.permute.xlu0 %5031  ;;  %v5568_v27 = vpop.permute.xlu1 %5567  ;;  %v6191_v18 = vld [vmem:[#allocation4 + $0x260] sm:$0xff]  ;;  %v6280_v61 = vld [vmem:[#allocation4 + $0x528] sm:$0xff] }
 0x8a6   : > { %5042 = vst.msk [vmem:[#allocation4 + $0x278] sm:$0xff] %vm4587_vm15, %v5032_v26  ;;  %5578 = vst.msk [vmem:[#allocation4 + $0x520] sm:$0xff] %vm4587_vm15, %v5568_v27  ;;  %v7629_v56 = vpack.c.bf16 %v6192_v11, %v6191_v18 }
 0x8a7   : > { %5981 = vrot.lane.b32.xlu0 %v13366_v2, %s8112_s16  ;;  %5979 = vrot.lane.b32.xlu1 %v13364_v54, %s8112_s16 }
 0x8a8   : > { %7630 = vmatpush3.bf16.msra.mxu1 %v7629_v56 }
 0x8a9   : > { %v5712_v13 = vpop.permute.xlu0 %5711  ;;  %v5148_v51 = vpop.permute.xlu1 %5147  ;;  %v6295_v47 = vld [vmem:[#allocation4 + $0x5a0] sm:$0xff]  ;;  %v6210_v60 = vld [vmem:[#allocation4 + $0x2f8] sm:$0xff] }
 0x8aa   : > { %5723 = vst.msk [vmem:[#allocation4 + $0x5b8] sm:$0xff] %vm4587_vm15, %v5712_v13  ;;  %5158 = vst.msk [vmem:[#allocation4 + $0x2f0] sm:$0xff] %vm4587_vm15, %v5148_v51  ;;  %v7707_v48 = vpack.c.bf16 %v6296_v22, %v6295_v47 }
 0x8ab   : > { %5535 = vrot.lane.b32.xlu0 %v13117_v9, %s8113_s25  ;;  %5533 = vrot.lane.b32.xlu1 %v13134_v59, %s8113_s25 }
 0x8ac   : > { %7708 = vmatprep.subr.bf16.mxu0 %v7707_v48 }
 0x8ad   : > { %v5594_v50 = vpop.permute.xlu0 %5593  ;;  %v5030_v3 = vpop.permute.xlu1 %5029  ;;  %v6279_v49 = vld [vmem:[#allocation4 + $0x520] sm:$0xff]  ;;  %v6194_v5 = vld [vmem:[#allocation4 + $0x278] sm:$0xff] }
 0x8ae   : > { %5606 = vst.msk [vmem:[#allocation4 + $0x538] sm:$0xff] %vm4587_vm15, %v5594_v50  ;;  %5041 = vst.msk [vmem:[#allocation4 + $0x270] sm:$0xff] %vm4587_vm15, %v5030_v3  ;;  %v7709_v10 = vpack.c.bf16 %v6280_v61, %v6279_v49 }
 0x8af   : > { %5443 = vrot.lane.b32.xlu0 %v13134_v59, %s8108_s27  ;;  %5441 = vrot.lane.b32.xlu1 %v13076_v25, %s8108_s27 }
 0x8b0   : > { %7710 = vmatpush3.bf16.msra.mxu0 %v7709_v10 }
 0x8b1   : > { %v5470_v17 = vpop.permute.xlu0 %5469  ;;  %v5710_v45 = vpop.permute.xlu1 %5709  ;;  %v6209_v32 = vld [vmem:[#allocation4 + $0x2f0] sm:$0xff]  ;;  %v6298_v37 = vld [vmem:[#allocation4 + $0x5b8] sm:$0xff] }
 0x8b2   : > { %5484 = vst.msk [vmem:[#allocation4 + $0x488] sm:$0xff] %vm4587_vm15, %v5470_v17  ;;  %5722 = vst.msk [vmem:[#allocation4 + $0x5b0] sm:$0xff] %vm4587_vm15, %v5710_v45  ;;  %v7631_v19 = vpack.c.bf16 %v6210_v60, %v6209_v32 }
 0x8b3   : > { %6005 = vrot.lane.b32.xlu0 %v13342_v42, %s8114_s9  ;;  %5983 = vrot.lane.b32.xlu1 %v13313_v38, %s8112_s16 }
 0x8b4   : > { %7632 = vmatprep.subr.bf16.mxu1 %v7631_v19 }
 0x8b5   : > { %v5358_v59 = vpop.permute.xlu0 %5357  ;;  %v5592_v25 = vpop.permute.xlu1 %5591  ;;  %v6193_v1 = vld [vmem:[#allocation4 + $0x270] sm:$0xff]  ;;  %v6282_v29 = vld [vmem:[#allocation4 + $0x538] sm:$0xff] }
 0x8b6   : > { %5368 = vst.msk [vmem:[#allocation4 + $0x408] sm:$0xff] %vm4587_vm15, %v5358_v59  ;;  %5605 = vst.msk [vmem:[#allocation4 + $0x530] sm:$0xff] %vm4587_vm15, %v5592_v25  ;;  %v7633_v63 = vpack.c.bf16 %v6194_v5, %v6193_v1 }
 0x8b7   : > { %5861 = vrot.lane.b32.xlu0 %v13126_v14, %s8115_s6  ;;  %5537 = vrot.lane.b32.xlu1 %v13162_v28, %s8113_s25 }
 0x8b8   : > { %7634 = vmatpush3.bf16.msra.mxu1 %v7633_v63 }
 0x8b9   : > { %v5736_v6 = vpop.permute.xlu0 %5735  ;;  %v5448_v8 = vpop.permute.xlu1 %5447  ;;  %v6297_v43 = vld [vmem:[#allocation4 + $0x5b0] sm:$0xff]  ;;  %v6260_v0 = vld [vmem:[#allocation4 + $0x488] sm:$0xff] }
 0x8ba   : > { %5750 = vst.msk [vmem:[#allocation4 + $0x5c8] sm:$0xff] %vm4587_vm15, %v5736_v6  ;;  %5458 = vst.msk [vmem:[#allocation4 + $0x480] sm:$0xff] %vm4587_vm15, %v5448_v8  ;;  %v7711_v58 = vpack.c.bf16 %v6298_v37, %v6297_v43 }
 0x8bb   : > { %5769 = vrot.lane.b32.xlu0 %v13067_v4, %s8111_s30  ;;  %5445 = vrot.lane.b32.xlu1 %v13117_v9, %s8108_s27 }
 0x8bc   : > { %7712 = vmatprep.subr.bf16.mxu0 %v7711_v58  ;;  %6665 = vmatmul.mubr.f32.vlgmr.msra.gmra.mrb[28].mxu1 %v13197_v52 }
 0x8bd   : > { %v5598_v28 = vpop.permute.xlu0 %5597  ;;  %v5356_v12 = vpop.permute.xlu1 %5355  ;;  %v6281_v23 = vld [vmem:[#allocation4 + $0x530] sm:$0xff]  ;;  %6804 = vmatprep.mubr.f32.mxu1 %v6423_v15  ;;  %v6244_v33 = vld [vmem:[#allocation4 + $0x408] sm:$0xff] }
 0x8be   : > { %5608 = vst.msk [vmem:[#allocation4 + $0x548] sm:$0xff] %vm4587_vm15, %v5598_v28  ;;  %5367 = vst.msk [vmem:[#allocation4 + $0x400] sm:$0xff] %vm4587_vm15, %v5356_v12  ;;  %v7713_v34 = vpack.c.bf16 %v6282_v29, %v6281_v23 }
 0x8bf   : > { %6009 = vrot.lane.b32.xlu0 %v13364_v54, %s8114_s9  ;;  %6007 = vrot.lane.b32.xlu1 %v13344_v44, %s8114_s9 }
 0x8c0   : > { %7714 = vmatpush3.bf16.msra.mxu0 %v7713_v34 }
 0x8c1   : > { %v5474_v9 = vpop.permute.xlu0 %5473  ;;  %v5714_v41 = vpop.permute.xlu1 %5713  ;;  %v6259_v52 = vld [vmem:[#allocation4 + $0x480] sm:$0xff]  ;;  %v6300_v31 = vld [vmem:[#allocation4 + $0x5c8] sm:$0xff] }
 0x8c2   : > { %5486 = vst.msk [vmem:[#allocation4 + $0x498] sm:$0xff] %vm4587_vm15, %v5474_v9  ;;  %5724 = vst.msk [vmem:[#allocation4 + $0x5c0] sm:$0xff] %vm4587_vm15, %v5714_v41  ;;  %v7667_v21 = vpack.c.bf16 %v6260_v0, %v6259_v52 }
 0x8c3   : > { %5885 = vrot.lane.b32.xlu0 %v13154_v7, %s8116_s10  ;;  %5863 = vrot.lane.b32.xlu1 %v13108_v24, %s8115_s6 }
 0x8c4   : > { %7668 = vmatprep.subr.bf16.mxu1 %v7667_v21 }
 0x8c5   : > { %v5382_v55 = vpop.permute.xlu0 %5381  ;;  %v5596_v62 = vpop.permute.xlu1 %5595  ;;  %v6243_v16 = vld [vmem:[#allocation4 + $0x400] sm:$0xff]  ;;  %v6284_v11 = vld [vmem:[#allocation4 + $0x548] sm:$0xff] }
 0x8c6   : > { %5395 = vst.msk [vmem:[#allocation4 + $0x418] sm:$0xff] %vm4587_vm15, %v5382_v55  ;;  %5607 = vst.msk [vmem:[#allocation4 + $0x540] sm:$0xff] %vm4587_vm15, %v5596_v62  ;;  %v7669_v40 = vpack.c.bf16 %v6244_v33, %v6243_v16 }
 0x8c7   : > { %5773 = vrot.lane.b32.xlu0 %v13108_v24, %s8111_s30  ;;  %5771 = vrot.lane.b32.xlu1 %v13126_v14, %s8111_s30 }
 0x8c8   : > { %7670 = vmatpush3.bf16.msra.mxu1 %v7669_v40 }
 0x8c9   : > { %v5632_v35 = vpop.permute.xlu0 %5631  ;;  %v5472_v30 = vpop.permute.xlu1 %5471  ;;  %v6299_v39 = vld [vmem:[#allocation4 + $0x5c0] sm:$0xff]  ;;  %v6262_v22 = vld [vmem:[#allocation4 + $0x498] sm:$0xff] }
 0x8ca   : > { %5485 = vst.msk [vmem:[#allocation4 + $0x490] sm:$0xff] %vm4587_vm15, %v5472_v30  ;;  %v7715_v53 = vpack.c.bf16 %v6300_v31, %v6299_v39 }
 0x8cb   : > { %6013 = vrot.lane.b32.xlu0 %v13313_v38, %s8114_s9  ;;  %6011 = vrot.lane.b32.xlu1 %v13366_v2, %s8114_s9 }
 0x8cc   : > { %7716 = vmatprep.subr.bf16.mxu0 %v7715_v53 }
 0x8cd   : > { %v5636_v26 = vpop.permute.xlu0 %5635  ;;  %v5380_v27 = vpop.permute.xlu1 %5379  ;;  %v6283_v18 = vld [vmem:[#allocation4 + $0x540] sm:$0xff]  ;;  %v6246_v10 = vld [vmem:[#allocation4 + $0x418] sm:$0xff] }
 0x8ce   : > { %5394 = vst.msk [vmem:[#allocation4 + $0x410] sm:$0xff] %vm4587_vm15, %v5380_v27  ;;  %v7717_v56 = vpack.c.bf16 %v6284_v11, %v6283_v18 }
 0x8cf   : > { %5889 = vrot.lane.b32.xlu0 %v13067_v4, %s8116_s10  ;;  %5887 = vrot.lane.b32.xlu1 %v13090_v57, %s8116_s10 }
 0x8d0   : > { %7718 = vmatpush3.bf16.msra.mxu0 %v7717_v56 }
 0x8d1   : > { %v5740_v13 = vpop.permute.xlu0 %5739  ;;  %v5630_v51 = vpop.permute.xlu1 %5629  ;;  %v6261_v47 = vld [vmem:[#allocation4 + $0x490] sm:$0xff] }
 0x8d2   : > { %5752 = vst.msk [vmem:[#allocation4 + $0x5d8] sm:$0xff] %vm4587_vm15, %v5740_v13  ;;  %v5650_v48 = vsel %vm5649_vm9, %v5630_v51, %v5632_v35  ;;  %v7671_v50 = vpack.c.bf16 %v6262_v22, %v6261_v47 }
 0x8d3   : > { %5660 = vst.msk [vmem:[#allocation4 + $0x550] sm:$0xff] %vm4587_vm15, %v5650_v48  ;;  %5797 = vrot.lane.b32.xlu0 %v13090_v57, %s8117_s17  ;;  %5795 = vrot.lane.b32.xlu1 %v13154_v7, %s8117_s17 }
 0x8d4   : > { %7672 = vmatprep.subr.bf16.mxu1 %v7671_v50 }
 0x8d5   : > { %v5478_v3 = vpop.permute.xlu0 %5477  ;;  %v5634_v49 = vpop.permute.xlu1 %5633  ;;  %v6245_v61 = vld [vmem:[#allocation4 + $0x410] sm:$0xff] }
 0x8d6   : > { %5488 = vst.msk [vmem:[#allocation4 + $0x4a8] sm:$0xff] %vm4587_vm15, %v5478_v3  ;;  %v5651_v17 = vsel %vm5649_vm9, %v5634_v49, %v5636_v26  ;;  %v7673_v45 = vpack.c.bf16 %v6246_v10, %v6245_v61 }
 0x8d7   : > { %5661 = vst.msk [vmem:[#allocation4 + $0x558] sm:$0xff] %vm4587_vm15, %v5651_v17  ;;  %6037 = vrot.lane.b32.xlu0 %v13344_v44, %s8118_s19  ;;  %6035 = vrot.lane.b32.xlu1 %v13342_v42, %s8118_s19 }
 0x8d8   : > { %7674 = vmatpush3.bf16.msra.mxu1 %v7673_v45 }
 0x8d9   : > { %v5386_v32 = vpop.permute.xlu0 %5385  ;;  %v5738_v60 = vpop.permute.xlu1 %5737  ;;  %v6302_v6 = vld [vmem:[#allocation4 + $0x5d8] sm:$0xff] }
 0x8da   : > { %5397 = vst.msk [vmem:[#allocation4 + $0x428] sm:$0xff] %vm4587_vm15, %v5386_v32  ;;  %5751 = vst.msk [vmem:[#allocation4 + $0x5d0] sm:$0xff] %vm4587_vm15, %v5738_v60  ;;  %v6285_v43 = vld [vmem:[#allocation4 + $0x550] sm:$0xff] }
 0x8db   : > { %5893 = vrot.lane.b32.xlu0 %v13108_v24, %s8116_s10  ;;  %5891 = vrot.lane.b32.xlu1 %v13126_v14, %s8116_s10 }
 0x8dd   : > { %v5640_v19 = vpop.permute.xlu0 %5639  ;;  %v5476_v59 = vpop.permute.xlu1 %5475  ;;  %v6264_v12 = vld [vmem:[#allocation4 + $0x4a8] sm:$0xff] }
 0x8de   : > { %5487 = vst.msk [vmem:[#allocation4 + $0x4a0] sm:$0xff] %vm4587_vm15, %v5476_v59  ;;  %v6286_v25 = vld [vmem:[#allocation4 + $0x558] sm:$0xff] }
 0x8df   : > { %5801 = vrot.lane.b32.xlu0 %v13126_v14, %s8117_s17  ;;  %5799 = vrot.lane.b32.xlu1 %v13067_v4, %s8117_s17  ;;  %v7721_v37 = vpack.c.bf16 %v6286_v25, %v6285_v43  ;;  %v8121_v43 = vmov 0.0|0.0  }
 0x8e1   : > { %v5644_v1 = vpop.permute.xlu0 %5643  ;;  %v5384_v5 = vpop.permute.xlu1 %5383  ;;  %v6301_v63 = vld [vmem:[#allocation4 + $0x5d0] sm:$0xff]  ;;  %v6248_v52 = vld [vmem:[#allocation4 + $0x428] sm:$0xff] }
 0x8e2   : > { %5396 = vst.msk [vmem:[#allocation4 + $0x420] sm:$0xff] %vm4587_vm15, %v5384_v5  ;;  %v7719_v8 = vpack.c.bf16 %v6302_v6, %v6301_v63 }
 0x8e3   : > { %6041 = vrot.lane.b32.xlu0 %v13366_v2, %s8118_s19  ;;  %6039 = vrot.lane.b32.xlu1 %v13364_v54, %s8118_s19 }
 0x8e4   : > { %7720 = vmatprep.subr.bf16.mxu0 %v7719_v8 }
 0x8e5   : > { %v5744_v15 = vpop.permute.xlu0 %5743  ;;  %7722 = vmatpush3.bf16.msra.mxu0 %v7721_v37  ;;  %v5638_v58 = vpop.permute.xlu1 %5637  ;;  %v6263_v28 = vld [vmem:[#allocation4 + $0x4a0] sm:$0xff] }
 0x8e6   : > { %5754 = vst.msk [vmem:[#allocation4 + $0x5e8] sm:$0xff] %vm4587_vm15, %v5744_v15  ;;  %v5652_v23 = vsel %vm5649_vm9, %v5638_v58, %v5640_v19  ;;  %v7675_v29 = vpack.c.bf16 %v6264_v12, %v6263_v28 }
 0x8e7   : > { %5662 = vst.msk [vmem:[#allocation4 + $0x560] sm:$0xff] %vm4587_vm15, %v5652_v23  ;;  %5917 = vrot.lane.b32.xlu0 %v13344_v44, %s8061_s15  ;;  %5915 = vrot.lane.b32.xlu1 %v13342_v42, %s8061_s15 }
 0x8e8   : > { %7676 = vmatprep.subr.bf16.mxu1 %v7675_v29 }
 0x8e9   : > { %v5502_v34 = vpop.permute.xlu0 %5501  ;;  %v5642_v9 = vpop.permute.xlu1 %5641  ;;  %v6247_v41 = vld [vmem:[#allocation4 + $0x420] sm:$0xff] }
 0x8ea   : > { %5515 = vst.msk [vmem:[#allocation4 + $0x4b8] sm:$0xff] %vm4587_vm15, %v5502_v34  ;;  %v5653_v0 = vsel %vm5649_vm9, %v5642_v9, %v5644_v1  ;;  %v7677_v21 = vpack.c.bf16 %v6248_v52, %v6247_v41  ;;  %v7326_v9 = vpop.f32.mrb[24].mxu1 }
 0x8eb   : > { %5663 = vst.msk [vmem:[#allocation4 + $0x568] sm:$0xff] %vm4587_vm15, %v5653_v0  ;;  %5825 = vrot.lane.b32.xlu0 %v13154_v7, %s8119_s14  ;;  %5803 = vrot.lane.b32.xlu1 %v13108_v24, %s8117_s17 }
 0x8ec   : > { %7678 = vmatpush3.bf16.msra.mxu1 %v7677_v21 }
 0x8ed   : > { %v5410_v55 = vpop.permute.xlu0 %5409  ;;  %v5742_v62 = vpop.permute.xlu1 %5741  ;;  %v6304_v31 = vld [vmem:[#allocation4 + $0x5e8] sm:$0xff] }
 0x8ee   : > { %5424 = vst.msk [vmem:[#allocation4 + $0x438] sm:$0xff] %vm4587_vm15, %v5410_v55  ;;  %5753 = vst.msk [vmem:[#allocation4 + $0x5e0] sm:$0xff] %vm4587_vm15, %v5742_v62  ;;  %v6287_v26 = vld [vmem:[#allocation4 + $0x560] sm:$0xff] }
 0x8ef   : > { %6065 = vrot.lane.b32.xlu0 %v13342_v42, %s8120_s11  ;;  %6043 = vrot.lane.b32.xlu1 %v13313_v38, %s8118_s19 }
 0x8f1   : > { %v5648_v16 = vpop.permute.xlu0 %5647  ;;  %v5500_v33 = vpop.permute.xlu1 %5499  ;;  %v6266_v13 = vld [vmem:[#allocation4 + $0x4b8] sm:$0xff] }
 0x8f2   : > { %5514 = vst.msk [vmem:[#allocation4 + $0x4b0] sm:$0xff] %vm4587_vm15, %v5500_v33  ;;  %v6288_v40 = vld [vmem:[#allocation4 + $0x568] sm:$0xff] }
 0x8f3   : > { %5921 = vrot.lane.b32.xlu0 %v13366_v2, %s8061_s15  ;;  %5919 = vrot.lane.b32.xlu1 %v13364_v54, %s8061_s15  ;;  %v7725_v27 = vpack.c.bf16 %v6288_v40, %v6287_v26 }
 0x8f5   : > { %v5768_v35 = vpop.permute.xlu0 %5767  ;;  %v5388_v30 = vpop.permute.xlu1 %5387  ;;  %v6303_v39 = vld [vmem:[#allocation4 + $0x5e0] sm:$0xff]  ;;  %v6250_v3 = vld [vmem:[#allocation4 + $0x438] sm:$0xff] }
 0x8f6   : > { %5781 = vst.msk [vmem:[#allocation4 + $0x5f8] sm:$0xff] %vm4587_vm15, %v5768_v35  ;;  %5398 = vst.msk [vmem:[#allocation4 + $0x430] sm:$0xff] %vm4587_vm15, %v5388_v30  ;;  %v7723_v53 = vpack.c.bf16 %v6304_v31, %v6303_v39  ;;  %v14218_v31 = vld [vmem:[#allocation16_spill] sm:$0xff] }
 0x8f7   : > { %5829 = vrot.lane.b32.xlu0 %v13067_v4, %s8119_s14  ;;  %5827 = vrot.lane.b32.xlu1 %v13090_v57, %s8119_s14 }
 0x8f8   : > { %7724 = vmatprep.subr.bf16.mxu0 %v7723_v53  ;;  %v6425_v53 = vcombine.high %v14218_v31, %v14218_v31 }
 0x8f9   : > { %v5504_v18 = vpop.permute.xlu0 %5503  ;;  %7726 = vmatpush3.bf16.msra.mxu0 %v7725_v27  ;;  %v5646_v11 = vpop.permute.xlu1 %5645  ;;  %v6265_v56 = vld [vmem:[#allocation4 + $0x4b0] sm:$0xff] }
 0x8fa   : > { %5516 = vst.msk [vmem:[#allocation4 + $0x4c0] sm:$0xff] %vm4587_vm15, %v5504_v18  ;;  %v5654_v51 = vsel %vm5649_vm9, %v5646_v11, %v5648_v16  ;;  %v7679_v47 = vpack.c.bf16 %v6266_v13, %v6265_v56  ;;  %v14217_v16 = vld [vmem:[#allocation17_spill] sm:$0xff] }
 0x8fb   : > { %5664 = vst.msk [vmem:[#allocation4 + $0x570] sm:$0xff] %vm4587_vm15, %v5654_v51  ;;  %6069 = vrot.lane.b32.xlu0 %v13364_v54, %s8120_s11  ;;  %6067 = vrot.lane.b32.xlu1 %v13344_v44, %s8120_s11 }
 0x8fc   : > { %7680 = vmatprep.subr.bf16.mxu1 %v7679_v47 }
 0x8fd   : > { %v5412_v22 = vpop.permute.xlu0 %5411  ;;  %v5766_v48 = vpop.permute.xlu1 %5765  ;;  %v6249_v50 = vld [vmem:[#allocation4 + $0x430] sm:$0xff]  ;;  %v6306_v60 = vld [vmem:[#allocation4 + $0x5f8] sm:$0xff] }
 0x8fe   : > { %5425 = vst.msk [vmem:[#allocation4 + $0x440] sm:$0xff] %vm4587_vm15, %v5412_v22  ;;  %5780 = vst.msk [vmem:[#allocation4 + $0x5f0] sm:$0xff] %vm4587_vm15, %v5766_v48  ;;  %v7681_v49 = vpack.c.bf16 %v6250_v3, %v6249_v50 }
 0x8ff   : > { %5945 = vrot.lane.b32.xlu0 %v13342_v42, %s8076_s7  ;;  %5923 = vrot.lane.b32.xlu1 %v13313_v38, %s8061_s15  ;;  %s8122_s15 = smov 33  }
 0x900   : > { %7682 = vmatpush3.bf16.msra.mxu1 %v7681_v49 }
 0x901   : > { %v5954_v61 = vpop.permute.xlu0 %5953  ;;  %v5676_v10 = vpop.permute.xlu1 %5675  ;;  %v6267_v6 = vld [vmem:[#allocation4 + $0x4c0] sm:$0xff] }
 0x902   : > { %5964 = vst.msk [vmem:[#allocation4 + $0x700] sm:$0xff] %vm4587_vm15, %v5954_v61  ;;  %5690 = vst.msk [vmem:[#allocation4 + $0x578] sm:$0xff] %vm4587_vm15, %v5676_v10  ;;  %v6289_v25 = vld [vmem:[#allocation4 + $0x570] sm:$0xff] }
 0x903   : > { %5833 = vrot.lane.b32.xlu0 %v13108_v24, %s8119_s14  ;;  %5831 = vrot.lane.b32.xlu1 %v13126_v14, %s8119_s14 }
 0x905   : > { %v5508_v17 = vpop.permute.xlu0 %5507  ;;  %v5506_v45 = vpop.permute.xlu1 %5505  ;;  %v6305_v32 = vld [vmem:[#allocation4 + $0x5f0] sm:$0xff]  ;;  %v6251_v28 = vld [vmem:[#allocation4 + $0x440] sm:$0xff] }
 0x906   : > { %5518 = vst.msk [vmem:[#allocation4 + $0x4d0] sm:$0xff] %vm4587_vm15, %v5508_v17  ;;  %5517 = vst.msk [vmem:[#allocation4 + $0x4c8] sm:$0xff] %vm4587_vm15, %v5506_v45  ;;  %v7727_v19 = vpack.c.bf16 %v6306_v60, %v6305_v32 }
 0x907   : > { %6073 = vrot.lane.b32.xlu0 %v13313_v38, %s8120_s11  ;;  %6071 = vrot.lane.b32.xlu1 %v13366_v2, %s8120_s11 }
 0x908   : > { %7728 = vmatprep.subr.bf16.mxu0 %v7727_v19 }
 0x909   : > { %v5416_v24 = vpop.permute.xlu0 %5415  ;;  %v5414_v59 = vpop.permute.xlu1 %5413  ;;  %v6290_v14 = vld [vmem:[#allocation4 + $0x578] sm:$0xff] }
 0x90a   : > { %5427 = vst.msk [vmem:[#allocation4 + $0x450] sm:$0xff] %vm4587_vm15, %v5416_v24  ;;  %5426 = vst.msk [vmem:[#allocation4 + $0x448] sm:$0xff] %vm4587_vm15, %v5414_v59  ;;  %v7729_v1 = vpack.c.bf16 %v6290_v14, %v6289_v25 }
 0x90b   : > { %5949 = vrot.lane.b32.xlu0 %v13364_v54, %s8076_s7  ;;  %5947 = vrot.lane.b32.xlu1 %v13344_v44, %s8076_s7 }
 0x90c   : > { %7730 = vmatpush3.bf16.msra.mxu0 %v7729_v1 }
 0x90d   : > { %v5978_v5 = vpop.permute.xlu0 %5977  ;;  %v5976_v63 = vpop.permute.xlu1 %5975  ;;  %v6268_v8 = vld [vmem:[#allocation4 + $0x4c8] sm:$0xff]  ;;  %7763 = vmatprep.subr.bf16.mxu0 %v8121_v43  ;;  %v6269_v21 = vld [vmem:[#allocation4 + $0x4d0] sm:$0xff] }
 0x90e   : > { %5991 = vst.msk [vmem:[#allocation4 + $0x710] sm:$0xff] %vm4587_vm15, %v5978_v5  ;;  %5990 = vst.msk [vmem:[#allocation4 + $0x708] sm:$0xff] %vm4587_vm15, %v5976_v63  ;;  %v7683_v37 = vpack.c.bf16 %v6268_v8, %v6267_v6  ;;  %v13588_v5 = vrot.slane %v14218_v31, %v12801_v36 }
 0x90f   : > { %5857 = vrot.lane.b32.xlu0 %v13090_v57, %s8115_s6  ;;  %5855 = vrot.lane.b32.xlu1 %v13154_v7, %s8115_s6 }
 0x910   : > { %7684 = vmatprep.subr.bf16.mxu1 %v7683_v37  ;;  %6875 = vmatmul.mubr.f32.vlgmr.msra.gmra.mrb[26].mxu0 %v13332_v20  ;;  %v6339_v20 = vld [vmem:[#allocation4 + $0x700] sm:$0xff] }
 0x911   : > { %v5532_v15 = vpop.permute.xlu0 %5531  ;;  %v5530_v58 = vpop.permute.xlu1 %5529  ;;  %v6252_v12 = vld [vmem:[#allocation4 + $0x448] sm:$0xff]  ;;  %v6253_v30 = vld [vmem:[#allocation4 + $0x450] sm:$0xff] }
 0x912   : > { %5545 = vst.msk [vmem:[#allocation4 + $0x4e0] sm:$0xff] %vm4587_vm15, %v5532_v15  ;;  %5544 = vst.msk [vmem:[#allocation4 + $0x4d8] sm:$0xff] %vm4587_vm15, %v5530_v58  ;;  %v7685_v23 = vpack.c.bf16 %v6252_v12, %v6251_v28  ;;  %v6440_v58 = vcombine.high %v13588_v5, %v13588_v5 }
 0x913   : > { %6097 = vrot.lane.b32.xlu0 %v13344_v44, %s8122_s15  ;;  %6095 = vrot.lane.b32.xlu1 %v13342_v42, %s8122_s15  ;;  %v7327_v44 = vpop.f32.mrb[25].mxu1 }
 0x914   : > { %7686 = vmatpush3.bf16.msra.mxu1 %v7685_v23  ;;  %v13551_v42 = vadd.f32 %v7327_v44, %v7326_v9  ;;  %v7361_v41 = vpop.f32.mrb[26].mxu1 }
 0x915   : > { %v5440_v57 = vpop.permute.xlu0 %5439  ;;  %v5418_v7 = vpop.permute.xlu1 %5417  ;;  %v6340_v29 = vld [vmem:[#allocation4 + $0x708] sm:$0xff]  ;;  %v6341_v11 = vld [vmem:[#allocation4 + $0x710] sm:$0xff] }
 0x916   : > { %5454 = vst.msk [vmem:[#allocation4 + $0x460] sm:$0xff] %vm4587_vm15, %v5440_v57  ;;  %5428 = vst.msk [vmem:[#allocation4 + $0x458] sm:$0xff] %vm4587_vm15, %v5418_v7  ;;  %v7764_v34 = vpack.c.bf16 %v6340_v29, %v6339_v20 }
 0x917   : > { %6101 = vrot.lane.b32.xlu0 %v13366_v2, %s8122_s15  ;;  %5951 = vrot.lane.b32.xlu1 %v13366_v2, %s8076_s7  ;;  %v7362_v2 = vpop.f32.mrb[27].mxu1 }
 0x918   : > { %7765 = vmatpush1.bf16.msra.mxu0 %v7764_v34  ;;  %v13559_v33 = vadd.f32 %v7362_v2, %v7361_v41 }
 0x919   : > { %v5982_v52 = vpop.permute.xlu0 %5981  ;;  %v5980_v0 = vpop.permute.xlu1 %5979  ;;  %v6270_v55 = vld [vmem:[#allocation4 + $0x4d8] sm:$0xff]  ;;  %7766 = vmatprep.subr.bf16.mxu0 %v8121_v43  ;;  %v6271_v22 = vld [vmem:[#allocation4 + $0x4e0] sm:$0xff] }
 0x91a   : > { %5993 = vst.msk [vmem:[#allocation4 + $0x720] sm:$0xff] %vm4587_vm15, %v5982_v52  ;;  %5992 = vst.msk [vmem:[#allocation4 + $0x718] sm:$0xff] %vm4587_vm15, %v5980_v0  ;;  %v7687_v62 = vpack.c.bf16 %v6270_v55, %v6269_v21 }
 0x91b   : > { %6367 = vperm.xlu0 %7887, %v14217_v16   ;;  %5859 = vrot.lane.b32.xlu1 %v13067_v4, %s8115_s6  ;;  %v13568_v4 = vrot.slane %v6425_v53, %v12801_v36 }
 0x91c   : > { %7688 = vmatprep.subr.bf16.mxu1 %v7687_v62 }
 0x91d   : > { %v5536_v40 = vpop.permute.xlu0 %5535  ;;  %v5534_v35 = vpop.permute.xlu1 %5533  ;;  %v6254_v39 = vld [vmem:[#allocation4 + $0x458] sm:$0xff]  ;;  %v6441_v13 = vcombine.high %v13568_v4, %v13568_v4  ;;  %v6255_v61 = vld [vmem:[#allocation4 + $0x460] sm:$0xff] }
 0x91e   : > { %5547 = vst.msk [vmem:[#allocation4 + $0x4f0] sm:$0xff] %vm4587_vm15, %v5536_v40  ;;  %5546 = vst.msk [vmem:[#allocation4 + $0x4e8] sm:$0xff] %vm4587_vm15, %v5534_v35  ;;  %v7689_v26 = vpack.c.bf16 %v6254_v39, %v6253_v30 }
 0x91f   : > { %6099 = vrot.lane.b32.xlu1 %v13364_v54, %s8122_s15  ;;  %7247 = vmatprep.mubr.msk.f32.mxu0 %vm6457_vm10, %v6441_v13 }
 0x920   : > { %7690 = vmatpush3.bf16.msra.mxu1 %v7689_v26 }
 0x921   : > { %v5444_v27 = vpop.permute.xlu0 %5443  ;;  %v5442_v18 = vpop.permute.xlu1 %5441  ;;  %v6342_v56 = vld [vmem:[#allocation4 + $0x718] sm:$0xff]  ;;  %v6343_v32 = vld [vmem:[#allocation4 + $0x720] sm:$0xff] }
 0x922   : > { %5456 = vst.msk [vmem:[#allocation4 + $0x470] sm:$0xff] %vm4587_vm15, %v5444_v27  ;;  %5455 = vst.msk [vmem:[#allocation4 + $0x468] sm:$0xff] %vm4587_vm15, %v5442_v18  ;;  %v7767_v51 = vpack.c.bf16 %v6342_v56, %v6341_v11 }
 0x923   : > { %6103 = vrot.lane.b32.xlu1 %v13313_v38, %s8122_s15 }
 0x924   : > { %7768 = vmatpush1.bf16.msra.mxu0 %v7767_v51 }
 0x925   : > { %v6006_v54 = vpop.permute.xlu0 %6005  ;;  %v5984_v47 = vpop.permute.xlu1 %5983  ;;  %v6272_v48 = vld [vmem:[#allocation4 + $0x4e8] sm:$0xff]  ;;  %7769 = vmatprep.subr.bf16.mxu0 %v8121_v43  ;;  %v6273_v25 = vld [vmem:[#allocation4 + $0x4f0] sm:$0xff] }
 0x926   : > { %6020 = vst.msk [vmem:[#allocation4 + $0x730] sm:$0xff] %vm4587_vm15, %v6006_v54  ;;  %5994 = vst.msk [vmem:[#allocation4 + $0x728] sm:$0xff] %vm4587_vm15, %v5984_v47  ;;  %v7691_v50 = vpack.c.bf16 %v6272_v48, %v6271_v22 }
 0x928   : > { %7692 = vmatprep.subr.bf16.mxu1 %v7691_v50 }
 0x929   : > { %v5862_v3 = vpop.permute.xlu0 %5861  ;;  %v5538_v49 = vpop.permute.xlu1 %5537  ;;  %v6256_v10 = vld [vmem:[#allocation4 + $0x468] sm:$0xff]  ;;  %v6257_v8 = vld [vmem:[#allocation4 + $0x470] sm:$0xff] }
 0x92a   : > { %5873 = vst.msk [vmem:[#allocation4 + $0x680] sm:$0xff] %vm4587_vm15, %v5862_v3  ;;  %5548 = vst.msk [vmem:[#allocation4 + $0x4f8] sm:$0xff] %vm4587_vm15, %v5538_v49  ;;  %v7693_v38 = vpack.c.bf16 %v6256_v10, %v6255_v61 }
 0x92c   : > { %7694 = vmatpush3.bf16.msra.mxu1 %v7693_v38 }
 0x92d   : > { %v5770_v17 = vpop.permute.xlu0 %5769  ;;  %v5446_v45 = vpop.permute.xlu1 %5445  ;;  %v6344_v60 = vld [vmem:[#allocation4 + $0x728] sm:$0xff]  ;;  %v6345_v23 = vld [vmem:[#allocation4 + $0x730] sm:$0xff] }
 0x92e   : > { %5782 = vst.msk [vmem:[#allocation4 + $0x600] sm:$0xff] %vm4587_vm15, %v5770_v17  ;;  %5457 = vst.msk [vmem:[#allocation4 + $0x478] sm:$0xff] %vm4587_vm15, %v5446_v45  ;;  %v7770_v19 = vpack.c.bf16 %v6344_v60, %v6343_v32 }
 0x930   : > { %7771 = vmatpush1.bf16.msra.mxu0 %v7770_v19 }
 0x931   : > { %v6010_v24 = vpop.permute.xlu0 %6009  ;;  %v6008_v59 = vpop.permute.xlu1 %6007  ;;  %v6274_v14 = vld [vmem:[#allocation4 + $0x4f8] sm:$0xff]  ;;  %7772 = vmatprep.subr.bf16.mxu0 %v8121_v43  ;;  %v6323_v29 = vld [vmem:[#allocation4 + $0x680] sm:$0xff] }
 0x932   : > { %6022 = vst.msk [vmem:[#allocation4 + $0x740] sm:$0xff] %vm4587_vm15, %v6010_v24  ;;  %6021 = vst.msk [vmem:[#allocation4 + $0x738] sm:$0xff] %vm4587_vm15, %v6008_v59  ;;  %v7695_v1 = vpack.c.bf16 %v6274_v14, %v6273_v25 }
 0x934   : > { %7696 = vmatprep.subr.bf16.mxu1 %v7695_v1 }
 0x935   : > { %v5886_v63 = vpop.permute.xlu0 %5885  ;;  %v5864_v6 = vpop.permute.xlu1 %5863  ;;  %v6258_v37 = vld [vmem:[#allocation4 + $0x478] sm:$0xff]  ;;  %v6307_v52 = vld [vmem:[#allocation4 + $0x600] sm:$0xff] }
 0x936   : > { %5900 = vst.msk [vmem:[#allocation4 + $0x690] sm:$0xff] %vm4587_vm15, %v5886_v63  ;;  %5874 = vst.msk [vmem:[#allocation4 + $0x688] sm:$0xff] %vm4587_vm15, %v5864_v6  ;;  %v7697_v15 = vpack.c.bf16 %v6258_v37, %v6257_v8 }
 0x938   : > { %7698 = vmatpush3.bf16.msra.mxu1 %v7697_v15 }
 0x939   : > { %v5774_v28 = vpop.permute.xlu0 %5773  ;;  %v5772_v12 = vpop.permute.xlu1 %5771  ;;  %v6346_v57 = vld [vmem:[#allocation4 + $0x738] sm:$0xff]  ;;  %v6347_v62 = vld [vmem:[#allocation4 + $0x740] sm:$0xff] }
 0x93a   : > { %5784 = vst.msk [vmem:[#allocation4 + $0x610] sm:$0xff] %vm4587_vm15, %v5774_v28  ;;  %5783 = vst.msk [vmem:[#allocation4 + $0x608] sm:$0xff] %vm4587_vm15, %v5772_v12  ;;  %v7773_v36 = vpack.c.bf16 %v6346_v57, %v6345_v23 }
 0x93b   : > { %6805 = vmatmul.mubr.f32.vlgmr.msra.gmra.mrb[30].mxu1 %v13400_v46 }
 0x93c   : > { %7774 = vmatpush1.bf16.msra.mxu0 %v7773_v36  ;;  %6944 = vmatprep.mubr.f32.mxu1 %v6440_v58 }
 0x93d   : > { %v6014_v7 = vpop.permute.xlu0 %6013  ;;  %v6012_v20 = vpop.permute.xlu1 %6011  ;;  %v6324_v34 = vld [vmem:[#allocation4 + $0x688] sm:$0xff]  ;;  %7775 = vmatprep.subr.bf16.mxu0 %v8121_v43  ;;  %v6325_v30 = vld [vmem:[#allocation4 + $0x690] sm:$0xff] }
 0x93e   : > { %6024 = vst.msk [vmem:[#allocation4 + $0x750] sm:$0xff] %vm4587_vm15, %v6014_v7  ;;  %6023 = vst.msk [vmem:[#allocation4 + $0x748] sm:$0xff] %vm4587_vm15, %v6012_v20  ;;  %v7731_v9 = vpack.c.bf16 %v6324_v34, %v6323_v29 }
 0x940   : > { %7732 = vmatprep.subr.bf16.mxu1 %v7731_v9 }
 0x941   : > { %v5890_v44 = vpop.permute.xlu0 %5889  ;;  %v5888_v41 = vpop.permute.xlu1 %5887  ;;  %v6308_v0 = vld [vmem:[#allocation4 + $0x608] sm:$0xff]  ;;  %v6309_v27 = vld [vmem:[#allocation4 + $0x610] sm:$0xff] }
 0x942   : > { %5902 = vst.msk [vmem:[#allocation4 + $0x6a0] sm:$0xff] %vm4587_vm15, %v5890_v44  ;;  %5901 = vst.msk [vmem:[#allocation4 + $0x698] sm:$0xff] %vm4587_vm15, %v5888_v41  ;;  %v7733_v46 = vpack.c.bf16 %v6308_v0, %v6307_v52 }
 0x944   : > { %7734 = vmatpush3.bf16.msra.mxu1 %v7733_v46 }
 0x945   : > { %v5798_v21 = vpop.permute.xlu0 %5797  ;;  %v5796_v55 = vpop.permute.xlu1 %5795  ;;  %v6348_v16 = vld [vmem:[#allocation4 + $0x748] sm:$0xff]  ;;  %v6349_v51 = vld [vmem:[#allocation4 + $0x750] sm:$0xff] }
 0x946   : > { %5811 = vst.msk [vmem:[#allocation4 + $0x620] sm:$0xff] %vm4587_vm15, %v5798_v21  ;;  %5810 = vst.msk [vmem:[#allocation4 + $0x618] sm:$0xff] %vm4587_vm15, %v5796_v55  ;;  %v7776_v2 = vpack.c.bf16 %v6348_v16, %v6347_v62 }
 0x948   : > { %7777 = vmatpush1.bf16.msra.mxu0 %v7776_v2 }
 0x949   : > { %v6038_v40 = vpop.permute.xlu0 %6037  ;;  %v6036_v35 = vpop.permute.xlu1 %6035  ;;  %v6326_v39 = vld [vmem:[#allocation4 + $0x698] sm:$0xff]  ;;  %7778 = vmatprep.subr.bf16.mxu0 %v8121_v43  ;;  %v6327_v49 = vld [vmem:[#allocation4 + $0x6a0] sm:$0xff] }
 0x94a   : > { %6051 = vst.msk [vmem:[#allocation4 + $0x760] sm:$0xff] %vm4587_vm15, %v6038_v40  ;;  %6050 = vst.msk [vmem:[#allocation4 + $0x758] sm:$0xff] %vm4587_vm15, %v6036_v35  ;;  %v7735_v31 = vpack.c.bf16 %v6326_v39, %v6325_v30 }
 0x94c   : > { %7736 = vmatprep.subr.bf16.mxu1 %v7735_v31 }
 0x94d   : > { %v5894_v53 = vpop.permute.xlu0 %5893  ;;  %v5892_v26 = vpop.permute.xlu1 %5891  ;;  %v6310_v18 = vld [vmem:[#allocation4 + $0x618] sm:$0xff]  ;;  %v6311_v32 = vld [vmem:[#allocation4 + $0x620] sm:$0xff] }
 0x94e   : > { %5904 = vst.msk [vmem:[#allocation4 + $0x6b0] sm:$0xff] %vm4587_vm15, %v5894_v53  ;;  %5903 = vst.msk [vmem:[#allocation4 + $0x6a8] sm:$0xff] %vm4587_vm15, %v5892_v26  ;;  %v7737_v11 = vpack.c.bf16 %v6310_v18, %v6309_v27 }
 0x950   : > { %7738 = vmatpush3.bf16.msra.mxu1 %v7737_v11 }
 0x951   : > { %v5802_v56 = vpop.permute.xlu0 %5801  ;;  %v5800_v13 = vpop.permute.xlu1 %5799  ;;  %v6350_v54 = vld [vmem:[#allocation4 + $0x758] sm:$0xff]  ;;  %v6351_v25 = vld [vmem:[#allocation4 + $0x760] sm:$0xff] }
 0x952   : > { %5813 = vst.msk [vmem:[#allocation4 + $0x630] sm:$0xff] %vm4587_vm15, %v5802_v56  ;;  %5812 = vst.msk [vmem:[#allocation4 + $0x628] sm:$0xff] %vm4587_vm15, %v5800_v13  ;;  %v7779_v47 = vpack.c.bf16 %v6350_v54, %v6349_v51 }
 0x953   : > { %v7431_v22 = vpop.f32.mrb[24].mxu0 }
 0x954   : > { %7780 = vmatpush1.bf16.msra.mxu0 %v7779_v47  ;;  %v7432_v48 = vpop.f32.mrb[25].mxu0 }
 0x955   : > { %v6042_v50 = vpop.permute.xlu0 %6041  ;;  %v6040_v3 = vpop.permute.xlu1 %6039  ;;  %v6328_v61 = vld [vmem:[#allocation4 + $0x6a8] sm:$0xff]  ;;  %7781 = vmatprep.subr.bf16.mxu0 %v8121_v43  ;;  %v13612_v10 = vadd.f32 %v7432_v48, %v7431_v22  ;;  %v6329_v8 = vld [vmem:[#allocation4 + $0x6b0] sm:$0xff] }
 0x956   : > { %6053 = vst.msk [vmem:[#allocation4 + $0x770] sm:$0xff] %vm4587_vm15, %v6042_v50  ;;  %6052 = vst.msk [vmem:[#allocation4 + $0x768] sm:$0xff] %vm4587_vm15, %v6040_v3  ;;  %v7739_v38 = vpack.c.bf16 %v6328_v61, %v6327_v49 }
 0x958   : > { %7740 = vmatprep.subr.bf16.mxu1 %v7739_v38 }
 0x959   : > { %v5918_v17 = vpop.permute.xlu0 %5917  ;;  %v5916_v45 = vpop.permute.xlu1 %5915  ;;  %v6312_v60 = vld [vmem:[#allocation4 + $0x628] sm:$0xff]  ;;  %v6313_v12 = vld [vmem:[#allocation4 + $0x630] sm:$0xff] }
 0x95a   : > { %5931 = vst.msk [vmem:[#allocation4 + $0x6c0] sm:$0xff] %vm4587_vm15, %v5918_v17  ;;  %5930 = vst.msk [vmem:[#allocation4 + $0x6b8] sm:$0xff] %vm4587_vm15, %v5916_v45  ;;  %v7741_v19 = vpack.c.bf16 %v6312_v60, %v6311_v32 }
 0x95c   : > { %7742 = vmatpush3.bf16.msra.mxu1 %v7741_v19 }
 0x95d   : > { %v5826_v24 = vpop.permute.xlu0 %5825  ;;  %v5804_v59 = vpop.permute.xlu1 %5803  ;;  %v6352_v14 = vld [vmem:[#allocation4 + $0x768] sm:$0xff]  ;;  %v6353_v20 = vld [vmem:[#allocation4 + $0x770] sm:$0xff] }
 0x95e   : > { %5840 = vst.msk [vmem:[#allocation4 + $0x640] sm:$0xff] %vm4587_vm15, %v5826_v24  ;;  %5814 = vst.msk [vmem:[#allocation4 + $0x638] sm:$0xff] %vm4587_vm15, %v5804_v59  ;;  %v7782_v1 = vpack.c.bf16 %v6352_v14, %v6351_v25 }
 0x960   : > { %7783 = vmatpush1.bf16.msra.mxu0 %v7782_v1 }
 0x961   : > { %v6066_v63 = vpop.permute.xlu0 %6065  ;;  %v6044_v6 = vpop.permute.xlu1 %6043  ;;  %v6330_v37 = vld [vmem:[#allocation4 + $0x6b8] sm:$0xff]  ;;  %7784 = vmatprep.subr.bf16.mxu0 %v8121_v43  ;;  %v6331_v41 = vld [vmem:[#allocation4 + $0x6c0] sm:$0xff] }
 0x962   : > { %6080 = vst.msk [vmem:[#allocation4 + $0x780] sm:$0xff] %vm4587_vm15, %v6066_v63  ;;  %6054 = vst.msk [vmem:[#allocation4 + $0x778] sm:$0xff] %vm4587_vm15, %v6044_v6  ;;  %v7743_v15 = vpack.c.bf16 %v6330_v37, %v6329_v8 }
 0x964   : > { %7744 = vmatprep.subr.bf16.mxu1 %v7743_v15 }
 0x965   : > { %v5922_v58 = vpop.permute.xlu0 %5921  ;;  %v5920_v28 = vpop.permute.xlu1 %5919  ;;  %v6314_v23 = vld [vmem:[#allocation4 + $0x638] sm:$0xff]  ;;  %v6315_v55 = vld [vmem:[#allocation4 + $0x640] sm:$0xff] }
 0x966   : > { %5933 = vst.msk [vmem:[#allocation4 + $0x6d0] sm:$0xff] %vm4587_vm15, %v5922_v58  ;;  %5932 = vst.msk [vmem:[#allocation4 + $0x6c8] sm:$0xff] %vm4587_vm15, %v5920_v28  ;;  %v7745_v57 = vpack.c.bf16 %v6314_v23, %v6313_v12 }
 0x968   : > { %7746 = vmatpush3.bf16.msra.mxu1 %v7745_v57 }
 0x969   : > { %v5830_v36 = vpop.permute.xlu0 %5829  ;;  %v5828_v7 = vpop.permute.xlu1 %5827  ;;  %v6354_v29 = vld [vmem:[#allocation4 + $0x778] sm:$0xff]  ;;  %v6355_v35 = vld [vmem:[#allocation4 + $0x780] sm:$0xff] }
 0x96a   : > { %5842 = vst.msk [vmem:[#allocation4 + $0x650] sm:$0xff] %vm4587_vm15, %v5830_v36  ;;  %5841 = vst.msk [vmem:[#allocation4 + $0x648] sm:$0xff] %vm4587_vm15, %v5828_v7  ;;  %v7785_v34 = vpack.c.bf16 %v6354_v29, %v6353_v20 }
 0x96c   : > { %7786 = vmatpush1.bf16.msra.mxu0 %v7785_v34 }
 0x96d   : > { %v6070_v9 = vpop.permute.xlu0 %6069  ;;  %v6068_v44 = vpop.permute.xlu1 %6067  ;;  %v6332_v52 = vld [vmem:[#allocation4 + $0x6c8] sm:$0xff]  ;;  %7787 = vmatprep.subr.bf16.mxu0 %v8121_v43  ;;  %v6333_v26 = vld [vmem:[#allocation4 + $0x6d0] sm:$0xff] }
 0x96e   : > { %6082 = vst.msk [vmem:[#allocation4 + $0x790] sm:$0xff] %vm4587_vm15, %v6070_v9  ;;  %6081 = vst.msk [vmem:[#allocation4 + $0x788] sm:$0xff] %vm4587_vm15, %v6068_v44  ;;  %v7747_v0 = vpack.c.bf16 %v6332_v52, %v6331_v41 }
 0x970   : > { %7748 = vmatprep.subr.bf16.mxu1 %v7747_v0 }
 0x971   : > { %v5946_v46 = vpop.permute.xlu0 %5945  ;;  %v5924_v21 = vpop.permute.xlu1 %5923  ;;  %v6316_v62 = vld [vmem:[#allocation4 + $0x648] sm:$0xff]  ;;  %v6317_v13 = vld [vmem:[#allocation4 + $0x650] sm:$0xff] }
 0x972   : > { %5960 = vst.msk [vmem:[#allocation4 + $0x6e0] sm:$0xff] %vm4587_vm15, %v5946_v46  ;;  %5934 = vst.msk [vmem:[#allocation4 + $0x6d8] sm:$0xff] %vm4587_vm15, %v5924_v21  ;;  %v7749_v16 = vpack.c.bf16 %v6316_v62, %v6315_v55 }
 0x974   : > { %7750 = vmatpush3.bf16.msra.mxu1 %v7749_v16 }
 0x975   : > { %v5834_v2 = vpop.permute.xlu0 %5833  ;;  %v5832_v40 = vpop.permute.xlu1 %5831  ;;  %v6356_v30 = vld [vmem:[#allocation4 + $0x788] sm:$0xff]  ;;  %v6357_v48 = vld [vmem:[#allocation4 + $0x790] sm:$0xff] }
 0x976   : > { %5844 = vst.msk [vmem:[#allocation4 + $0x660] sm:$0xff] %vm4587_vm15, %v5834_v2  ;;  %5843 = vst.msk [vmem:[#allocation4 + $0x658] sm:$0xff] %vm4587_vm15, %v5832_v40  ;;  %v7788_v39 = vpack.c.bf16 %v6356_v30, %v6355_v35 }
 0x978   : > { %7789 = vmatpush1.bf16.msra.mxu0 %v7788_v39 }
 0x979   : > { %v6074_v31 = vpop.permute.xlu0 %6073  ;;  %v6072_v53 = vpop.permute.xlu1 %6071  ;;  %v6334_v27 = vld [vmem:[#allocation4 + $0x6d8] sm:$0xff]  ;;  %7790 = vmatprep.subr.bf16.mxu0 %v8121_v43  ;;  %v6335_v38 = vld [vmem:[#allocation4 + $0x6e0] sm:$0xff] }
 0x97a   : > { %6084 = vst.msk [vmem:[#allocation4 + $0x7a0] sm:$0xff] %vm4587_vm15, %v6074_v31  ;;  %6083 = vst.msk [vmem:[#allocation4 + $0x798] sm:$0xff] %vm4587_vm15, %v6072_v53  ;;  %v7751_v18 = vpack.c.bf16 %v6334_v27, %v6333_v26 }
 0x97c   : > { %7752 = vmatprep.subr.bf16.mxu1 %v7751_v18 }
 0x97d   : > { %v5950_v11 = vpop.permute.xlu0 %5949  ;;  %v5948_v56 = vpop.permute.xlu1 %5947  ;;  %v6318_v51 = vld [vmem:[#allocation4 + $0x658] sm:$0xff]  ;;  %v6319_v19 = vld [vmem:[#allocation4 + $0x660] sm:$0xff] }
 0x97e   : > { %5962 = vst.msk [vmem:[#allocation4 + $0x6f0] sm:$0xff] %vm4587_vm15, %v5950_v11  ;;  %5961 = vst.msk [vmem:[#allocation4 + $0x6e8] sm:$0xff] %vm4587_vm15, %v5948_v56  ;;  %v7753_v54 = vpack.c.bf16 %v6318_v51, %v6317_v13 }
 0x980   : > { %7754 = vmatpush3.bf16.msra.mxu1 %v7753_v54 }
 0x981   : > { %v5858_v47 = vpop.permute.xlu0 %5857  ;;  %v5856_v22 = vpop.permute.xlu1 %5855  ;;  %v6358_v50 = vld [vmem:[#allocation4 + $0x798] sm:$0xff]  ;;  %v6359_v14 = vld [vmem:[#allocation4 + $0x7a0] sm:$0xff] }
 0x982   : > { %5871 = vst.msk [vmem:[#allocation4 + $0x670] sm:$0xff] %vm4587_vm15, %v5858_v47  ;;  %5870 = vst.msk [vmem:[#allocation4 + $0x668] sm:$0xff] %vm4587_vm15, %v5856_v22  ;;  %v7791_v3 = vpack.c.bf16 %v6358_v50, %v6357_v48 }
 0x984   : > { %7792 = vmatpush1.bf16.msra.mxu0 %v7791_v3 }
 0x985   : > { %v6098_v49 = vpop.permute.xlu0 %6097  ;;  %v6096_v61 = vpop.permute.xlu1 %6095  ;;  %v6336_v17 = vld [vmem:[#allocation4 + $0x6e8] sm:$0xff]  ;;  %7793 = vmatprep.subr.bf16.mxu0 %v8121_v43  ;;  %v6337_v15 = vld [vmem:[#allocation4 + $0x6f0] sm:$0xff] }
 0x986   : > { %6111 = vst.msk [vmem:[#allocation4 + $0x7b0] sm:$0xff] %vm4587_vm15, %v6098_v49  ;;  %6110 = vst.msk [vmem:[#allocation4 + $0x7a8] sm:$0xff] %vm4587_vm15, %v6096_v61  ;;  %v7755_v45 = vpack.c.bf16 %v6336_v17, %v6335_v38 }
 0x988   : > { %7756 = vmatprep.subr.bf16.mxu1 %v7755_v45 }
 0x989   : > { %v6102_v32 = vpop.permute.xlu0 %6101  ;;  %v5952_v60 = vpop.permute.xlu1 %5951  ;;  %v6320_v24 = vld [vmem:[#allocation4 + $0x668] sm:$0xff]  ;;  %v6321_v57 = vld [vmem:[#allocation4 + $0x670] sm:$0xff] }
 0x98a   : > { %6113 = vst.msk [vmem:[#allocation4 + $0x7c0] sm:$0xff] %vm4587_vm15, %v6102_v32  ;;  %5963 = vst.msk [vmem:[#allocation4 + $0x6f8] sm:$0xff] %vm4587_vm15, %v5952_v60  ;;  %v7757_v59 = vpack.c.bf16 %v6320_v24, %v6319_v19 }
 0x98c   : > { %7758 = vmatpush3.bf16.msra.mxu1 %v7757_v59 }
 0x98d   : > { %v5860_v25 = vpop.permute.xlu1 %5859  ;;  %v6360_v1 = vld [vmem:[#allocation4 + $0x7a8] sm:$0xff]  ;;  %v6361_v20 = vld [vmem:[#allocation4 + $0x7b0] sm:$0xff] }
 0x98e   : > { %5872 = vst.msk [vmem:[#allocation4 + $0x678] sm:$0xff] %vm4587_vm15, %v5860_v25  ;;  %v7794_v63 = vpack.c.bf16 %v6360_v1, %v6359_v14 }
 0x98f   : > { %v7396_v6 = vpop.f32.mrb[28].mxu1 }
 0x990   : > { %7795 = vmatpush1.bf16.msra.mxu0 %v7794_v63  ;;  %v7397_v8 = vpop.f32.mrb[29].mxu1 }
 0x991   : > { %v6100_v37 = vpop.permute.xlu1 %6099  ;;  %v6338_v58 = vld [vmem:[#allocation4 + $0x6f8] sm:$0xff]  ;;  %7796 = vmatprep.subr.bf16.mxu0 %v8121_v43  ;;  %v7398_v28 = vadd.f32 %v7397_v8, %v7396_v6  ;;  %v6363_v52 = vld [vmem:[#allocation4 + $0x7c0] sm:$0xff] }
 0x992   : > { %6112 = vst.msk [vmem:[#allocation4 + $0x7b8] sm:$0xff] %vm4587_vm15, %v6100_v37  ;;  %v7759_v12 = vpack.c.bf16 %v6338_v58, %v6337_v15 }
 0x994   : > { %7760 = vmatprep.subr.bf16.mxu1 %v7759_v12 }
 0x995   : > { %v6104_v23 = vpop.permute.xlu1 %6103  ;;  %v6322_v36 = vld [vmem:[#allocation4 + $0x678] sm:$0xff] }
 0x996   : > { %6114 = vst.msk [vmem:[#allocation4 + $0x7c8] sm:$0xff] %vm4587_vm15, %v6104_v23  ;;  %v7761_v7 = vpack.c.bf16 %v6322_v36, %v6321_v57 }
 0x998   : > { %7762 = vmatpush3.bf16.msra.mxu1 %v7761_v7 }
 0x999   : > { %v6362_v29 = vld [vmem:[#allocation4 + $0x7b8] sm:$0xff] }
 0x99a   : > { %v6368_v34 = vpop.permute.xlu0 %6367  ;;  %v7797_v9 = vpack.c.bf16 %v6362_v29, %v6361_v20 }
 0x99b   : > { %v6527_v44 = vadd.f32 %v13551_v42, %v6368_v34  ;;  %6945 = vmatmul.mubr.f32.vlgmr.msra.gmra.mrb[32].mxu1 %v13588_v5 }
 0x99c   : > { %7798 = vmatpush1.bf16.msra.mxu0 %v7797_v9 }
 0x99d   : > { %v6597_v41 = vadd.f32 %v13559_v33, %v6527_v44  ;;  %7799 = vmatprep.subr.bf16.mxu0 %v8121_v43  ;;  %v6364_v0 = vld [vmem:[#allocation4 + $0x7c8] sm:$0xff] }
 0x99e   : > { %v7800_v46 = vpack.c.bf16 %v6364_v0, %v6363_v52 }
 0x99f   : > { %v6667_v21 = vadd.f32 %v7398_v28, %v6597_v41 }
 0x9a0   : > { %7801 = vmatpush1.bf16.msra.mxu0 %v7800_v46 }
 0x9a1   : > { %v6737_v55 = vadd.f32 %v13612_v10, %v6667_v21 }
 0x9a3   : > { %7015 = vmatmul.mubr.f32.vlgmr.msra.gmra.mrb[28].mxu0 %v13568_v4 }
 0x9e3   : > { %v7501_v62 = vpop.f32.mrb[26].mxu0 }
 0x9e4   : > { %v7502_v16 = vpop.f32.mrb[27].mxu0 }
 0x9e5   : > { %v7503_v2 = vadd.f32 %v7502_v16, %v7501_v62 }
 0xa0e   : > { %v7466_v42 = vpop.f32.mrb[30].mxu1 }
 0xa0f   : > { %v7467_v40 = vpop.f32.mrb[31].mxu1 }
 0xa10   : > { %v7468_v5 = vadd.f32 %v7467_v40, %v7466_v42 }
 0xa12   : > { %v6807_v35 = vadd.f32 %v7468_v5, %v6737_v55 }
 0xa14   : > { %v6877_v30 = vadd.f32 %v7503_v2, %v6807_v35 }
 0xa6e   : > { %v7536_v33 = vpop.f32.mrb[32].mxu1 }
 0xa6f   : > { %v7537_v39 = vpop.f32.mrb[33].mxu1 }
 0xa70   : > { %v7538_v43 = vadd.f32 %v7537_v39, %v7536_v33 }
 0xa72   : > { %v6947_v31 = vadd.f32 %v7538_v43, %v6877_v30 }
 0xa76   : > { %v7016_v53 = vpop.f32.mrb[28].mxu0 }
 0xa77   : > { %v7017_v26 = vadd.f32 %v7016_v53, %v6947_v31  ;;  %v7018_v27 = vpop.f32.mrb[29].mxu0 }
 0xa79   : > { %v7021_v18 = vsel %vm683_vm3, %v7017_v26, -inf }
 0xa7a   : > { %v7022_v10 = vrot.slane %v7021_v18, 4 }
 0xa7c   : > { %v7023_v11 = vmax.f32 %v7021_v18, %v7022_v10 }
 0xa7e   : > { %v7024_v4 = vrot.slane %v7023_v11, 2 }
 0xa80   : > { %v7025_v56 = vmax.f32 %v7023_v11, %v7024_v4 }
 0xa82   : > { %v7026_v13 = vrot.slane %v7025_v56, 1 }
 0xa84   : > { %v7027_v51 = vmax.f32 %v7025_v56, %v7026_v13 }
 0xa86   : > { %v7028_v54 = vsub.f32 %v7017_v26, %v7027_v51 }
 0xa88   : > { %v7029_v47 = vmul.f32 1.442695, %v7028_v54 }
 0xa8a   : > { %8039 = vpow2.f32 %v7029_v47 }
 0xa94   : > { %v8040_v22 = vpop.eup %8039 }
 0xa95   : > { %v7031_v48 = vsel %vm683_vm3, %v8040_v22, 0.0 }
 0xa96   : > { %v7032_v50 = vrot.slane %v7031_v48, 4 }
 0xa98   : > { %v7033_v3 = vadd.f32 %v7032_v50, %v7031_v48 }
 0xa9a   : > { %v7034_v49 = vrot.slane %v7033_v3, 2 }
 0xa9c   : > { %v7035_v61 = vadd.f32 %v7034_v49, %v7033_v3 }
 0xa9e   : > { %v7036_v38 = vrot.slane %v7035_v61, 1 }
 0xaa0   : > { %v7037_v17 = vadd.f32 %v7036_v38, %v7035_v61 }
 0xaa2   : > { %8041 = vlog2.f32 %v7037_v17 }
 0xaac   : > { %v8042_v45 = vpop.eup %8041 }
 0xaad   : > { %v7039_v32 = vmul.f32 0.6931472, %v8042_v45 }
 0xaaf   : > { %v7040_v60 = vadd.f32 %v7039_v32, %v7027_v51 }
 0xab1   : > { %v7041_v19 = vsub.f32 %v7017_v26, %v7040_v60 }
 0xab3   : > { %7042 = vst [vmem:[%s8239_s8] sm:$0x3] %v7041_v19 }
 0xab4 PF: > { %s15_s18 = sadd.s32 1, %s8052_s18  }
 0xab5   : > { %p12_p5 = scmp.ge.s32.totalorder %s15_s18, 4  }
 0xab7   :  { %14 = sbr.rel (!%p12_p5) target bundleno = 1 (0x1), region = 74 }

</bundles_post_ra>
